<compile_context>
chip_gen: v7x
topology: tpu7x:2x2x1
jax: 0.10.0
libtpu: 0.0.40
codegen_flags: <defaults>
</compile_context>

<pallas_src>
import jax
import jax.numpy as jnp
import numpy as np
from jax.experimental import pallas as pl
from jax.experimental.pallas import tpu as pltpu

N_EMB_DIM = 60
N_SYMBOL = 26

K_PAD = 32          # fused contraction dim: 26 one-hot + delta + 1 -> pad to 32
DELTA_ROW = 26      # row of the fused weight holding w_delta
ONE_ROW = 27        # row of the fused weight holding the bias
SMALL_BATCH = 1024  # below this, fused XLA beats pallas_call fixed overhead


def _cdiv(a, b):
    return -(-a // b)


def _round_up(x, m):
    return _cdiv(x, m) * m


def net_kernel(cd_ref, w_ref, out_ref):
    """One batch tile.

    cd_ref : (2, TB) f32        row 0 = c_idx (as f32), row 1 = delta
    w_ref  : (K_PAD, 26) f32    fused weight (resident across the grid)
    out_ref: (TB, 26) f32       log-probabilities
    """
    tb = cd_ref.shape[1]

    c_row = cd_ref[0:1, :]                                   # (1, TB)
    d_row = cd_ref[1:2, :]                                   # (1, TB)

    # Transposed activation act_t[k, r]:
    #   k < 26 : one_hot(c_r)[k]    k == 26 : delta_r    k == 27 : 1.0
    # Built only from sublane iota + sublane broadcasts (no in-kernel transpose).
    k_i = jax.lax.broadcasted_iota(jnp.int32, (K_PAD, tb), 0)
    c_b = jnp.broadcast_to(c_row, (K_PAD, tb))
    d_b = jnp.broadcast_to(d_row, (K_PAD, tb))
    act_t = (k_i.astype(jnp.float32) == c_b).astype(jnp.float32)
    act_t = jnp.where(k_i == DELTA_ROW, d_b, act_t)
    act_t = jnp.where(k_i == ONE_ROW, 1.0, act_t)

    # logits[r, n] = sum_k act_t[k, r] * W[k, n]
    #             = w_fused[c_r, n] + delta_r * w_delta[n] + b[n]
    # Transposed-LHS matmul on the MXU -> batch-major output directly.
    logits = jax.lax.dot_general(
        act_t, w_ref[...],
        dimension_numbers=(((0,), (0,)), ((), ())),
        preferred_element_type=jnp.float32)                  # (TB, 26)

    # Numerically stable log-softmax over the 26 live lanes only.
    m = jnp.max(logits, axis=-1, keepdims=True)
    shifted = logits - m
    lse = jnp.log(jnp.sum(jnp.exp(shifted), axis=-1, keepdims=True))
    out_ref[...] = shifted - lse


def _fused_weight(emb_table, w_full, b):
    # one_hot(c) @ (emb_table @ W_emb) == emb_table[c] @ W_emb  -> prefuse.
    w_emb = w_full[:N_EMB_DIM, :]                            # (60, 26)
    w_delta = w_full[N_EMB_DIM, :]                           # (26,)
    w_fused = jnp.dot(emb_table, w_emb,
                      precision=jax.lax.Precision.HIGHEST)   # (26, 26)
    w_all = jnp.zeros((K_PAD, N_SYMBOL), jnp.float32)
    w_all = w_all.at[:N_SYMBOL, :].set(w_fused)
    w_all = w_all.at[DELTA_ROW, :].set(w_delta)
    w_all = w_all.at[ONE_ROW, :].set(b)
    return w_all


def net_forward(c_idx, delta, emb_table, w_full, b, tb=4096):
    """Forward pass of Net.

    c_idx:     (B,)     int   symbol indices in [0, N_SYMBOL)
    delta:     (B,)     f32
    emb_table: (26, 60) f32   nn.Embedding weight
    w_full:    (61, 26) f32   nn.Linear weight, transposed to (in_f, out_f)
    b:         (26,)    f32   nn.Linear bias
    """
    B = c_idx.shape[0]
    w_all = _fused_weight(emb_table, w_full, b)

    # Tiny batches: fixed pallas_call / Mosaic invocation overhead dwarfs the
    # work, so use the same fused algebra directly in XLA.
    if B < SMALL_BATCH:
        logits = (w_all[:N_SYMBOL][c_idx]
                  + delta.astype(jnp.float32)[:, None] * w_all[DELTA_ROW]
                  + w_all[ONE_ROW])
        return jax.nn.log_softmax(logits, axis=-1)

    # Tile: multiple of 128 (lane-dense (2, tb) block), >= 2 grid steps so the
    # "parallel" axis feeds both v7x TensorCores, as large as possible to
    # amortize the ~0.35us/step pipeline overhead.
    tb = min(int(tb), _round_up(_cdiv(B, 2), 128))
    tb = max(128, _round_up(tb, 128))
    b_rows = _round_up(B, tb)
    grid = (b_rows // tb,)

    # Stack per-row scalars as (2, b_rows): one contiguous lane-dense DMA per
    # tile instead of two 4B-per-512B strided column DMAs.
    cd = jnp.stack([c_idx.astype(jnp.float32),
                    delta.astype(jnp.float32)], axis=0)
    if b_rows != B:
        cd = jnp.pad(cd, ((0, 0), (0, b_rows - B)))          # pad rows: c=0, d=0

    # VMEM budget from the actual footprint (double-buffered blocks + softmax
    # temporaries) rather than a blanket 32-48 MiB request.
    out_buf = tb * 128 * 4           # (tb, 26) block, lanes padded to 128
    in_buf = 8 * tb * 4              # (2, tb) block, sublanes padded to 8
    w_buf = K_PAD * 128 * 4
    vmem_limit = int(2 * (out_buf + in_buf + w_buf) + 6 * out_buf + (2 << 20))
    vmem_limit = min(max(vmem_limit, 4 << 20), 48 << 20)

    out = pl.pallas_call(
        net_kernel,
        out_shape=jax.ShapeDtypeStruct((b_rows, N_SYMBOL), jnp.float32),
        grid=grid,
        in_specs=[
            pl.BlockSpec((2, tb), lambda i: (0, i)),             # scalar pair tile
            pl.BlockSpec((K_PAD, N_SYMBOL), lambda i: (0, 0)),   # fused weight
        ],
        out_specs=pl.BlockSpec((tb, N_SYMBOL), lambda i: (i, 0)),
        compiler_params=pltpu.CompilerParams(
            dimension_semantics=("parallel",),
            vmem_limit_bytes=vmem_limit),
    )(cd, w_all)

    # NOTE: c_idx outside [0, N_SYMBOL) silently yields delta/bias-only logits
    # (zero rows of the fused weight); inputs are trusted to be in range.
    return out if b_rows == B else out[:B]


if __name__ == "__main__":
    key = jax.random.PRNGKey(0)
    k_emb, k_w, k_b = jax.random.split(key, 3)

    # Deterministic parameter init (shapes from nn.Embedding / nn.Linear).
    emb_table = jax.random.normal(k_emb, (N_SYMBOL, N_EMB_DIM), jnp.float32)
    bound = 1.0 / np.sqrt(N_EMB_DIM + 1)
    w_full = jax.random.uniform(k_w, (N_EMB_DIM + 1, N_SYMBOL), jnp.float32,
                                minval=-bound, maxval=bound)
    b = jax.random.uniform(k_b, (N_SYMBOL,), jnp.float32,
                           minval=-bound, maxval=bound)

    def reference(c_idx, delta):
        emb_out = emb_table[c_idx]
        final_in = jnp.concatenate([emb_out, delta.reshape(-1, 1)], axis=1)
        logits = jnp.dot(final_in, w_full,
                         precision=jax.lax.Precision.HIGHEST) + b
        return jax.nn.log_softmax(logits, axis=1)

    def check(batch):
        ki, kd = jax.random.split(jax.random.fold_in(key, batch))
        c_idx = jax.random.randint(ki, (batch,), 0, N_SYMBOL, jnp.int32)
        delta = jax.random.normal(kd, (batch,), jnp.float32)
        out = jax.block_until_ready(
            net_forward(c_idx, delta, emb_table, w_full, b))
        np.testing.assert_allclose(np.asarray(out),
                                   np.asarray(reference(c_idx, delta)),
                                   rtol=1e-5, atol=3e-5)

    check(8)       # tiny batch  -> fused XLA fallback path
    check(4096)    # exact tile multiple -> Pallas kernel, grid=2, no epilogue
    check(3000)    # ragged batch -> padded rows + row-slice epilogue, grid=2
    print("KERNEL_OK")
</pallas_src>

<mosaic_0001>
module attributes {stable_mosaic.version = 11 : i64} {
  func.func @net_kernel(%arg0: i32, %arg1: memref<2x2048xf32, #tpu.memory_space<vmem>>, %arg2: memref<32x26xf32, #tpu.memory_space<vmem>>, %arg3: memref<2048x26xf32, #tpu.memory_space<vmem>>) attributes {dimension_semantics = [#tpu.dimension_semantics<parallel>], iteration_bounds = array<i64: 2>, scalar_prefetch = 0 : i64, scratch_operands = 0 : i64, tpu.core_type = #tpu.core_type<tc>, window_params = [{transform_indices = @transform_0, window_bounds = array<i64: 2, 2048>}, {pipeline_mode = #tpu.pipeline_mode<synchronous>, transform_indices = @transform_1, window_bounds = array<i64: 32, 26>}, {transform_indices = @transform_2, window_bounds = array<i64: 2048, 26>}]} {
    %c0 = arith.constant 0 : index
    %c0_0 = arith.constant 0 : index
    %0 = vector.load %arg1[%c0, %c0_0] : memref<2x2048xf32, #tpu.memory_space<vmem>>, vector<1x2048xf32>
    %c1 = arith.constant 1 : index
    %c0_1 = arith.constant 0 : index
    %1 = vector.load %arg1[%c1, %c0_1] : memref<2x2048xf32, #tpu.memory_space<vmem>>, vector<1x2048xf32>
    %2 = tpu.iota {dimensions = array<i32: 0>} : vector<32x2048xi32>
    %3 = vector.shape_cast %0 : vector<1x2048xf32> to vector<1x2048xf32>
    %4 = vector.broadcast %3 : vector<1x2048xf32> to vector<32x2048xf32>
    %5 = vector.shape_cast %1 : vector<1x2048xf32> to vector<1x2048xf32>
    %6 = vector.broadcast %5 : vector<1x2048xf32> to vector<32x2048xf32>
    %7 = arith.sitofp %2 : vector<32x2048xi32> to vector<32x2048xf32>
    %8 = arith.cmpf oeq, %7, %4 : vector<32x2048xf32>
    %9 = arith.extui %8 : vector<32x2048xi1> to vector<32x2048xi32>
    %10 = arith.sitofp %9 : vector<32x2048xi32> to vector<32x2048xf32>
    %c26_i32 = arith.constant 26 : i32
    %11 = vector.broadcast %c26_i32 : i32 to vector<32x2048xi32>
    %12 = arith.cmpi eq, %2, %11 : vector<32x2048xi32>
    %13 = arith.select %12, %6, %10 : vector<32x2048xi1>, vector<32x2048xf32>
    %c27_i32 = arith.constant 27 : i32
    %14 = vector.broadcast %c27_i32 : i32 to vector<32x2048xi32>
    %15 = arith.cmpi eq, %2, %14 : vector<32x2048xi32>
    %cst = arith.constant 1.000000e+00 : f32
    %16 = vector.broadcast %cst : f32 to vector<32x2048xf32>
    %17 = arith.select %15, %16, %13 : vector<32x2048xi1>, vector<32x2048xf32>
    %c0_2 = arith.constant 0 : index
    %c0_3 = arith.constant 0 : index
    %18 = vector.load %arg2[%c0_2, %c0_3] : memref<32x26xf32, #tpu.memory_space<vmem>>, vector<32x26xf32>
    %cst_4 = arith.constant dense<0.000000e+00> : vector<2048x26xf32>
    %19 = tpu.matmul %17, %18, %cst_4 {dimension_numbers = #tpu.dot_dimension_numbers<[0], [0], [1], [1], [0, 1, 1, 1], [], []>} : vector<32x2048xf32>, vector<32x26xf32>, vector<2048x26xf32> -> vector<2048x26xf32>
    %cst_5 = arith.constant dense<0xFF800000> : vector<2048xf32>
    %20 = vector.multi_reduction <maximumf>, %19, %cst_5 [1] : vector<2048x26xf32> to vector<2048xf32>
    %21 = vector.shape_cast %20 : vector<2048xf32> to vector<2048x1xf32>
    %22 = vector.broadcast %21 : vector<2048x1xf32> to vector<2048x26xf32>
    %23 = arith.subf %19, %22 : vector<2048x26xf32>
    %24 = math.exp %23 : vector<2048x26xf32>
    %cst_6 = arith.constant dense<0.000000e+00> : vector<2048xf32>
    %25 = vector.multi_reduction <add>, %24, %cst_6 [1] : vector<2048x26xf32> to vector<2048xf32>
    %26 = vector.shape_cast %25 : vector<2048xf32> to vector<2048x1xf32>
    %27 = math.log %26 : vector<2048x1xf32>
    %28 = vector.broadcast %27 : vector<2048x1xf32> to vector<2048x26xf32>
    %29 = arith.subf %23, %28 : vector<2048x26xf32>
    %c0_7 = arith.constant 0 : index
    %c0_8 = arith.constant 0 : index
    %30 = vector.load %arg3[%c0_7, %c0_8] : memref<2048x26xf32, #tpu.memory_space<vmem>>, vector<2048x26xf32>
    tpu.vector_store %arg3[%c0_7, %c0_8], %29 {strides = array<i32>} : memref<2048x26xf32, #tpu.memory_space<vmem>>, vector<2048x26xf32>,
    return
  }
  func.func @transform_0(%arg0: i32) -> (i32, i32) {
    %c0_i32 = arith.constant 0 : i32
    %c0_i32_0 = arith.constant 0 : i32
    return %c0_i32, %arg0 : i32, i32
  }
  func.func @transform_1(%arg0: i32) -> (i32, i32) {
    %c0_i32 = arith.constant 0 : i32
    %c0_i32_0 = arith.constant 0 : i32
    %c0_i32_1 = arith.constant 0 : i32
    return %c0_i32, %c0_i32_0 : i32, i32
  }
  func.func @transform_2(%arg0: i32) -> (i32, i32) {
    %c0_i32 = arith.constant 0 : i32
    %c0_i32_0 = arith.constant 0 : i32
    return %arg0, %c0_i32 : i32, i32
  }
}

</mosaic_0001>

<bundles_post_ra>
// kernel: tpu_custom_call.1
= control target key start
LH: loop header
LB: loop body
LE: loop exit
PB: predicated region body
PF: predicated region fallthrough
CT: control target
= control target key end

     0   :  { %7 = vsyncpa [#allocation3], 0  ;;  %s13052_s0 = inlined_call_operand.hbm [shape: f32[2,4096], index: 0, kind: input, shape index: {}]   ;;  %s13053_s1 = inlined_call_operand.hbm [shape: f32[32,26], index: 1, kind: input, shape index: {}]   ;;  %s13054_s2 = inlined_call_operand.vmem [shape: f32[4096,26], index: 2, kind: output, shape index: {}]  }
   0x1   :  { %9 = vsyncpa [#allocation3 + $0x1], 0 }
   0x2   :  { %10 = vsyncpa [#allocation5], 0  ;;  %s8921_s9 = smov 0   ;;  %s8923_s10 = smov 0  }
   0x3   :  { %s8925_s11 = smov 0   ;;  %s8927_s12 = smov 0  }
   0x4 LB: > { %s6723_s13 = sadd.s32 4294967295, %s8899_s12   ;;  %p36_p0 = scmp.ne.s32.totalorder %s8891_s10, %s8887_s9  ;;  %s8899_s12 = sphi %s8927_s12, %s14686_s12   ;;  %s8895_s11 = sphi %s8925_s11, %s14685_s11   ;;  %s8891_s10 = sphi %s8923_s10, %s14684_s10   ;;  %s8887_s9 = sphi %s8921_s9, %s14683_s9  }
   0x5   : > { %p8943_p1 = scmp.eq.s32.totalorder %s6723_s13, 0  ;;  %p6725_p2 = scmp.ge.s32.totalorder %s8899_s12, 1 }
   0x6   : > { %p94_p3 = scmp.lt.s32.totalorder %s8899_s12, 3  ;;  %s8901_s17 = smov [#allocation4]  }
   0x7   : > { %s13533_s14 = scalar_select %p8943_p1, 1, 0 }
   0x8   : > { %p8951_p4 = por %p8943_p1, %p36_p0  ;;  %p8955_p5 = pnand %p6725_p2, %p94_p3 }
   0x9   : > { %s106_s18 = sshll.u32 %s8901_s17, 4  ;;  %s8968_s20 = sadd.s32 1, %s8899_s12   ;;  %s107_s18 = int_to_ptr.vmem [resolvable:$true] %s106_s18 }
   0xa   : > { %s13534_s15 = scalar_select %p8951_p4, 1, 0 }
   0xb   : > { %s13535_s16 = scalar_select %p8955_p5, 1, 0 }
   0xc   : > { %p7732_p6 = pneg %p8955_p5  ;;  %s23_s21 = sadd.s32 1, %s8895_s11 }
   0xd   : > { %s20_s22 = ssub.s32 %s8899_s12, %s8968_s20  ;;  %s8803_s25 = scalar_lea.hbm %s13053_s1, 512 }
   0xe   : > { %p8963_p7 = pnand %p7732_p6, %p8943_p1  ;;  %p8804_p8 = scmp.ne.s32.totalorder %s13053_s1, %s8803_s25 }
   0xf   : > { %p8810_p12 = scmp.lt.u32.totalorder %s8803_s25, %s13053_s1 }
  0x10   : > { %p8805_p9 = pneg %p8963_p7 }
  0x12   : > { %p8806_p10 = pnand %p8805_p9, %p8804_p8 }
  0x14   : > { %p8807_p11 = pneg %p8806_p10 }
  0x16   : > { %p8812_p13 = pnand %p8810_p12, %p8807_p11 }
  0x18   : > { %8815 = shalt.err (!%p8812_p13)
}
  0x19   : > { %s8816_s30 = scalar_lea.vmem %s107_s18, 512  ;;  %p8824_p6 = scmp.lt.s32.totalorder %s107_s18, %s107_s18 }
  0x1a   : > { %p8817_p0 = scmp.ne.s32.totalorder %s107_s18, %s8816_s30  ;;  %p8825_p1 = scmp.lt.s32.totalorder %s8816_s30, %s8816_s30 }
  0x1c   : > { %p8819_p2 = pnand %p8817_p0, %p8805_p9  ;;  %p8826_p4 = por %p8825_p1, %p8824_p6 }
  0x1e   : > { %p8820_p3 = pneg %p8819_p2 }
  0x20   : > { %p8827_p5 = pnand %p8826_p4, %p8820_p3 }
  0x22   : > { %8830 = shalt.err (!%p8827_p5)
}
  0x23   : > { %s8902_s3 = smov 128   ;;  %s8903_s4 = smov 8  }
  0x24   : > { %7735 = dma.hbm_to_vmem [thread:$0]  (!%p8963_p7), %s13053_s1, 512, %s107_s18, [#allocation5], %s8902_s3, %s8902_s3, %s8903_s4  }
  0x25   : > { %p21_p8 = scmp.eq.s32.totalorder %s20_s22, 0  ;;  %p30_p9 = scmp.ne.s32.totalorder %s8895_s11, %s8891_s10 }
  0x26   : > { %p31_p1 = scmp.eq.s32.totalorder %s8899_s12, 0  ;;  %p7741_p4 = scmp.lt.s32.totalorder %s8899_s12, 2 }
  0x27   : > { %s8994_s7 = scalar_select %p21_p8, %s8895_s11, %s23_s21  }
  0x28   : > { %p32_p5 = por %p31_p1, %p30_p9  ;;  %s120_s8 = sand.u32 1, %s8895_s11  }
  0x29   : > { %s6728_s9 = sshll.u32 %s120_s8, 5  ;;  %s7061_s17 = sshll.u32 %s8899_s12, 9 }
  0x2a   : > { %s9001_s25 = scalar_lea.hbm %s13052_s0, %s7061_s17  ;;  %s124_s18 = scalar_lea.vmem [#allocation2], %s6728_s9 }
  0x2b   : > { %s132_s19 = sshll.u32 %s124_s18, 4  ;;  %p9005_p7 = pnand %p7741_p4, %p32_p5  ;;  %s9003_s19 = int_to_ptr.vmem [resolvable:$true] %s132_s19 }
  0x2c   : > { %s121_s22 = scalar_lea.sflag [#allocation3], %s120_s8  ;;  %s8831_s26 = scalar_lea.hbm %s9001_s25, 512 }
  0x2d   : > { %p8832_p10 = scmp.ne.s32.totalorder %s9001_s25, %s8831_s26  ;;  %p8833_p11 = pneg %p9005_p7 }
  0x2e   : > { %s8836_s29 = scalar_lea.hbm %s13052_s0, 1024  ;;  %p8837_p0 = scmp.lt.u32.totalorder %s9001_s25, %s13052_s0 }
  0x2f   : > { %p8834_p12 = pnand %p8833_p11, %p8832_p10  ;;  %p8838_p2 = scmp.lt.u32.totalorder %s8836_s29, %s8831_s26 }
  0x30   : > { %p8840_p6 = scmp.lt.u32.totalorder %s8831_s26, %s9001_s25 }
  0x31   : > { %p8835_p13 = pneg %p8834_p12  ;;  %p8839_p3 = por %p8838_p2, %p8837_p0 }
  0x33   : > { %p8841_p8 = por %p8840_p6, %p8839_p3 }
  0x35   : > { %p8842_p9 = pnand %p8841_p8, %p8835_p13 }
  0x37   : > { %8845 = shalt.err (!%p8842_p9)
}
  0x38   : > { %s8846_s4 = scalar_lea.vmem %s9003_s19, 512  ;;  %s8904_s5 = smov [#allocation2]  }
  0x39   : > { %p8847_p1 = scmp.ne.s32.totalorder %s9003_s19, %s8846_s4  ;;  %s8851_s6 = sshll.u32 %s8904_s5, 4  ;;  %s8852_s6 = int_to_ptr.vmem [resolvable:$false] %s8851_s6 }
  0x3a   : > { %s8853_s8 = scalar_lea.vmem %s8852_s6, 1024  ;;  %p8854_p10 = scmp.lt.s32.totalorder %s9003_s19, %s8852_s6 }
  0x3b   : > { %p8849_p4 = pnand %p8847_p1, %p8833_p11  ;;  %p8855_p12 = scmp.lt.s32.totalorder %s8853_s8, %s8846_s4 }
  0x3d   : > { %p8850_p5 = pneg %p8849_p4  ;;  %p8856_p0 = por %p8855_p12, %p8854_p10 }
  0x3f   : > { %p8857_p2 = pnand %p8856_p0, %p8850_p5 }
  0x41   : > { %8860 = shalt.err (!%p8857_p2)
}
  0x42   : > { %7739 = dma.hbm_to_vmem [thread:$0]  (!%p9005_p7), %s9001_s25, 512, %s9003_s19, %s121_s22  }
  0x43   : > { %p13538_p13 = scmp.ne.s32.totalorder %s13535_s16, 0 }
  0x45   : > { %141 = sbr.rel (%p13538_p13) target bundleno = 1814 (0x716), region = 28 }
  0x4c   : > { %s143_s9 = sand.u32 1, %s8891_s10   ;;  %p13539_p11 = scmp.ne.s32.totalorder %s13534_s15, 0 }
  0x4d   : > { %s6732_s17 = sshll.u32 %s143_s9, 5  ;;  %s144_s23 = scalar_lea.sflag [#allocation3], %s143_s9 }
  0x4e   : > { %s9037_s24 = scalar_lea.vmem [#allocation2], %s6732_s17 }
  0x4f   : > { %8878 = dma.done.wait (%p13539_p11), %s144_s23, 512  }
  0x50   : > { %8880 = vsyncadd (%p13539_p11), %s144_s23, 4294966784  ;;  %p13540_p3 = scmp.ne.s32.totalorder %s13533_s14, 0 }
  0x52   : > { %8882 = dma.done.wait (%p13540_p3), [#allocation5], 512  }
  0x53   : > { %8884 = vsyncadd (%p13540_p3), [#allocation5], 4294966784  ;;  %v186_v0 = vlaneseq  ;;  %v9066_v9 = vld [vmem:[%s9037_s24] ss:$2 sm:$0xff]  ;;  %v8905_v14 = vmov 0.0   ;;  %v689_v28 = vld [vmem:[#allocation4 + $0x10] sm:$0xff] }
  0x54   : > { %v9084_v17 = vld [vmem:[%s9037_s24 + $0x1] ss:$2 sm:$0xff]  ;;  %v690_v29 = vld [vmem:[#allocation4 + $0x18] sm:$0xff]  ;;  %s6734_s14 = sshll.u32 %s6723_s13, 8 }
  0x55   : > { %v9047_v1 = vshrl.u32 %v186_v0, 7  ;;  %v687_v24 = vld [vmem:[#allocation4] sm:$0xff]  ;;  %v688_v25 = vld [vmem:[#allocation4 + $0x8] sm:$0xff]  ;;  %v7718_v33 = vpack.c.bf16 %v690_v29, %v689_v28  ;;  %p174_p7 = scmp.lt.s32.totalorder %s6734_s14, 511 }
  0x56   : > { %v7714_v32 = vpack.c.bf16 %v688_v25, %v687_v24 }
  0x57   : > { %v9050_v2 = vsub.s32 1, %v9047_v1  ;;  %v9053_v3 = vsub.s32 0, %v9047_v1  ;;  %v188_v4 = vadd.s32 8, %v9047_v1  ;;  %v189_v5 = vadd.s32 16, %v9047_v1  ;;  %s14688_s14 = smov (!%p174_p7, %s6734_s14), 511 }
  0x58   : > { %v9058_v6 = vadd.s32 24, %v9047_v1  ;;  %v9061_v7 = vcvt.s32.f32 %v9047_v1  ;;  %7715 = vmatprep.subr.bf16.mxu0 %v7714_v32  ;;  %7722 = vmatprep.subr.bf16.mxu1 %v7714_v32  ;;  %v9111_v36 = vsub.s32 3, %v9047_v1  ;;  %v9114_v37 = vsub.s32 2, %v9047_v1  ;;  %s6735_s12 = sshll.u32 %s14688_s14, 3 }
  0x59   : > { %v9063_v8 = vcvt.s32.f32 %v188_v4  ;;  %v200_v10 = vrot.slane %v9066_v9, %v9050_v2  ;;  %v196_v11 = vrot.slane %v9066_v9, %v9053_v3  ;;  %v9075_v13 = vcvt.s32.f32 %v189_v5  ;;  %7717 = vmatpush3.bf16.msra.mxu0 %v7714_v32  ;;  %7724 = vmatpush3.bf16.msra.mxu1 %v7714_v32  ;;  %s11925_s16 = scalar_lea.vmem %s13054_s2, %s6735_s12 }
  0x5a   : > { %v9073_v12 = vcvt.s32.f32 %v9058_v6  ;;  %v282_v20 = vrot.slane %v9084_v17, %v9050_v2  ;;  %v278_v21 = vrot.slane %v9084_v17, %v9053_v3  ;;  %vm554_vm8 = vcmp.eq.s32.totalorder %v9058_v6, 26  ;;  %7719 = vmatprep.subr.bf16.mxu0 %v7718_v33  ;;  %7723 = vmatprep.subr.bf16.mxu1 %v7718_v33 }
  0x5b   : > { %vm360_vm0 = vcmp.eq.f32.partialorder %v9061_v7, %v200_v10  ;;  %vm359_vm1 = vcmp.eq.f32.partialorder %v9061_v7, %v196_v11  ;;  %vm376_vm2 = vcmp.eq.f32.partialorder %v9063_v8, %v200_v10  ;;  %vm375_vm3 = vcmp.eq.f32.partialorder %v9063_v8, %v196_v11 }
  0x5c   : > { %v6740_v15 = vsel %vm360_vm0, 1.0, %v8905_v14  ;;  %v6739_v16 = vsel %vm359_vm1, 1.0, %v8905_v14  ;;  %vm408_vm4 = vcmp.eq.f32.partialorder %v9073_v12, %v200_v10  ;;  %v6756_v18 = vsel %vm376_vm2, 1.0, %v8905_v14 }
  0x5d   : > { %723 = vxpose.xlu1.b32.start [1/4] (short) %v6740_v15, 128  ;;  %691 = vxpose.xlu0.b32.start [1/4] (short) %v6739_v16, 128  ;;  %v6755_v19 = vsel %vm375_vm3, 1.0, %v8905_v14  ;;  %vm407_vm5 = vcmp.eq.f32.partialorder %v9073_v12, %v196_v11  ;;  %vm392_vm6 = vcmp.eq.f32.partialorder %v9075_v13, %v200_v10  ;;  %vm391_vm7 = vcmp.eq.f32.partialorder %v9075_v13, %v196_v11 }
  0x5e   : > { %v6788_v22 = vsel %vm408_vm4, 1.0, %v8905_v14  ;;  %v6787_v23 = vsel %vm407_vm5, 1.0, %v8905_v14  ;;  %v6772_v26 = vsel %vm392_vm6, 1.0, %v8905_v14  ;;  %v6771_v27 = vsel %vm391_vm7, 1.0, %v8905_v14  ;;  %7721 = vmatpush3.bf16.msra.mxu0 %v7718_v33  ;;  %7725 = vmatpush3.bf16.msra.mxu1 %v7718_v33 }
  0x5f   : > { %v604_v30 = vsel %vm554_vm8, %v282_v20, %v6788_v22  ;;  %vm622_vm9 = vcmp.eq.s32.totalorder %v9058_v6, 27  ;;  %v603_v31 = vsel %vm554_vm8, %v278_v21, %v6787_v23  ;;  %v208_v38 = vrot.slane %v9066_v9, %v9111_v36 }
  0x60   : > { %v672_v34 = vsel %vm622_vm9, 1.0, %v604_v30  ;;  %v671_v35 = vsel %vm622_vm9, 1.0, %v603_v31  ;;  %v204_v39 = vrot.slane %v9066_v9, %v9114_v37  ;;  %v290_v44 = vrot.slane %v9084_v17, %v9111_v36 }
  0x61   : > { %724 = vxpose.xlu1.b32.cont [2/4] (short) %v6756_v18, 128  ;;  %692 = vxpose.xlu0.b32.cont [2/4] (short) %v6755_v19, 128  ;;  %vm362_vm10 = vcmp.eq.f32.partialorder %v9061_v7, %v208_v38  ;;  %vm378_vm12 = vcmp.eq.f32.partialorder %v9063_v8, %v208_v38  ;;  %vm410_vm14 = vcmp.eq.f32.partialorder %v9073_v12, %v208_v38  ;;  %v9149_v54 = vsub.s32 5, %v9047_v1 }
  0x62   : > { %vm361_vm11 = vcmp.eq.f32.partialorder %v9061_v7, %v204_v39  ;;  %v6742_v40 = vsel %vm362_vm10, 1.0, %v8905_v14  ;;  %vm377_vm13 = vcmp.eq.f32.partialorder %v9063_v8, %v204_v39  ;;  %vm409_vm15 = vcmp.eq.f32.partialorder %v9073_v12, %v204_v39 }
  0x63   : > { %v6741_v41 = vsel %vm361_vm11, 1.0, %v8905_v14  ;;  %v6758_v42 = vsel %vm378_vm12, 1.0, %v8905_v14  ;;  %v6757_v43 = vsel %vm377_vm13, 1.0, %v8905_v14  ;;  %vm394_vm0 = vcmp.eq.f32.partialorder %v9075_v13, %v208_v38 }
  0x64   : > { %vm393_vm1 = vcmp.eq.f32.partialorder %v9075_v13, %v204_v39  ;;  %v286_v45 = vrot.slane %v9084_v17, %v9114_v37  ;;  %v6790_v46 = vsel %vm410_vm14, 1.0, %v8905_v14  ;;  %v6789_v47 = vsel %vm409_vm15, 1.0, %v8905_v14 }
  0x65   : > { %725 = vxpose.xlu1.b32.cont [3/4] (short) %v6772_v26, 128  ;;  %693 = vxpose.xlu0.b32.cont [3/4] (short) %v6771_v27, 128  ;;  %v6774_v48 = vsel %vm394_vm0, 1.0, %v8905_v14  ;;  %v6773_v49 = vsel %vm393_vm1, 1.0, %v8905_v14  ;;  %v606_v50 = vsel %vm554_vm8, %v290_v44, %v6790_v46  ;;  %v9152_v55 = vsub.s32 4, %v9047_v1 }
  0x66   : > { %v605_v51 = vsel %vm554_vm8, %v286_v45, %v6789_v47  ;;  %v674_v52 = vsel %vm622_vm9, 1.0, %v606_v50  ;;  %v216_v56 = vrot.slane %v9066_v9, %v9149_v54  ;;  %v298_v62 = vrot.slane %v9084_v17, %v9149_v54 }
  0x67   : > { %v673_v53 = vsel %vm622_vm9, 1.0, %v605_v51  ;;  %v212_v57 = vrot.slane %v9066_v9, %v9152_v55  ;;  %v294_v63 = vrot.slane %v9084_v17, %v9152_v55  ;;  %vm1203_vm12 = vcmask 261120  }
  0x68   : > { %vm364_vm2 = vcmp.eq.f32.partialorder %v9061_v7, %v216_v56  ;;  %vm380_vm4 = vcmp.eq.f32.partialorder %v9063_v8, %v216_v56  ;;  %vm412_vm6 = vcmp.eq.f32.partialorder %v9073_v12, %v216_v56  ;;  %vm396_vm10 = vcmp.eq.f32.partialorder %v9075_v13, %v216_v56 }
  0x69   : > { %726 = vxpose.xlu1.b32.end [4/4] (short) %v672_v34, 128  ;;  %694 = vxpose.xlu0.b32.end [4/4] (short) %v671_v35, 128  ;;  %vm363_vm3 = vcmp.eq.f32.partialorder %v9061_v7, %v212_v57  ;;  %v6744_v58 = vsel %vm364_vm2, 1.0, %v8905_v14  ;;  %vm379_vm5 = vcmp.eq.f32.partialorder %v9063_v8, %v212_v57  ;;  %vm411_vm7 = vcmp.eq.f32.partialorder %v9073_v12, %v212_v57 }
  0x6a   : > { %v6743_v59 = vsel %vm363_vm3, 1.0, %v8905_v14  ;;  %v6760_v60 = vsel %vm380_vm4, 1.0, %v8905_v14  ;;  %v6759_v61 = vsel %vm379_vm5, 1.0, %v8905_v14  ;;  %vm395_vm11 = vcmp.eq.f32.partialorder %v9075_v13, %v212_v57 }
  0x6b   : > { %v6792_v0 = vsel %vm412_vm6, 1.0, %v8905_v14  ;;  %v6791_v4 = vsel %vm411_vm7, 1.0, %v8905_v14  ;;  %v6776_v5 = vsel %vm396_vm10, 1.0, %v8905_v14  ;;  %v6775_v10 = vsel %vm395_vm11, 1.0, %v8905_v14 }
  0x6c   : > { %v608_v16 = vsel %vm554_vm8, %v298_v62, %v6792_v0  ;;  %v607_v18 = vsel %vm554_vm8, %v294_v63, %v6791_v4  ;;  %v9223_v44 = vsub.s32 6, %v9047_v1 }
  0x6d   : > { %v676_v19 = vsel %vm622_vm9, 1.0, %v608_v16  ;;  %v675_v20 = vsel %vm622_vm9, 1.0, %v607_v18 }
  0x9a   : > { %787 = vxpose.xlu1.b32.start [1/4] (short) %v6742_v40, 128  ;;  %755 = vxpose.xlu0.b32.start [1/4] (short) %v6741_v41, 128 }
  0x9e   : > { %788 = vxpose.xlu1.b32.cont [2/4] (short) %v6758_v42, 128  ;;  %756 = vxpose.xlu0.b32.cont [2/4] (short) %v6757_v43, 128  ;;  %v9220_v43 = vsub.s32 7, %v9047_v1 }
  0xa0   : > { %v224_v47 = vrot.slane %v9066_v9, %v9220_v43 }
  0xa2   : > { %789 = vxpose.xlu1.b32.cont [3/4] (short) %v6774_v48, 128  ;;  %757 = vxpose.xlu0.b32.cont [3/4] (short) %v6773_v49, 128  ;;  %v220_v48 = vrot.slane %v9066_v9, %v9223_v44  ;;  %vm366_vm13 = vcmp.eq.f32.partialorder %v9061_v7, %v224_v47  ;;  %vm382_vm15 = vcmp.eq.f32.partialorder %v9063_v8, %v224_v47 }
  0xa3   : > { %vm414_vm1 = vcmp.eq.f32.partialorder %v9073_v12, %v224_v47  ;;  %v6762_v57 = vsel %vm382_vm15, 1.0, %v8905_v14  ;;  %vm398_vm3 = vcmp.eq.f32.partialorder %v9075_v13, %v224_v47 }
  0xa4   : > { %vm365_vm14 = vcmp.eq.f32.partialorder %v9061_v7, %v220_v48  ;;  %vm381_vm0 = vcmp.eq.f32.partialorder %v9063_v8, %v220_v48  ;;  %vm413_vm2 = vcmp.eq.f32.partialorder %v9073_v12, %v220_v48  ;;  %vm397_vm4 = vcmp.eq.f32.partialorder %v9075_v13, %v220_v48 }
  0xa5   : > { %v6793_v62 = vsel %vm413_vm2, 1.0, %v8905_v14  ;;  %v6778_v4 = vsel %vm398_vm3, 1.0, %v8905_v14 }
  0xa6   : > { %790 = vxpose.xlu1.b32.end [4/4] (short) %v674_v52, 128  ;;  %758 = vxpose.xlu0.b32.end [4/4] (short) %v673_v53, 128  ;;  %v6746_v52 = vsel %vm366_vm13, 1.0, %v8905_v14  ;;  %v6745_v53 = vsel %vm365_vm14, 1.0, %v8905_v14 }
  0xd7   : > { %851 = vxpose.xlu1.b32.start [1/4] (short) %v6744_v58, 128  ;;  %819 = vxpose.xlu0.b32.start [1/4] (short) %v6743_v59, 128  ;;  %v6761_v58 = vsel %vm381_vm0, 1.0, %v8905_v14  ;;  %v306_v59 = vrot.slane %v9084_v17, %v9220_v43 }
  0xdb   : > { %852 = vxpose.xlu1.b32.cont [2/4] (short) %v6760_v60, 128  ;;  %820 = vxpose.xlu0.b32.cont [2/4] (short) %v6759_v61, 128  ;;  %v302_v60 = vrot.slane %v9084_v17, %v9223_v44  ;;  %v6794_v61 = vsel %vm414_vm1, 1.0, %v8905_v14 }
  0xdc   : > { %v610_v17 = vsel %vm554_vm8, %v306_v59, %v6794_v61 }
  0xdd   : > { %v9178_v11 = vpop.trf.xlu1  ;;  %v707_v15 = vpop.trf.xlu0  ;;  %v678_v18 = vsel %vm622_vm9, 1.0, %v610_v17 }
  0xde   : > { %7330 = vmatprep.mubr.msk.f32.mxu0 %vm1203_vm12, %v707_v15 }
  0xdf   : > { %853 = vxpose.xlu1.b32.cont [3/4] (short) %v6776_v5, 128  ;;  %821 = vxpose.xlu0.b32.cont [3/4] (short) %v6775_v10, 128  ;;  %v6777_v5 = vsel %vm397_vm4, 1.0, %v8905_v14  ;;  %v609_v10 = vsel %vm554_vm8, %v302_v60, %v6793_v62 }
  0xe1   : > { %v9189_v21 = vpop.trf.xlu1  ;;  %v708_v22 = vpop.trf.xlu0 }
  0xe2   : > { %7331 = vmatmul.mubr.msk.f32.vlgmr.msra.gmra.mrb[0].mxu0 %vm1203_vm12, %v708_v22 }
  0xe3   : > { %854 = vxpose.xlu1.b32.end [4/4] (short) %v676_v19, 128  ;;  %822 = vxpose.xlu0.b32.end [4/4] (short) %v675_v20, 128 }
  0xe5   : > { %v9192_v23 = vpop.trf.xlu1  ;;  %v709_v24 = vpop.trf.xlu0 }
  0xe6   : > { %7333 = vmatprep.mubr.msk.f32.mxu0 %vm1203_vm12, %v709_v24 }
  0xe9   : > { %v9195_v25 = vpop.trf.xlu1  ;;  %v710_v26 = vpop.trf.xlu0 }
  0xea   : > { %7334 = vmatmul.mubr.msk.f32.gmra.mrb[2].mxu0 %vm1203_vm12, %v710_v26 }
  0xed   : > { %v9198_v27 = vpop.trf.xlu1  ;;  %v711_v28 = vpop.trf.xlu0 }
  0xee   : > { %7336 = vmatprep.mubr.msk.f32.mxu0 %vm1203_vm12, %v711_v28 }
  0xf1   : > { %v9201_v29 = vpop.trf.xlu1  ;;  %v712_v30 = vpop.trf.xlu0 }
  0xf2   : > { %7337 = vmatmul.mubr.msk.f32.gmra.mrb[4].mxu0 %vm1203_vm12, %v712_v30 }
  0xf5   : > { %v9204_v31 = vpop.trf.xlu1  ;;  %v713_v32 = vpop.trf.xlu0 }
  0xf6   : > { %7339 = vmatprep.mubr.msk.f32.mxu0 %vm1203_vm12, %v713_v32 }
  0xf9   : > { %v9207_v33 = vpop.trf.xlu1  ;;  %v714_v34 = vpop.trf.xlu0 }
  0xfa   : > { %7340 = vmatmul.mubr.msk.f32.gmra.mrb[6].mxu0 %vm1203_vm12, %v714_v34 }
  0xfd   : > { %v9210_v35 = vpop.trf.xlu1  ;;  %v715_v38 = vpop.trf.xlu0 }
  0xfe   : > { %7342 = vmatprep.mubr.msk.f32.mxu0 %vm1203_vm12, %v715_v38 }
 0x101   : > { %v9213_v39 = vpop.trf.xlu1  ;;  %v716_v40 = vpop.trf.xlu0 }
 0x102   : > { %7343 = vmatmul.mubr.msk.f32.gmra.mrb[8].mxu0 %vm1203_vm12, %v716_v40 }
 0x105   : > { %v9216_v41 = vpop.trf.xlu1  ;;  %v717_v42 = vpop.trf.xlu0 }
 0x106   : > { %7345 = vmatprep.mubr.msk.f32.mxu0 %vm1203_vm12, %v717_v42 }
 0x109   : > { %v9225_v45 = vpop.trf.xlu1  ;;  %v718_v46 = vpop.trf.xlu0 }
 0x10a   : > { %7346 = vmatmul.mubr.msk.f32.gmra.mrb[10].mxu0 %vm1203_vm12, %v718_v46 }
 0x10d   : > { %v9232_v49 = vpop.trf.xlu1  ;;  %v719_v50 = vpop.trf.xlu0 }
 0x10e   : > { %7348 = vmatprep.mubr.msk.f32.mxu0 %vm1203_vm12, %v719_v50 }
 0x111   : > { %v9237_v1 = vpop.trf.xlu1  ;;  %v720_v51 = vpop.trf.xlu0 }
 0x112   : > { %7349 = vmatmul.mubr.msk.f32.gmra.mrb[12].mxu0 %vm1203_vm12, %v720_v51 }
 0x115   : > { %v753_v9 = vpop.trf.xlu1  ;;  %v721_v56 = vpop.trf.xlu0  ;;  %915 = vxpose.xlu1.b32.start [1/4] (short) %v6746_v52, 128  ;;  %883 = vxpose.xlu0.b32.start [1/4] (short) %v6745_v53, 128  ;;  %v9353_v53 = vld [vmem:[%s9037_s24 + $0x11] ss:$2 sm:$0xff] }
 0x116   : > { %7351 = vmatprep.mubr.msk.f32.mxu0 %vm1203_vm12, %v721_v56  ;;  %v314_v59 = vrot.slane %v9353_v53, %v9050_v2  ;;  %v310_v60 = vrot.slane %v9353_v53, %v9053_v3 }
 0x119   : > { %v754_v63 = vpop.trf.xlu1  ;;  %v722_v0 = vpop.trf.xlu0  ;;  %916 = vxpose.xlu1.b32.cont [2/4] (short) %v6762_v57, 128  ;;  %884 = vxpose.xlu0.b32.cont [2/4] (short) %v6761_v58, 128 }
 0x11a   : > { %7352 = vmatmul.mubr.msk.f32.gmra.mrb[14].mxu0 %vm1203_vm12, %v722_v0 }
 0x11b   : > { %7354 = vmatprep.mubr.msk.f32.mxu0 %vm1203_vm12, %v9178_v11  ;;  %v677_v11 = vsel %vm622_vm9, 1.0, %v609_v10 }
 0x11d   : > { %v9266_v15 = vpop.trf.xlu1  ;;  %v771_v16 = vpop.trf.xlu0  ;;  %917 = vxpose.xlu1.b32.cont [3/4] (short) %v6778_v4, 128  ;;  %885 = vxpose.xlu0.b32.cont [3/4] (short) %v6777_v5, 128 }
 0x11e   : > { %7355 = vmatmul.mubr.msk.f32.gmra.mrb[16].mxu0 %vm1203_vm12, %v9189_v21 }
 0x11f   : > { %7357 = vmatprep.mubr.msk.f32.mxu0 %vm1203_vm12, %v9192_v23 }
 0x121   : > { %v9276_v19 = vpop.trf.xlu1  ;;  %v772_v20 = vpop.trf.xlu0  ;;  %918 = vxpose.xlu1.b32.end [4/4] (short) %v678_v18, 128  ;;  %886 = vxpose.xlu0.b32.end [4/4] (short) %v677_v11, 128 }
 0x122   : > { %7358 = vmatmul.mubr.msk.f32.gmra.mrb[18].mxu0 %vm1203_vm12, %v9195_v25 }
 0x123   : > { %7360 = vmatprep.mubr.msk.f32.mxu0 %vm1203_vm12, %v9198_v27 }
 0x125   : > { %v9282_v21 = vpop.trf.xlu1  ;;  %v773_v22 = vpop.trf.xlu0 }
 0x126   : > { %7361 = vmatmul.mubr.msk.f32.gmra.mrb[20].mxu0 %vm1203_vm12, %v9201_v29 }
 0x127   : > { %7363 = vmatprep.mubr.msk.f32.mxu0 %vm1203_vm12, %v9204_v31 }
 0x129   : > { %v9288_v23 = vpop.trf.xlu1  ;;  %v774_v24 = vpop.trf.xlu0 }
 0x12a   : > { %7364 = vmatmul.mubr.msk.f32.gmra.mrb[22].mxu0 %vm1203_vm12, %v9207_v33 }
 0x12b   : > { %7366 = vmatprep.mubr.msk.f32.mxu0 %vm1203_vm12, %v9210_v35 }
 0x12d   : > { %v9294_v25 = vpop.trf.xlu1  ;;  %v775_v26 = vpop.trf.xlu0 }
 0x12e   : > { %7367 = vmatmul.mubr.msk.f32.gmra.mrb[24].mxu0 %vm1203_vm12, %v9213_v39 }
 0x12f   : > { %7369 = vmatprep.mubr.msk.f32.mxu0 %vm1203_vm12, %v9216_v41  ;;  %v9328_v41 = vld [vmem:[%s9037_s24 + $0x10] ss:$2 sm:$0xff] }
 0x130   : > { %v232_v46 = vrot.slane %v9328_v41, %v9050_v2  ;;  %v228_v47 = vrot.slane %v9328_v41, %v9053_v3 }
 0x131   : > { %v9300_v27 = vpop.trf.xlu1  ;;  %v776_v28 = vpop.trf.xlu0 }
 0x132   : > { %7370 = vmatmul.mubr.msk.f32.gmra.mrb[26].mxu0 %vm1203_vm12, %v9225_v45  ;;  %vm368_vm5 = vcmp.eq.f32.partialorder %v9061_v7, %v232_v46  ;;  %vm367_vm6 = vcmp.eq.f32.partialorder %v9061_v7, %v228_v47  ;;  %vm384_vm7 = vcmp.eq.f32.partialorder %v9063_v8, %v232_v46  ;;  %vm383_vm10 = vcmp.eq.f32.partialorder %v9063_v8, %v228_v47 }
 0x133   : > { %7372 = vmatprep.mubr.msk.f32.mxu0 %vm1203_vm12, %v9232_v49  ;;  %v6748_v51 = vsel %vm368_vm5, 1.0, %v8905_v14  ;;  %v6747_v52 = vsel %vm367_vm6, 1.0, %v8905_v14  ;;  %vm416_vm11 = vcmp.eq.f32.partialorder %v9073_v12, %v232_v46  ;;  %vm415_vm13 = vcmp.eq.f32.partialorder %v9073_v12, %v228_v47 }
 0x134   : > { %v6764_v57 = vsel %vm384_vm7, 1.0, %v8905_v14  ;;  %v6763_v58 = vsel %vm383_vm10, 1.0, %v8905_v14  ;;  %vm400_vm14 = vcmp.eq.f32.partialorder %v9075_v13, %v232_v46  ;;  %vm399_vm15 = vcmp.eq.f32.partialorder %v9075_v13, %v228_v47 }
 0x135   : > { %v9306_v29 = vpop.trf.xlu1  ;;  %v777_v30 = vpop.trf.xlu0  ;;  %v6796_v61 = vsel %vm416_vm11, 1.0, %v8905_v14  ;;  %v6795_v62 = vsel %vm415_vm13, 1.0, %v8905_v14  ;;  %v6780_v4 = vsel %vm400_vm14, 1.0, %v8905_v14  ;;  %v6779_v5 = vsel %vm399_vm15, 1.0, %v8905_v14 }
 0x136   : > { %7373 = vmatmul.mubr.msk.f32.gmra.mrb[28].mxu0 %vm1203_vm12, %v9237_v1  ;;  %v612_v2 = vsel %vm554_vm8, %v314_v59, %v6796_v61  ;;  %v611_v3 = vsel %vm554_vm8, %v310_v60, %v6795_v62 }
 0x137   : > { %7375 = vmatprep.mubr.msk.f32.mxu0 %vm1203_vm12, %v753_v9 }
 0x139   : > { %v9311_v31 = vpop.trf.xlu1  ;;  %v778_v32 = vpop.trf.xlu0 }
 0x13a   : > { %7376 = vmatmul.mubr.msk.f32.gmra.mrb[30].mxu0 %vm1203_vm12, %v754_v63 }
 0x13b   : > { %7378 = vmatprep.mubr.msk.f32.mxu0 %vm1203_vm12, %v771_v16  ;;  %v680_v16 = vsel %vm622_vm9, 1.0, %v612_v2 }
 0x13d   : > { %v9315_v33 = vpop.trf.xlu1  ;;  %v779_v34 = vpop.trf.xlu0 }
 0x13e   : > { %7379 = vmatmul.mubr.msk.f32.gmra.mrb[32].mxu0 %vm1203_vm12, %v772_v20 }
 0x13f   : > { %7381 = vmatprep.mubr.msk.f32.mxu0 %vm1203_vm12, %v773_v22 }
 0x141   : > { %v9319_v35 = vpop.trf.xlu1  ;;  %v780_v38 = vpop.trf.xlu0 }
 0x142   : > { %7382 = vmatmul.mubr.msk.f32.gmra.mrb[34].mxu0 %vm1203_vm12, %v774_v24 }
 0x143   : > { %7384 = vmatprep.mubr.msk.f32.mxu0 %vm1203_vm12, %v775_v26 }
 0x145   : > { %v9323_v39 = vpop.trf.xlu1  ;;  %v781_v40 = vpop.trf.xlu0 }
 0x146   : > { %7385 = vmatmul.mubr.msk.f32.gmra.mrb[36].mxu0 %vm1203_vm12, %v776_v28 }
 0x147   : > { %7387 = vmatprep.mubr.msk.f32.mxu0 %vm1203_vm12, %v777_v30 }
 0x149   : > { %v9330_v42 = vpop.trf.xlu1  ;;  %v782_v45 = vpop.trf.xlu0 }
 0x14a   : > { %7388 = vmatmul.mubr.msk.f32.gmra.mrb[38].mxu0 %vm1203_vm12, %v778_v32 }
 0x14b   : > { %7390 = vmatprep.mubr.msk.f32.mxu0 %vm1203_vm12, %v779_v34 }
 0x14d   : > { %v9338_v48 = vpop.trf.xlu1  ;;  %v783_v49 = vpop.trf.xlu0 }
 0x14e   : > { %7391 = vmatmul.mubr.msk.f32.gmra.mrb[40].mxu0 %vm1203_vm12, %v780_v38 }
 0x14f   : > { %7393 = vmatprep.mubr.msk.f32.mxu0 %vm1203_vm12, %v781_v40 }
 0x151   : > { %v9344_v50 = vpop.trf.xlu1  ;;  %v784_v1 = vpop.trf.xlu0 }
 0x152   : > { %7394 = vmatmul.mubr.msk.f32.gmra.mrb[42].mxu0 %vm1203_vm12, %v782_v45  ;;  %v236_v45 = vrot.slane %v9328_v41, %v9114_v37 }
 0x153   : > { %7396 = vmatprep.mubr.msk.f32.mxu0 %vm1203_vm12, %v783_v49 }
 0x154   : > { %vm369_vm1 = vcmp.eq.f32.partialorder %v9061_v7, %v236_v45  ;;  %vm385_vm3 = vcmp.eq.f32.partialorder %v9063_v8, %v236_v45  ;;  %vm417_vm5 = vcmp.eq.f32.partialorder %v9073_v12, %v236_v45  ;;  %vm401_vm7 = vcmp.eq.f32.partialorder %v9075_v13, %v236_v45 }
 0x155   : > { %v817_v9 = vpop.trf.xlu1  ;;  %v785_v56 = vpop.trf.xlu0  ;;  %979 = vxpose.xlu1.b32.start [1/4] (short) %v6748_v51, 128  ;;  %947 = vxpose.xlu0.b32.start [1/4] (short) %v6747_v52, 128  ;;  %v6797_v60 = vsel %vm417_vm5, 1.0, %v8905_v14 }
 0x156   : > { %7397 = vmatmul.mubr.msk.f32.gmra.mrb[44].mxu0 %vm1203_vm12, %v784_v1  ;;  %v6749_v1 = vsel %vm369_vm1, 1.0, %v8905_v14 }
 0x157   : > { %7399 = vmatprep.mubr.msk.f32.mxu0 %vm1203_vm12, %v785_v56  ;;  %v6765_v56 = vsel %vm385_vm3, 1.0, %v8905_v14 }
 0x159   : > { %v818_v63 = vpop.trf.xlu1  ;;  %v786_v0 = vpop.trf.xlu0  ;;  %980 = vxpose.xlu1.b32.cont [2/4] (short) %v6764_v57, 128  ;;  %948 = vxpose.xlu0.b32.cont [2/4] (short) %v6763_v58, 128  ;;  %v322_v57 = vrot.slane %v9353_v53, %v9111_v36  ;;  %v318_v58 = vrot.slane %v9353_v53, %v9114_v37 }
 0x15a   : > { %7400 = vmatmul.mubr.msk.f32.gmra.mrb[46].mxu0 %vm1203_vm12, %v786_v0  ;;  %v6781_v0 = vsel %vm401_vm7, 1.0, %v8905_v14 }
 0x15b   : > { %7402 = vmatprep.mubr.msk.f32.mxu0 %vm1203_vm12, %v9266_v15  ;;  %v679_v15 = vsel %vm622_vm9, 1.0, %v611_v3  ;;  %v613_v37 = vsel %vm554_vm8, %v318_v58, %v6797_v60 }
 0x15c   : > { %v681_v3 = vsel %vm622_vm9, 1.0, %v613_v37 }
 0x15d   : > { %v9378_v17 = vpop.trf.xlu1  ;;  %v835_v10 = vpop.trf.xlu0  ;;  %981 = vxpose.xlu1.b32.cont [3/4] (short) %v6780_v4, 128  ;;  %949 = vxpose.xlu0.b32.cont [3/4] (short) %v6779_v5, 128 }
 0x15e   : > { %7403 = vmatmul.mubr.msk.f32.gmra.mrb[48].mxu0 %vm1203_vm12, %v9276_v19 }
 0x15f   : > { %7405 = vmatprep.mubr.msk.f32.mxu0 %vm1203_vm12, %v9282_v21 }
 0x161   : > { %v9388_v18 = vpop.trf.xlu1  ;;  %v836_v11 = vpop.trf.xlu0  ;;  %982 = vxpose.xlu1.b32.end [4/4] (short) %v680_v16, 128  ;;  %950 = vxpose.xlu0.b32.end [4/4] (short) %v679_v15, 128 }
 0x162   : > { %7406 = vmatmul.mubr.msk.f32.gmra.mrb[50].mxu0 %vm1203_vm12, %v9288_v23 }
 0x163   : > { %7408 = vmatprep.mubr.msk.f32.mxu0 %vm1203_vm12, %v9294_v25 }
 0x165   : > { %v9394_v19 = vpop.trf.xlu1  ;;  %v837_v20 = vpop.trf.xlu0 }
 0x166   : > { %7409 = vmatmul.mubr.msk.f32.gmra.mrb[52].mxu0 %vm1203_vm12, %v9300_v27 }
 0x167   : > { %7411 = vmatprep.mubr.msk.f32.mxu0 %vm1203_vm12, %v9306_v29 }
 0x169   : > { %v9400_v21 = vpop.trf.xlu1  ;;  %v838_v22 = vpop.trf.xlu0 }
 0x16a   : > { %7412 = vmatmul.mubr.msk.f32.gmra.mrb[54].mxu0 %vm1203_vm12, %v9311_v31 }
 0x16b   : > { %7414 = vmatprep.mubr.msk.f32.mxu0 %vm1203_vm12, %v9315_v33 }
 0x16d   : > { %v9406_v23 = vpop.trf.xlu1  ;;  %v839_v24 = vpop.trf.xlu0 }
 0x16e   : > { %7415 = vmatmul.mubr.msk.f32.gmra.mrb[56].mxu0 %vm1203_vm12, %v9319_v35 }
 0x16f   : > { %7417 = vmatprep.mubr.msk.f32.mxu0 %vm1203_vm12, %v9323_v39 }
 0x171   : > { %v9412_v25 = vpop.trf.xlu1  ;;  %v840_v26 = vpop.trf.xlu0 }
 0x172   : > { %7418 = vmatmul.mubr.msk.f32.gmra.mrb[58].mxu0 %vm1203_vm12, %v9330_v42  ;;  %v240_v42 = vrot.slane %v9328_v41, %v9111_v36 }
 0x173   : > { %7420 = vmatprep.mubr.msk.f32.mxu0 %vm1203_vm12, %v9338_v48 }
 0x174   : > { %vm370_vm0 = vcmp.eq.f32.partialorder %v9061_v7, %v240_v42  ;;  %vm386_vm2 = vcmp.eq.f32.partialorder %v9063_v8, %v240_v42  ;;  %vm418_vm4 = vcmp.eq.f32.partialorder %v9073_v12, %v240_v42  ;;  %vm402_vm6 = vcmp.eq.f32.partialorder %v9075_v13, %v240_v42 }
 0x175   : > { %v9418_v27 = vpop.trf.xlu1  ;;  %v841_v28 = vpop.trf.xlu0  ;;  %v6798_v59 = vsel %vm418_vm4, 1.0, %v8905_v14 }
 0x176   : > { %7421 = vmatmul.mubr.msk.f32.gmra.mrb[60].mxu0 %vm1203_vm12, %v9344_v50  ;;  %v6750_v50 = vsel %vm370_vm0, 1.0, %v8905_v14  ;;  %v614_v36 = vsel %vm554_vm8, %v322_v57, %v6798_v59 }
 0x177   : > { %7423 = vmatprep.mubr.msk.f32.mxu0 %vm1203_vm12, %v817_v9  ;;  %v6766_v9 = vsel %vm386_vm2, 1.0, %v8905_v14  ;;  %v682_v2 = vsel %vm622_vm9, 1.0, %v614_v36 }
 0x179   : > { %v9423_v29 = vpop.trf.xlu1  ;;  %v842_v30 = vpop.trf.xlu0 }
 0x17a   : > { %7424 = vmatmul.mubr.msk.f32.gmra.mrb[62].mxu0 %vm1203_vm12, %v818_v63  ;;  %v6782_v63 = vsel %vm402_vm6, 1.0, %v8905_v14 }
 0x17b   : > { %7426 = vmatprep.mubr.msk.f32.mxu0 %vm1203_vm12, %v835_v10 }
 0x17d   : > { %v9427_v31 = vpop.trf.xlu1  ;;  %v843_v32 = vpop.trf.xlu0 }
 0x17e   : > { %7427 = vmatmul.mubr.msk.f32.gmra.mrb[64].mxu0 %vm1203_vm12, %v836_v11 }
 0x17f   : > { %7429 = vmatprep.mubr.msk.f32.mxu0 %vm1203_vm12, %v837_v20 }
 0x181   : > { %v9431_v33 = vpop.trf.xlu1  ;;  %v844_v34 = vpop.trf.xlu0 }
 0x182   : > { %7430 = vmatmul.mubr.msk.f32.gmra.mrb[66].mxu0 %vm1203_vm12, %v838_v22 }
 0x183   : > { %7432 = vmatprep.mubr.msk.f32.mxu0 %vm1203_vm12, %v839_v24 }
 0x185   : > { %v9435_v35 = vpop.trf.xlu1  ;;  %v845_v38 = vpop.trf.xlu0 }
 0x186   : > { %7433 = vmatmul.mubr.msk.f32.gmra.mrb[68].mxu0 %vm1203_vm12, %v840_v26 }
 0x187   : > { %7435 = vmatprep.mubr.msk.f32.mxu0 %vm1203_vm12, %v841_v28 }
 0x189   : > { %v9439_v39 = vpop.trf.xlu1  ;;  %v846_v40 = vpop.trf.xlu0 }
 0x18a   : > { %7436 = vmatmul.mubr.msk.f32.gmra.mrb[70].mxu0 %vm1203_vm12, %v842_v30 }
 0x18b   : > { %7438 = vmatprep.mubr.msk.f32.mxu0 %vm1203_vm12, %v843_v32 }
 0x18d   : > { %v9447_v46 = vpop.trf.xlu1  ;;  %v847_v47 = vpop.trf.xlu0 }
 0x18e   : > { %7439 = vmatmul.mubr.msk.f32.gmra.mrb[72].mxu0 %vm1203_vm12, %v844_v34 }
 0x18f   : > { %7441 = vmatprep.mubr.msk.f32.mxu0 %vm1203_vm12, %v845_v38 }
 0x191   : > { %v9453_v48 = vpop.trf.xlu1  ;;  %v848_v49 = vpop.trf.xlu0 }
 0x192   : > { %7442 = vmatmul.mubr.msk.f32.gmra.mrb[74].mxu0 %vm1203_vm12, %v846_v40 }
 0x193   : > { %7444 = vmatprep.mubr.msk.f32.mxu0 %vm1203_vm12, %v847_v47  ;;  %v244_v47 = vrot.slane %v9328_v41, %v9152_v55 }
 0x195   : > { %v881_v51 = vpop.trf.xlu1  ;;  %v849_v52 = vpop.trf.xlu0  ;;  %1043 = vxpose.xlu1.b32.start [1/4] (short) %v6750_v50, 128  ;;  %1011 = vxpose.xlu0.b32.start [1/4] (short) %v6749_v1, 128  ;;  %vm371_vm11 = vcmp.eq.f32.partialorder %v9061_v7, %v244_v47  ;;  %vm387_vm14 = vcmp.eq.f32.partialorder %v9063_v8, %v244_v47  ;;  %vm419_vm0 = vcmp.eq.f32.partialorder %v9073_v12, %v244_v47 }
 0x196   : > { %7445 = vmatmul.mubr.msk.f32.gmra.mrb[76].mxu0 %vm1203_vm12, %v848_v49  ;;  %vm403_vm2 = vcmp.eq.f32.partialorder %v9075_v13, %v244_v47  ;;  %v6799_v37 = vsel %vm419_vm0, 1.0, %v8905_v14 }
 0x197   : > { %7447 = vmatprep.mubr.msk.f32.mxu0 %vm1203_vm12, %v849_v52 }
 0x199   : > { %v882_v61 = vpop.trf.xlu1  ;;  %v850_v62 = vpop.trf.xlu0  ;;  %1044 = vxpose.xlu1.b32.cont [2/4] (short) %v6766_v9, 128  ;;  %1012 = vxpose.xlu0.b32.cont [2/4] (short) %v6765_v56, 128  ;;  %v6751_v56 = vsel %vm371_vm11, 1.0, %v8905_v14 }
 0x19a   : > { %7448 = vmatmul.mubr.msk.f32.gmra.mrb[78].mxu0 %vm1203_vm12, %v850_v62 }
 0x19b   : > { %7450 = vmatprep.mubr.msk.f32.mxu0 %vm1203_vm12, %v9378_v17 }
 0x19d   : > { %v9484_v4 = vpop.trf.xlu1  ;;  %v899_v5 = vpop.trf.xlu0  ;;  %1045 = vxpose.xlu1.b32.cont [3/4] (short) %v6782_v63, 128  ;;  %1013 = vxpose.xlu0.b32.cont [3/4] (short) %v6781_v0, 128  ;;  %v330_v63 = vrot.slane %v9353_v53, %v9149_v54  ;;  %v326_v0 = vrot.slane %v9353_v53, %v9152_v55 }
 0x19e   : > { %7451 = vmatmul.mubr.msk.f32.gmra.mrb[80].mxu0 %vm1203_vm12, %v9388_v18 }
 0x19f   : > { %7453 = vmatprep.mubr.msk.f32.mxu0 %vm1203_vm12, %v9394_v19  ;;  %v615_v55 = vsel %vm554_vm8, %v326_v0, %v6799_v37 }
 0x1a1   : > { %v9494_v17 = vpop.trf.xlu1  ;;  %v900_v10 = vpop.trf.xlu0  ;;  %1046 = vxpose.xlu1.b32.end [4/4] (short) %v682_v2, 128  ;;  %1014 = vxpose.xlu0.b32.end [4/4] (short) %v681_v3, 128 }
 0x1a2   : > { %7454 = vmatmul.mubr.msk.f32.gmra.mrb[82].mxu0 %vm1203_vm12, %v9400_v21 }
 0x1a3   : > { %7456 = vmatprep.mubr.msk.f32.mxu0 %vm1203_vm12, %v9406_v23 }
 0x1a5   : > { %v9500_v16 = vpop.trf.xlu1  ;;  %v901_v15 = vpop.trf.xlu0 }
 0x1a6   : > { %7457 = vmatmul.mubr.msk.f32.gmra.mrb[84].mxu0 %vm1203_vm12, %v9412_v25 }
 0x1a7   : > { %7459 = vmatprep.mubr.msk.f32.mxu0 %vm1203_vm12, %v9418_v27 }
 0x1a9   : > { %v9506_v18 = vpop.trf.xlu1  ;;  %v902_v11 = vpop.trf.xlu0 }
 0x1aa   : > { %7460 = vmatmul.mubr.msk.f32.gmra.mrb[86].mxu0 %vm1203_vm12, %v9423_v29 }
 0x1ab   : > { %7462 = vmatprep.mubr.msk.f32.mxu0 %vm1203_vm12, %v9427_v31 }
 0x1ad   : > { %v9512_v19 = vpop.trf.xlu1  ;;  %v903_v20 = vpop.trf.xlu0 }
 0x1ae   : > { %7463 = vmatmul.mubr.msk.f32.gmra.mrb[88].mxu0 %vm1203_vm12, %v9431_v33 }
 0x1af   : > { %7465 = vmatprep.mubr.msk.f32.mxu0 %vm1203_vm12, %v9435_v35 }
 0x1b1   : > { %v9518_v21 = vpop.trf.xlu1  ;;  %v904_v22 = vpop.trf.xlu0 }
 0x1b2   : > { %7466 = vmatmul.mubr.msk.f32.gmra.mrb[90].mxu0 %vm1203_vm12, %v9439_v39 }
 0x1b3   : > { %7468 = vmatprep.mubr.msk.f32.mxu0 %vm1203_vm12, %v9447_v46  ;;  %v248_v46 = vrot.slane %v9328_v41, %v9149_v54 }
 0x1b5   : > { %v9524_v23 = vpop.trf.xlu1  ;;  %v905_v24 = vpop.trf.xlu0  ;;  %vm372_vm10 = vcmp.eq.f32.partialorder %v9061_v7, %v248_v46  ;;  %vm388_vm13 = vcmp.eq.f32.partialorder %v9063_v8, %v248_v46  ;;  %vm420_vm15 = vcmp.eq.f32.partialorder %v9073_v12, %v248_v46  ;;  %vm404_vm1 = vcmp.eq.f32.partialorder %v9075_v13, %v248_v46 }
 0x1b6   : > { %v9526_v25 = vpop.f32.mrb[0].mxu0  ;;  %7469 = vmatmul.mubr.msk.f32.gmra.mrb[92].mxu0 %vm1203_vm12, %v9453_v48  ;;  %v6752_v9 = vsel %vm372_vm10, 1.0, %v8905_v14  ;;  %v6768_v60 = vsel %vm388_vm13, 1.0, %v8905_v14  ;;  %v6800_v36 = vsel %vm420_vm15, 1.0, %v8905_v14  ;;  %v6784_v3 = vsel %vm404_vm1, 1.0, %v8905_v14 }
 0x1b7   : > { %v9530_v26 = vpop.f32.mrb[1].mxu0  ;;  %7471 = vmatprep.mubr.msk.f32.mxu0 %vm1203_vm12, %v881_v51  ;;  %v616_v54 = vsel %vm554_vm8, %v330_v63, %v6800_v36 }
 0x1b9   : > { %v9533_v27 = vpop.trf.xlu1  ;;  %v906_v28 = vpop.trf.xlu0 }
 0x1ba   : > { %7472 = vmatmul.mubr.msk.f32.gmra.mrb[94].mxu0 %vm1203_vm12, %v882_v61  ;;  %v6767_v61 = vsel %vm387_vm14, 1.0, %v8905_v14 }
 0x1bb   : > { %7474 = vmatprep.mubr.msk.f32.mxu0 %vm1203_vm12, %v899_v5 }
 0x1bd   : > { %v9537_v29 = vpop.trf.xlu1  ;;  %v907_v30 = vpop.trf.xlu0 }
 0x1be   : > { %v9539_v31 = vpop.f32.mrb[2].mxu0  ;;  %7475 = vmatmul.mubr.msk.f32.gmra.mrb[96].mxu0 %vm1203_vm12, %v900_v10  ;;  %v6783_v10 = vsel %vm403_vm2, 1.0, %v8905_v14 }
 0x1bf   : > { %v9542_v32 = vpop.f32.mrb[3].mxu0  ;;  %7477 = vmatprep.mubr.msk.f32.mxu0 %vm1203_vm12, %v901_v15 }
 0x1c1   : > { %v9545_v33 = vpop.trf.xlu1  ;;  %v908_v34 = vpop.trf.xlu0 }
 0x1c2   : > { %7478 = vmatmul.mubr.msk.f32.gmra.mrb[98].mxu0 %vm1203_vm12, %v902_v11 }
 0x1c3   : > { %7480 = vmatprep.mubr.msk.f32.mxu0 %vm1203_vm12, %v903_v20 }
 0x1c5   : > { %v9549_v35 = vpop.trf.xlu1  ;;  %v909_v38 = vpop.trf.xlu0 }
 0x1c6   : > { %v9551_v39 = vpop.f32.mrb[4].mxu0  ;;  %7481 = vmatmul.mubr.msk.f32.gmra.mrb[100].mxu0 %vm1203_vm12, %v904_v22  ;;  %v683_v22 = vsel %vm622_vm9, 1.0, %v615_v55 }
 0x1c7   : > { %v9554_v40 = vpop.f32.mrb[5].mxu0  ;;  %7483 = vmatprep.mubr.msk.f32.mxu0 %vm1203_vm12, %v905_v24 }
 0x1c9   : > { %v9557_v42 = vpop.trf.xlu1  ;;  %v910_v45 = vpop.trf.xlu0 }
 0x1ca   : > { %7484 = vmatmul.mubr.msk.f32.gmra.mrb[102].mxu0 %vm1203_vm12, %v906_v28 }
 0x1cb   : > { %7486 = vmatprep.mubr.msk.f32.mxu0 %vm1203_vm12, %v907_v30 }
 0x1cd   : > { %v9565_v48 = vpop.trf.xlu1  ;;  %v911_v49 = vpop.trf.xlu0 }
 0x1ce   : > { %v9567_v50 = vpop.f32.mrb[6].mxu0  ;;  %7487 = vmatmul.mubr.msk.f32.gmra.mrb[104].mxu0 %vm1203_vm12, %v908_v34 }
 0x1cf   : > { %v9570_v1 = vpop.f32.mrb[7].mxu0  ;;  %7489 = vmatprep.mubr.msk.f32.mxu0 %vm1203_vm12, %v909_v38 }
 0x1d1   : > { %v9575_v51 = vpop.trf.xlu1  ;;  %v912_v52 = vpop.trf.xlu0 }
 0x1d2   : > { %7490 = vmatmul.mubr.msk.f32.gmra.mrb[106].mxu0 %vm1203_vm12, %v910_v45 }
 0x1d3   : > { %7492 = vmatprep.mubr.msk.f32.mxu0 %vm1203_vm12, %v911_v49 }
 0x1d5   : > { %v9583_v57 = vpop.trf.xlu1  ;;  %v913_v58 = vpop.trf.xlu0  ;;  %1107 = vxpose.xlu1.b32.start [1/4] (short) %v6752_v9, 128  ;;  %1075 = vxpose.xlu0.b32.start [1/4] (short) %v6751_v56, 128 }
 0x1d6   : > { %v9587_v59 = vpop.f32.mrb[8].mxu0  ;;  %7493 = vmatmul.mubr.msk.f32.gmra.mrb[108].mxu0 %vm1203_vm12, %v912_v52 }
 0x1d7   : > { %v9592_v62 = vpop.f32.mrb[9].mxu0  ;;  %7495 = vmatprep.mubr.msk.f32.mxu0 %vm1203_vm12, %v913_v58 }
 0x1d9   : > { %v9603_v5 = vpop.trf.xlu1  ;;  %v914_v2 = vpop.trf.xlu0  ;;  %1108 = vxpose.xlu1.b32.cont [2/4] (short) %v6768_v60, 128  ;;  %1076 = vxpose.xlu0.b32.cont [2/4] (short) %v6767_v61, 128 }
 0x1da   : > { %7496 = vmatmul.mubr.msk.f32.gmra.mrb[110].mxu0 %vm1203_vm12, %v914_v2 }
 0x1db   : > { %7498 = vmatprep.mubr.msk.f32.mxu0 %vm1203_vm12, %v9484_v4  ;;  %v684_v4 = vsel %vm622_vm9, 1.0, %v616_v54 }
 0x1dd   : > { %v9614_v15 = vpop.trf.xlu1  ;;  %v963_v11 = vpop.trf.xlu0  ;;  %1109 = vxpose.xlu1.b32.cont [3/4] (short) %v6784_v3, 128  ;;  %1077 = vxpose.xlu0.b32.cont [3/4] (short) %v6783_v10, 128 }
 0x1de   : > { %v9616_v20 = vpop.f32.mrb[10].mxu0  ;;  %7499 = vmatmul.mubr.msk.f32.gmra.mrb[112].mxu0 %vm1203_vm12, %v9494_v17  ;;  %7522 = vmatprep.mubr.msk.f32.mxu1 %vm1203_vm12, %v963_v11 }
 0x1df   : > { %v9625_v24 = vpop.f32.mrb[11].mxu0  ;;  %7501 = vmatprep.mubr.msk.f32.mxu0 %vm1203_vm12, %v9500_v16 }
 0x1e1   : > { %v9629_v28 = vpop.trf.xlu1  ;;  %v964_v30 = vpop.trf.xlu0  ;;  %1110 = vxpose.xlu1.b32.end [4/4] (short) %v684_v4, 128  ;;  %1078 = vxpose.xlu0.b32.end [4/4] (short) %v683_v22, 128  ;;  %v256_v22 = vrot.slane %v9328_v41, %v9220_v43 }
 0x1e2   : > { %7502 = vmatmul.mubr.msk.f32.gmra.mrb[114].mxu0 %vm1203_vm12, %v9506_v18  ;;  %7523 = vmatmul.mubr.msk.f32.vlgmr.msra.gmra.mrb[0].mxu1 %vm1203_vm12, %v964_v30  ;;  %v252_v30 = vrot.slane %v9328_v41, %v9223_v44 }
 0x1e3   : > { %7504 = vmatprep.mubr.msk.f32.mxu0 %vm1203_vm12, %v9512_v19  ;;  %vm374_vm3 = vcmp.eq.f32.partialorder %v9061_v7, %v256_v22  ;;  %vm390_vm5 = vcmp.eq.f32.partialorder %v9063_v8, %v256_v22  ;;  %vm422_vm7 = vcmp.eq.f32.partialorder %v9073_v12, %v256_v22  ;;  %vm406_vm11 = vcmp.eq.f32.partialorder %v9075_v13, %v256_v22 }
 0x1e4   : > { %vm373_vm4 = vcmp.eq.f32.partialorder %v9061_v7, %v252_v30  ;;  %v6754_v41 = vsel %vm374_vm3, 1.0, %v8905_v14  ;;  %vm389_vm6 = vcmp.eq.f32.partialorder %v9063_v8, %v252_v30  ;;  %vm421_vm10 = vcmp.eq.f32.partialorder %v9073_v12, %v252_v30 }
 0x1e5   : > { %v9636_v17 = vpop.trf.xlu1  ;;  %v965_v34 = vpop.trf.xlu0  ;;  %v338_v8 = vrot.slane %v9353_v53, %v9220_v43  ;;  %vm405_vm13 = vcmp.eq.f32.partialorder %v9075_v13, %v252_v30  ;;  %v6801_v12 = vsel %vm421_vm10, 1.0, %v8905_v14  ;;  %v6786_v22 = vsel %vm406_vm11, 1.0, %v8905_v14 }
 0x1e6   : > { %v9638_v38 = vpop.f32.mrb[12].mxu0  ;;  %7505 = vmatmul.mubr.msk.f32.gmra.mrb[116].mxu0 %vm1203_vm12, %v9518_v21  ;;  %7525 = vmatprep.mubr.msk.f32.mxu1 %vm1203_vm12, %v965_v34  ;;  %v6785_v13 = vsel %vm405_vm13, 1.0, %v8905_v14 }
 0x1e7   : > { %v9643_v16 = vpop.f32.mrb[13].mxu0  ;;  %7507 = vmatprep.mubr.msk.f32.mxu0 %vm1203_vm12, %v9524_v23 }
 0x1e9   : > { %v9647_v18 = vpop.trf.xlu1  ;;  %v966_v45 = vpop.trf.xlu0 }
 0x1ea   : > { %7508 = vmatmul.mubr.msk.f32.gmra.mrb[118].mxu0 %vm1203_vm12, %v9533_v27  ;;  %7526 = vmatmul.mubr.msk.f32.gmra.mrb[2].mxu1 %vm1203_vm12, %v966_v45 }
 0x1eb   : > { %7510 = vmatprep.mubr.msk.f32.mxu0 %vm1203_vm12, %v9537_v29 }
 0x1ed   : > { %v9654_v19 = vpop.trf.xlu1  ;;  %v967_v21 = vpop.trf.xlu0 }
 0x1ee   : > { %v9656_v46 = vpop.f32.mrb[14].mxu0  ;;  %7511 = vmatmul.mubr.msk.f32.gmra.mrb[120].mxu0 %vm1203_vm12, %v9545_v33  ;;  %7528 = vmatprep.mubr.msk.f32.mxu1 %vm1203_vm12, %v967_v21 }
 0x1ef   : > { %v9661_v23 = vpop.f32.mrb[15].mxu0  ;;  %7513 = vmatprep.mubr.msk.f32.mxu0 %vm1203_vm12, %v9549_v35 }
 0x1f1   : > { %v9665_v27 = vpop.trf.xlu1  ;;  %v9667_v47 = vpop.f32.mrb[16].mxu0 }
 0x1f2   : > { %v968_v29 = vpop.trf.xlu0  ;;  %v9669_v49 = vpop.f32.mrb[17].mxu0  ;;  %7514 = vmatmul.mubr.msk.f32.gmra.mrb[122].mxu0 %vm1203_vm12, %v9557_v42 }
 0x1f3   : > { %7516 = vmatprep.mubr.msk.f32.mxu0 %vm1203_vm12, %v9565_v48  ;;  %7529 = vmatmul.mubr.msk.f32.gmra.mrb[4].mxu1 %vm1203_vm12, %v968_v29 }
 0x1f5   : > { %v9676_v33 = vpop.trf.xlu1  ;;  %v9678_v52 = vpop.f32.mrb[18].mxu0 }
 0x1f6   : > { %v969_v35 = vpop.trf.xlu0  ;;  %v9680_v9 = vpop.f32.mrb[19].mxu0  ;;  %7517 = vmatmul.mubr.msk.f32.gmra.mrb[124].mxu0 %vm1203_vm12, %v9575_v51 }
 0x1f7   : > { %7519 = vmatprep.mubr.msk.f32.mxu0 %vm1203_vm12, %v9583_v57  ;;  %7531 = vmatprep.mubr.msk.f32.mxu1 %vm1203_vm12, %v969_v35 }
 0x1f9   : > { %v9687_v42 = vpop.trf.xlu1  ;;  %v9689_v48 = vpop.f32.mrb[20].mxu0 }
 0x1fa   : > { %v970_v56 = vpop.trf.xlu0  ;;  %v9691_v58 = vpop.f32.mrb[21].mxu0  ;;  %7520 = vmatmul.mubr.msk.f32.gmra.mrb[126].mxu0 %vm1203_vm12, %v9603_v5 }
 0x1fb   : > { %7532 = vmatmul.mubr.msk.f32.gmra.mrb[6].mxu1 %vm1203_vm12, %v970_v56 }
 0x1fd   : > { %v9696_v60 = vpop.trf.xlu1  ;;  %v9698_v51 = vpop.f32.mrb[22].mxu0 }
 0x1fe   : > { %v971_v61 = vpop.trf.xlu0  ;;  %v9700_v57 = vpop.f32.mrb[23].mxu0 }
 0x1ff   : > { %7534 = vmatprep.mubr.msk.f32.mxu1 %vm1203_vm12, %v971_v61 }
 0x201   : > { %v9703_v63 = vpop.trf.xlu1  ;;  %v9705_v0 = vpop.f32.mrb[24].mxu0 }
 0x202   : > { %v972_v36 = vpop.trf.xlu0  ;;  %v9707_v37 = vpop.f32.mrb[25].mxu0 }
 0x203   : > { %7535 = vmatmul.mubr.msk.f32.gmra.mrb[8].mxu1 %vm1203_vm12, %v972_v36 }
 0x205   : > { %v9710_v5 = vpop.trf.xlu1  ;;  %v9712_v2 = vpop.f32.mrb[26].mxu0 }
 0x206   : > { %v973_v3 = vpop.trf.xlu0  ;;  %v9714_v10 = vpop.f32.mrb[27].mxu0 }
 0x207   : > { %7537 = vmatprep.mubr.msk.f32.mxu1 %vm1203_vm12, %v973_v3  ;;  %v6753_v3 = vsel %vm373_vm4, 1.0, %v8905_v14 }
 0x209   : > { %v9717_v54 = vpop.trf.xlu1  ;;  %v9719_v55 = vpop.f32.mrb[28].mxu0 }
 0x20a   : > { %v974_v11 = vpop.trf.xlu0  ;;  %v9721_v4 = vpop.f32.mrb[29].mxu0 }
 0x20b   : > { %7538 = vmatmul.mubr.msk.f32.gmra.mrb[10].mxu1 %vm1203_vm12, %v974_v11 }
 0x20d   : > { %v9728_v34 = vpop.trf.xlu1  ;;  %v9730_v45 = vpop.f32.mrb[30].mxu0 }
 0x20e   : > { %13541 = vst [vmem:[#allocation8_spill] sm:$0xff] %v9730_v45  ;;  %v975_v21 = vpop.trf.xlu0  ;;  %v9732_v29 = vpop.f32.mrb[31].mxu0 }
 0x20f   : > { %7540 = vmatprep.mubr.msk.f32.mxu1 %vm1203_vm12, %v975_v21 }
 0x211   : > { %v9737_v35 = vpop.trf.xlu1  ;;  %v9739_v56 = vpop.f32.mrb[32].mxu0 }
 0x212   : > { %13542 = vst [vmem:[#allocation9_spill] sm:$0xff] %v9739_v56  ;;  %v976_v61 = vpop.trf.xlu0  ;;  %v9741_v36 = vpop.f32.mrb[33].mxu0 }
 0x213   : > { %13543 = vst [vmem:[#allocation10_spill] sm:$0xff] %v9741_v36  ;;  %7541 = vmatmul.mubr.msk.f32.gmra.mrb[12].mxu1 %vm1203_vm12, %v976_v61  ;;  %v6770_v36 = vsel %vm390_vm5, 1.0, %v8905_v14  ;;  %v6769_v61 = vsel %vm389_vm6, 1.0, %v8905_v14 }
 0x215   : > { %v9748_v11 = vpop.trf.xlu1  ;;  %1171 = vxpose.xlu1.b32.start [1/4] (short) %v6754_v41, 128  ;;  %v9750_v7 = vpop.f32.mrb[34].mxu0  ;;  %v6802_v41 = vsel %vm422_vm7, 1.0, %v8905_v14 }
 0x216   : > { %13544 = vst [vmem:[#allocation11_spill] sm:$0xff] %v9750_v7  ;;  %v977_v21 = vpop.trf.xlu0  ;;  %1139 = vxpose.xlu0.b32.start [1/4] (short) %v6753_v3, 128  ;;  %v9753_v56 = vpop.f32.mrb[35].mxu0  ;;  %v334_v3 = vrot.slane %v9353_v53, %v9223_v44  ;;  %v618_v43 = vsel %vm554_vm8, %v338_v8, %v6802_v41 }
 0x217   : > { %13545 = vst [vmem:[#allocation12_spill] sm:$0xff] %v9753_v56  ;;  %7543 = vmatprep.mubr.msk.f32.mxu1 %vm1203_vm12, %v977_v21  ;;  %v686_v14 = vsel %vm622_vm9, 1.0, %v618_v43 }
 0x218   : > { %v617_v44 = vsel %vm554_vm8, %v334_v3, %v6801_v12  ;;  %vm3317_vm8 = vcmask 211968  }
 0x219   : > { %1172 = vxpose.xlu1.b32.cont [2/4] (short) %v6770_v36, 128  ;;  %v9766_v7 = vpop.f32.mrb[36].mxu0  ;;  %v1010_v21 = vpop.trf.xlu1 }
 0x21a   : > { %1140 = vxpose.xlu0.b32.cont [2/4] (short) %v6769_v61, 128  ;;  %v978_v56 = vpop.trf.xlu0  ;;  %v9769_v45 = vpop.f32.mrb[37].mxu0 }
 0x21b   : > { %7544 = vmatmul.mubr.msk.f32.gmra.mrb[14].mxu1 %vm1203_vm12, %v978_v56 }
 0x21c   : > { %7546 = vmatprep.mubr.msk.f32.mxu1 %vm1203_vm12, %v9614_v15  ;;  %v685_v15 = vsel %vm622_vm9, 1.0, %v617_v44 }
 0x21d   : > { %1173 = vxpose.xlu1.b32.cont [3/4] (short) %v6786_v22, 128  ;;  %v9780_v53 = vpop.f32.mrb[38].mxu0  ;;  %v9782_v30 = vpop.trf.xlu1 }
 0x21e   : > { %1141 = vxpose.xlu0.b32.cont [3/4] (short) %v6785_v13, 128  ;;  %v1027_v36 = vpop.trf.xlu0  ;;  %v9784_v61 = vpop.f32.mrb[39].mxu0 }
 0x21f   : > { %7547 = vmatmul.mubr.msk.f32.gmra.mrb[16].mxu1 %vm1203_vm12, %v9629_v28 }
 0x220   : > { %7549 = vmatprep.mubr.msk.f32.mxu1 %vm1203_vm12, %v9636_v17 }
 0x221   : > { %1174 = vxpose.xlu1.b32.end [4/4] (short) %v686_v14, 128  ;;  %v9794_v56 = vpop.f32.mrb[40].mxu0  ;;  %v9796_v8 = vpop.trf.xlu1 }
 0x222   : > { %1142 = vxpose.xlu0.b32.end [4/4] (short) %v685_v15, 128  ;;  %v1028_v41 = vpop.trf.xlu0  ;;  %v9798_v3 = vpop.f32.mrb[41].mxu0 }
 0x223   : > { %7550 = vmatmul.mubr.msk.f32.gmra.mrb[18].mxu1 %vm1203_vm12, %v9647_v18 }
 0x224   : > { %7552 = vmatprep.mubr.msk.f32.mxu1 %vm1203_vm12, %v9654_v19 }
 0x225   : > { %v9804_v6 = vpop.f32.mrb[42].mxu0  ;;  %v9806_v28 = vpop.trf.xlu1 }
 0x226   : > { %13546 = vst [vmem:[#allocation13_spill] sm:$0xff] %v9804_v6  ;;  %v1029_v17 = vpop.trf.xlu0  ;;  %v9808_v12 = vpop.f32.mrb[43].mxu0 }
 0x227   : > { %13547 = vst [vmem:[#allocation14_spill] sm:$0xff] %v9808_v12  ;;  %7553 = vmatmul.mubr.msk.f32.gmra.mrb[20].mxu1 %vm1203_vm12, %v9665_v27 }
 0x228   : > { %7555 = vmatprep.mubr.msk.f32.mxu1 %vm1203_vm12, %v9676_v33 }
 0x229   : > { %v9814_v22 = vpop.f32.mrb[44].mxu0  ;;  %v9816_v13 = vpop.trf.xlu1 }
 0x22a   : > { %13548 = vst [vmem:[#allocation15_spill] sm:$0xff] %v9814_v22  ;;  %v1030_v18 = vpop.trf.xlu0  ;;  %v9818_v43 = vpop.f32.mrb[45].mxu0 }
 0x22b   : > { %13549 = vst [vmem:[#allocation16_spill] sm:$0xff] %v9818_v43  ;;  %7556 = vmatmul.mubr.msk.f32.gmra.mrb[22].mxu1 %vm1203_vm12, %v9687_v42 }
 0x22c   : > { %7558 = vmatprep.mubr.msk.f32.mxu1 %vm1203_vm12, %v9696_v60 }
 0x22d   : > { %v9824_v19 = vpop.f32.mrb[46].mxu0  ;;  %v9826_v44 = vpop.trf.xlu1 }
 0x22e   : > { %13550 = vst [vmem:[#allocation17_spill] sm:$0xff] %v9824_v19  ;;  %v1031_v27 = vpop.trf.xlu0  ;;  %v9828_v14 = vpop.f32.mrb[47].mxu0 }
 0x22f   : > { %13551 = vst [vmem:[#allocation18_spill] sm:$0xff] %v9828_v14  ;;  %7559 = vmatmul.mubr.msk.f32.gmra.mrb[24].mxu1 %vm1203_vm12, %v9703_v63 }
 0x230   : > { %7561 = vmatprep.mubr.msk.f32.mxu1 %vm1203_vm12, %v9710_v5 }
 0x231   : > { %v9834_v33 = vpop.f32.mrb[48].mxu0  ;;  %v9836_v15 = vpop.trf.xlu1 }
 0x232   : > { %13552 = vst [vmem:[#allocation19_spill] sm:$0xff] %v9834_v33  ;;  %v1032_v42 = vpop.trf.xlu0  ;;  %v9838_v22 = vpop.f32.mrb[49].mxu0 }
 0x233   : > { %13553 = vst [vmem:[#allocation20_spill] sm:$0xff] %v9838_v22  ;;  %7562 = vmatmul.mubr.msk.f32.gmra.mrb[26].mxu1 %vm1203_vm12, %v9717_v54 }
 0x234   : > { %7564 = vmatprep.mubr.msk.f32.mxu1 %vm1203_vm12, %v9728_v34 }
 0x235   : > { %v9844_v60 = vpop.f32.mrb[50].mxu0  ;;  %v9846_v19 = vpop.trf.xlu1 }
 0x236   : > { %13554 = vst [vmem:[#allocation21_spill] sm:$0xff] %v9844_v60  ;;  %v1033_v63 = vpop.trf.xlu0  ;;  %v9848_v14 = vpop.f32.mrb[51].mxu0 }
 0x237   : > { %13555 = vst [vmem:[#allocation22_spill] sm:$0xff] %v9848_v14  ;;  %7565 = vmatmul.mubr.msk.f32.gmra.mrb[28].mxu1 %vm1203_vm12, %v9737_v35 }
 0x238   : > { %7567 = vmatprep.mubr.msk.f32.mxu1 %vm1203_vm12, %v9748_v11 }
 0x239   : > { %v9854_v5 = vpop.f32.mrb[52].mxu0  ;;  %v9856_v33 = vpop.trf.xlu1 }
 0x23a   : > { %13556 = vst [vmem:[#allocation23_spill] sm:$0xff] %v9854_v5  ;;  %v1034_v54 = vpop.trf.xlu0  ;;  %v9858_v22 = vpop.f32.mrb[53].mxu0 }
 0x23b   : > { %13557 = vst [vmem:[#allocation24_spill] sm:$0xff] %v9858_v22  ;;  %7568 = vmatmul.mubr.msk.f32.gmra.mrb[30].mxu1 %vm1203_vm12, %v1010_v21 }
 0x23c   : > { %7570 = vmatprep.mubr.msk.f32.mxu1 %vm1203_vm12, %v1027_v36 }
 0x23d   : > { %v9862_v34 = vpop.f32.mrb[54].mxu0  ;;  %v9864_v60 = vpop.trf.xlu1 }
 0x23e   : > { %13558 = vst [vmem:[#allocation25_spill] sm:$0xff] %v9862_v34  ;;  %v1035_v14 = vpop.trf.xlu0  ;;  %v9866_v35 = vpop.f32.mrb[55].mxu0 }
 0x23f   : > { %13559 = vst [vmem:[#allocation26_spill] sm:$0xff] %v9866_v35  ;;  %7571 = vmatmul.mubr.msk.f32.gmra.mrb[32].mxu1 %vm1203_vm12, %v1028_v41 }
 0x240   : > { %7573 = vmatprep.mubr.msk.f32.mxu1 %vm1203_vm12, %v1029_v17 }
 0x241   : > { %v9870_v11 = vpop.f32.mrb[56].mxu0  ;;  %v9872_v5 = vpop.trf.xlu1 }
 0x242   : > { %13560 = vst [vmem:[#allocation27_spill] sm:$0xff] %v9870_v11  ;;  %v1036_v22 = vpop.trf.xlu0  ;;  %v9874_v43 = vpop.f32.mrb[57].mxu0 }
 0x243   : > { %13561 = vst [vmem:[#allocation28_spill] sm:$0xff] %v9874_v43  ;;  %7574 = vmatmul.mubr.msk.f32.gmra.mrb[34].mxu1 %vm1203_vm12, %v1030_v18 }
 0x244   : > { %7576 = vmatprep.mubr.msk.f32.mxu1 %vm1203_vm12, %v1031_v27 }
 0x245   : > { %v9878_v21 = vpop.f32.mrb[58].mxu0  ;;  %v9880_v36 = vpop.trf.xlu1 }
 0x246   : > { %13562 = vst [vmem:[#allocation29_spill] sm:$0xff] %v9878_v21  ;;  %v1037_v34 = vpop.trf.xlu0  ;;  %v9882_v35 = vpop.f32.mrb[59].mxu0 }
 0x247   : > { %13563 = vst [vmem:[#allocation30_spill] sm:$0xff] %v9882_v35  ;;  %7577 = vmatmul.mubr.msk.f32.gmra.mrb[36].mxu1 %vm1203_vm12, %v1032_v42 }
 0x248   : > { %7579 = vmatprep.mubr.msk.f32.mxu1 %vm1203_vm12, %v1033_v63 }
 0x249   : > { %v9886_v41 = vpop.f32.mrb[60].mxu0  ;;  %v9888_v17 = vpop.trf.xlu1 }
 0x24a   : > { %13564 = vst [vmem:[#allocation31_spill] sm:$0xff] %v9886_v41  ;;  %v1038_v11 = vpop.trf.xlu0  ;;  %v9890_v43 = vpop.f32.mrb[61].mxu0 }
 0x24b   : > { %13565 = vst [vmem:[#allocation32_spill] sm:$0xff] %v9890_v43  ;;  %7580 = vmatmul.mubr.msk.f32.gmra.mrb[38].mxu1 %vm1203_vm12, %v1034_v54 }
 0x24c   : > { %7582 = vmatprep.mubr.msk.f32.mxu1 %vm1203_vm12, %v1035_v14 }
 0x24d   : > { %v9894_v18 = vpop.f32.mrb[62].mxu0  ;;  %v1071_v27 = vpop.trf.xlu1 }
 0x24e   : > { %13566 = vst [vmem:[#allocation33_spill] sm:$0xff] %v9894_v18  ;;  %v1039_v21 = vpop.trf.xlu0  ;;  %v9896_v35 = vpop.f32.mrb[63].mxu0 }
 0x24f   : > { %13567 = vst [vmem:[#allocation34_spill] sm:$0xff] %v9896_v35  ;;  %7583 = vmatmul.mubr.msk.f32.gmra.mrb[40].mxu1 %vm1203_vm12, %v1036_v22 }
 0x250   : > { %7585 = vmatprep.mubr.msk.f32.mxu1 %vm1203_vm12, %v1037_v34 }
 0x251   : > { %v9900_v42 = vpop.f32.mrb[64].mxu0  ;;  %v1072_v63 = vpop.trf.xlu1 }
 0x252   : > { %13568 = vst [vmem:[#allocation35_spill] sm:$0xff] %v9900_v42  ;;  %v1040_v41 = vpop.trf.xlu0  ;;  %v9902_v6 = vpop.f32.mrb[65].mxu0 }
 0x253   : > { %13569 = vst [vmem:[#allocation36_spill] sm:$0xff] %v9902_v6  ;;  %7586 = vmatmul.mubr.msk.f32.gmra.mrb[42].mxu1 %vm1203_vm12, %v1038_v11 }
 0x254   : > { %7588 = vmatprep.mubr.msk.f32.mxu1 %vm1203_vm12, %v1039_v21 }
 0x255   : > { %v9906_v14 = vpop.f32.mrb[66].mxu0  ;;  %v1073_v54 = vpop.trf.xlu1 }
 0x256   : > { %13570 = vst [vmem:[#allocation37_spill] sm:$0xff] %v9906_v14  ;;  %v1041_v18 = vpop.trf.xlu0  ;;  %v9908_v43 = vpop.f32.mrb[67].mxu0 }
 0x257   : > { %13571 = vst [vmem:[#allocation38_spill] sm:$0xff] %v9908_v43  ;;  %7589 = vmatmul.mubr.msk.f32.gmra.mrb[44].mxu1 %vm1203_vm12, %v1040_v41 }
 0x258   : > { %7591 = vmatprep.mubr.msk.f32.mxu1 %vm1203_vm12, %v1041_v18 }
 0x259   : > { %v9912_v22 = vpop.f32.mrb[68].mxu0  ;;  %v1074_v34 = vpop.trf.xlu1 }
 0x25a   : > { %13572 = vst [vmem:[#allocation39_spill] sm:$0xff] %v9912_v22  ;;  %v1042_v42 = vpop.trf.xlu0  ;;  %v9914_v35 = vpop.f32.mrb[69].mxu0 }
 0x25b   : > { %13573 = vst [vmem:[#allocation40_spill] sm:$0xff] %v9914_v35  ;;  %7592 = vmatmul.mubr.msk.f32.gmra.mrb[46].mxu1 %vm1203_vm12, %v1042_v42 }
 0x25c   : > { %7594 = vmatprep.mubr.msk.f32.mxu1 %vm1203_vm12, %v9782_v30 }
 0x25d   : > { %v9919_v11 = vpop.f32.mrb[70].mxu0  ;;  %v9921_v21 = vpop.trf.xlu1 }
 0x25e   : > { %13574 = vst [vmem:[#allocation41_spill] sm:$0xff] %v9919_v11  ;;  %v1091_v14 = vpop.trf.xlu0  ;;  %v9923_v43 = vpop.f32.mrb[71].mxu0 }
 0x25f   : > { %13575 = vst [vmem:[#allocation42_spill] sm:$0xff] %v9923_v43  ;;  %7595 = vmatmul.mubr.msk.f32.gmra.mrb[48].mxu1 %vm1203_vm12, %v9796_v8 }
 0x260   : > { %7597 = vmatprep.mubr.msk.f32.mxu1 %vm1203_vm12, %v9806_v28 }
 0x261   : > { %v9929_v41 = vpop.f32.mrb[72].mxu0  ;;  %v9931_v18 = vpop.trf.xlu1 }
 0x262   : > { %13576 = vst [vmem:[#allocation43_spill] sm:$0xff] %v9929_v41  ;;  %v1092_v42 = vpop.trf.xlu0  ;;  %v9933_v22 = vpop.f32.mrb[73].mxu0 }
 0x263   : > { %13577 = vst [vmem:[#allocation44_spill] sm:$0xff] %v9933_v22  ;;  %7598 = vmatmul.mubr.msk.f32.gmra.mrb[50].mxu1 %vm1203_vm12, %v9816_v13 }
 0x264   : > { %7600 = vmatprep.mubr.msk.f32.mxu1 %vm1203_vm12, %v9826_v44 }
 0x265   : > { %v9939_v30 = vpop.f32.mrb[74].mxu0  ;;  %v9941_v11 = vpop.trf.xlu1 }
 0x266   : > { %13578 = vst [vmem:[#allocation45_spill] sm:$0xff] %v9939_v30  ;;  %v1093_v8 = vpop.trf.xlu0  ;;  %v9943_v43 = vpop.f32.mrb[75].mxu0 }
 0x267   : > { %13579 = vst [vmem:[#allocation46_spill] sm:$0xff] %v9943_v43  ;;  %7601 = vmatmul.mubr.msk.f32.gmra.mrb[52].mxu1 %vm1203_vm12, %v9836_v15 }
 0x268   : > { %7603 = vmatprep.mubr.msk.f32.mxu1 %vm1203_vm12, %v9846_v19 }
 0x269   : > { %v9949_v28 = vpop.f32.mrb[76].mxu0  ;;  %v9951_v41 = vpop.trf.xlu1 }
 0x26a   : > { %13580 = vst [vmem:[#allocation47_spill] sm:$0xff] %v9949_v28  ;;  %v1094_v13 = vpop.trf.xlu0  ;;  %v9953_v22 = vpop.f32.mrb[77].mxu0 }
 0x26b   : > { %13581 = vst [vmem:[#allocation48_spill] sm:$0xff] %v9953_v22  ;;  %7604 = vmatmul.mubr.msk.f32.gmra.mrb[54].mxu1 %vm1203_vm12, %v9856_v33 }
 0x26c   : > { %7606 = vmatprep.mubr.msk.f32.mxu1 %vm1203_vm12, %v9864_v60 }
 0x26d   : > { %v9959_v44 = vpop.f32.mrb[78].mxu0  ;;  %v9961_v30 = vpop.trf.xlu1 }
 0x26e   : > { %13582 = vst [vmem:[#allocation49_spill] sm:$0xff] %v9959_v44  ;;  %v1095_v15 = vpop.trf.xlu0  ;;  %v9963_v43 = vpop.f32.mrb[79].mxu0 }
 0x26f   : > { %13583 = vst [vmem:[#allocation50_spill] sm:$0xff] %v9963_v43  ;;  %7607 = vmatmul.mubr.msk.f32.gmra.mrb[56].mxu1 %vm1203_vm12, %v9872_v5 }
 0x270   : > { %7609 = vmatprep.mubr.msk.f32.mxu1 %vm1203_vm12, %v9880_v36  ;;  %v3321_v36 = vsel %vm3317_vm8, %v9526_v25, -inf }
 0x271   : > { %v9969_v19 = vpop.f32.mrb[80].mxu0  ;;  %v9971_v28 = vpop.trf.xlu1 }
 0x272   : > { %13584 = vst [vmem:[#allocation51_spill] sm:$0xff] %v9969_v19  ;;  %v1096_v33 = vpop.trf.xlu0  ;;  %v9973_v22 = vpop.f32.mrb[81].mxu0 }
 0x273   : > { %13585 = vst [vmem:[#allocation52_spill] sm:$0xff] %v9973_v22  ;;  %7610 = vmatmul.mubr.msk.f32.gmra.mrb[58].mxu1 %vm1203_vm12, %v9888_v17 }
 0x274   : > { %7612 = vmatprep.mubr.msk.f32.mxu1 %vm1203_vm12, %v1071_v27 }
 0x275   : > { %v9978_v60 = vpop.f32.mrb[82].mxu0  ;;  %v9980_v44 = vpop.trf.xlu1 }
 0x276   : > { %13586 = vst [vmem:[#allocation53_spill] sm:$0xff] %v9978_v60  ;;  %v1097_v5 = vpop.trf.xlu0  ;;  %v9982_v43 = vpop.f32.mrb[83].mxu0  ;;  %v3324_v60 = vsel %vm3317_vm8, %v9542_v32, -inf }
 0x277   : > { %13587 = vst [vmem:[#allocation54_spill] sm:$0xff] %v9982_v43  ;;  %7613 = vmatmul.mubr.msk.f32.gmra.mrb[60].mxu1 %vm1203_vm12, %v1072_v63 }
 0x278   : > { %3322 = vmax.xlane.f32.xlu1 %v3321_v36  ;;  %7615 = vmatprep.mubr.msk.f32.mxu1 %vm1203_vm12, %v1073_v54 }
 0x279   : > { %v9988_v19 = vpop.f32.mrb[84].mxu0  ;;  %v9990_v17 = vpop.trf.xlu1 }
 0x27a   : > { %13588 = vst [vmem:[#allocation55_spill] sm:$0xff] %v9988_v19  ;;  %v1098_v27 = vpop.trf.xlu0  ;;  %v9992_v22 = vpop.f32.mrb[85].mxu0  ;;  %v3318_v19 = vsel %vm3317_vm8, %v9530_v26, -inf }
 0x27b   : > { %13589 = vst [vmem:[#allocation56_spill] sm:$0xff] %v9992_v22  ;;  %7616 = vmatmul.mubr.msk.f32.gmra.mrb[62].mxu1 %vm1203_vm12, %v1074_v34  ;;  %v3327_v34 = vsel %vm3317_vm8, %v9539_v31, -inf }
 0x27c   : > { %3325 = vmax.xlane.f32.xlu1 %v3324_v60  ;;  %7618 = vmatprep.mubr.msk.f32.mxu1 %vm1203_vm12, %v1091_v14 }
 0x27d   : > { %v9998_v63 = vpop.f32.mrb[86].mxu0  ;;  %v10000_v36 = vpop.trf.xlu1 }
 0x27e   : > { %13590 = vst [vmem:[#allocation57_spill] sm:$0xff] %v9998_v63  ;;  %v1099_v54 = vpop.trf.xlu0  ;;  %v10002_v43 = vpop.f32.mrb[87].mxu0 }
 0x27f   : > { %13591 = vst [vmem:[#allocation58_spill] sm:$0xff] %v10002_v43  ;;  %3319 = vmax.xlane.f32.xlu0 %v3318_v19  ;;  %7619 = vmatmul.mubr.msk.f32.gmra.mrb[64].mxu1 %vm1203_vm12, %v1092_v42  ;;  %v3330_v43 = vsel %vm3317_vm8, %v9554_v40, -inf  ;;  %v3333_v42 = vsel %vm3317_vm8, %v9551_v39, -inf }
 0x280   : > { %3328 = vmax.xlane.f32.xlu1 %v3327_v34  ;;  %7621 = vmatprep.mubr.msk.f32.mxu1 %vm1203_vm12, %v1093_v8 }
 0x281   : > { %v10010_v14 = vpop.f32.mrb[88].mxu0  ;;  %v10012_v60 = vpop.trf.xlu1 }
 0x282   : > { %13592 = vst [vmem:[#allocation59_spill] sm:$0xff] %v10010_v14  ;;  %v1100_v63 = vpop.trf.xlu0  ;;  %v10014_v22 = vpop.f32.mrb[89].mxu0 }
 0x283   : > { %13593 = vst [vmem:[#allocation60_spill] sm:$0xff] %v10014_v22  ;;  %3331 = vmax.xlane.f32.xlu0 %v3330_v43  ;;  %7622 = vmatmul.mubr.msk.f32.gmra.mrb[66].mxu1 %vm1203_vm12, %v1094_v13  ;;  %v3336_v22 = vsel %vm3317_vm8, %v9570_v1, -inf  ;;  %v3339_v43 = vsel %vm3317_vm8, %v9567_v50, -inf }
 0x284   : > { %3334 = vmax.xlane.f32.xlu1 %v3333_v42  ;;  %7624 = vmatprep.mubr.msk.f32.mxu1 %vm1203_vm12, %v1095_v15 }
 0x285   : > { %v10022_v8 = vpop.f32.mrb[90].mxu0  ;;  %v10024_v19 = vpop.trf.xlu1 }
 0x286   : > { %13594 = vst [vmem:[#allocation61_spill] sm:$0xff] %v10022_v8  ;;  %v1101_v34 = vpop.trf.xlu0  ;;  %v10026_v14 = vpop.f32.mrb[91].mxu0 }
 0x287   : > { %13595 = vst [vmem:[#allocation62_spill] sm:$0xff] %v10026_v14  ;;  %3337 = vmax.xlane.f32.xlu0 %v3336_v22  ;;  %7625 = vmatmul.mubr.msk.f32.gmra.mrb[68].mxu1 %vm1203_vm12, %v1096_v33  ;;  %v3342_v14 = vsel %vm3317_vm8, %v9592_v62, -inf  ;;  %v3345_v22 = vsel %vm3317_vm8, %v9587_v59, -inf }
 0x288   : > { %3340 = vmax.xlane.f32.xlu1 %v3339_v43  ;;  %7627 = vmatprep.mubr.msk.f32.mxu1 %vm1203_vm12, %v1097_v5 }
 0x289   : > { %v10034_v13 = vpop.f32.mrb[92].mxu0  ;;  %v10036_v15 = vpop.trf.xlu1 }
 0x28a   : > { %13596 = vst [vmem:[#allocation63_spill] sm:$0xff] %v10034_v13  ;;  %v1102_v42 = vpop.trf.xlu0  ;;  %v10038_v8 = vpop.f32.mrb[93].mxu0 }
 0x28b   : > { %13597 = vst [vmem:[#allocation64_spill] sm:$0xff] %v10038_v8  ;;  %3343 = vmax.xlane.f32.xlu0 %v3342_v14  ;;  %7628 = vmatmul.mubr.msk.f32.gmra.mrb[70].mxu1 %vm1203_vm12, %v1098_v27  ;;  %v3348_v8 = vsel %vm3317_vm8, %v9625_v24, -inf  ;;  %v3351_v27 = vsel %vm3317_vm8, %v9616_v20, -inf }
 0x28c   : > { %3346 = vmax.xlane.f32.xlu1 %v3345_v22  ;;  %7630 = vmatprep.mubr.msk.f32.mxu1 %vm1203_vm12, %v1099_v54 }
 0x28d   : > { %v10046_v33 = vpop.f32.mrb[94].mxu0  ;;  %v10048_v5 = vpop.trf.xlu1 }
 0x28e   : > { %13598 = vst [vmem:[#allocation65_spill] sm:$0xff] %v10046_v33  ;;  %v1103_v43 = vpop.trf.xlu0  ;;  %v10050_v13 = vpop.f32.mrb[95].mxu0 }
 0x28f   : > { %13599 = vst [vmem:[#allocation66_spill] sm:$0xff] %v10050_v13  ;;  %3349 = vmax.xlane.f32.xlu0 %v3348_v8  ;;  %7631 = vmatmul.mubr.msk.f32.gmra.mrb[72].mxu1 %vm1203_vm12, %v1100_v63  ;;  %v3354_v13 = vsel %vm3317_vm8, %v9643_v16, -inf  ;;  %v3357_v63 = vsel %vm3317_vm8, %v9638_v38, -inf }
 0x290   : > { %3352 = vmax.xlane.f32.xlu1 %v3351_v27  ;;  %7633 = vmatprep.mubr.msk.f32.mxu1 %vm1203_vm12, %v1101_v34 }
 0x291   : > { %v10058_v54 = vpop.f32.mrb[96].mxu0  ;;  %v10060_v14 = vpop.trf.xlu1 }
 0x292   : > { %13600 = vst [vmem:[#allocation67_spill] sm:$0xff] %v10058_v54  ;;  %v1104_v22 = vpop.trf.xlu0  ;;  %v10062_v33 = vpop.f32.mrb[97].mxu0 }
 0x293   : > { %13601 = vst [vmem:[#allocation68_spill] sm:$0xff] %v10062_v33  ;;  %3355 = vmax.xlane.f32.xlu0 %v3354_v13  ;;  %7634 = vmatmul.mubr.msk.f32.gmra.mrb[74].mxu1 %vm1203_vm12, %v1102_v42  ;;  %v3360_v33 = vsel %vm3317_vm8, %v9661_v23, -inf  ;;  %v3363_v13 = vsel %vm3317_vm8, %v9656_v46, -inf }
 0x294   : > { %3358 = vmax.xlane.f32.xlu1 %v3357_v63  ;;  %7636 = vmatprep.mubr.msk.f32.mxu1 %vm1203_vm12, %v1103_v43 }
 0x295   : > { %v10070_v8 = vpop.f32.mrb[98].mxu0  ;;  %v10072_v34 = vpop.trf.xlu1 }
 0x296   : > { %13602 = vst [vmem:[#allocation69_spill] sm:$0xff] %v10070_v8  ;;  %v1105_v27 = vpop.trf.xlu0  ;;  %v10074_v54 = vpop.f32.mrb[99].mxu0 }
 0x297   : > { %13603 = vst [vmem:[#allocation70_spill] sm:$0xff] %v10074_v54  ;;  %3361 = vmax.xlane.f32.xlu0 %v3360_v33  ;;  %7637 = vmatmul.mubr.msk.f32.gmra.mrb[76].mxu1 %vm1203_vm12, %v1104_v22  ;;  %v3366_v54 = vsel %vm3317_vm8, %v9669_v49, -inf  ;;  %v3369_v33 = vsel %vm3317_vm8, %v9667_v47, -inf }
 0x298   : > { %3364 = vmax.xlane.f32.xlu1 %v3363_v13  ;;  %7639 = vmatprep.mubr.msk.f32.mxu1 %vm1203_vm12, %v1105_v27 }
 0x299   : > { %v10082_v42 = vpop.f32.mrb[100].mxu0  ;;  %v10084_v43 = vpop.trf.xlu1 }
 0x29a   : > { %13604 = vst [vmem:[#allocation71_spill] sm:$0xff] %v10082_v42  ;;  %v1106_v63 = vpop.trf.xlu0  ;;  %v10086_v8 = vpop.f32.mrb[101].mxu0 }
 0x29b   : > { %3367 = vmax.xlane.f32.xlu0 %v3366_v54  ;;  %7640 = vmatmul.mubr.msk.f32.gmra.mrb[78].mxu1 %vm1203_vm12, %v1106_v63  ;;  %v3372_v54 = vsel %vm3317_vm8, %v9680_v9, -inf  ;;  %v3375_v63 = vsel %vm3317_vm8, %v9678_v52, -inf }
 0x29c   : > { %7642 = vmatprep.mubr.msk.f32.mxu1 %vm1203_vm12, %v9921_v21  ;;  %3370 = vmax.xlane.f32.xlu1 %v3369_v33 }
 0x29d   : > { %v10095_v22 = vpop.f32.mrb[102].mxu0  ;;  %v10097_v27 = vpop.trf.xlu1 }
 0x29e   : > { %13605 = vst [vmem:[#allocation72_spill] sm:$0xff] %v10095_v22  ;;  %v10099_v13 = vpop.trf.xlu0  ;;  %v10101_v42 = vpop.f32.mrb[103].mxu0 }
 0x29f   : > { %13606 = vst [vmem:[#allocation73_spill] sm:$0xff] %v10101_v42  ;;  %3373 = vmax.xlane.f32.xlu0 %v3372_v54  ;;  %7643 = vmatmul.mubr.msk.f32.gmra.mrb[80].mxu1 %vm1203_vm12, %v9931_v18  ;;  %v3378_v54 = vsel %vm3317_vm8, %v9691_v58, -inf  ;;  %v3381_v18 = vsel %vm3317_vm8, %v9689_v48, -inf }
 0x2a0   : > { %7645 = vmatprep.mubr.msk.f32.mxu1 %vm1203_vm12, %v9941_v11  ;;  %3376 = vmax.xlane.f32.xlu1 %v3375_v63 }
 0x2a1   : > { %v10111_v21 = vpop.f32.mrb[104].mxu0  ;;  %v10113_v33 = vpop.trf.xlu1 }
 0x2a2   : > { %13607 = vst [vmem:[#allocation74_spill] sm:$0xff] %v10111_v21  ;;  %v10115_v22 = vpop.trf.xlu0  ;;  %v10117_v42 = vpop.f32.mrb[105].mxu0 }
 0x2a3   : > { %13608 = vst [vmem:[#allocation75_spill] sm:$0xff] %v10117_v42  ;;  %3379 = vmax.xlane.f32.xlu0 %v3378_v54  ;;  %7646 = vmatmul.mubr.msk.f32.gmra.mrb[82].mxu1 %vm1203_vm12, %v9951_v41  ;;  %v3384_v42 = vsel %vm3317_vm8, %v9700_v57, -inf  ;;  %v3387_v41 = vsel %vm3317_vm8, %v9698_v51, -inf }
 0x2a4   : > { %7648 = vmatprep.mubr.msk.f32.mxu1 %vm1203_vm12, %v9961_v30  ;;  %3382 = vmax.xlane.f32.xlu1 %v3381_v18 }
 0x2a5   : > { %v10127_v11 = vpop.f32.mrb[106].mxu0  ;;  %v10139_v54 = vpop.trf.xlu1 }
 0x2a6   : > { %13609 = vst [vmem:[#allocation76_spill] sm:$0xff] %v10127_v11  ;;  %v10129_v63 = vpop.trf.xlu0  ;;  %v10131_v21 = vpop.f32.mrb[107].mxu0 }
 0x2a7   : > { %13610 = vst [vmem:[#allocation77_spill] sm:$0xff] %v10131_v21  ;;  %3385 = vmax.xlane.f32.xlu0 %v3384_v42  ;;  %7649 = vmatmul.mubr.msk.f32.gmra.mrb[84].mxu1 %vm1203_vm12, %v9971_v28  ;;  %v3390_v42 = vsel %vm3317_vm8, %v9707_v37, -inf  ;;  %v3393_v28 = vsel %vm3317_vm8, %v9705_v0, -inf }
 0x2a8   : > { %7651 = vmatprep.mubr.msk.f32.mxu1 %vm1203_vm12, %v9980_v44  ;;  %3388 = vmax.xlane.f32.xlu1 %v3387_v41 }
 0x2a9   : > { %v10143_v30 = vpop.f32.mrb[108].mxu0  ;;  %v10159_v41 = vpop.trf.xlu1 }
 0x2aa   : > { %13611 = vst [vmem:[#allocation78_spill] sm:$0xff] %v10143_v30  ;;  %v10145_v18 = vpop.trf.xlu0  ;;  %v10147_v11 = vpop.f32.mrb[109].mxu0 }
 0x2ab   : > { %13612 = vst [vmem:[#allocation79_spill] sm:$0xff] %v10147_v11  ;;  %3391 = vmax.xlane.f32.xlu0 %v3390_v42  ;;  %7652 = vmatmul.mubr.msk.f32.gmra.mrb[86].mxu1 %vm1203_vm12, %v9990_v17  ;;  %v3396_v11 = vsel %vm3317_vm8, %v9714_v10, -inf  ;;  %v3399_v17 = vsel %vm3317_vm8, %v9712_v2, -inf }
 0x2ac   : > { %7654 = vmatprep.mubr.msk.f32.mxu1 %vm1203_vm12, %v10000_v36  ;;  %3394 = vmax.xlane.f32.xlu1 %v3393_v28 }
 0x2ad   : > { %v10157_v44 = vpop.f32.mrb[110].mxu0 }
 0x2ae   : > { %13613 = vst [vmem:[#allocation80_spill] sm:$0xff] %v10157_v44  ;;  %v1159_v30 = vpop.trf.xlu0  ;;  %v10163_v21 = vpop.f32.mrb[111].mxu0  ;;  %v3402_v44 = vsel %vm3317_vm8, %v9721_v4, -inf }
 0x2af   : > { %13614 = vst [vmem:[#allocation81_spill] sm:$0xff] %v10163_v21  ;;  %3397 = vmax.xlane.f32.xlu0 %v3396_v11  ;;  %7655 = vmatmul.mubr.msk.f32.gmra.mrb[88].mxu1 %vm1203_vm12, %v10012_v60  ;;  %v3405_v60 = vsel %vm3317_vm8, %v9719_v55, -inf  ;;  %v13624_v21 = vld [vmem:[#allocation10_spill] sm:$0xff] }
 0x2b0   : > { %7657 = vmatprep.mubr.msk.f32.mxu1 %vm1203_vm12, %v10024_v19  ;;  %3400 = vmax.xlane.f32.xlu1 %v3399_v17  ;;  %v10183_v19 = vpop.trf.xlu1 }
 0x2b1   : > { %v10171_v36 = vpop.f32.mrb[112].mxu0 }
 0x2b2   : > { %13615 = vst [vmem:[#allocation82_spill] sm:$0xff] %v10171_v36  ;;  %v1160_v42 = vpop.trf.xlu0  ;;  %v10173_v28 = vpop.f32.mrb[113].mxu0 }
 0x2b3   : > { %13616 = vst [vmem:[#allocation83_spill] sm:$0xff] %v10173_v28  ;;  %3403 = vmax.xlane.f32.xlu0 %v3402_v44  ;;  %7658 = vmatmul.mubr.msk.f32.gmra.mrb[90].mxu1 %vm1203_vm12, %v10036_v15  ;;  %v3408_v44 = vsel %vm3317_vm8, %v9732_v29, -inf }
 0x2b4   : > { %3406 = vmax.xlane.f32.xlu1 %v3405_v60  ;;  %7660 = vmatprep.mubr.msk.f32.mxu1 %vm1203_vm12, %v10048_v5  ;;  %v13621_v60 = vld [vmem:[#allocation8_spill] sm:$0xff] }
 0x2b5   : > { %v10185_v11 = vpop.f32.mrb[114].mxu0  ;;  %v10187_v17 = vpop.f32.mrb[0].mxu1  ;;  %v3411_v5 = vsel %vm3317_vm8, %v13621_v60, -inf }
 0x2b6   : > { %13617 = vst [vmem:[#allocation84_spill] sm:$0xff] %v10185_v11  ;;  %13618 = vst [vmem:[#allocation85_spill] sm:$0xff] %v10187_v17  ;;  %v1161_v36 = vpop.trf.xlu0  ;;  %v10189_v28 = vpop.f32.mrb[115].mxu0 }
 0x2b7   : > { %13619 = vst [vmem:[#allocation86_spill] sm:$0xff] %v10189_v28  ;;  %3409 = vmax.xlane.f32.xlu0 %v3408_v44  ;;  %7661 = vmatmul.mubr.msk.f32.gmra.mrb[92].mxu1 %vm1203_vm12, %v10060_v14  ;;  %v10195_v15 = vpop.f32.mrb[1].mxu1  ;;  %v3414_v44 = vsel %vm3317_vm8, %v13624_v21, -inf  ;;  %v13625_v14 = vld [vmem:[#allocation9_spill] sm:$0xff]  ;;  %v10211_v60 = vpop.trf.xlu1 }
 0x2b8   : > { %13620 = vst [vmem:[#allocation87_spill] sm:$0xff] %v10195_v15  ;;  %3412 = vmax.xlane.f32.xlu1 %v3411_v5  ;;  %7663 = vmatprep.mubr.msk.f32.mxu1 %vm1203_vm12, %v10072_v34  ;;  %v3417_v15 = vsel %vm3317_vm8, %v13625_v14, -inf }
 0x2b9   : > { %v10201_v17 = vpop.f32.mrb[116].mxu0 }
 0x2ba   : > { %13622 = vst [vmem:[#allocation88_spill] sm:$0xff] %v10201_v17  ;;  %v1162_v11 = vpop.trf.xlu0  ;;  %v10203_v28 = vpop.f32.mrb[117].mxu0 }
 0x2bb   : > { %13623 = vst [vmem:[#allocation89_spill] sm:$0xff] %v10203_v28  ;;  %3415 = vmax.xlane.f32.xlu0 %v3414_v44  ;;  %7664 = vmatmul.mubr.msk.f32.gmra.mrb[94].mxu1 %vm1203_vm12, %v10084_v43  ;;  %v13629_v44 = vld [vmem:[#allocation12_spill] sm:$0xff] }
 0x2bc   : > { %3418 = vmax.xlane.f32.xlu1 %v3417_v15  ;;  %7666 = vmatprep.mubr.msk.f32.mxu1 %vm1203_vm12, %v10099_v13  ;;  %v3420_v21 = vsel %vm3317_vm8, %v13629_v44, -inf  ;;  %v13631_v15 = vld [vmem:[#allocation11_spill] sm:$0xff] }
 0x2bd   : > { %v10215_v34 = vpop.f32.mrb[118].mxu0  ;;  %v10217_v5 = vpop.f32.mrb[2].mxu1  ;;  %v3423_v14 = vsel %vm3317_vm8, %v13631_v15, -inf }
 0x2be   : > { %13626 = vst [vmem:[#allocation90_spill] sm:$0xff] %v10215_v34  ;;  %13627 = vst [vmem:[#allocation91_spill] sm:$0xff] %v10217_v5  ;;  %v1163_v17 = vpop.trf.xlu0  ;;  %v10219_v28 = vpop.f32.mrb[119].mxu0 }
 0x2bf   : > { %13628 = vst [vmem:[#allocation92_spill] sm:$0xff] %v10219_v28  ;;  %3421 = vmax.xlane.f32.xlu0 %v3420_v21  ;;  %7667 = vmatmul.mubr.msk.f32.gmra.mrb[96].mxu1 %vm1203_vm12, %v10115_v22  ;;  %v10225_v43 = vpop.f32.mrb[3].mxu1  ;;  %v10233_v5 = vpop.trf.xlu1  ;;  %v3426_v21 = vsel %vm3317_vm8, %v9769_v45, -inf  ;;  %v3429_v22 = vsel %vm3317_vm8, %v9766_v7, -inf }
 0x2c0   : > { %13630 = vst [vmem:[#allocation12_spill] sm:$0xff] %v10225_v43  ;;  %3424 = vmax.xlane.f32.xlu1 %v3423_v14  ;;  %7669 = vmatprep.mubr.msk.f32.mxu1 %vm1203_vm12, %v10129_v63 }
 0x2c1   : > { %v10231_v13 = vpop.f32.mrb[120].mxu0 }
 0x2c2   : > { %13632 = vst [vmem:[#allocation11_spill] sm:$0xff] %v10231_v13  ;;  %v1164_v34 = vpop.trf.xlu0  ;;  %v10235_v28 = vpop.f32.mrb[121].mxu0  ;;  %v3432_v13 = vsel %vm3317_vm8, %v9784_v61, -inf }
 0x2c3   : > { %13633 = vst [vmem:[#allocation93_spill] sm:$0xff] %v10235_v28  ;;  %3427 = vmax.xlane.f32.xlu0 %v3426_v21  ;;  %7670 = vmatmul.mubr.msk.f32.gmra.mrb[98].mxu1 %vm1203_vm12, %v10145_v18  ;;  %v3435_v18 = vsel %vm3317_vm8, %v9780_v53, -inf  ;;  %v10255_v21 = vpop.trf.xlu1 }
 0x2c4   : > { %3430 = vmax.xlane.f32.xlu1 %v3429_v22  ;;  %7672 = vmatprep.mubr.msk.f32.mxu1 %vm1203_vm12, %v1159_v30 }
 0x2c5   : > { %v10244_v63 = vpop.f32.mrb[122].mxu0 }
 0x2c6   : > { %13634 = vst [vmem:[#allocation94_spill] sm:$0xff] %v10244_v63  ;;  %v1165_v14 = vpop.trf.xlu0  ;;  %v10246_v43 = vpop.f32.mrb[123].mxu0 }
 0x2c7   : > { %13635 = vst [vmem:[#allocation95_spill] sm:$0xff] %v10246_v43  ;;  %v10250_v28 = vpop.f32.mrb[4].mxu1  ;;  %3433 = vmax.xlane.f32.xlu0 %v3432_v13  ;;  %7673 = vmatmul.mubr.msk.f32.gmra.mrb[100].mxu1 %vm1203_vm12, %v1160_v42  ;;  %v3438_v13 = vsel %vm3317_vm8, %v9798_v3, -inf  ;;  %v3441_v42 = vsel %vm3317_vm8, %v9794_v56, -inf }
 0x2c8   : > { %13636 = vst [vmem:[#allocation96_spill] sm:$0xff] %v10250_v28  ;;  %v10257_v22 = vpop.f32.mrb[5].mxu1  ;;  %3436 = vmax.xlane.f32.xlu1 %v3435_v18  ;;  %7675 = vmatprep.mubr.msk.f32.mxu1 %vm1203_vm12, %v1161_v36  ;;  %v10272_v36 = vpop.trf.xlu1 }
 0x2c9   : > { %13637 = vst [vmem:[#allocation97_spill] sm:$0xff] %v10257_v22  ;;  %v10260_v30 = vpop.f32.mrb[124].mxu0 }
 0x2ca   : > { %13638 = vst [vmem:[#allocation98_spill] sm:$0xff] %v10260_v30  ;;  %v1166_v63 = vpop.trf.xlu0  ;;  %v10262_v43 = vpop.f32.mrb[125].mxu0  ;;  %v3444_v30 = vsel %vm3317_vm8, %v9808_v12, -inf  ;;  %v13646_v12 = vld [vmem:[#allocation15_spill] sm:$0xff] }
 0x2cb   : > { %13639 = vst [vmem:[#allocation99_spill] sm:$0xff] %v10262_v43  ;;  %3439 = vmax.xlane.f32.xlu0 %v3438_v13  ;;  %7676 = vmatmul.mubr.msk.f32.gmra.mrb[102].mxu1 %vm1203_vm12, %v1162_v11  ;;  %v13643_v11 = vld [vmem:[#allocation13_spill] sm:$0xff] }
 0x2cc   : > { %3442 = vmax.xlane.f32.xlu1 %v3441_v42  ;;  %7678 = vmatprep.mubr.msk.f32.mxu1 %vm1203_vm12, %v1163_v17  ;;  %v3447_v13 = vsel %vm3317_vm8, %v13643_v11, -inf }
 0x2cd   : > { %v10270_v18 = vpop.f32.mrb[126].mxu0 }
 0x2ce   : > { %13640 = vst [vmem:[#allocation100_spill] sm:$0xff] %v10270_v18  ;;  %v1167_v28 = vpop.trf.xlu0  ;;  %v10274_v22 = vpop.f32.mrb[127].mxu0  ;;  %v13645_v18 = vld [vmem:[#allocation16_spill] sm:$0xff] }
 0x2cf   : > { %13641 = vst [vmem:[#allocation101_spill] sm:$0xff] %v10274_v22  ;;  %v10278_v43 = vpop.f32.mrb[6].mxu1  ;;  %3445 = vmax.xlane.f32.xlu0 %v3444_v30  ;;  %7679 = vmatmul.mubr.msk.f32.gmra.mrb[104].mxu1 %vm1203_vm12, %v1164_v34  ;;  %v3450_v22 = vsel %vm3317_vm8, %v13645_v18, -inf  ;;  %v3453_v30 = vsel %vm3317_vm8, %v13646_v12, -inf  ;;  %v1196_v34 = vpop.trf.xlu1 }
 0x2d0   : > { %13642 = vst [vmem:[#allocation102_spill] sm:$0xff] %v10278_v43  ;;  %v10283_v42 = vpop.f32.mrb[7].mxu1  ;;  %3448 = vmax.xlane.f32.xlu1 %v3447_v13  ;;  %7681 = vmatprep.mubr.msk.f32.mxu1 %vm1203_vm12, %v1165_v14  ;;  %v13648_v13 = vld [vmem:[#allocation18_spill] sm:$0xff] }
 0x2d1   : > { %13644 = vst [vmem:[#allocation103_spill] sm:$0xff] %v10283_v42  ;;  %v3456_v14 = vsel %vm3317_vm8, %v13648_v13, -inf }
 0x2d2   : > { %v1168_v17 = vpop.trf.xlu0 }
 0x2d3   : > { %3451 = vmax.xlane.f32.xlu0 %v3450_v22  ;;  %7682 = vmatmul.mubr.msk.f32.gmra.mrb[106].mxu1 %vm1203_vm12, %v1166_v63  ;;  %v13650_v22 = vld [vmem:[#allocation17_spill] sm:$0xff]  ;;  %v1197_v18 = vpop.trf.xlu1 }
 0x2d4   : > { %3454 = vmax.xlane.f32.xlu1 %v3453_v30  ;;  %7684 = vmatprep.mubr.msk.f32.mxu1 %vm1203_vm12, %v1167_v28  ;;  %v3459_v63 = vsel %vm3317_vm8, %v13650_v22, -inf  ;;  %v13651_v28 = vld [vmem:[#allocation20_spill] sm:$0xff] }
 0x2d5   : > { %v3462_v12 = vsel %vm3317_vm8, %v13651_v28, -inf }
 0x2d6   : > { %v1169_v43 = vpop.trf.xlu0  ;;  %v10292_v11 = vpop.f32.mrb[8].mxu1 }
 0x2d7   : > { %13647 = vst [vmem:[#allocation104_spill] sm:$0xff] %v10292_v11  ;;  %3457 = vmax.xlane.f32.xlu0 %v3456_v14  ;;  %7685 = vmatmul.mubr.msk.f32.gmra.mrb[108].mxu1 %vm1203_vm12, %v1168_v17  ;;  %v10297_v42 = vpop.f32.mrb[9].mxu1  ;;  %v13652_v11 = vld [vmem:[#allocation19_spill] sm:$0xff] }
 0x2d8   : > { %13649 = vst [vmem:[#allocation18_spill] sm:$0xff] %v10297_v42  ;;  %3460 = vmax.xlane.f32.xlu1 %v3459_v63  ;;  %7687 = vmatprep.mubr.msk.f32.mxu1 %vm1203_vm12, %v1169_v43  ;;  %v3465_v14 = vsel %vm3317_vm8, %v13652_v11, -inf  ;;  %v13654_v63 = vld [vmem:[#allocation22_spill] sm:$0xff] }
 0x2d9   : > { %v3468_v43 = vsel %vm3317_vm8, %v13654_v63, -inf }
 0x2da   : > { %v1170_v30 = vpop.trf.xlu0 }
 0x2db   : > { %3463 = vmax.xlane.f32.xlu0 %v3462_v12  ;;  %7688 = vmatmul.mubr.msk.f32.gmra.mrb[110].mxu1 %vm1203_vm12, %v1170_v30  ;;  %v13656_v12 = vld [vmem:[#allocation21_spill] sm:$0xff] }
 0x2dc   : > { %7690 = vmatprep.mubr.msk.f32.mxu1 %vm1203_vm12, %v10097_v27  ;;  %3466 = vmax.xlane.f32.xlu1 %v3465_v14  ;;  %v3471_v30 = vsel %vm3317_vm8, %v13656_v12, -inf  ;;  %v1198_v27 = vpop.trf.xlu1  ;;  %v13657_v14 = vld [vmem:[#allocation24_spill] sm:$0xff]  ;;  %v13660_v12 = vld [vmem:[#allocation26_spill] sm:$0xff] }
 0x2de   : > { %v10309_v17 = vpop.f32.mrb[10].mxu1 }
 0x2df   : > { %13653 = vst [vmem:[#allocation17_spill] sm:$0xff] %v10309_v17  ;;  %3469 = vmax.xlane.f32.xlu0 %v3468_v43  ;;  %7691 = vmatmul.mubr.msk.f32.gmra.mrb[112].mxu1 %vm1203_vm12, %v10113_v33  ;;  %v10315_v42 = vpop.f32.mrb[11].mxu1  ;;  %v3474_v17 = vsel %vm3317_vm8, %v13657_v14, -inf  ;;  %v13658_v43 = vld [vmem:[#allocation23_spill] sm:$0xff] }
 0x2e0   : > { %13655 = vst [vmem:[#allocation20_spill] sm:$0xff] %v10315_v42  ;;  %7693 = vmatprep.mubr.msk.f32.mxu1 %vm1203_vm12, %v10139_v54  ;;  %3472 = vmax.xlane.f32.xlu1 %v3471_v30  ;;  %v3477_v33 = vsel %vm3317_vm8, %v13658_v43, -inf  ;;  %v3480_v54 = vsel %vm3317_vm8, %v13660_v12, -inf  ;;  %v1199_v30 = vpop.trf.xlu1 }
 0x2e3   : > { %3475 = vmax.xlane.f32.xlu0 %v3474_v17  ;;  %7694 = vmatmul.mubr.msk.f32.gmra.mrb[114].mxu1 %vm1203_vm12, %v10159_v41  ;;  %v13662_v41 = vld [vmem:[#allocation25_spill] sm:$0xff] }
 0x2e4   : > { %7696 = vmatprep.mubr.msk.f32.mxu1 %vm1203_vm12, %v10183_v19  ;;  %3478 = vmax.xlane.f32.xlu1 %v3477_v33  ;;  %v3483_v14 = vsel %vm3317_vm8, %v13662_v41, -inf  ;;  %v13663_v19 = vld [vmem:[#allocation28_spill] sm:$0xff] }
 0x2e5   : > { %v3486_v33 = vsel %vm3317_vm8, %v13663_v19, -inf }
 0x2e6   : > { %v10329_v42 = vpop.f32.mrb[12].mxu1 }
 0x2e7   : > { %13659 = vst [vmem:[#allocation19_spill] sm:$0xff] %v10329_v42  ;;  %3481 = vmax.xlane.f32.xlu0 %v3480_v54  ;;  %7697 = vmatmul.mubr.msk.f32.gmra.mrb[116].mxu1 %vm1203_vm12, %v10211_v60  ;;  %v10335_v17 = vpop.f32.mrb[13].mxu1  ;;  %v13664_v54 = vld [vmem:[#allocation27_spill] sm:$0xff]  ;;  %v1200_v60 = vpop.trf.xlu1 }
 0x2e8   : > { %13661 = vst [vmem:[#allocation22_spill] sm:$0xff] %v10335_v17  ;;  %7699 = vmatprep.mubr.msk.f32.mxu1 %vm1203_vm12, %v10233_v5  ;;  %3484 = vmax.xlane.f32.xlu1 %v3483_v14  ;;  %v3489_v42 = vsel %vm3317_vm8, %v13664_v54, -inf  ;;  %v13665_v17 = vld [vmem:[#allocation30_spill] sm:$0xff]  ;;  %v13667_v14 = vld [vmem:[#allocation29_spill] sm:$0xff] }
 0x2e9   : > { %v3492_v41 = vsel %vm3317_vm8, %v13665_v17, -inf }
 0x2eb   : > { %3487 = vmax.xlane.f32.xlu0 %v3486_v33  ;;  %7700 = vmatmul.mubr.msk.f32.gmra.mrb[118].mxu1 %vm1203_vm12, %v10255_v21  ;;  %v3495_v33 = vsel %vm3317_vm8, %v13667_v14, -inf  ;;  %v1201_v19 = vpop.trf.xlu1 }
 0x2ec   : > { %7702 = vmatprep.mubr.msk.f32.mxu1 %vm1203_vm12, %v10272_v36  ;;  %3490 = vmax.xlane.f32.xlu1 %v3489_v42  ;;  %v13670_v36 = vld [vmem:[#allocation32_spill] sm:$0xff] }
 0x2ed   : > { %v3498_v42 = vsel %vm3317_vm8, %v13670_v36, -inf }
 0x2ee   : > { %v10351_v5 = vpop.f32.mrb[14].mxu1 }
 0x2ef   : > { %13666 = vst [vmem:[#allocation23_spill] sm:$0xff] %v10351_v5  ;;  %3493 = vmax.xlane.f32.xlu0 %v3492_v41  ;;  %7703 = vmatmul.mubr.msk.f32.gmra.mrb[120].mxu1 %vm1203_vm12, %v1196_v34  ;;  %v10356_v21 = vpop.f32.mrb[15].mxu1  ;;  %v13672_v34 = vld [vmem:[#allocation31_spill] sm:$0xff] }
 0x2f0   : > { %13668 = vst [vmem:[#allocation26_spill] sm:$0xff] %v10356_v21  ;;  %7705 = vmatprep.mubr.msk.f32.mxu1 %vm1203_vm12, %v1197_v18  ;;  %3496 = vmax.xlane.f32.xlu1 %v3495_v33  ;;  %v3501_v41 = vsel %vm3317_vm8, %v13672_v34, -inf  ;;  %v13674_v18 = vld [vmem:[#allocation34_spill] sm:$0xff]  ;;  %v13676_v21 = vld [vmem:[#allocation33_spill] sm:$0xff] }
 0x2f1   : > { %v3504_v33 = vsel %vm3317_vm8, %v13674_v18, -inf }
 0x2f2   : > { %v10359_v54 = vpop.f32.mrb[16].mxu1 }
 0x2f3   : > { %13669 = vst [vmem:[#allocation29_spill] sm:$0xff] %v10359_v54  ;;  %v10363_v17 = vpop.f32.mrb[17].mxu1  ;;  %3499 = vmax.xlane.f32.xlu0 %v3498_v42  ;;  %7706 = vmatmul.mubr.msk.f32.gmra.mrb[122].mxu1 %vm1203_vm12, %v1198_v27  ;;  %v1202_v27 = vpop.trf.xlu1 }
 0x2f4   : > { %13671 = vst [vmem:[#allocation32_spill] sm:$0xff] %v10363_v17  ;;  %3502 = vmax.xlane.f32.xlu1 %v3501_v41  ;;  %7708 = vmatprep.mubr.msk.f32.mxu1 %vm1203_vm12, %v1199_v30  ;;  %v3507_v17 = vsel %vm3317_vm8, %v13676_v21, -inf  ;;  %v3510_v30 = vsel %vm3317_vm8, %v9902_v6, -inf }
 0x2f6   : > { %v10369_v5 = vpop.f32.mrb[18].mxu1 }
 0x2f7   : > { %13673 = vst [vmem:[#allocation31_spill] sm:$0xff] %v10369_v5  ;;  %v10373_v54 = vpop.f32.mrb[19].mxu1  ;;  %3505 = vmax.xlane.f32.xlu0 %v3504_v33  ;;  %7709 = vmatmul.mubr.msk.f32.gmra.mrb[124].mxu1 %vm1203_vm12, %v1200_v60  ;;  %v13679_v5 = vld [vmem:[#allocation35_spill] sm:$0xff] }
 0x2f8   : > { %13675 = vst [vmem:[#allocation34_spill] sm:$0xff] %v10373_v54  ;;  %3508 = vmax.xlane.f32.xlu1 %v3507_v17  ;;  %7711 = vmatprep.mubr.msk.f32.mxu1 %vm1203_vm12, %v1201_v19  ;;  %v3513_v33 = vsel %vm3317_vm8, %v13679_v5, -inf  ;;  %v13681_v17 = vld [vmem:[#allocation38_spill] sm:$0xff] }
 0x2f9   : > { %v3516_v19 = vsel %vm3317_vm8, %v13681_v17, -inf }
 0x2fa   : > { %v10379_v42 = vpop.f32.mrb[20].mxu1 }
 0x2fb   : > { %13677 = vst [vmem:[#allocation33_spill] sm:$0xff] %v10379_v42  ;;  %v10383_v41 = vpop.f32.mrb[21].mxu1  ;;  %3511 = vmax.xlane.f32.xlu0 %v3510_v30  ;;  %7712 = vmatmul.mubr.msk.f32.gmra.mrb[126].mxu1 %vm1203_vm12, %v1202_v27  ;;  %v13683_v42 = vld [vmem:[#allocation37_spill] sm:$0xff]  ;;  %v3522_v30 = vsel %vm3317_vm8, %v9914_v35, -inf  ;;  %v13686_v27 = vld [vmem:[#allocation39_spill] sm:$0xff] }
 0x2fc   : > { %13678 = vst [vmem:[#allocation105_spill] sm:$0xff] %v10383_v41  ;;  %3514 = vmax.xlane.f32.xlu1 %v3513_v33  ;;  %v3519_v6 = vsel %vm3317_vm8, %v13683_v42, -inf  ;;  %v3525_v33 = vsel %vm3317_vm8, %v13686_v27, -inf  ;;  %v13689_v42 = vld [vmem:[#allocation42_spill] sm:$0xff]  ;;  %v13691_v35 = vld [vmem:[#allocation41_spill] sm:$0xff] }
 0x2fe   : > { %v10388_v54 = vpop.f32.mrb[22].mxu1 }
 0x2ff   : > { %13680 = vst [vmem:[#allocation106_spill] sm:$0xff] %v10388_v54  ;;  %v10392_v60 = vpop.f32.mrb[23].mxu1  ;;  %3517 = vmax.xlane.f32.xlu0 %v3516_v19 }
 0x300   : > { %13682 = vst [vmem:[#allocation38_spill] sm:$0xff] %v10392_v60  ;;  %3520 = vmax.xlane.f32.xlu1 %v3519_v6  ;;  %v3528_v6 = vsel %vm3317_vm8, %v13689_v42, -inf }
 0x302   : > { %v10396_v41 = vpop.f32.mrb[24].mxu1 }
 0x303   : > { %13684 = vst [vmem:[#allocation107_spill] sm:$0xff] %v10396_v41  ;;  %v10400_v5 = vpop.f32.mrb[25].mxu1  ;;  %3523 = vmax.xlane.f32.xlu0 %v3522_v30 }
 0x304   : > { %13685 = vst [vmem:[#allocation108_spill] sm:$0xff] %v10400_v5  ;;  %3526 = vmax.xlane.f32.xlu1 %v3525_v33  ;;  %v3531_v5 = vsel %vm3317_vm8, %v13691_v35, -inf }
 0x305   : > { %v3323_v54 = vpop.xlane.xlu1 %3322 }
 0x306   : > { %v10405_v60 = vsub.f32 %v9526_v25, %v3323_v54  ;;  %v10407_v19 = vpop.f32.mrb[26].mxu1  ;;  %v13694_v25 = vld [vmem:[#allocation44_spill] sm:$0xff] }
 0x307   : > { %13688 = vst [vmem:[#allocation110_spill] sm:$0xff] %v10407_v19  ;;  %v10411_v41 = vpop.f32.mrb[27].mxu1  ;;  %3529 = vmax.xlane.f32.xlu0 %v3528_v6  ;;  %v3534_v54 = vsel %vm3317_vm8, %v13694_v25, -inf  ;;  %v13696_v19 = vld [vmem:[#allocation43_spill] sm:$0xff] }
 0x308   : > { %13687 = vst [vmem:[#allocation109_spill] sm:$0xff] %v10405_v60  ;;  %13690 = vst [vmem:[#allocation42_spill] sm:$0xff] %v10411_v41  ;;  %3532 = vmax.xlane.f32.xlu1 %v3531_v5  ;;  %v3537_v41 = vsel %vm3317_vm8, %v13696_v19, -inf }
 0x309   : > { %v3326_v30 = vpop.xlane.xlu1 %3325 }
 0x30a   : > { %v10416_v27 = vsub.f32 %v9542_v32, %v3326_v30  ;;  %v10418_v33 = vpop.f32.mrb[28].mxu1  ;;  %v13699_v30 = vld [vmem:[#allocation46_spill] sm:$0xff] }
 0x30b   : > { %13693 = vst [vmem:[#allocation112_spill] sm:$0xff] %v10418_v33  ;;  %v10422_v60 = vpop.f32.mrb[29].mxu1  ;;  %3535 = vmax.xlane.f32.xlu0 %v3534_v54 }
 0x30c   : > { %13692 = vst [vmem:[#allocation111_spill] sm:$0xff] %v10416_v27  ;;  %13695 = vst [vmem:[#allocation113_spill] sm:$0xff] %v10422_v60  ;;  %v3320_v6 = vpop.xlane.xlu0 %3319  ;;  %3538 = vmax.xlane.f32.xlu1 %v3537_v41  ;;  %v3540_v27 = vsel %vm3317_vm8, %v13699_v30, -inf  ;;  %v13701_v60 = vld [vmem:[#allocation45_spill] sm:$0xff] }
 0x30d   : > { %v10427_v35 = vsub.f32 %v9530_v26, %v3320_v6  ;;  %v3329_v5 = vpop.xlane.xlu1 %3328  ;;  %v3543_v54 = vsel %vm3317_vm8, %v13701_v60, -inf  ;;  %v13705_v6 = vld [vmem:[#allocation48_spill] sm:$0xff] }
 0x30e   : > { %v10430_v32 = vsub.f32 %v9539_v31, %v3329_v5  ;;  %v10434_v33 = vpop.f32.mrb[30].mxu1  ;;  %v3546_v5 = vsel %vm3317_vm8, %v13705_v6, -inf }
 0x30f   : > { %13697 = vst [vmem:[#allocation114_spill] sm:$0xff] %v10427_v35  ;;  %13700 = vst [vmem:[#allocation46_spill] sm:$0xff] %v10434_v33  ;;  %3541 = vmax.xlane.f32.xlu0 %v3540_v27  ;;  %v10438_v25 = vpop.f32.mrb[31].mxu1  ;;  %v13707_v27 = vld [vmem:[#allocation47_spill] sm:$0xff] }
 0x310   : > { %13698 = vst [vmem:[#allocation115_spill] sm:$0xff] %v10430_v32  ;;  %13702 = vst [vmem:[#allocation45_spill] sm:$0xff] %v10438_v25  ;;  %v3332_v19 = vpop.xlane.xlu0 %3331  ;;  %3544 = vmax.xlane.f32.xlu1 %v3543_v54  ;;  %v3549_v35 = vsel %vm3317_vm8, %v13707_v27, -inf  ;;  %v13711_v54 = vld [vmem:[#allocation50_spill] sm:$0xff] }
 0x311   : > { %v10441_v26 = vsub.f32 %v9554_v40, %v3332_v19  ;;  %v3335_v41 = vpop.xlane.xlu1 %3334 }
 0x312   : > { %v10444_v31 = vsub.f32 %v9551_v39, %v3335_v41  ;;  %v10448_v32 = vpop.f32.mrb[32].mxu1  ;;  %v3552_v41 = vsel %vm3317_vm8, %v13711_v54, -inf }
 0x313   : > { %13703 = vst [vmem:[#allocation116_spill] sm:$0xff] %v10441_v26  ;;  %13706 = vst [vmem:[#allocation48_spill] sm:$0xff] %v10448_v32  ;;  %3547 = vmax.xlane.f32.xlu0 %v3546_v5  ;;  %v10452_v33 = vpop.f32.mrb[33].mxu1  ;;  %v13713_v5 = vld [vmem:[#allocation49_spill] sm:$0xff] }
 0x314   : > { %13704 = vst [vmem:[#allocation117_spill] sm:$0xff] %v10444_v31  ;;  %13708 = vst [vmem:[#allocation47_spill] sm:$0xff] %v10452_v33  ;;  %v3338_v25 = vpop.xlane.xlu0 %3337  ;;  %3550 = vmax.xlane.f32.xlu1 %v3549_v35  ;;  %v3555_v26 = vsel %vm3317_vm8, %v13713_v5, -inf }
 0x315   : > { %v10455_v40 = vsub.f32 %v9570_v1, %v3338_v25  ;;  %v3341_v19 = vpop.xlane.xlu1 %3340  ;;  %v13717_v25 = vld [vmem:[#allocation52_spill] sm:$0xff] }
 0x316   : > { %v10458_v39 = vsub.f32 %v9567_v50, %v3341_v19  ;;  %v10462_v31 = vpop.f32.mrb[34].mxu1  ;;  %v3558_v19 = vsel %vm3317_vm8, %v13717_v25, -inf }
 0x317   : > { %13709 = vst [vmem:[#allocation118_spill] sm:$0xff] %v10455_v40  ;;  %13712 = vst [vmem:[#allocation50_spill] sm:$0xff] %v10462_v31  ;;  %3553 = vmax.xlane.f32.xlu0 %v3552_v41  ;;  %v10466_v32 = vpop.f32.mrb[35].mxu1  ;;  %v13719_v41 = vld [vmem:[#allocation51_spill] sm:$0xff] }
 0x318   : > { %13710 = vst [vmem:[#allocation119_spill] sm:$0xff] %v10458_v39  ;;  %13714 = vst [vmem:[#allocation49_spill] sm:$0xff] %v10466_v32  ;;  %v3344_v33 = vpop.xlane.xlu0 %3343  ;;  %3556 = vmax.xlane.f32.xlu1 %v3555_v26  ;;  %v3561_v40 = vsel %vm3317_vm8, %v13719_v41, -inf  ;;  %v13723_v26 = vld [vmem:[#allocation54_spill] sm:$0xff] }
 0x319   : > { %v10469_v1 = vsub.f32 %v9592_v62, %v3344_v33  ;;  %v3347_v35 = vpop.xlane.xlu1 %3346 }
 0x31a   : > { %v10472_v50 = vsub.f32 %v9587_v59, %v3347_v35  ;;  %v10476_v39 = vpop.f32.mrb[36].mxu1  ;;  %v3564_v35 = vsel %vm3317_vm8, %v13723_v26, -inf }
 0x31b   : > { %13715 = vst [vmem:[#allocation120_spill] sm:$0xff] %v10469_v1  ;;  %13718 = vst [vmem:[#allocation52_spill] sm:$0xff] %v10476_v39  ;;  %3559 = vmax.xlane.f32.xlu0 %v3558_v19  ;;  %v10480_v31 = vpop.f32.mrb[37].mxu1  ;;  %v13725_v19 = vld [vmem:[#allocation53_spill] sm:$0xff] }
 0x31c   : > { %13716 = vst [vmem:[#allocation121_spill] sm:$0xff] %v10472_v50  ;;  %13720 = vst [vmem:[#allocation51_spill] sm:$0xff] %v10480_v31  ;;  %v3350_v32 = vpop.xlane.xlu0 %3349  ;;  %3562 = vmax.xlane.f32.xlu1 %v3561_v40  ;;  %v3567_v1 = vsel %vm3317_vm8, %v13725_v19, -inf  ;;  %v13729_v40 = vld [vmem:[#allocation56_spill] sm:$0xff] }
 0x31d   : > { %v10483_v62 = vsub.f32 %v9625_v24, %v3350_v32  ;;  %v3353_v33 = vpop.xlane.xlu1 %3352 }
 0x31e   : > { %v10486_v59 = vsub.f32 %v9616_v20, %v3353_v33  ;;  %v10490_v50 = vpop.f32.mrb[38].mxu1  ;;  %v3570_v33 = vsel %vm3317_vm8, %v13729_v40, -inf }
 0x31f   : > { %13721 = vst [vmem:[#allocation122_spill] sm:$0xff] %v10483_v62  ;;  %13724 = vst [vmem:[#allocation54_spill] sm:$0xff] %v10490_v50  ;;  %3565 = vmax.xlane.f32.xlu0 %v3564_v35  ;;  %v10494_v39 = vpop.f32.mrb[39].mxu1  ;;  %v13731_v35 = vld [vmem:[#allocation55_spill] sm:$0xff] }
 0x320   : > { %13722 = vst [vmem:[#allocation123_spill] sm:$0xff] %v10486_v59  ;;  %13726 = vst [vmem:[#allocation53_spill] sm:$0xff] %v10494_v39  ;;  %v3356_v31 = vpop.xlane.xlu0 %3355  ;;  %3568 = vmax.xlane.f32.xlu1 %v3567_v1  ;;  %v3573_v62 = vsel %vm3317_vm8, %v13731_v35, -inf  ;;  %v13735_v1 = vld [vmem:[#allocation58_spill] sm:$0xff] }
 0x321   : > { %v10497_v24 = vsub.f32 %v9643_v16, %v3356_v31  ;;  %v3359_v32 = vpop.xlane.xlu1 %3358 }
 0x322   : > { %v10500_v20 = vsub.f32 %v9638_v38, %v3359_v32  ;;  %v10504_v59 = vpop.f32.mrb[40].mxu1  ;;  %v3576_v32 = vsel %vm3317_vm8, %v13735_v1, -inf }
 0x323   : > { %13727 = vst [vmem:[#allocation124_spill] sm:$0xff] %v10497_v24  ;;  %13730 = vst [vmem:[#allocation56_spill] sm:$0xff] %v10504_v59  ;;  %3571 = vmax.xlane.f32.xlu0 %v3570_v33  ;;  %v10508_v50 = vpop.f32.mrb[41].mxu1  ;;  %v13737_v33 = vld [vmem:[#allocation57_spill] sm:$0xff] }
 0x324   : > { %13728 = vst [vmem:[#allocation125_spill] sm:$0xff] %v10500_v20  ;;  %13732 = vst [vmem:[#allocation55_spill] sm:$0xff] %v10508_v50  ;;  %v3362_v39 = vpop.xlane.xlu0 %3361  ;;  %3574 = vmax.xlane.f32.xlu1 %v3573_v62  ;;  %v3579_v24 = vsel %vm3317_vm8, %v13737_v33, -inf  ;;  %v13741_v62 = vld [vmem:[#allocation60_spill] sm:$0xff] }
 0x325   : > { %v10511_v16 = vsub.f32 %v9661_v23, %v3362_v39  ;;  %v3365_v31 = vpop.xlane.xlu1 %3364 }
 0x326   : > { %v10514_v38 = vsub.f32 %v9656_v46, %v3365_v31  ;;  %v10518_v20 = vpop.f32.mrb[42].mxu1  ;;  %v3582_v31 = vsel %vm3317_vm8, %v13741_v62, -inf }
 0x327   : > { %13733 = vst [vmem:[#allocation126_spill] sm:$0xff] %v10511_v16  ;;  %13736 = vst [vmem:[#allocation58_spill] sm:$0xff] %v10518_v20  ;;  %3577 = vmax.xlane.f32.xlu0 %v3576_v32  ;;  %v10522_v59 = vpop.f32.mrb[43].mxu1  ;;  %v13743_v32 = vld [vmem:[#allocation59_spill] sm:$0xff] }
 0x328   : > { %13734 = vst [vmem:[#allocation127_spill] sm:$0xff] %v10514_v38  ;;  %13738 = vst [vmem:[#allocation57_spill] sm:$0xff] %v10522_v59  ;;  %v3368_v50 = vpop.xlane.xlu0 %3367  ;;  %3580 = vmax.xlane.f32.xlu1 %v3579_v24  ;;  %v3585_v16 = vsel %vm3317_vm8, %v13743_v32, -inf  ;;  %v13747_v24 = vld [vmem:[#allocation62_spill] sm:$0xff] }
 0x329   : > { %v10525_v23 = vsub.f32 %v9669_v49, %v3368_v50  ;;  %v3371_v39 = vpop.xlane.xlu1 %3370 }
 0x32a   : > { %v10528_v46 = vsub.f32 %v9667_v47, %v3371_v39  ;;  %v10532_v38 = vpop.f32.mrb[44].mxu1  ;;  %v3588_v39 = vsel %vm3317_vm8, %v13747_v24, -inf }
 0x32b   : > { %13739 = vst [vmem:[#allocation128_spill] sm:$0xff] %v10525_v23  ;;  %13742 = vst [vmem:[#allocation60_spill] sm:$0xff] %v10532_v38  ;;  %3583 = vmax.xlane.f32.xlu0 %v3582_v31  ;;  %v10536_v20 = vpop.f32.mrb[45].mxu1  ;;  %v13749_v31 = vld [vmem:[#allocation61_spill] sm:$0xff] }
 0x32c   : > { %13740 = vst [vmem:[#allocation129_spill] sm:$0xff] %v10528_v46  ;;  %13744 = vst [vmem:[#allocation59_spill] sm:$0xff] %v10536_v20  ;;  %v3374_v59 = vpop.xlane.xlu0 %3373  ;;  %3586 = vmax.xlane.f32.xlu1 %v3585_v16  ;;  %v3591_v23 = vsel %vm3317_vm8, %v13749_v31, -inf }
 0x32d   : > { %v10539_v49 = vsub.f32 %v9680_v9, %v3374_v59  ;;  %v3377_v50 = vpop.xlane.xlu1 %3376 }
 0x32e   : > { %v10542_v47 = vsub.f32 %v9678_v52, %v3377_v50  ;;  %v10546_v46 = vpop.f32.mrb[46].mxu1  ;;  %v13754_v50 = vld [vmem:[#allocation64_spill] sm:$0xff] }
 0x32f   : > { %13745 = vst [vmem:[#allocation130_spill] sm:$0xff] %v10539_v49  ;;  %13748 = vst [vmem:[#allocation62_spill] sm:$0xff] %v10546_v46  ;;  %3589 = vmax.xlane.f32.xlu0 %v3588_v39  ;;  %v10550_v38 = vpop.f32.mrb[47].mxu1  ;;  %v13756_v49 = vld [vmem:[#allocation63_spill] sm:$0xff] }
 0x330   : > { %13746 = vst [vmem:[#allocation131_spill] sm:$0xff] %v10542_v47  ;;  %13750 = vst [vmem:[#allocation61_spill] sm:$0xff] %v10550_v38  ;;  %v3380_v20 = vpop.xlane.xlu0 %3379  ;;  %3592 = vmax.xlane.f32.xlu1 %v3591_v23  ;;  %v3594_v47 = vsel %vm3317_vm8, %v13754_v50, -inf  ;;  %v3597_v46 = vsel %vm3317_vm8, %v13756_v49, -inf }
 0x331   : > { %v10553_v9 = vsub.f32 %v9691_v58, %v3380_v20  ;;  %v3383_v59 = vpop.xlane.xlu1 %3382 }
 0x332   : > { %v10556_v52 = vsub.f32 %v9689_v48, %v3383_v59  ;;  %v10558_v16 = vpop.f32.mrb[48].mxu1  ;;  %v13760_v59 = vld [vmem:[#allocation66_spill] sm:$0xff] }
 0x333   : > { %13751 = vst [vmem:[#allocation132_spill] sm:$0xff] %v10553_v9  ;;  %13753 = vst [vmem:[#allocation134_spill] sm:$0xff] %v10558_v16  ;;  %v10562_v39 = vpop.f32.mrb[49].mxu1  ;;  %3595 = vmax.xlane.f32.xlu0 %v3594_v47  ;;  %v13762_v47 = vld [vmem:[#allocation65_spill] sm:$0xff] }
 0x334   : > { %13752 = vst [vmem:[#allocation133_spill] sm:$0xff] %v10556_v52  ;;  %13755 = vst [vmem:[#allocation64_spill] sm:$0xff] %v10562_v39  ;;  %v3386_v38 = vpop.xlane.xlu0 %3385  ;;  %3598 = vmax.xlane.f32.xlu1 %v3597_v46  ;;  %v3600_v52 = vsel %vm3317_vm8, %v13760_v59, -inf  ;;  %v3603_v16 = vsel %vm3317_vm8, %v13762_v47, -inf }
 0x335   : > { %v10567_v58 = vsub.f32 %v9700_v57, %v3386_v38  ;;  %v3389_v20 = vpop.xlane.xlu1 %3388 }
 0x336   : > { %v10570_v48 = vsub.f32 %v9698_v51, %v3389_v20  ;;  %v10572_v23 = vpop.f32.mrb[50].mxu1  ;;  %v13766_v20 = vld [vmem:[#allocation68_spill] sm:$0xff] }
 0x337   : > { %13757 = vst [vmem:[#allocation63_spill] sm:$0xff] %v10567_v58  ;;  %13759 = vst [vmem:[#allocation136_spill] sm:$0xff] %v10572_v23  ;;  %v10576_v9 = vpop.f32.mrb[51].mxu1  ;;  %3601 = vmax.xlane.f32.xlu0 %v3600_v52  ;;  %v13768_v52 = vld [vmem:[#allocation67_spill] sm:$0xff] }
 0x338   : > { %13758 = vst [vmem:[#allocation135_spill] sm:$0xff] %v10570_v48  ;;  %13761 = vst [vmem:[#allocation66_spill] sm:$0xff] %v10576_v9  ;;  %v3392_v39 = vpop.xlane.xlu0 %3391  ;;  %3604 = vmax.xlane.f32.xlu1 %v3603_v16  ;;  %v3606_v48 = vsel %vm3317_vm8, %v13766_v20, -inf  ;;  %v3609_v23 = vsel %vm3317_vm8, %v13768_v52, -inf }
 0x339   : > { %v10581_v57 = vsub.f32 %v9707_v37, %v3392_v39  ;;  %v3395_v38 = vpop.xlane.xlu1 %3394 }
 0x33a   : > { %v10584_v51 = vsub.f32 %v9705_v0, %v3395_v38  ;;  %v10586_v46 = vpop.f32.mrb[52].mxu1  ;;  %v13772_v38 = vld [vmem:[#allocation70_spill] sm:$0xff] }
 0x33b   : > { %13763 = vst [vmem:[#allocation65_spill] sm:$0xff] %v10581_v57  ;;  %13765 = vst [vmem:[#allocation138_spill] sm:$0xff] %v10586_v46  ;;  %v10590_v58 = vpop.f32.mrb[53].mxu1  ;;  %3607 = vmax.xlane.f32.xlu0 %v3606_v48  ;;  %v13774_v48 = vld [vmem:[#allocation69_spill] sm:$0xff] }
 0x33c   : > { %13764 = vst [vmem:[#allocation137_spill] sm:$0xff] %v10584_v51  ;;  %13767 = vst [vmem:[#allocation68_spill] sm:$0xff] %v10590_v58  ;;  %v3398_v9 = vpop.xlane.xlu0 %3397  ;;  %3610 = vmax.xlane.f32.xlu1 %v3609_v23  ;;  %v3612_v51 = vsel %vm3317_vm8, %v13772_v38, -inf  ;;  %v3615_v46 = vsel %vm3317_vm8, %v13774_v48, -inf }
 0x33d   : > { %v10595_v37 = vsub.f32 %v9714_v10, %v3398_v9  ;;  %v3401_v16 = vpop.xlane.xlu1 %3400 }
 0x33e   : > { %v10598_v0 = vsub.f32 %v9712_v2, %v3401_v16  ;;  %v10600_v39 = vpop.f32.mrb[54].mxu1  ;;  %v3618_v16 = vsel %vm3317_vm8, %v10086_v8, -inf }
 0x33f   : > { %13769 = vst [vmem:[#allocation67_spill] sm:$0xff] %v10595_v37  ;;  %13771 = vst [vmem:[#allocation140_spill] sm:$0xff] %v10600_v39  ;;  %v10604_v57 = vpop.f32.mrb[55].mxu1  ;;  %3613 = vmax.xlane.f32.xlu0 %v3612_v51  ;;  %v13779_v51 = vld [vmem:[#allocation71_spill] sm:$0xff] }
 0x340   : > { %13770 = vst [vmem:[#allocation139_spill] sm:$0xff] %v10598_v0  ;;  %13773 = vst [vmem:[#allocation70_spill] sm:$0xff] %v10604_v57  ;;  %v3404_v58 = vpop.xlane.xlu0 %3403  ;;  %3616 = vmax.xlane.f32.xlu1 %v3615_v46  ;;  %v3621_v37 = vsel %vm3317_vm8, %v13779_v51, -inf  ;;  %v13781_v46 = vld [vmem:[#allocation8_spill] sm:$0xff] }
 0x341   : > { %v10609_v10 = vsub.f32 %v9721_v4, %v3404_v58  ;;  %v3407_v9 = vpop.xlane.xlu1 %3406 }
 0x342   : > { %v10612_v2 = vsub.f32 %v9719_v55, %v3407_v9  ;;  %v10614_v23 = vpop.f32.mrb[56].mxu1 }
 0x343   : > { %13775 = vst [vmem:[#allocation69_spill] sm:$0xff] %v10609_v10  ;;  %13777 = vst [vmem:[#allocation142_spill] sm:$0xff] %v10614_v23  ;;  %v10618_v0 = vpop.f32.mrb[57].mxu1  ;;  %3619 = vmax.xlane.f32.xlu0 %v3618_v16  ;;  %v13786_v16 = vld [vmem:[#allocation72_spill] sm:$0xff] }
 0x344   : > { %13776 = vst [vmem:[#allocation141_spill] sm:$0xff] %v10612_v2  ;;  %13778 = vst [vmem:[#allocation143_spill] sm:$0xff] %v10618_v0  ;;  %v3410_v39 = vpop.xlane.xlu0 %3409  ;;  %3622 = vmax.xlane.f32.xlu1 %v3621_v37  ;;  %v13784_v2 = vld [vmem:[#allocation73_spill] sm:$0xff]  ;;  %v3627_v0 = vsel %vm3317_vm8, %v13786_v16, -inf  ;;  %v13787_v37 = vld [vmem:[#allocation10_spill] sm:$0xff] }
 0x345   : > { %v10623_v4 = vsub.f32 %v9732_v29, %v3410_v39  ;;  %v3413_v58 = vpop.xlane.xlu1 %3412  ;;  %v3624_v10 = vsel %vm3317_vm8, %v13784_v2, -inf }
 0x346   : > { %v10626_v55 = vsub.f32 %v13781_v46, %v3413_v58  ;;  %v10628_v9 = vpop.f32.mrb[58].mxu1  ;;  %v13791_v46 = vld [vmem:[#allocation75_spill] sm:$0xff] }
 0x347   : > { %13780 = vst [vmem:[#allocation71_spill] sm:$0xff] %v10623_v4  ;;  %13783 = vst [vmem:[#allocation144_spill] sm:$0xff] %v10628_v9  ;;  %v10632_v23 = vpop.f32.mrb[59].mxu1  ;;  %3625 = vmax.xlane.f32.xlu0 %v3624_v10  ;;  %v13789_v4 = vld [vmem:[#allocation9_spill] sm:$0xff] }
 0x348   : > { %13782 = vst [vmem:[#allocation8_spill] sm:$0xff] %v10626_v55  ;;  %13785 = vst [vmem:[#allocation145_spill] sm:$0xff] %v10632_v23  ;;  %v3416_v57 = vpop.xlane.xlu0 %3415  ;;  %3628 = vmax.xlane.f32.xlu1 %v3627_v0  ;;  %v3630_v55 = vsel %vm3317_vm8, %v13791_v46, -inf  ;;  %v13793_v23 = vld [vmem:[#allocation74_spill] sm:$0xff] }
 0x349   : > { %v10637_v29 = vsub.f32 %v13787_v37, %v3416_v57  ;;  %v3419_v39 = vpop.xlane.xlu1 %3418  ;;  %v3633_v10 = vsel %vm3317_vm8, %v13793_v23, -inf  ;;  %v13797_v37 = vld [vmem:[#allocation77_spill] sm:$0xff] }
 0x34a   : > { %v10640_v58 = vsub.f32 %v13789_v4, %v3419_v39  ;;  %v10644_v9 = vpop.f32.mrb[60].mxu1  ;;  %v3636_v39 = vsel %vm3317_vm8, %v13797_v37, -inf }
 0x34b   : > { %13788 = vst [vmem:[#allocation10_spill] sm:$0xff] %v10637_v29  ;;  %13792 = vst [vmem:[#allocation75_spill] sm:$0xff] %v10644_v9  ;;  %3631 = vmax.xlane.f32.xlu0 %v3630_v55  ;;  %v10648_v2 = vpop.f32.mrb[61].mxu1  ;;  %v13799_v55 = vld [vmem:[#allocation76_spill] sm:$0xff] }
 0x34c   : > { %13790 = vst [vmem:[#allocation9_spill] sm:$0xff] %v10640_v58  ;;  %13794 = vst [vmem:[#allocation74_spill] sm:$0xff] %v10648_v2  ;;  %v3422_v16 = vpop.xlane.xlu0 %3421  ;;  %3634 = vmax.xlane.f32.xlu1 %v3633_v10  ;;  %v3639_v29 = vsel %vm3317_vm8, %v13799_v55, -inf  ;;  %v13803_v10 = vld [vmem:[#allocation79_spill] sm:$0xff] }
 0x34d   : > { %v10651_v57 = vsub.f32 %v13629_v44, %v3422_v16  ;;  %v3425_v0 = vpop.xlane.xlu1 %3424 }
 0x34e   : > { %v10654_v4 = vsub.f32 %v13631_v15, %v3425_v0  ;;  %v10658_v58 = vpop.f32.mrb[62].mxu1  ;;  %v3642_v0 = vsel %vm3317_vm8, %v13803_v10, -inf }
 0x34f   : > { %13795 = vst [vmem:[#allocation146_spill] sm:$0xff] %v10651_v57  ;;  %13798 = vst [vmem:[#allocation77_spill] sm:$0xff] %v10658_v58  ;;  %3637 = vmax.xlane.f32.xlu0 %v3636_v39  ;;  %v10662_v9 = vpop.f32.mrb[63].mxu1  ;;  %v13805_v39 = vld [vmem:[#allocation78_spill] sm:$0xff] }
 0x350   : > { %13796 = vst [vmem:[#allocation147_spill] sm:$0xff] %v10654_v4  ;;  %13800 = vst [vmem:[#allocation76_spill] sm:$0xff] %v10662_v9  ;;  %v3428_v2 = vpop.xlane.xlu0 %3427  ;;  %3640 = vmax.xlane.f32.xlu1 %v3639_v29  ;;  %v3645_v57 = vsel %vm3317_vm8, %v13805_v39, -inf  ;;  %v13809_v29 = vld [vmem:[#allocation81_spill] sm:$0xff] }
 0x351   : > { %v10665_v44 = vsub.f32 %v9769_v45, %v3428_v2  ;;  %v3431_v16 = vpop.xlane.xlu1 %3430 }
 0x352   : > { %v10668_v15 = vsub.f32 %v9766_v7, %v3431_v16  ;;  %v10672_v4 = vpop.f32.mrb[64].mxu1  ;;  %v3648_v16 = vsel %vm3317_vm8, %v13809_v29, -inf }
 0x353   : > { %13801 = vst [vmem:[#allocation148_spill] sm:$0xff] %v10665_v44  ;;  %13804 = vst [vmem:[#allocation79_spill] sm:$0xff] %v10672_v4  ;;  %3643 = vmax.xlane.f32.xlu0 %v3642_v0  ;;  %v10676_v58 = vpop.f32.mrb[65].mxu1  ;;  %v13811_v0 = vld [vmem:[#allocation80_spill] sm:$0xff] }
 0x354   : > { %13802 = vst [vmem:[#allocation149_spill] sm:$0xff] %v10668_v15  ;;  %13806 = vst [vmem:[#allocation78_spill] sm:$0xff] %v10676_v58  ;;  %v3434_v9 = vpop.xlane.xlu0 %3433  ;;  %3646 = vmax.xlane.f32.xlu1 %v3645_v57  ;;  %v3651_v44 = vsel %vm3317_vm8, %v13811_v0, -inf  ;;  %v13815_v57 = vld [vmem:[#allocation83_spill] sm:$0xff] }
 0x355   : > { %v10679_v45 = vsub.f32 %v9784_v61, %v3434_v9  ;;  %v3437_v2 = vpop.xlane.xlu1 %3436 }
 0x356   : > { %v10682_v7 = vsub.f32 %v9780_v53, %v3437_v2  ;;  %v10686_v15 = vpop.f32.mrb[66].mxu1  ;;  %v3654_v2 = vsel %vm3317_vm8, %v13815_v57, -inf }
 0x357   : > { %13807 = vst [vmem:[#allocation150_spill] sm:$0xff] %v10679_v45  ;;  %13810 = vst [vmem:[#allocation81_spill] sm:$0xff] %v10686_v15  ;;  %3649 = vmax.xlane.f32.xlu0 %v3648_v16  ;;  %v10690_v4 = vpop.f32.mrb[67].mxu1  ;;  %v13817_v16 = vld [vmem:[#allocation82_spill] sm:$0xff] }
 0x358   : > { %13808 = vst [vmem:[#allocation151_spill] sm:$0xff] %v10682_v7  ;;  %13812 = vst [vmem:[#allocation80_spill] sm:$0xff] %v10690_v4  ;;  %v3440_v58 = vpop.xlane.xlu0 %3439  ;;  %3652 = vmax.xlane.f32.xlu1 %v3651_v44  ;;  %v3657_v45 = vsel %vm3317_vm8, %v13817_v16, -inf  ;;  %v13819_v44 = vld [vmem:[#allocation14_spill] sm:$0xff] }
 0x359   : > { %v10693_v61 = vsub.f32 %v9798_v3, %v3440_v58  ;;  %v3443_v9 = vpop.xlane.xlu1 %3442 }
 0x35a   : > { %v10696_v53 = vsub.f32 %v9794_v56, %v3443_v9  ;;  %v10700_v7 = vpop.f32.mrb[68].mxu1  ;;  %v13823_v9 = vld [vmem:[#allocation86_spill] sm:$0xff] }
 0x35b   : > { %13813 = vst [vmem:[#allocation152_spill] sm:$0xff] %v10693_v61  ;;  %13816 = vst [vmem:[#allocation154_spill] sm:$0xff] %v10700_v7  ;;  %3655 = vmax.xlane.f32.xlu0 %v3654_v2  ;;  %v10704_v15 = vpop.f32.mrb[69].mxu1  ;;  %v13821_v61 = vld [vmem:[#allocation13_spill] sm:$0xff]  ;;  %v13825_v2 = vld [vmem:[#allocation84_spill] sm:$0xff] }
 0x35c   : > { %13814 = vst [vmem:[#allocation153_spill] sm:$0xff] %v10696_v53  ;;  %13818 = vst [vmem:[#allocation155_spill] sm:$0xff] %v10704_v15  ;;  %v3446_v4 = vpop.xlane.xlu0 %3445  ;;  %3658 = vmax.xlane.f32.xlu1 %v3657_v45  ;;  %v3660_v53 = vsel %vm3317_vm8, %v13823_v9, -inf  ;;  %v3663_v7 = vsel %vm3317_vm8, %v13825_v2, -inf  ;;  %v13827_v45 = vld [vmem:[#allocation16_spill] sm:$0xff] }
 0x35d   : > { %v10707_v3 = vsub.f32 %v13819_v44, %v3446_v4  ;;  %v3449_v58 = vpop.xlane.xlu1 %3448 }
 0x35e   : > { %v10710_v56 = vsub.f32 %v13821_v61, %v3449_v58  ;;  %v10714_v57 = vpop.f32.mrb[70].mxu1  ;;  %v13831_v58 = vld [vmem:[#allocation89_spill] sm:$0xff] }
 0x35f   : > { %13820 = vst [vmem:[#allocation14_spill] sm:$0xff] %v10707_v3  ;;  %13824 = vst [vmem:[#allocation156_spill] sm:$0xff] %v10714_v57  ;;  %3661 = vmax.xlane.f32.xlu0 %v3660_v53  ;;  %v10718_v16 = vpop.f32.mrb[71].mxu1  ;;  %v13829_v3 = vld [vmem:[#allocation15_spill] sm:$0xff]  ;;  %v13833_v53 = vld [vmem:[#allocation88_spill] sm:$0xff] }
 0x360   : > { %13822 = vst [vmem:[#allocation13_spill] sm:$0xff] %v10710_v56  ;;  %13826 = vst [vmem:[#allocation157_spill] sm:$0xff] %v10718_v16  ;;  %v3452_v15 = vpop.xlane.xlu0 %3451  ;;  %3664 = vmax.xlane.f32.xlu1 %v3663_v7  ;;  %v3666_v56 = vsel %vm3317_vm8, %v13831_v58, -inf  ;;  %v3669_v57 = vsel %vm3317_vm8, %v13833_v53, -inf }
 0x361   : > { %v10721_v4 = vsub.f32 %v13827_v45, %v3452_v15  ;;  %v3455_v44 = vpop.xlane.xlu1 %3454  ;;  %v13837_v45 = vld [vmem:[#allocation92_spill] sm:$0xff] }
 0x362   : > { %v10724_v61 = vsub.f32 %v13829_v3, %v3455_v44  ;;  %v10728_v9 = vpop.f32.mrb[72].mxu1  ;;  %v3672_v44 = vsel %vm3317_vm8, %v13837_v45, -inf }
 0x363   : > { %13828 = vst [vmem:[#allocation16_spill] sm:$0xff] %v10721_v4  ;;  %13832 = vst [vmem:[#allocation89_spill] sm:$0xff] %v10728_v9  ;;  %3667 = vmax.xlane.f32.xlu0 %v3666_v56  ;;  %v10732_v2 = vpop.f32.mrb[73].mxu1  ;;  %v13839_v56 = vld [vmem:[#allocation90_spill] sm:$0xff] }
 0x364   : > { %13830 = vst [vmem:[#allocation15_spill] sm:$0xff] %v10724_v61  ;;  %13834 = vst [vmem:[#allocation88_spill] sm:$0xff] %v10732_v2  ;;  %v3458_v16 = vpop.xlane.xlu0 %3457  ;;  %3670 = vmax.xlane.f32.xlu1 %v3669_v57  ;;  %v3675_v4 = vsel %vm3317_vm8, %v13839_v56, -inf }
 0x365   : > { %v10735_v15 = vsub.f32 %v13648_v13, %v3458_v16  ;;  %v3461_v7 = vpop.xlane.xlu1 %3460  ;;  %v13843_v16 = vld [vmem:[#allocation93_spill] sm:$0xff] }
 0x366   : > { %v10738_v3 = vsub.f32 %v13650_v22, %v3461_v7  ;;  %v10742_v61 = vpop.f32.mrb[74].mxu1  ;;  %v3678_v7 = vsel %vm3317_vm8, %v13843_v16, -inf }
 0x367   : > { %13835 = vst [vmem:[#allocation158_spill] sm:$0xff] %v10735_v15  ;;  %13838 = vst [vmem:[#allocation92_spill] sm:$0xff] %v10742_v61  ;;  %3673 = vmax.xlane.f32.xlu0 %v3672_v44  ;;  %v10746_v9 = vpop.f32.mrb[75].mxu1  ;;  %v13845_v44 = vld [vmem:[#allocation11_spill] sm:$0xff] }
 0x368   : > { %13836 = vst [vmem:[#allocation159_spill] sm:$0xff] %v10738_v3  ;;  %13840 = vst [vmem:[#allocation90_spill] sm:$0xff] %v10746_v9  ;;  %v3464_v2 = vpop.xlane.xlu0 %3463  ;;  %3676 = vmax.xlane.f32.xlu1 %v3675_v4  ;;  %v3681_v15 = vsel %vm3317_vm8, %v13845_v44, -inf  ;;  %v13848_v4 = vld [vmem:[#allocation21_spill] sm:$0xff] }
 0x369   : > { %v10749_v13 = vsub.f32 %v13651_v28, %v3464_v2  ;;  %v3467_v57 = vpop.xlane.xlu1 %3466 }
 0x36a   : > { %v10752_v22 = vsub.f32 %v13652_v11, %v3467_v57  ;;  %v10756_v3 = vpop.f32.mrb[76].mxu1  ;;  %v13850_v57 = vld [vmem:[#allocation95_spill] sm:$0xff] }
 0x36b   : > { %13841 = vst [vmem:[#allocation160_spill] sm:$0xff] %v10749_v13  ;;  %13844 = vst [vmem:[#allocation93_spill] sm:$0xff] %v10756_v3  ;;  %3679 = vmax.xlane.f32.xlu0 %v3678_v7  ;;  %v10760_v61 = vpop.f32.mrb[77].mxu1  ;;  %v13852_v7 = vld [vmem:[#allocation94_spill] sm:$0xff] }
 0x36c   : > { %13842 = vst [vmem:[#allocation161_spill] sm:$0xff] %v10752_v22  ;;  %13846 = vst [vmem:[#allocation162_spill] sm:$0xff] %v10760_v61  ;;  %v3470_v9 = vpop.xlane.xlu0 %3469  ;;  %3682 = vmax.xlane.f32.xlu1 %v3681_v15  ;;  %v3684_v22 = vsel %vm3317_vm8, %v13850_v57, -inf  ;;  %v3687_v3 = vsel %vm3317_vm8, %v13852_v7, -inf  ;;  %v13854_v15 = vld [vmem:[#allocation24_spill] sm:$0xff] }
 0x36d   : > { %v10763_v28 = vsub.f32 %v13654_v63, %v3470_v9  ;;  %v3473_v2 = vpop.xlane.xlu1 %3472 }
 0x36e   : > { %v10766_v11 = vsub.f32 %v13848_v4, %v3473_v2  ;;  %v10770_v13 = vpop.f32.mrb[78].mxu1 }
 0x36f   : > { %13847 = vst [vmem:[#allocation163_spill] sm:$0xff] %v10763_v28  ;;  %13851 = vst [vmem:[#allocation95_spill] sm:$0xff] %v10770_v13  ;;  %3685 = vmax.xlane.f32.xlu0 %v3684_v22  ;;  %v10774_v44 = vpop.f32.mrb[79].mxu1  ;;  %v13860_v13 = vld [vmem:[#allocation98_spill] sm:$0xff] }
 0x370   : > { %13849 = vst [vmem:[#allocation21_spill] sm:$0xff] %v10766_v11  ;;  %13853 = vst [vmem:[#allocation164_spill] sm:$0xff] %v10774_v44  ;;  %v3476_v61 = vpop.xlane.xlu0 %3475  ;;  %3688 = vmax.xlane.f32.xlu1 %v3687_v3  ;;  %v13858_v11 = vld [vmem:[#allocation99_spill] sm:$0xff]  ;;  %v3693_v44 = vsel %vm3317_vm8, %v13860_v13, -inf }
 0x371   : > { %v10777_v63 = vsub.f32 %v13854_v15, %v3476_v61  ;;  %v3479_v9 = vpop.xlane.xlu1 %3478  ;;  %v3690_v28 = vsel %vm3317_vm8, %v13858_v11, -inf  ;;  %v13862_v15 = vld [vmem:[#allocation101_spill] sm:$0xff] }
 0x372   : > { %v10780_v2 = vsub.f32 %v13658_v43, %v3479_v9  ;;  %v10782_v4 = vpop.f32.mrb[80].mxu1  ;;  %v3696_v43 = vsel %vm3317_vm8, %v13862_v15, -inf  ;;  %v13863_v9 = vld [vmem:[#allocation25_spill] sm:$0xff] }
 0x373   : > { %13855 = vst [vmem:[#allocation24_spill] sm:$0xff] %v10777_v63  ;;  %13857 = vst [vmem:[#allocation166_spill] sm:$0xff] %v10782_v4  ;;  %v10786_v22 = vpop.f32.mrb[81].mxu1  ;;  %3691 = vmax.xlane.f32.xlu0 %v3690_v28  ;;  %v13867_v28 = vld [vmem:[#allocation100_spill] sm:$0xff] }
 0x374   : > { %13856 = vst [vmem:[#allocation165_spill] sm:$0xff] %v10780_v2  ;;  %13859 = vst [vmem:[#allocation167_spill] sm:$0xff] %v10786_v22  ;;  %v3482_v7 = vpop.xlane.xlu0 %3481  ;;  %3694 = vmax.xlane.f32.xlu1 %v3693_v44  ;;  %v3699_v22 = vsel %vm3317_vm8, %v13867_v28, -inf  ;;  %v13868_v44 = vld [vmem:[#allocation28_spill] sm:$0xff] }
 0x375   : > { %v10791_v61 = vsub.f32 %v13660_v12, %v3482_v7  ;;  %v3485_v3 = vpop.xlane.xlu1 %3484 }
 0x376   : > { %v10796_v2 = vsub.f32 %v13863_v9, %v3485_v3  ;;  %v10798_v63 = vpop.f32.mrb[82].mxu1  ;;  %v13873_v3 = vld [vmem:[#allocation87_spill] sm:$0xff] }
 0x377   : > { %13861 = vst [vmem:[#allocation168_spill] sm:$0xff] %v10791_v61  ;;  %13865 = vst [vmem:[#allocation169_spill] sm:$0xff] %v10798_v63  ;;  %v10800_v4 = vpop.f32.mrb[83].mxu1  ;;  %3697 = vmax.xlane.f32.xlu0 %v3696_v43  ;;  %v13870_v61 = vld [vmem:[#allocation27_spill] sm:$0xff]  ;;  %v3702_v9 = vsel %vm3317_vm8, %v13873_v3, -inf  ;;  %v13875_v43 = vld [vmem:[#allocation85_spill] sm:$0xff] }
 0x378   : > { %13864 = vst [vmem:[#allocation25_spill] sm:$0xff] %v10796_v2  ;;  %13866 = vst [vmem:[#allocation170_spill] sm:$0xff] %v10800_v4  ;;  %v3488_v13 = vpop.xlane.xlu0 %3487  ;;  %3700 = vmax.xlane.f32.xlu1 %v3699_v22  ;;  %v3705_v63 = vsel %vm3317_vm8, %v13875_v43, -inf  ;;  %v13876_v22 = vld [vmem:[#allocation30_spill] sm:$0xff] }
 0x379   : > { %v10805_v12 = vsub.f32 %v13868_v44, %v3488_v13  ;;  %v3491_v7 = vpop.xlane.xlu1 %3490 }
 0x37a   : > { %v10808_v11 = vsub.f32 %v13870_v61, %v3491_v7  ;;  %v10810_v15 = vpop.f32.mrb[84].mxu1 }
 0x37b   : > { %13869 = vst [vmem:[#allocation100_spill] sm:$0xff] %v10805_v12  ;;  %13872 = vst [vmem:[#allocation27_spill] sm:$0xff] %v10810_v15  ;;  %v10814_v2 = vpop.f32.mrb[85].mxu1  ;;  %3703 = vmax.xlane.f32.xlu0 %v3702_v9  ;;  %v13882_v9 = vld [vmem:[#allocation91_spill] sm:$0xff] }
 0x37c   : > { %13871 = vst [vmem:[#allocation28_spill] sm:$0xff] %v10808_v11  ;;  %13874 = vst [vmem:[#allocation87_spill] sm:$0xff] %v10814_v2  ;;  %v3494_v4 = vpop.xlane.xlu0 %3493  ;;  %3706 = vmax.xlane.f32.xlu1 %v3705_v63  ;;  %v13880_v11 = vld [vmem:[#allocation12_spill] sm:$0xff]  ;;  %v3711_v2 = vsel %vm3317_vm8, %v13882_v9, -inf }
 0x37d   : > { %v10819_v13 = vsub.f32 %v13876_v22, %v3494_v4  ;;  %v3497_v44 = vpop.xlane.xlu1 %3496  ;;  %v3708_v12 = vsel %vm3317_vm8, %v13880_v11, -inf }
 0x37e   : > { %v10822_v61 = vsub.f32 %v13667_v14, %v3497_v44  ;;  %v10824_v7 = vpop.f32.mrb[86].mxu1  ;;  %v13886_v44 = vld [vmem:[#allocation97_spill] sm:$0xff] }
 0x37f   : > { %13877 = vst [vmem:[#allocation30_spill] sm:$0xff] %v10819_v13  ;;  %13879 = vst [vmem:[#allocation172_spill] sm:$0xff] %v10824_v7  ;;  %v10828_v15 = vpop.f32.mrb[87].mxu1  ;;  %3709 = vmax.xlane.f32.xlu0 %v3708_v12  ;;  %v13888_v12 = vld [vmem:[#allocation96_spill] sm:$0xff] }
 0x380   : > { %13878 = vst [vmem:[#allocation171_spill] sm:$0xff] %v10822_v61  ;;  %13881 = vst [vmem:[#allocation12_spill] sm:$0xff] %v10828_v15  ;;  %v3500_v43 = vpop.xlane.xlu0 %3499  ;;  %3712 = vmax.xlane.f32.xlu1 %v3711_v2  ;;  %v3714_v61 = vsel %vm3317_vm8, %v13886_v44, -inf  ;;  %v3717_v7 = vsel %vm3317_vm8, %v13888_v12, -inf }
 0x381   : > { %v10833_v63 = vsub.f32 %v13670_v36, %v3500_v43  ;;  %v3503_v4 = vpop.xlane.xlu1 %3502 }
 0x382   : > { %v10836_v14 = vsub.f32 %v13672_v34, %v3503_v4  ;;  %v10838_v22 = vpop.f32.mrb[88].mxu1  ;;  %v13892_v4 = vld [vmem:[#allocation103_spill] sm:$0xff] }
 0x383   : > { %13883 = vst [vmem:[#allocation91_spill] sm:$0xff] %v10833_v63  ;;  %13885 = vst [vmem:[#allocation174_spill] sm:$0xff] %v10838_v22  ;;  %v10842_v13 = vpop.f32.mrb[89].mxu1  ;;  %3715 = vmax.xlane.f32.xlu0 %v3714_v61  ;;  %v13894_v61 = vld [vmem:[#allocation102_spill] sm:$0xff] }
 0x384   : > { %13884 = vst [vmem:[#allocation173_spill] sm:$0xff] %v10836_v14  ;;  %13887 = vst [vmem:[#allocation97_spill] sm:$0xff] %v10842_v13  ;;  %v3506_v15 = vpop.xlane.xlu0 %3505  ;;  %3718 = vmax.xlane.f32.xlu1 %v3717_v7  ;;  %v3720_v14 = vsel %vm3317_vm8, %v13892_v4, -inf  ;;  %v3723_v22 = vsel %vm3317_vm8, %v13894_v61, -inf  ;;  %v13895_v7 = vld [vmem:[#allocation36_spill] sm:$0xff] }
 0x385   : > { %v10847_v36 = vsub.f32 %v13674_v18, %v3506_v15  ;;  %v3509_v2 = vpop.xlane.xlu1 %3508 }
 0x386   : > { %v10850_v34 = vsub.f32 %v13676_v21, %v3509_v2  ;;  %v10852_v43 = vpop.f32.mrb[90].mxu1  ;;  %v13899_v2 = vld [vmem:[#allocation18_spill] sm:$0xff] }
 0x387   : > { %13889 = vst [vmem:[#allocation96_spill] sm:$0xff] %v10847_v36  ;;  %13891 = vst [vmem:[#allocation176_spill] sm:$0xff] %v10852_v43  ;;  %v10856_v63 = vpop.f32.mrb[91].mxu1  ;;  %3721 = vmax.xlane.f32.xlu0 %v3720_v14  ;;  %v13897_v36 = vld [vmem:[#allocation35_spill] sm:$0xff] }
 0x388   : > { %13890 = vst [vmem:[#allocation175_spill] sm:$0xff] %v10850_v34  ;;  %13893 = vst [vmem:[#allocation177_spill] sm:$0xff] %v10856_v63  ;;  %v3512_v13 = vpop.xlane.xlu0 %3511  ;;  %3724 = vmax.xlane.f32.xlu1 %v3723_v22  ;;  %v3726_v34 = vsel %vm3317_vm8, %v13899_v2, -inf  ;;  %v13901_v63 = vld [vmem:[#allocation104_spill] sm:$0xff] }
 0x389   : > { %v10861_v18 = vsub.f32 %v13895_v7, %v3512_v13  ;;  %v3515_v15 = vpop.xlane.xlu1 %3514  ;;  %v3729_v14 = vsel %vm3317_vm8, %v13901_v63, -inf  ;;  %v13904_v7 = vld [vmem:[#allocation37_spill] sm:$0xff] }
 0x38a   : > { %v10864_v21 = vsub.f32 %v13897_v36, %v3515_v15  ;;  %v10868_v43 = vpop.f32.mrb[92].mxu1  ;;  %v13906_v15 = vld [vmem:[#allocation20_spill] sm:$0xff] }
 0x38b   : > { %13896 = vst [vmem:[#allocation36_spill] sm:$0xff] %v10861_v18  ;;  %13900 = vst [vmem:[#allocation18_spill] sm:$0xff] %v10868_v43  ;;  %3727 = vmax.xlane.f32.xlu0 %v3726_v34  ;;  %v10872_v4 = vpop.f32.mrb[93].mxu1  ;;  %v13908_v34 = vld [vmem:[#allocation17_spill] sm:$0xff] }
 0x38c   : > { %13898 = vst [vmem:[#allocation35_spill] sm:$0xff] %v10864_v21  ;;  %13902 = vst [vmem:[#allocation178_spill] sm:$0xff] %v10872_v4  ;;  %v3518_v61 = vpop.xlane.xlu0 %3517  ;;  %3730 = vmax.xlane.f32.xlu1 %v3729_v14  ;;  %v3732_v21 = vsel %vm3317_vm8, %v13906_v15, -inf  ;;  %v3735_v43 = vsel %vm3317_vm8, %v13908_v34, -inf  ;;  %v13910_v14 = vld [vmem:[#allocation40_spill] sm:$0xff] }
 0x38d   : > { %v10875_v13 = vsub.f32 %v13681_v17, %v3518_v61  ;;  %v3521_v22 = vpop.xlane.xlu1 %3520 }
 0x38e   : > { %v10878_v36 = vsub.f32 %v13904_v7, %v3521_v22  ;;  %v10882_v18 = vpop.f32.mrb[94].mxu1  ;;  %v13914_v7 = vld [vmem:[#allocation22_spill] sm:$0xff] }
 0x38f   : > { %13903 = vst [vmem:[#allocation179_spill] sm:$0xff] %v10875_v13  ;;  %13907 = vst [vmem:[#allocation180_spill] sm:$0xff] %v10882_v18  ;;  %3733 = vmax.xlane.f32.xlu0 %v3732_v21  ;;  %v10886_v63 = vpop.f32.mrb[95].mxu1  ;;  %v13912_v13 = vld [vmem:[#allocation39_spill] sm:$0xff] }
 0x390   : > { %13905 = vst [vmem:[#allocation37_spill] sm:$0xff] %v10878_v36  ;;  %13909 = vst [vmem:[#allocation181_spill] sm:$0xff] %v10886_v63  ;;  %v3524_v4 = vpop.xlane.xlu0 %3523  ;;  %3736 = vmax.xlane.f32.xlu1 %v3735_v43  ;;  %v3738_v36 = vsel %vm3317_vm8, %v13914_v7, -inf  ;;  %v13916_v21 = vld [vmem:[#allocation19_spill] sm:$0xff] }
 0x391   : > { %v10889_v17 = vsub.f32 %v13910_v14, %v3524_v4  ;;  %v3527_v61 = vpop.xlane.xlu1 %3526  ;;  %v3741_v18 = vsel %vm3317_vm8, %v13916_v21, -inf  ;;  %v13919_v14 = vld [vmem:[#allocation41_spill] sm:$0xff] }
 0x392   : > { %v10892_v22 = vsub.f32 %v13912_v13, %v3527_v61  ;;  %v10896_v15 = vpop.f32.mrb[96].mxu1  ;;  %v13921_v61 = vld [vmem:[#allocation26_spill] sm:$0xff] }
 0x393   : > { %13911 = vst [vmem:[#allocation40_spill] sm:$0xff] %v10889_v17  ;;  %13915 = vst [vmem:[#allocation22_spill] sm:$0xff] %v10896_v15  ;;  %3739 = vmax.xlane.f32.xlu0 %v3738_v36  ;;  %v10900_v34 = vpop.f32.mrb[97].mxu1  ;;  %v13923_v36 = vld [vmem:[#allocation23_spill] sm:$0xff] }
 0x394   : > { %13913 = vst [vmem:[#allocation39_spill] sm:$0xff] %v10892_v22  ;;  %13917 = vst [vmem:[#allocation182_spill] sm:$0xff] %v10900_v34  ;;  %v3530_v63 = vpop.xlane.xlu0 %3529  ;;  %3742 = vmax.xlane.f32.xlu1 %v3741_v18  ;;  %v3744_v22 = vsel %vm3317_vm8, %v13921_v61, -inf  ;;  %v3747_v15 = vsel %vm3317_vm8, %v13923_v36, -inf  ;;  %v13925_v18 = vld [vmem:[#allocation44_spill] sm:$0xff] }
 0x395   : > { %v10903_v43 = vsub.f32 %v13689_v42, %v3530_v63  ;;  %v3533_v4 = vpop.xlane.xlu1 %3532 }
 0x396   : > { %v10906_v13 = vsub.f32 %v13919_v14, %v3533_v4  ;;  %v10910_v17 = vpop.f32.mrb[98].mxu1  ;;  %v13929_v14 = vld [vmem:[#allocation32_spill] sm:$0xff] }
 0x397   : > { %13918 = vst [vmem:[#allocation183_spill] sm:$0xff] %v10903_v43  ;;  %13922 = vst [vmem:[#allocation184_spill] sm:$0xff] %v10910_v17  ;;  %3745 = vmax.xlane.f32.xlu0 %v3744_v22  ;;  %v10914_v21 = vpop.f32.mrb[99].mxu1  ;;  %v13927_v43 = vld [vmem:[#allocation43_spill] sm:$0xff]  ;;  %v13931_v22 = vld [vmem:[#allocation29_spill] sm:$0xff] }
 0x398   : > { %13920 = vst [vmem:[#allocation41_spill] sm:$0xff] %v10906_v13  ;;  %13924 = vst [vmem:[#allocation185_spill] sm:$0xff] %v10914_v21  ;;  %v3536_v34 = vpop.xlane.xlu0 %3535  ;;  %3748 = vmax.xlane.f32.xlu1 %v3747_v15  ;;  %v3750_v13 = vsel %vm3317_vm8, %v13929_v14, -inf  ;;  %v3753_v17 = vsel %vm3317_vm8, %v13931_v22, -inf }
 0x399   : > { %v10917_v42 = vsub.f32 %v13925_v18, %v3536_v34  ;;  %v3539_v63 = vpop.xlane.xlu1 %3538  ;;  %v13935_v18 = vld [vmem:[#allocation34_spill] sm:$0xff] }
 0x39a   : > { %v10920_v4 = vsub.f32 %v13927_v43, %v3539_v63  ;;  %v10924_v61 = vpop.f32.mrb[100].mxu1  ;;  %v3756_v63 = vsel %vm3317_vm8, %v13935_v18, -inf }
 0x39b   : > { %13926 = vst [vmem:[#allocation44_spill] sm:$0xff] %v10917_v42  ;;  %13930 = vst [vmem:[#allocation32_spill] sm:$0xff] %v10924_v61  ;;  %3751 = vmax.xlane.f32.xlu0 %v3750_v13  ;;  %v10928_v36 = vpop.f32.mrb[101].mxu1  ;;  %v13937_v13 = vld [vmem:[#allocation31_spill] sm:$0xff] }
 0x39c   : > { %13928 = vst [vmem:[#allocation43_spill] sm:$0xff] %v10920_v4  ;;  %13932 = vst [vmem:[#allocation29_spill] sm:$0xff] %v10928_v36  ;;  %v3542_v21 = vpop.xlane.xlu0 %3541  ;;  %3754 = vmax.xlane.f32.xlu1 %v3753_v17  ;;  %v3759_v42 = vsel %vm3317_vm8, %v13937_v13, -inf }
 0x39d   : > { %v10931_v15 = vsub.f32 %v13699_v30, %v3542_v21  ;;  %v3545_v34 = vpop.xlane.xlu1 %3544  ;;  %v13941_v21 = vld [vmem:[#allocation105_spill] sm:$0xff] }
 0x39e   : > { %v10934_v43 = vsub.f32 %v13701_v60, %v3545_v34  ;;  %v10938_v4 = vpop.f32.mrb[102].mxu1  ;;  %v3762_v34 = vsel %vm3317_vm8, %v13941_v21, -inf }
 0x39f   : > { %13933 = vst [vmem:[#allocation186_spill] sm:$0xff] %v10931_v15  ;;  %13936 = vst [vmem:[#allocation34_spill] sm:$0xff] %v10938_v4  ;;  %3757 = vmax.xlane.f32.xlu0 %v3756_v63  ;;  %v10942_v61 = vpop.f32.mrb[103].mxu1  ;;  %v13943_v63 = vld [vmem:[#allocation33_spill] sm:$0xff] }
 0x3a0   : > { %13934 = vst [vmem:[#allocation187_spill] sm:$0xff] %v10934_v43  ;;  %13938 = vst [vmem:[#allocation31_spill] sm:$0xff] %v10942_v61  ;;  %v3548_v36 = vpop.xlane.xlu0 %3547  ;;  %3760 = vmax.xlane.f32.xlu1 %v3759_v42  ;;  %v3765_v15 = vsel %vm3317_vm8, %v13943_v63, -inf  ;;  %v13947_v42 = vld [vmem:[#allocation38_spill] sm:$0xff] }
 0x3a1   : > { %v10945_v30 = vsub.f32 %v13705_v6, %v3548_v36  ;;  %v3551_v17 = vpop.xlane.xlu1 %3550 }
 0x3a2   : > { %v10948_v60 = vsub.f32 %v13707_v27, %v3551_v17  ;;  %v10952_v43 = vpop.f32.mrb[104].mxu1  ;;  %v3768_v17 = vsel %vm3317_vm8, %v13947_v42, -inf }
 0x3a3   : > { %13939 = vst [vmem:[#allocation188_spill] sm:$0xff] %v10945_v30  ;;  %13942 = vst [vmem:[#allocation105_spill] sm:$0xff] %v10952_v43  ;;  %3763 = vmax.xlane.f32.xlu0 %v3762_v34  ;;  %v10956_v4 = vpop.f32.mrb[105].mxu1  ;;  %v13949_v34 = vld [vmem:[#allocation106_spill] sm:$0xff] }
 0x3a4   : > { %13940 = vst [vmem:[#allocation189_spill] sm:$0xff] %v10948_v60  ;;  %13944 = vst [vmem:[#allocation33_spill] sm:$0xff] %v10956_v4  ;;  %v3554_v61 = vpop.xlane.xlu0 %3553  ;;  %3766 = vmax.xlane.f32.xlu1 %v3765_v15  ;;  %v3771_v30 = vsel %vm3317_vm8, %v13949_v34, -inf  ;;  %v13953_v15 = vld [vmem:[#allocation108_spill] sm:$0xff] }
 0x3a5   : > { %v10959_v6 = vsub.f32 %v13711_v54, %v3554_v61  ;;  %v3557_v36 = vpop.xlane.xlu1 %3556 }
 0x3a6   : > { %v10962_v27 = vsub.f32 %v13713_v5, %v3557_v36  ;;  %v10966_v60 = vpop.f32.mrb[106].mxu1  ;;  %v3774_v36 = vsel %vm3317_vm8, %v13953_v15, -inf }
 0x3a7   : > { %13945 = vst [vmem:[#allocation190_spill] sm:$0xff] %v10959_v6  ;;  %13948 = vst [vmem:[#allocation38_spill] sm:$0xff] %v10966_v60  ;;  %3769 = vmax.xlane.f32.xlu0 %v3768_v17  ;;  %v10970_v43 = vpop.f32.mrb[107].mxu1  ;;  %v13955_v17 = vld [vmem:[#allocation107_spill] sm:$0xff] }
 0x3a8   : > { %13946 = vst [vmem:[#allocation191_spill] sm:$0xff] %v10962_v27  ;;  %13950 = vst [vmem:[#allocation106_spill] sm:$0xff] %v10970_v43  ;;  %v3560_v4 = vpop.xlane.xlu0 %3559  ;;  %3772 = vmax.xlane.f32.xlu1 %v3771_v30  ;;  %v3777_v6 = vsel %vm3317_vm8, %v13955_v17, -inf  ;;  %v13959_v30 = vld [vmem:[#allocation42_spill] sm:$0xff] }
 0x3a9   : > { %v10973_v54 = vsub.f32 %v13717_v25, %v3560_v4  ;;  %v3563_v61 = vpop.xlane.xlu1 %3562 }
 0x3aa   : > { %v10976_v5 = vsub.f32 %v13719_v41, %v3563_v61  ;;  %v10980_v27 = vpop.f32.mrb[108].mxu1  ;;  %v3780_v61 = vsel %vm3317_vm8, %v13959_v30, -inf }
 0x3ab   : > { %13951 = vst [vmem:[#allocation192_spill] sm:$0xff] %v10973_v54  ;;  %13954 = vst [vmem:[#allocation108_spill] sm:$0xff] %v10980_v27  ;;  %3775 = vmax.xlane.f32.xlu0 %v3774_v36  ;;  %v10984_v60 = vpop.f32.mrb[109].mxu1  ;;  %v13961_v36 = vld [vmem:[#allocation110_spill] sm:$0xff] }
 0x3ac   : > { %13952 = vst [vmem:[#allocation193_spill] sm:$0xff] %v10976_v5  ;;  %13956 = vst [vmem:[#allocation107_spill] sm:$0xff] %v10984_v60  ;;  %v3566_v43 = vpop.xlane.xlu0 %3565  ;;  %3778 = vmax.xlane.f32.xlu1 %v3777_v6  ;;  %v3783_v54 = vsel %vm3317_vm8, %v13961_v36, -inf }
 0x3ad   : > { %v10987_v25 = vsub.f32 %v13723_v26, %v3566_v43  ;;  %v3569_v4 = vpop.xlane.xlu1 %3568 }
 0x3ae   : > { %v10990_v41 = vsub.f32 %v13725_v19, %v3569_v4  ;;  %v10994_v5 = vpop.f32.mrb[110].mxu1  ;;  %v13966_v4 = vld [vmem:[#allocation113_spill] sm:$0xff] }
 0x3af   : > { %13957 = vst [vmem:[#allocation194_spill] sm:$0xff] %v10987_v25  ;;  %13960 = vst [vmem:[#allocation42_spill] sm:$0xff] %v10994_v5  ;;  %3781 = vmax.xlane.f32.xlu0 %v3780_v61  ;;  %v10998_v27 = vpop.f32.mrb[111].mxu1  ;;  %v13968_v25 = vld [vmem:[#allocation112_spill] sm:$0xff] }
 0x3b0   : > { %13958 = vst [vmem:[#allocation195_spill] sm:$0xff] %v10990_v41  ;;  %13962 = vst [vmem:[#allocation110_spill] sm:$0xff] %v10998_v27  ;;  %v3572_v60 = vpop.xlane.xlu0 %3571  ;;  %3784 = vmax.xlane.f32.xlu1 %v3783_v54  ;;  %v3786_v41 = vsel %vm3317_vm8, %v13966_v4, -inf  ;;  %v3789_v5 = vsel %vm3317_vm8, %v13968_v25, -inf }
 0x3b1   : > { %v11001_v26 = vsub.f32 %v13729_v40, %v3572_v60  ;;  %v3575_v43 = vpop.xlane.xlu1 %3574 }
 0x3b2   : > { %v11004_v19 = vsub.f32 %v13731_v35, %v3575_v43  ;;  %v11006_v6 = vpop.f32.mrb[112].mxu1  ;;  %v13972_v43 = vld [vmem:[#allocation45_spill] sm:$0xff] }
 0x3b3   : > { %13963 = vst [vmem:[#allocation196_spill] sm:$0xff] %v11001_v26  ;;  %13965 = vst [vmem:[#allocation198_spill] sm:$0xff] %v11006_v6  ;;  %v11010_v61 = vpop.f32.mrb[113].mxu1  ;;  %3787 = vmax.xlane.f32.xlu0 %v3786_v41  ;;  %v13974_v41 = vld [vmem:[#allocation46_spill] sm:$0xff] }
 0x3b4   : > { %13964 = vst [vmem:[#allocation197_spill] sm:$0xff] %v11004_v19  ;;  %13967 = vst [vmem:[#allocation113_spill] sm:$0xff] %v11010_v61  ;;  %v3578_v27 = vpop.xlane.xlu0 %3577  ;;  %3790 = vmax.xlane.f32.xlu1 %v3789_v5  ;;  %v3792_v19 = vsel %vm3317_vm8, %v13972_v43, -inf  ;;  %v3795_v6 = vsel %vm3317_vm8, %v13974_v41, -inf }
 0x3b5   : > { %v11015_v40 = vsub.f32 %v13735_v1, %v3578_v27  ;;  %v3581_v60 = vpop.xlane.xlu1 %3580 }
 0x3b6   : > { %v11018_v35 = vsub.f32 %v13737_v33, %v3581_v60  ;;  %v11020_v54 = vpop.f32.mrb[114].mxu1  ;;  %v13978_v60 = vld [vmem:[#allocation47_spill] sm:$0xff] }
 0x3b7   : > { %13969 = vst [vmem:[#allocation112_spill] sm:$0xff] %v11015_v40  ;;  %13971 = vst [vmem:[#allocation200_spill] sm:$0xff] %v11020_v54  ;;  %v11024_v26 = vpop.f32.mrb[115].mxu1  ;;  %3793 = vmax.xlane.f32.xlu0 %v3792_v19  ;;  %v13980_v19 = vld [vmem:[#allocation48_spill] sm:$0xff] }
 0x3b8   : > { %13970 = vst [vmem:[#allocation199_spill] sm:$0xff] %v11018_v35  ;;  %13973 = vst [vmem:[#allocation45_spill] sm:$0xff] %v11024_v26  ;;  %v3584_v61 = vpop.xlane.xlu0 %3583  ;;  %3796 = vmax.xlane.f32.xlu1 %v3795_v6  ;;  %v3798_v35 = vsel %vm3317_vm8, %v13978_v60, -inf  ;;  %v3801_v54 = vsel %vm3317_vm8, %v13980_v19, -inf }
 0x3b9   : > { %v11029_v1 = vsub.f32 %v13741_v62, %v3584_v61  ;;  %v3587_v27 = vpop.xlane.xlu1 %3586 }
 0x3ba   : > { %v11032_v33 = vsub.f32 %v13743_v32, %v3587_v27  ;;  %v11034_v5 = vpop.f32.mrb[116].mxu1  ;;  %v13984_v27 = vld [vmem:[#allocation49_spill] sm:$0xff] }
 0x3bb   : > { %13975 = vst [vmem:[#allocation46_spill] sm:$0xff] %v11029_v1  ;;  %13977 = vst [vmem:[#allocation202_spill] sm:$0xff] %v11034_v5  ;;  %v11038_v40 = vpop.f32.mrb[117].mxu1  ;;  %3799 = vmax.xlane.f32.xlu0 %v3798_v35  ;;  %v13986_v35 = vld [vmem:[#allocation50_spill] sm:$0xff] }
 0x3bc   : > { %13976 = vst [vmem:[#allocation201_spill] sm:$0xff] %v11032_v33  ;;  %13979 = vst [vmem:[#allocation47_spill] sm:$0xff] %v11038_v40  ;;  %v3590_v26 = vpop.xlane.xlu0 %3589  ;;  %3802 = vmax.xlane.f32.xlu1 %v3801_v54  ;;  %v3804_v33 = vsel %vm3317_vm8, %v13984_v27, -inf  ;;  %v3807_v5 = vsel %vm3317_vm8, %v13986_v35, -inf }
 0x3bd   : > { %v11043_v62 = vsub.f32 %v13747_v24, %v3590_v26  ;;  %v3593_v6 = vpop.xlane.xlu1 %3592 }
 0x3be   : > { %v11046_v32 = vsub.f32 %v13749_v31, %v3593_v6  ;;  %v11048_v61 = vpop.f32.mrb[118].mxu1  ;;  %v13990_v6 = vld [vmem:[#allocation51_spill] sm:$0xff] }
 0x3bf   : > { %13981 = vst [vmem:[#allocation48_spill] sm:$0xff] %v11043_v62  ;;  %13983 = vst [vmem:[#allocation204_spill] sm:$0xff] %v11048_v61  ;;  %v11052_v1 = vpop.f32.mrb[119].mxu1  ;;  %3805 = vmax.xlane.f32.xlu0 %v3804_v33  ;;  %v13992_v33 = vld [vmem:[#allocation52_spill] sm:$0xff] }
 0x3c0   : > { %13982 = vst [vmem:[#allocation203_spill] sm:$0xff] %v11046_v32  ;;  %13985 = vst [vmem:[#allocation49_spill] sm:$0xff] %v11052_v1  ;;  %v3596_v40 = vpop.xlane.xlu0 %3595  ;;  %3808 = vmax.xlane.f32.xlu1 %v3807_v5  ;;  %v3810_v32 = vsel %vm3317_vm8, %v13990_v6, -inf  ;;  %v3813_v61 = vsel %vm3317_vm8, %v13992_v33, -inf }
 0x3c1   : > { %v11057_v24 = vsub.f32 %v13754_v50, %v3596_v40  ;;  %v3599_v26 = vpop.xlane.xlu1 %3598 }
 0x3c2   : > { %v11060_v31 = vsub.f32 %v13756_v49, %v3599_v26  ;;  %v11062_v54 = vpop.f32.mrb[120].mxu1  ;;  %v13996_v26 = vld [vmem:[#allocation53_spill] sm:$0xff] }
 0x3c3   : > { %13987 = vst [vmem:[#allocation50_spill] sm:$0xff] %v11057_v24  ;;  %13989 = vst [vmem:[#allocation206_spill] sm:$0xff] %v11062_v54  ;;  %v11066_v62 = vpop.f32.mrb[121].mxu1  ;;  %3811 = vmax.xlane.f32.xlu0 %v3810_v32  ;;  %v13998_v32 = vld [vmem:[#allocation54_spill] sm:$0xff] }
 0x3c4   : > { %13988 = vst [vmem:[#allocation205_spill] sm:$0xff] %v11060_v31  ;;  %13991 = vst [vmem:[#allocation51_spill] sm:$0xff] %v11066_v62  ;;  %v3602_v1 = vpop.xlane.xlu0 %3601  ;;  %3814 = vmax.xlane.f32.xlu1 %v3813_v61  ;;  %v3816_v31 = vsel %vm3317_vm8, %v13996_v26, -inf  ;;  %v3819_v54 = vsel %vm3317_vm8, %v13998_v32, -inf  ;;  %v14001_v61 = vld [vmem:[#allocation55_spill] sm:$0xff] }
 0x3c5   : > { %v11071_v50 = vsub.f32 %v13760_v59, %v3602_v1  ;;  %v3605_v40 = vpop.xlane.xlu1 %3604 }
 0x3c6   : > { %v11074_v49 = vsub.f32 %v13762_v47, %v3605_v40  ;;  %v11076_v5 = vpop.f32.mrb[122].mxu1  ;;  %v3822_v40 = vsel %vm3317_vm8, %v14001_v61, -inf }
 0x3c7   : > { %13993 = vst [vmem:[#allocation52_spill] sm:$0xff] %v11071_v50  ;;  %13995 = vst [vmem:[#allocation208_spill] sm:$0xff] %v11076_v5  ;;  %v11080_v24 = vpop.f32.mrb[123].mxu1  ;;  %3817 = vmax.xlane.f32.xlu0 %v3816_v31  ;;  %v14003_v50 = vld [vmem:[#allocation56_spill] sm:$0xff] }
 0x3c8   : > { %13994 = vst [vmem:[#allocation207_spill] sm:$0xff] %v11074_v49  ;;  %13997 = vst [vmem:[#allocation53_spill] sm:$0xff] %v11080_v24  ;;  %v3608_v62 = vpop.xlane.xlu0 %3607  ;;  %3820 = vmax.xlane.f32.xlu1 %v3819_v54  ;;  %v3825_v31 = vsel %vm3317_vm8, %v14003_v50, -inf  ;;  %v14007_v54 = vld [vmem:[#allocation57_spill] sm:$0xff] }
 0x3c9   : > { %v11085_v59 = vsub.f32 %v13766_v20, %v3608_v62  ;;  %v3611_v1 = vpop.xlane.xlu1 %3610 }
 0x3ca   : > { %v11088_v47 = vsub.f32 %v13768_v52, %v3611_v1  ;;  %v11092_v49 = vpop.f32.mrb[124].mxu1  ;;  %v3828_v1 = vsel %vm3317_vm8, %v14007_v54, -inf }
 0x3cb   : > { %13999 = vst [vmem:[#allocation54_spill] sm:$0xff] %v11085_v59  ;;  %14002 = vst [vmem:[#allocation55_spill] sm:$0xff] %v11092_v49  ;;  %3823 = vmax.xlane.f32.xlu0 %v3822_v40  ;;  %v11096_v5 = vpop.f32.mrb[125].mxu1  ;;  %v14009_v40 = vld [vmem:[#allocation58_spill] sm:$0xff] }
 0x3cc   : > { %14000 = vst [vmem:[#allocation209_spill] sm:$0xff] %v11088_v47  ;;  %14004 = vst [vmem:[#allocation56_spill] sm:$0xff] %v11096_v5  ;;  %v3614_v24 = vpop.xlane.xlu0 %3613  ;;  %3826 = vmax.xlane.f32.xlu1 %v3825_v31  ;;  %v3831_v59 = vsel %vm3317_vm8, %v14009_v40, -inf  ;;  %v14013_v31 = vld [vmem:[#allocation59_spill] sm:$0xff]  ;;  %v14017_v40 = vld [vmem:[#allocation72_spill] sm:$0xff] }
 0x3cd   : > { %v11099_v20 = vsub.f32 %v13772_v38, %v3614_v24  ;;  %v3617_v62 = vpop.xlane.xlu1 %3616 }
 0x3ce   : > { %v11102_v52 = vsub.f32 %v13774_v48, %v3617_v62  ;;  %v11106_v47 = vpop.f32.mrb[126].mxu1  ;;  %v3834_v62 = vsel %vm3317_vm8, %v14013_v31, -inf }
 0x3cf   : > { %14005 = vst [vmem:[#allocation210_spill] sm:$0xff] %v11099_v20  ;;  %14008 = vst [vmem:[#allocation57_spill] sm:$0xff] %v11106_v47  ;;  %3829 = vmax.xlane.f32.xlu0 %v3828_v1  ;;  %v11110_v49 = vpop.f32.mrb[127].mxu1  ;;  %v14015_v47 = vld [vmem:[#allocation73_spill] sm:$0xff] }
 0x3d0   : > { %14006 = vst [vmem:[#allocation211_spill] sm:$0xff] %v11102_v52  ;;  %14010 = vst [vmem:[#allocation212_spill] sm:$0xff] %v11110_v49  ;;  %v3620_v5 = vpop.xlane.xlu0 %3619  ;;  %3832 = vmax.xlane.f32.xlu1 %v3831_v59  ;;  %v14014_v52 = vld [vmem:[#allocation60_spill] sm:$0xff] }
 0x3d1   : > { %v11113_v38 = vsub.f32 %v10086_v8, %v3620_v5  ;;  %v3623_v24 = vpop.xlane.xlu1 %3622  ;;  %v3837_v1 = vsel %vm3317_vm8, %v14014_v52, -inf  ;;  %v14019_v5 = vld [vmem:[#allocation61_spill] sm:$0xff] }
 0x3d2   : > { %v11116_v48 = vsub.f32 %v13779_v51, %v3623_v24  ;;  %v3840_v51 = vsel %vm3317_vm8, %v14019_v5, -inf  ;;  %v14020_v24 = vld [vmem:[#allocation62_spill] sm:$0xff] }
 0x3d3   : > { %14011 = vst [vmem:[#allocation213_spill] sm:$0xff] %v11113_v38  ;;  %3835 = vmax.xlane.f32.xlu0 %v3834_v62 }
 0x3d4   : > { %14012 = vst [vmem:[#allocation214_spill] sm:$0xff] %v11116_v48  ;;  %v3626_v20 = vpop.xlane.xlu0 %3625  ;;  %3838 = vmax.xlane.f32.xlu1 %v3837_v1  ;;  %v3843_v48 = vsel %vm3317_vm8, %v14020_v24, -inf }
 0x3d5   : > { %v11123_v49 = vsub.f32 %v14015_v47, %v3626_v20  ;;  %v3629_v59 = vpop.xlane.xlu1 %3628  ;;  %v14023_v20 = vld [vmem:[#allocation64_spill] sm:$0xff] }
 0x3d6   : > { %v11126_v8 = vsub.f32 %v14017_v40, %v3629_v59  ;;  %v3846_v40 = vsel %vm3317_vm8, %v14023_v20, -inf  ;;  %v14024_v59 = vld [vmem:[#allocation134_spill] sm:$0xff] }
 0x3d7   : > { %14016 = vst [vmem:[#allocation59_spill] sm:$0xff] %v11123_v49  ;;  %3841 = vmax.xlane.f32.xlu0 %v3840_v51 }
 0x3d8   : > { %14018 = vst [vmem:[#allocation60_spill] sm:$0xff] %v11126_v8  ;;  %v3632_v62 = vpop.xlane.xlu0 %3631  ;;  %3844 = vmax.xlane.f32.xlu1 %v3843_v48  ;;  %v3849_v8 = vsel %vm3317_vm8, %v14024_v59, -inf }
 0x3d9   : > { %v11133_v38 = vsub.f32 %v13791_v46, %v3632_v62  ;;  %v3635_v1 = vpop.xlane.xlu1 %3634  ;;  %v14027_v62 = vld [vmem:[#allocation66_spill] sm:$0xff] }
 0x3da   : > { %v11136_v47 = vsub.f32 %v13793_v23, %v3635_v1  ;;  %v3852_v23 = vsel %vm3317_vm8, %v14027_v62, -inf  ;;  %v14028_v1 = vld [vmem:[#allocation136_spill] sm:$0xff] }
 0x3db   : > { %14021 = vst [vmem:[#allocation73_spill] sm:$0xff] %v11133_v38  ;;  %3847 = vmax.xlane.f32.xlu0 %v3846_v40 }
 0x3dc   : > { %14022 = vst [vmem:[#allocation72_spill] sm:$0xff] %v11136_v47  ;;  %v3638_v51 = vpop.xlane.xlu0 %3637  ;;  %3850 = vmax.xlane.f32.xlu1 %v3849_v8  ;;  %v3855_v47 = vsel %vm3317_vm8, %v14028_v1, -inf }
 0x3dd   : > { %v11143_v49 = vsub.f32 %v13797_v37, %v3638_v51  ;;  %v3641_v48 = vpop.xlane.xlu1 %3640  ;;  %v14031_v51 = vld [vmem:[#allocation68_spill] sm:$0xff] }
 0x3de   : > { %v11146_v46 = vsub.f32 %v13799_v55, %v3641_v48  ;;  %v3858_v55 = vsel %vm3317_vm8, %v14031_v51, -inf  ;;  %v14032_v48 = vld [vmem:[#allocation138_spill] sm:$0xff] }
 0x3df   : > { %14025 = vst [vmem:[#allocation61_spill] sm:$0xff] %v11143_v49  ;;  %3853 = vmax.xlane.f32.xlu0 %v3852_v23  ;;  %v14039_v51 = vld [vmem:[#allocation82_spill] sm:$0xff] }
 0x3e0   : > { %14026 = vst [vmem:[#allocation62_spill] sm:$0xff] %v11146_v46  ;;  %v3644_v40 = vpop.xlane.xlu0 %3643  ;;  %3856 = vmax.xlane.f32.xlu1 %v3855_v47  ;;  %v3861_v46 = vsel %vm3317_vm8, %v14032_v48, -inf }
 0x3e1   : > { %v11153_v38 = vsub.f32 %v13803_v10, %v3644_v40  ;;  %v3647_v8 = vpop.xlane.xlu1 %3646  ;;  %v14035_v40 = vld [vmem:[#allocation70_spill] sm:$0xff] }
 0x3e2   : > { %v11156_v37 = vsub.f32 %v13805_v39, %v3647_v8  ;;  %v3864_v39 = vsel %vm3317_vm8, %v14035_v40, -inf  ;;  %v14036_v8 = vld [vmem:[#allocation140_spill] sm:$0xff] }
 0x3e3   : > { %14029 = vst [vmem:[#allocation64_spill] sm:$0xff] %v11153_v38  ;;  %3859 = vmax.xlane.f32.xlu0 %v3858_v55  ;;  %v14037_v38 = vld [vmem:[#allocation83_spill] sm:$0xff]  ;;  %v14045_v40 = vld [vmem:[#allocation84_spill] sm:$0xff] }
 0x3e4   : > { %14030 = vst [vmem:[#allocation134_spill] sm:$0xff] %v11156_v37  ;;  %v3650_v23 = vpop.xlane.xlu0 %3649  ;;  %3862 = vmax.xlane.f32.xlu1 %v3861_v46  ;;  %v3867_v37 = vsel %vm3317_vm8, %v14036_v8, -inf }
 0x3e5   : > { %v11163_v49 = vsub.f32 %v13809_v29, %v3650_v23  ;;  %v3653_v47 = vpop.xlane.xlu1 %3652  ;;  %v14041_v23 = vld [vmem:[#allocation143_spill] sm:$0xff] }
 0x3e6   : > { %v11166_v10 = vsub.f32 %v13811_v0, %v3653_v47  ;;  %v3870_v0 = vsel %vm3317_vm8, %v14041_v23, -inf  ;;  %v14042_v47 = vld [vmem:[#allocation142_spill] sm:$0xff] }
 0x3e7   : > { %14033 = vst [vmem:[#allocation66_spill] sm:$0xff] %v11163_v49  ;;  %3865 = vmax.xlane.f32.xlu0 %v3864_v39  ;;  %v14043_v49 = vld [vmem:[#allocation86_spill] sm:$0xff] }
 0x3e8   : > { %14034 = vst [vmem:[#allocation136_spill] sm:$0xff] %v11166_v10  ;;  %v3656_v55 = vpop.xlane.xlu0 %3655  ;;  %3868 = vmax.xlane.f32.xlu1 %v3867_v37  ;;  %v3873_v10 = vsel %vm3317_vm8, %v14042_v47, -inf }
 0x3e9   : > { %v11173_v48 = vsub.f32 %v14037_v38, %v3656_v55  ;;  %v3659_v46 = vpop.xlane.xlu1 %3658  ;;  %v14047_v55 = vld [vmem:[#allocation145_spill] sm:$0xff] }
 0x3ea   : > { %v11176_v29 = vsub.f32 %v14039_v51, %v3659_v46  ;;  %v3876_v51 = vsel %vm3317_vm8, %v14047_v55, -inf  ;;  %v14048_v46 = vld [vmem:[#allocation144_spill] sm:$0xff] }
 0x3eb   : > { %14038 = vst [vmem:[#allocation83_spill] sm:$0xff] %v11173_v48  ;;  %3871 = vmax.xlane.f32.xlu0 %v3870_v0 }
 0x3ec   : > { %14040 = vst [vmem:[#allocation82_spill] sm:$0xff] %v11176_v29  ;;  %v3662_v39 = vpop.xlane.xlu0 %3661  ;;  %3874 = vmax.xlane.f32.xlu1 %v3873_v10  ;;  %v3879_v29 = vsel %vm3317_vm8, %v14048_v46, -inf }
 0x3ed   : > { %v11183_v8 = vsub.f32 %v14043_v49, %v3662_v39  ;;  %v3665_v37 = vpop.xlane.xlu1 %3664  ;;  %v14051_v39 = vld [vmem:[#allocation74_spill] sm:$0xff] }
 0x3ee   : > { %v11186_v38 = vsub.f32 %v14045_v40, %v3665_v37  ;;  %v3882_v40 = vsel %vm3317_vm8, %v14051_v39, -inf  ;;  %v14052_v37 = vld [vmem:[#allocation75_spill] sm:$0xff] }
 0x3ef   : > { %14044 = vst [vmem:[#allocation143_spill] sm:$0xff] %v11183_v8  ;;  %3877 = vmax.xlane.f32.xlu0 %v3876_v51 }
 0x3f0   : > { %14046 = vst [vmem:[#allocation142_spill] sm:$0xff] %v11186_v38  ;;  %v3668_v0 = vpop.xlane.xlu0 %3667  ;;  %3880 = vmax.xlane.f32.xlu1 %v3879_v29  ;;  %v3885_v38 = vsel %vm3317_vm8, %v14052_v37, -inf  ;;  %v14058_v37 = vld [vmem:[#allocation11_spill] sm:$0xff] }
 0x3f1   : > { %v11193_v48 = vsub.f32 %v13831_v58, %v3668_v0  ;;  %v3671_v10 = vpop.xlane.xlu1 %3670  ;;  %v14055_v0 = vld [vmem:[#allocation76_spill] sm:$0xff] }
 0x3f2   : > { %v11196_v49 = vsub.f32 %v13833_v53, %v3671_v10  ;;  %v3888_v53 = vsel %vm3317_vm8, %v14055_v0, -inf  ;;  %v14056_v10 = vld [vmem:[#allocation77_spill] sm:$0xff] }
 0x3f3   : > { %14049 = vst [vmem:[#allocation86_spill] sm:$0xff] %v11193_v48  ;;  %3883 = vmax.xlane.f32.xlu0 %v3882_v40 }
 0x3f4   : > { %14050 = vst [vmem:[#allocation84_spill] sm:$0xff] %v11196_v49  ;;  %v3674_v51 = vpop.xlane.xlu0 %3673  ;;  %3886 = vmax.xlane.f32.xlu1 %v3885_v38  ;;  %v3891_v49 = vsel %vm3317_vm8, %v14056_v10, -inf  ;;  %v14063_v10 = vld [vmem:[#allocation94_spill] sm:$0xff] }
 0x3f5   : > { %v11203_v8 = vsub.f32 %v13837_v45, %v3674_v51  ;;  %v3677_v29 = vpop.xlane.xlu1 %3676  ;;  %v14060_v51 = vld [vmem:[#allocation78_spill] sm:$0xff] }
 0x3f6   : > { %v11206_v58 = vsub.f32 %v13839_v56, %v3677_v29  ;;  %v3894_v56 = vsel %vm3317_vm8, %v14060_v51, -inf  ;;  %v14061_v29 = vld [vmem:[#allocation79_spill] sm:$0xff]  ;;  %v14069_v51 = vld [vmem:[#allocation98_spill] sm:$0xff] }
 0x3f7   : > { %14053 = vst [vmem:[#allocation145_spill] sm:$0xff] %v11203_v8  ;;  %3889 = vmax.xlane.f32.xlu0 %v3888_v53 }
 0x3f8   : > { %14054 = vst [vmem:[#allocation144_spill] sm:$0xff] %v11206_v58  ;;  %v3680_v40 = vpop.xlane.xlu0 %3679  ;;  %3892 = vmax.xlane.f32.xlu1 %v3891_v49  ;;  %v3897_v58 = vsel %vm3317_vm8, %v14061_v29, -inf }
 0x3f9   : > { %v11213_v48 = vsub.f32 %v13843_v16, %v3680_v40  ;;  %v3683_v38 = vpop.xlane.xlu1 %3682  ;;  %v14065_v40 = vld [vmem:[#allocation80_spill] sm:$0xff] }
 0x3fa   : > { %v11216_v45 = vsub.f32 %v14058_v37, %v3683_v38  ;;  %v3900_v37 = vsel %vm3317_vm8, %v14065_v40, -inf  ;;  %v14066_v38 = vld [vmem:[#allocation81_spill] sm:$0xff] }
 0x3fb   : > { %14057 = vst [vmem:[#allocation74_spill] sm:$0xff] %v11213_v48  ;;  %3895 = vmax.xlane.f32.xlu0 %v3894_v56  ;;  %v14067_v48 = vld [vmem:[#allocation99_spill] sm:$0xff] }
 0x3fc   : > { %14059 = vst [vmem:[#allocation76_spill] sm:$0xff] %v11216_v45  ;;  %v3686_v53 = vpop.xlane.xlu0 %3685  ;;  %3898 = vmax.xlane.f32.xlu1 %v3897_v58  ;;  %v3903_v45 = vsel %vm3317_vm8, %v14066_v38, -inf }
 0x3fd   : > { %v11223_v8 = vsub.f32 %v13850_v57, %v3686_v53  ;;  %v3689_v49 = vpop.xlane.xlu1 %3688  ;;  %v14071_v53 = vld [vmem:[#allocation155_spill] sm:$0xff] }
 0x3fe   : > { %v11226_v16 = vsub.f32 %v14063_v10, %v3689_v49  ;;  %v3906_v10 = vsel %vm3317_vm8, %v14071_v53, -inf  ;;  %v14072_v49 = vld [vmem:[#allocation154_spill] sm:$0xff] }
 0x3ff   : > { %14062 = vst [vmem:[#allocation11_spill] sm:$0xff] %v11223_v8  ;;  %3901 = vmax.xlane.f32.xlu0 %v3900_v37  ;;  %v14073_v8 = vld [vmem:[#allocation101_spill] sm:$0xff] }
 0x400   : > { %14064 = vst [vmem:[#allocation94_spill] sm:$0xff] %v11226_v16  ;;  %v3692_v56 = vpop.xlane.xlu0 %3691  ;;  %3904 = vmax.xlane.f32.xlu1 %v3903_v45  ;;  %v3909_v16 = vsel %vm3317_vm8, %v14072_v49, -inf  ;;  %v14079_v49 = vld [vmem:[#allocation85_spill] sm:$0xff] }
 0x401   : > { %v11233_v29 = vsub.f32 %v14067_v48, %v3692_v56  ;;  %v3695_v58 = vpop.xlane.xlu1 %3694  ;;  %v14076_v56 = vld [vmem:[#allocation157_spill] sm:$0xff] }
 0x402   : > { %v11236_v57 = vsub.f32 %v14069_v51, %v3695_v58  ;;  %v3912_v51 = vsel %vm3317_vm8, %v14076_v56, -inf  ;;  %v14077_v58 = vld [vmem:[#allocation156_spill] sm:$0xff] }
 0x403   : > { %14068 = vst [vmem:[#allocation80_spill] sm:$0xff] %v11233_v29  ;;  %3907 = vmax.xlane.f32.xlu0 %v3906_v10 }
 0x404   : > { %14070 = vst [vmem:[#allocation99_spill] sm:$0xff] %v11236_v57  ;;  %v3698_v37 = vpop.xlane.xlu0 %3697  ;;  %3910 = vmax.xlane.f32.xlu1 %v3909_v16  ;;  %v3915_v57 = vsel %vm3317_vm8, %v14077_v58, -inf }
 0x405   : > { %v11243_v38 = vsub.f32 %v14073_v8, %v3698_v37  ;;  %v3701_v45 = vpop.xlane.xlu1 %3700  ;;  %v14081_v37 = vld [vmem:[#allocation88_spill] sm:$0xff] }
 0x406   : > { %v11246_v48 = vsub.f32 %v13867_v28, %v3701_v45  ;;  %v3918_v28 = vsel %vm3317_vm8, %v14081_v37, -inf  ;;  %v14082_v45 = vld [vmem:[#allocation89_spill] sm:$0xff] }
 0x407   : > { %14074 = vst [vmem:[#allocation98_spill] sm:$0xff] %v11243_v38  ;;  %3913 = vmax.xlane.f32.xlu0 %v3912_v51 }
 0x408   : > { %14075 = vst [vmem:[#allocation155_spill] sm:$0xff] %v11246_v48  ;;  %v3704_v10 = vpop.xlane.xlu0 %3703  ;;  %3916 = vmax.xlane.f32.xlu1 %v3915_v57  ;;  %v3921_v48 = vsel %vm3317_vm8, %v14082_v45, -inf }
 0x409   : > { %v11253_v29 = vsub.f32 %v13873_v3, %v3704_v10  ;;  %v3707_v16 = vpop.xlane.xlu1 %3706  ;;  %v14085_v10 = vld [vmem:[#allocation90_spill] sm:$0xff] }
 0x40a   : > { %v11256_v8 = vsub.f32 %v14079_v49, %v3707_v16  ;;  %v3924_v49 = vsel %vm3317_vm8, %v14085_v10, -inf  ;;  %v14086_v16 = vld [vmem:[#allocation92_spill] sm:$0xff]  ;;  %v14093_v10 = vld [vmem:[#allocation102_spill] sm:$0xff] }
 0x40b   : > { %14078 = vst [vmem:[#allocation101_spill] sm:$0xff] %v11253_v29  ;;  %3919 = vmax.xlane.f32.xlu0 %v3918_v28 }
 0x40c   : > { %14080 = vst [vmem:[#allocation157_spill] sm:$0xff] %v11256_v8  ;;  %v3710_v51 = vpop.xlane.xlu0 %3709  ;;  %3922 = vmax.xlane.f32.xlu1 %v3921_v48  ;;  %v3927_v8 = vsel %vm3317_vm8, %v14086_v16, -inf }
 0x40d   : > { %v11263_v38 = vsub.f32 %v13880_v11, %v3710_v51  ;;  %v3713_v57 = vpop.xlane.xlu1 %3712  ;;  %v14089_v51 = vld [vmem:[#allocation162_spill] sm:$0xff] }
 0x40e   : > { %v11266_v3 = vsub.f32 %v13882_v9, %v3713_v57  ;;  %v3930_v9 = vsel %vm3317_vm8, %v14089_v51, -inf  ;;  %v14090_v57 = vld [vmem:[#allocation93_spill] sm:$0xff] }
 0x40f   : > { %14083 = vst [vmem:[#allocation156_spill] sm:$0xff] %v11263_v38  ;;  %3925 = vmax.xlane.f32.xlu0 %v3924_v49  ;;  %v14091_v38 = vld [vmem:[#allocation103_spill] sm:$0xff] }
 0x410   : > { %14084 = vst [vmem:[#allocation85_spill] sm:$0xff] %v11266_v3  ;;  %v3716_v28 = vpop.xlane.xlu0 %3715  ;;  %3928 = vmax.xlane.f32.xlu1 %v3927_v8  ;;  %v3933_v3 = vsel %vm3317_vm8, %v14090_v57, -inf  ;;  %v14098_v57 = vld [vmem:[#allocation104_spill] sm:$0xff] }
 0x411   : > { %v11273_v29 = vsub.f32 %v13886_v44, %v3716_v28  ;;  %v3719_v48 = vpop.xlane.xlu1 %3718  ;;  %v14095_v28 = vld [vmem:[#allocation164_spill] sm:$0xff] }
 0x412   : > { %v11276_v11 = vsub.f32 %v13888_v12, %v3719_v48  ;;  %v3936_v12 = vsel %vm3317_vm8, %v14095_v28, -inf  ;;  %v14096_v48 = vld [vmem:[#allocation95_spill] sm:$0xff]  ;;  %v14104_v28 = vld [vmem:[#allocation17_spill] sm:$0xff] }
 0x413   : > { %14087 = vst [vmem:[#allocation88_spill] sm:$0xff] %v11273_v29  ;;  %3931 = vmax.xlane.f32.xlu0 %v3930_v9 }
 0x414   : > { %14088 = vst [vmem:[#allocation89_spill] sm:$0xff] %v11276_v11  ;;  %v3722_v49 = vpop.xlane.xlu0 %3721  ;;  %3934 = vmax.xlane.f32.xlu1 %v3933_v3  ;;  %v3939_v11 = vsel %vm3317_vm8, %v14096_v48, -inf }
 0x415   : > { %v11283_v16 = vsub.f32 %v14091_v38, %v3722_v49  ;;  %v3725_v8 = vpop.xlane.xlu1 %3724  ;;  %v14100_v49 = vld [vmem:[#allocation167_spill] sm:$0xff] }
 0x416   : > { %v11286_v44 = vsub.f32 %v14093_v10, %v3725_v8  ;;  %v3942_v10 = vsel %vm3317_vm8, %v14100_v49, -inf  ;;  %v14101_v8 = vld [vmem:[#allocation166_spill] sm:$0xff] }
 0x417   : > { %14092 = vst [vmem:[#allocation162_spill] sm:$0xff] %v11283_v16  ;;  %3937 = vmax.xlane.f32.xlu0 %v3936_v12  ;;  %v14102_v16 = vld [vmem:[#allocation20_spill] sm:$0xff] }
 0x418   : > { %14094 = vst [vmem:[#allocation103_spill] sm:$0xff] %v11286_v44  ;;  %v3728_v9 = vpop.xlane.xlu0 %3727  ;;  %3940 = vmax.xlane.f32.xlu1 %v3939_v11  ;;  %v3945_v44 = vsel %vm3317_vm8, %v14101_v8, -inf  ;;  %v14109_v8 = vld [vmem:[#allocation19_spill] sm:$0xff] }
 0x419   : > { %v11293_v29 = vsub.f32 %v13899_v2, %v3728_v9  ;;  %v3731_v3 = vpop.xlane.xlu1 %3730  ;;  %v14106_v9 = vld [vmem:[#allocation170_spill] sm:$0xff] }
 0x41a   : > { %v11296_v38 = vsub.f32 %v14098_v57, %v3731_v3  ;;  %v3948_v57 = vsel %vm3317_vm8, %v14106_v9, -inf  ;;  %v14107_v3 = vld [vmem:[#allocation169_spill] sm:$0xff]  ;;  %v14115_v9 = vld [vmem:[#allocation23_spill] sm:$0xff] }
 0x41b   : > { %14097 = vst [vmem:[#allocation102_spill] sm:$0xff] %v11293_v29  ;;  %3943 = vmax.xlane.f32.xlu0 %v3942_v10 }
 0x41c   : > { %14099 = vst [vmem:[#allocation104_spill] sm:$0xff] %v11296_v38  ;;  %v3734_v12 = vpop.xlane.xlu0 %3733  ;;  %3946 = vmax.xlane.f32.xlu1 %v3945_v44  ;;  %v3951_v38 = vsel %vm3317_vm8, %v14107_v3, -inf }
 0x41d   : > { %v11303_v48 = vsub.f32 %v14102_v16, %v3734_v12  ;;  %v3737_v11 = vpop.xlane.xlu1 %3736  ;;  %v14111_v12 = vld [vmem:[#allocation87_spill] sm:$0xff] }
 0x41e   : > { %v11306_v2 = vsub.f32 %v14104_v28, %v3737_v11  ;;  %v3954_v28 = vsel %vm3317_vm8, %v14111_v12, -inf  ;;  %v14112_v11 = vld [vmem:[#allocation27_spill] sm:$0xff] }
 0x41f   : > { %14103 = vst [vmem:[#allocation167_spill] sm:$0xff] %v11303_v48  ;;  %3949 = vmax.xlane.f32.xlu0 %v3948_v57  ;;  %v14113_v48 = vld [vmem:[#allocation26_spill] sm:$0xff] }
 0x420   : > { %14105 = vst [vmem:[#allocation20_spill] sm:$0xff] %v11306_v2  ;;  %v3740_v10 = vpop.xlane.xlu0 %3739  ;;  %3952 = vmax.xlane.f32.xlu1 %v3951_v38  ;;  %v3957_v2 = vsel %vm3317_vm8, %v14112_v11, -inf }
 0x421   : > { %v11313_v29 = vsub.f32 %v13914_v7, %v3740_v10  ;;  %v3743_v44 = vpop.xlane.xlu1 %3742  ;;  %v14117_v10 = vld [vmem:[#allocation12_spill] sm:$0xff] }
 0x422   : > { %v11316_v16 = vsub.f32 %v14109_v8, %v3743_v44  ;;  %v3960_v8 = vsel %vm3317_vm8, %v14117_v10, -inf  ;;  %v14118_v44 = vld [vmem:[#allocation172_spill] sm:$0xff] }
 0x423   : > { %14108 = vst [vmem:[#allocation17_spill] sm:$0xff] %v11313_v29  ;;  %3955 = vmax.xlane.f32.xlu0 %v3954_v28 }
 0x424   : > { %14110 = vst [vmem:[#allocation19_spill] sm:$0xff] %v11316_v16  ;;  %v3746_v57 = vpop.xlane.xlu0 %3745  ;;  %3958 = vmax.xlane.f32.xlu1 %v3957_v2  ;;  %v3963_v16 = vsel %vm3317_vm8, %v14118_v44, -inf }
 0x425   : > { %v11323_v3 = vsub.f32 %v14113_v48, %v3746_v57  ;;  %v3749_v38 = vpop.xlane.xlu1 %3748  ;;  %v14121_v57 = vld [vmem:[#allocation97_spill] sm:$0xff] }
 0x426   : > { %v11326_v7 = vsub.f32 %v14115_v9, %v3749_v38  ;;  %v3966_v9 = vsel %vm3317_vm8, %v14121_v57, -inf  ;;  %v14122_v38 = vld [vmem:[#allocation174_spill] sm:$0xff] }
 0x427   : > { %14114 = vst [vmem:[#allocation87_spill] sm:$0xff] %v11323_v3  ;;  %3961 = vmax.xlane.f32.xlu0 %v3960_v8 }
 0x428   : > { %14116 = vst [vmem:[#allocation27_spill] sm:$0xff] %v11326_v7  ;;  %v3752_v28 = vpop.xlane.xlu0 %3751  ;;  %3964 = vmax.xlane.f32.xlu1 %v3963_v16  ;;  %v3969_v7 = vsel %vm3317_vm8, %v14122_v38, -inf }
 0x429   : > { %v11333_v29 = vsub.f32 %v13929_v14, %v3752_v28  ;;  %v3755_v2 = vpop.xlane.xlu1 %3754  ;;  %v14125_v28 = vld [vmem:[#allocation177_spill] sm:$0xff] }
 0x42a   : > { %v11336_v48 = vsub.f32 %v13931_v22, %v3755_v2  ;;  %v3972_v22 = vsel %vm3317_vm8, %v14125_v28, -inf  ;;  %v14126_v2 = vld [vmem:[#allocation176_spill] sm:$0xff] }
 0x42b   : > { %14119 = vst [vmem:[#allocation26_spill] sm:$0xff] %v11333_v29  ;;  %3967 = vmax.xlane.f32.xlu0 %v3966_v9 }
 0x42c   : > { %14120 = vst [vmem:[#allocation23_spill] sm:$0xff] %v11336_v48  ;;  %v3758_v8 = vpop.xlane.xlu0 %3757  ;;  %3970 = vmax.xlane.f32.xlu1 %v3969_v7  ;;  %v3975_v48 = vsel %vm3317_vm8, %v14126_v2, -inf }
 0x42d   : > { %v11343_v3 = vsub.f32 %v13935_v18, %v3758_v8  ;;  %v3761_v16 = vpop.xlane.xlu1 %3760  ;;  %v14129_v8 = vld [vmem:[#allocation178_spill] sm:$0xff] }
 0x42e   : > { %v11346_v14 = vsub.f32 %v13937_v13, %v3761_v16  ;;  %v3978_v13 = vsel %vm3317_vm8, %v14129_v8, -inf  ;;  %v14130_v16 = vld [vmem:[#allocation18_spill] sm:$0xff] }
 0x42f   : > { %14123 = vst [vmem:[#allocation12_spill] sm:$0xff] %v11343_v3  ;;  %3973 = vmax.xlane.f32.xlu0 %v3972_v22 }
 0x430   : > { %14124 = vst [vmem:[#allocation172_spill] sm:$0xff] %v11346_v14  ;;  %v3764_v9 = vpop.xlane.xlu0 %3763  ;;  %3976 = vmax.xlane.f32.xlu1 %v3975_v48  ;;  %v3981_v14 = vsel %vm3317_vm8, %v14130_v16, -inf }
 0x431   : > { %v11353_v29 = vsub.f32 %v13941_v21, %v3764_v9  ;;  %v3767_v7 = vpop.xlane.xlu1 %3766  ;;  %v14133_v9 = vld [vmem:[#allocation181_spill] sm:$0xff] }
 0x432   : > { %v11356_v18 = vsub.f32 %v13943_v63, %v3767_v7  ;;  %v3984_v63 = vsel %vm3317_vm8, %v14133_v9, -inf  ;;  %v14134_v7 = vld [vmem:[#allocation180_spill] sm:$0xff] }
 0x433   : > { %14127 = vst [vmem:[#allocation97_spill] sm:$0xff] %v11353_v29  ;;  %3979 = vmax.xlane.f32.xlu0 %v3978_v13 }
 0x434   : > { %14128 = vst [vmem:[#allocation174_spill] sm:$0xff] %v11356_v18  ;;  %v3770_v22 = vpop.xlane.xlu0 %3769  ;;  %3982 = vmax.xlane.f32.xlu1 %v3981_v14  ;;  %v3987_v18 = vsel %vm3317_vm8, %v14134_v7, -inf }
 0x435   : > { %v11363_v3 = vsub.f32 %v13947_v42, %v3770_v22  ;;  %v3773_v48 = vpop.xlane.xlu1 %3772  ;;  %v14137_v22 = vld [vmem:[#allocation182_spill] sm:$0xff] }
 0x436   : > { %v11366_v21 = vsub.f32 %v13949_v34, %v3773_v48  ;;  %v3990_v34 = vsel %vm3317_vm8, %v14137_v22, -inf  ;;  %v14138_v48 = vld [vmem:[#allocation22_spill] sm:$0xff] }
 0x437   : > { %14131 = vst [vmem:[#allocation177_spill] sm:$0xff] %v11363_v3  ;;  %3985 = vmax.xlane.f32.xlu0 %v3984_v63 }
 0x438   : > { %14132 = vst [vmem:[#allocation176_spill] sm:$0xff] %v11366_v21  ;;  %v3776_v13 = vpop.xlane.xlu0 %3775  ;;  %3988 = vmax.xlane.f32.xlu1 %v3987_v18  ;;  %v3993_v21 = vsel %vm3317_vm8, %v14138_v48, -inf }
 0x439   : > { %v11373_v29 = vsub.f32 %v13953_v15, %v3776_v13  ;;  %v3779_v14 = vpop.xlane.xlu1 %3778  ;;  %v14141_v13 = vld [vmem:[#allocation185_spill] sm:$0xff] }
 0x43a   : > { %v11376_v42 = vsub.f32 %v13955_v17, %v3779_v14  ;;  %v3996_v17 = vsel %vm3317_vm8, %v14141_v13, -inf  ;;  %v14142_v14 = vld [vmem:[#allocation184_spill] sm:$0xff] }
 0x43b   : > { %14135 = vst [vmem:[#allocation178_spill] sm:$0xff] %v11373_v29  ;;  %3991 = vmax.xlane.f32.xlu0 %v3990_v34 }
 0x43c   : > { %14136 = vst [vmem:[#allocation18_spill] sm:$0xff] %v11376_v42  ;;  %v3782_v63 = vpop.xlane.xlu0 %3781  ;;  %3994 = vmax.xlane.f32.xlu1 %v3993_v21  ;;  %v3999_v42 = vsel %vm3317_vm8, %v14142_v14, -inf }
 0x43d   : > { %v11383_v3 = vsub.f32 %v13959_v30, %v3782_v63  ;;  %v3785_v18 = vpop.xlane.xlu1 %3784  ;;  %v14145_v63 = vld [vmem:[#allocation29_spill] sm:$0xff] }
 0x43e   : > { %v11386_v15 = vsub.f32 %v13961_v36, %v3785_v18  ;;  %v4002_v36 = vsel %vm3317_vm8, %v14145_v63, -inf  ;;  %v14146_v18 = vld [vmem:[#allocation32_spill] sm:$0xff] }
 0x43f   : > { %14139 = vst [vmem:[#allocation181_spill] sm:$0xff] %v11383_v3  ;;  %3997 = vmax.xlane.f32.xlu0 %v3996_v17 }
 0x440   : > { %14140 = vst [vmem:[#allocation180_spill] sm:$0xff] %v11386_v15  ;;  %v3788_v34 = vpop.xlane.xlu0 %3787  ;;  %4000 = vmax.xlane.f32.xlu1 %v3999_v42  ;;  %v4005_v15 = vsel %vm3317_vm8, %v14146_v18, -inf }
 0x441   : > { %v11393_v29 = vsub.f32 %v13966_v4, %v3788_v34  ;;  %v3791_v21 = vpop.xlane.xlu1 %3790  ;;  %v14149_v34 = vld [vmem:[#allocation31_spill] sm:$0xff] }
 0x442   : > { %v11396_v30 = vsub.f32 %v13968_v25, %v3791_v21  ;;  %v4008_v25 = vsel %vm3317_vm8, %v14149_v34, -inf  ;;  %v14150_v21 = vld [vmem:[#allocation34_spill] sm:$0xff] }
 0x443   : > { %14143 = vst [vmem:[#allocation182_spill] sm:$0xff] %v11393_v29  ;;  %4003 = vmax.xlane.f32.xlu0 %v4002_v36 }
 0x444   : > { %14144 = vst [vmem:[#allocation22_spill] sm:$0xff] %v11396_v30  ;;  %v3794_v17 = vpop.xlane.xlu0 %3793  ;;  %4006 = vmax.xlane.f32.xlu1 %v4005_v15  ;;  %v4011_v30 = vsel %vm3317_vm8, %v14150_v21, -inf }
 0x445   : > { %v11403_v3 = vsub.f32 %v13972_v43, %v3794_v17  ;;  %v3797_v42 = vpop.xlane.xlu1 %3796  ;;  %v14153_v17 = vld [vmem:[#allocation33_spill] sm:$0xff] }
 0x446   : > { %v11406_v4 = vsub.f32 %v13974_v41, %v3797_v42  ;;  %v4014_v41 = vsel %vm3317_vm8, %v14153_v17, -inf  ;;  %v14154_v42 = vld [vmem:[#allocation105_spill] sm:$0xff] }
 0x447   : > { %14147 = vst [vmem:[#allocation185_spill] sm:$0xff] %v11403_v3  ;;  %4009 = vmax.xlane.f32.xlu0 %v4008_v25 }
 0x448   : > { %14148 = vst [vmem:[#allocation184_spill] sm:$0xff] %v11406_v4  ;;  %v3800_v36 = vpop.xlane.xlu0 %3799  ;;  %4012 = vmax.xlane.f32.xlu1 %v4011_v30  ;;  %v4017_v4 = vsel %vm3317_vm8, %v14154_v42, -inf }
 0x449   : > { %v11413_v29 = vsub.f32 %v13978_v60, %v3800_v36  ;;  %v3803_v15 = vpop.xlane.xlu1 %3802  ;;  %v14157_v36 = vld [vmem:[#allocation106_spill] sm:$0xff] }
 0x44a   : > { %v11416_v43 = vsub.f32 %v13980_v19, %v3803_v15  ;;  %v4020_v19 = vsel %vm3317_vm8, %v14157_v36, -inf  ;;  %v14158_v15 = vld [vmem:[#allocation38_spill] sm:$0xff] }
 0x44b   : > { %14151 = vst [vmem:[#allocation29_spill] sm:$0xff] %v11413_v29  ;;  %4015 = vmax.xlane.f32.xlu0 %v4014_v41 }
 0x44c   : > { %14152 = vst [vmem:[#allocation32_spill] sm:$0xff] %v11416_v43  ;;  %v3806_v25 = vpop.xlane.xlu0 %3805  ;;  %4018 = vmax.xlane.f32.xlu1 %v4017_v4  ;;  %v4023_v43 = vsel %vm3317_vm8, %v14158_v15, -inf }
 0x44d   : > { %v11423_v3 = vsub.f32 %v13984_v27, %v3806_v25  ;;  %v3809_v30 = vpop.xlane.xlu1 %3808  ;;  %v14161_v25 = vld [vmem:[#allocation107_spill] sm:$0xff] }
 0x44e   : > { %v11426_v60 = vsub.f32 %v13986_v35, %v3809_v30  ;;  %v4026_v35 = vsel %vm3317_vm8, %v14161_v25, -inf  ;;  %v14162_v30 = vld [vmem:[#allocation108_spill] sm:$0xff] }
 0x44f   : > { %14155 = vst [vmem:[#allocation31_spill] sm:$0xff] %v11423_v3  ;;  %4021 = vmax.xlane.f32.xlu0 %v4020_v19 }
 0x450   : > { %14156 = vst [vmem:[#allocation34_spill] sm:$0xff] %v11426_v60  ;;  %v3812_v41 = vpop.xlane.xlu0 %3811  ;;  %4024 = vmax.xlane.f32.xlu1 %v4023_v43  ;;  %v4029_v60 = vsel %vm3317_vm8, %v14162_v30, -inf }
 0x451   : > { %v11433_v29 = vsub.f32 %v13990_v6, %v3812_v41  ;;  %v3815_v4 = vpop.xlane.xlu1 %3814  ;;  %v14165_v41 = vld [vmem:[#allocation110_spill] sm:$0xff] }
 0x452   : > { %v11436_v27 = vsub.f32 %v13992_v33, %v3815_v4  ;;  %v4032_v33 = vsel %vm3317_vm8, %v14165_v41, -inf  ;;  %v14166_v4 = vld [vmem:[#allocation42_spill] sm:$0xff] }
 0x453   : > { %14159 = vst [vmem:[#allocation33_spill] sm:$0xff] %v11433_v29  ;;  %4027 = vmax.xlane.f32.xlu0 %v4026_v35 }
 0x454   : > { %14160 = vst [vmem:[#allocation105_spill] sm:$0xff] %v11436_v27  ;;  %v3818_v19 = vpop.xlane.xlu0 %3817  ;;  %4030 = vmax.xlane.f32.xlu1 %v4029_v60  ;;  %v4035_v27 = vsel %vm3317_vm8, %v14166_v4, -inf  ;;  %v14172_v4 = vld [vmem:[#allocation58_spill] sm:$0xff] }
 0x455   : > { %v11443_v3 = vsub.f32 %v13996_v26, %v3818_v19  ;;  %v3821_v43 = vpop.xlane.xlu1 %3820  ;;  %v14169_v19 = vld [vmem:[#allocation113_spill] sm:$0xff] }
 0x456   : > { %v11446_v6 = vsub.f32 %v13998_v32, %v3821_v43  ;;  %v4038_v32 = vsel %vm3317_vm8, %v14169_v19, -inf  ;;  %v14170_v43 = vld [vmem:[#allocation198_spill] sm:$0xff] }
 0x457   : > { %14163 = vst [vmem:[#allocation106_spill] sm:$0xff] %v11443_v3  ;;  %4033 = vmax.xlane.f32.xlu0 %v4032_v33 }
 0x458   : > { %14164 = vst [vmem:[#allocation38_spill] sm:$0xff] %v11446_v6  ;;  %v3824_v35 = vpop.xlane.xlu0 %3823  ;;  %4036 = vmax.xlane.f32.xlu1 %v4035_v27  ;;  %v4041_v6 = vsel %vm3317_vm8, %v14170_v43, -inf }
 0x459   : > { %v11453_v29 = vsub.f32 %v14001_v61, %v3824_v35  ;;  %v3827_v60 = vpop.xlane.xlu1 %3826  ;;  %v14174_v35 = vld [vmem:[#allocation45_spill] sm:$0xff] }
 0x45a   : > { %v11456_v26 = vsub.f32 %v14003_v50, %v3827_v60  ;;  %v4044_v50 = vsel %vm3317_vm8, %v14174_v35, -inf  ;;  %v14175_v60 = vld [vmem:[#allocation200_spill] sm:$0xff] }
 0x45b   : > { %14167 = vst [vmem:[#allocation107_spill] sm:$0xff] %v11453_v29  ;;  %4039 = vmax.xlane.f32.xlu0 %v4038_v32 }
 0x45c   : > { %14168 = vst [vmem:[#allocation108_spill] sm:$0xff] %v11456_v26  ;;  %v3830_v33 = vpop.xlane.xlu0 %3829  ;;  %4042 = vmax.xlane.f32.xlu1 %v4041_v6  ;;  %v4047_v26 = vsel %vm3317_vm8, %v14175_v60, -inf }
 0x45d   : > { %v11463_v3 = vsub.f32 %v14007_v54, %v3830_v33  ;;  %v3833_v27 = vpop.xlane.xlu1 %3832  ;;  %v14178_v33 = vld [vmem:[#allocation47_spill] sm:$0xff] }
 0x45e   : > { %v11466_v61 = vsub.f32 %v14172_v4, %v3833_v27  ;;  %v4050_v4 = vsel %vm3317_vm8, %v14178_v33, -inf  ;;  %v14179_v27 = vld [vmem:[#allocation202_spill] sm:$0xff] }
 0x45f   : > { %14171 = vst [vmem:[#allocation110_spill] sm:$0xff] %v11463_v3  ;;  %4045 = vmax.xlane.f32.xlu0 %v4044_v50 }
 0x460   : > { %14173 = vst [vmem:[#allocation113_spill] sm:$0xff] %v11466_v61  ;;  %v3836_v32 = vpop.xlane.xlu0 %3835  ;;  %4048 = vmax.xlane.f32.xlu1 %v4047_v26  ;;  %v4053_v61 = vsel %vm3317_vm8, %v14179_v27, -inf }
 0x461   : > { %v11473_v29 = vsub.f32 %v14013_v31, %v3836_v32  ;;  %v3839_v6 = vpop.xlane.xlu1 %3838  ;;  %v14182_v32 = vld [vmem:[#allocation49_spill] sm:$0xff] }
 0x462   : > { %v11476_v54 = vsub.f32 %v14014_v52, %v3839_v6  ;;  %v4056_v52 = vsel %vm3317_vm8, %v14182_v32, -inf  ;;  %v14183_v6 = vld [vmem:[#allocation204_spill] sm:$0xff] }
 0x463   : > { %14176 = vst [vmem:[#allocation198_spill] sm:$0xff] %v11473_v29  ;;  %4051 = vmax.xlane.f32.xlu0 %v4050_v4  ;;  %v14184_v29 = vld [vmem:[#allocation114_spill] sm:$0xff] }
 0x464   : > { %14177 = vst [vmem:[#allocation58_spill] sm:$0xff] %v11476_v54  ;;  %v3842_v50 = vpop.xlane.xlu0 %3841  ;;  %4054 = vmax.xlane.f32.xlu1 %v4053_v61  ;;  %v4059_v54 = vsel %vm3317_vm8, %v14183_v6, -inf  ;;  %v4342_v27 = vmul.f32 1.442695, %v14184_v29 }
 0x465   : > { %v11483_v3 = vsub.f32 %v14019_v5, %v3842_v50  ;;  %v3845_v26 = vpop.xlane.xlu1 %3844  ;;  %v14186_v50 = vld [vmem:[#allocation109_spill] sm:$0xff] }
 0x466   : > { %v11486_v31 = vsub.f32 %v14020_v24, %v3845_v26  ;;  %v14188_v26 = vld [vmem:[#allocation51_spill] sm:$0xff]  ;;  %7779 = vpow2.f32 %v4342_v27  ;;  %v14196_v27 = vld [vmem:[#allocation116_spill] sm:$0xff] }
 0x467   : > { %14180 = vst [vmem:[#allocation45_spill] sm:$0xff] %v11483_v3  ;;  %4057 = vmax.xlane.f32.xlu0 %v4056_v52  ;;  %v4344_v3 = vmul.f32 1.442695, %v14186_v50  ;;  %v14189_v52 = vld [vmem:[#allocation206_spill] sm:$0xff]  ;;  %v14195_v50 = vld [vmem:[#allocation208_spill] sm:$0xff] }
 0x468   : > { %14181 = vst [vmem:[#allocation200_spill] sm:$0xff] %v11486_v31  ;;  %v3848_v4 = vpop.xlane.xlu0 %3847  ;;  %4060 = vmax.xlane.f32.xlu1 %v4059_v54  ;;  %v4062_v31 = vsel %vm3317_vm8, %v14188_v26, -inf  ;;  %v4065_v6 = vsel %vm3317_vm8, %v14189_v52, -inf  ;;  %v14190_v54 = vld [vmem:[#allocation111_spill] sm:$0xff] }
 0x469   : > { %v11494_v61 = vsub.f32 %v14023_v20, %v3848_v4  ;;  %v3851_v5 = vpop.xlane.xlu1 %3850  ;;  %v4346_v29 = vmul.f32 1.442695, %v14190_v54  ;;  %7781 = vpow2.f32 %v4344_v3  ;;  %v14202_v54 = vld [vmem:[#allocation56_spill] sm:$0xff] }
 0x46a   : > { %v11498_v24 = vsub.f32 %v14024_v59, %v3851_v5 }
 0x46b   : > { %14185 = vst [vmem:[#allocation47_spill] sm:$0xff] %v11494_v61  ;;  %4063 = vmax.xlane.f32.xlu0 %v4062_v31  ;;  %v14192_v61 = vld [vmem:[#allocation115_spill] sm:$0xff]  ;;  %7783 = vpow2.f32 %v4346_v29 }
 0x46c   : > { %14187 = vst [vmem:[#allocation215_spill] sm:$0xff] %v11498_v24  ;;  %v3854_v32 = vpop.xlane.xlu0 %3853  ;;  %4066 = vmax.xlane.f32.xlu1 %v4065_v6  ;;  %v4348_v59 = vmul.f32 1.442695, %v14192_v61  ;;  %v14194_v24 = vld [vmem:[#allocation53_spill] sm:$0xff]  ;;  %v4071_v6 = vsel %vm3317_vm8, %v14195_v50, -inf  ;;  %v14203_v50 = vld [vmem:[#allocation55_spill] sm:$0xff] }
 0x46d   : > { %v11506_v20 = vsub.f32 %v14027_v62, %v3854_v32  ;;  %v3857_v4 = vpop.xlane.xlu1 %3856  ;;  %v4068_v31 = vsel %vm3317_vm8, %v14194_v24, -inf  ;;  %v4350_v62 = vmul.f32 1.442695, %v14196_v27  ;;  %v14197_v32 = vld [vmem:[#allocation68_spill] sm:$0xff]  ;;  %v14199_v61 = vld [vmem:[#allocation117_spill] sm:$0xff]  ;;  %v14204_v27 = vld [vmem:[#allocation118_spill] sm:$0xff] }
 0x46e   : > { %v11510_v5 = vsub.f32 %v14028_v1, %v3857_v4  ;;  %7785 = vpow2.f32 %v4348_v59  ;;  %v4352_v1 = vmul.f32 1.442695, %v14199_v61  ;;  %v14200_v4 = vld [vmem:[#allocation138_spill] sm:$0xff]  ;;  %v14207_v61 = vld [vmem:[#allocation119_spill] sm:$0xff] }
 0x46f   : > { %14191 = vst [vmem:[#allocation51_spill] sm:$0xff] %v11506_v20  ;;  %4069 = vmax.xlane.f32.xlu0 %v4068_v31  ;;  %v4074_v31 = vsel %vm3317_vm8, %v14202_v54, -inf  ;;  %7787 = vpow2.f32 %v4350_v62  ;;  %v14209_v54 = vld [vmem:[#allocation140_spill] sm:$0xff] }
 0x470   : > { %14193 = vst [vmem:[#allocation216_spill] sm:$0xff] %v11510_v5  ;;  %v3860_v52 = vpop.xlane.xlu0 %3859  ;;  %4072 = vmax.xlane.f32.xlu1 %v4071_v6  ;;  %v4077_v6 = vsel %vm3317_vm8, %v14203_v50, -inf  ;;  %7789 = vpow2.f32 %v4352_v1  ;;  %v7780_v24 = vpop.eup %7779  ;;  %v14211_v50 = vld [vmem:[#allocation57_spill] sm:$0xff] }
 0x471   : > { %v11518_v20 = vsub.f32 %v14197_v32, %v3860_v52  ;;  %v3863_v3 = vpop.xlane.xlu1 %3862  ;;  %v4354_v52 = vmul.f32 1.442695, %v14204_v27  ;;  %v14205_v32 = vld [vmem:[#allocation70_spill] sm:$0xff]  ;;  %v4083_v62 = vsel %vm3317_vm8, %v14211_v50, -inf }
 0x472   : > { %v11522_v5 = vsub.f32 %v14200_v4, %v3863_v3  ;;  %v4356_v3 = vmul.f32 1.442695, %v14207_v61  ;;  %v14208_v4 = vld [vmem:[#allocation212_spill] sm:$0xff]  ;;  %v14214_v61 = vld [vmem:[#allocation121_spill] sm:$0xff] }
 0x473   : > { %14198 = vst [vmem:[#allocation68_spill] sm:$0xff] %v11518_v20  ;;  %4075 = vmax.xlane.f32.xlu0 %v4074_v31  ;;  %7791 = vpow2.f32 %v4354_v52 }
 0x474   : > { %14201 = vst [vmem:[#allocation138_spill] sm:$0xff] %v11522_v5  ;;  %v3866_v29 = vpop.xlane.xlu0 %3865  ;;  %4078 = vmax.xlane.f32.xlu1 %v4077_v6  ;;  %v4080_v5 = vsel %vm3317_vm8, %v14208_v4, -inf  ;;  %v7782_v6 = vpop.eup %7781  ;;  %7793 = vpow2.f32 %v4356_v3  ;;  %v4360_v4 = vmul.f32 1.442695, %v14214_v61 }
 0x475   : > { %v11530_v20 = vsub.f32 %v14205_v32, %v3866_v29  ;;  %v3869_v59 = vpop.xlane.xlu1 %3868  ;;  %v14212_v29 = vld [vmem:[#allocation120_spill] sm:$0xff] }
 0x476   : > { %v11536_v31 = vsub.f32 %v14209_v54, %v3869_v59  ;;  %v4358_v32 = vmul.f32 1.442695, %v14212_v29  ;;  %v7784_v59 = vpop.eup %7783  ;;  %v14216_v29 = vld [vmem:[#allocation122_spill] sm:$0xff] }
 0x477   : > { %14206 = vst [vmem:[#allocation70_spill] sm:$0xff] %v11530_v20  ;;  %4081 = vmax.xlane.f32.xlu0 %v4080_v5  ;;  %v4854_v5 = vsel %vm3317_vm8, %v7780_v24, 0.0  ;;  %v4860_v24 = vsel %vm3317_vm8, %v7784_v59, 0.0 }
 0x478   : > { %14210 = vst [vmem:[#allocation140_spill] sm:$0xff] %v11536_v31  ;;  %v3872_v27 = vpop.xlane.xlu0 %3871  ;;  %4084 = vmax.xlane.f32.xlu1 %v4083_v62  ;;  %v4857_v31 = vsel %vm3317_vm8, %v7782_v6, 0.0  ;;  %v7786_v62 = vpop.eup %7785  ;;  %7795 = vpow2.f32 %v4358_v32 }
 0x479   : > { %v11542_v1 = vsub.f32 %v14041_v23, %v3872_v27  ;;  %v3875_v20 = vpop.xlane.xlu1 %3874  ;;  %v4362_v23 = vmul.f32 1.442695, %v14216_v29  ;;  %7797 = vpow2.f32 %v4360_v4  ;;  %v4863_v6 = vsel %vm3317_vm8, %v7786_v62, 0.0 }
 0x47a   : > { %v11546_v54 = vsub.f32 %v14042_v47, %v3875_v20 }
 0x47b   : > { %14213 = vst [vmem:[#allocation57_spill] sm:$0xff] %v11542_v1  ;;  %4855 = vadd.xlane.f32.xlu0 %v4854_v5  ;;  %v14218_v1 = vld [vmem:[#allocation123_spill] sm:$0xff]  ;;  %v7788_v5 = vpop.eup %7787  ;;  %7799 = vpow2.f32 %v4362_v23 }
 0x47c   : > { %14215 = vst [vmem:[#allocation121_spill] sm:$0xff] %v11546_v54  ;;  %v3878_v52 = vpop.xlane.xlu0 %3877  ;;  %4858 = vadd.xlane.f32.xlu1 %v4857_v31  ;;  %v4364_v47 = vmul.f32 1.442695, %v14218_v1  ;;  %v7790_v31 = vpop.eup %7789  ;;  %v14220_v54 = vld [vmem:[#allocation124_spill] sm:$0xff]  ;;  %v4866_v59 = vsel %vm3317_vm8, %v7788_v5, 0.0 }
 0x47d   : > { %v11552_v27 = vsub.f32 %v14047_v55, %v3878_v52  ;;  %v3881_v3 = vpop.xlane.xlu1 %3880  ;;  %v4366_v55 = vmul.f32 1.442695, %v14220_v54  ;;  %v4869_v62 = vsel %vm3317_vm8, %v7790_v31, 0.0  ;;  %v14225_v54 = vld [vmem:[#allocation126_spill] sm:$0xff] }
 0x47e   : > { %v11556_v20 = vsub.f32 %v14048_v46, %v3881_v3  ;;  %7801 = vpow2.f32 %v4364_v47  ;;  %v14223_v3 = vld [vmem:[#allocation75_spill] sm:$0xff] }
 0x47f   : > { %14217 = vst [vmem:[#allocation122_spill] sm:$0xff] %v11552_v27  ;;  %4861 = vadd.xlane.f32.xlu0 %v4860_v24  ;;  %v14222_v27 = vld [vmem:[#allocation125_spill] sm:$0xff]  ;;  %v7792_v24 = vpop.eup %7791  ;;  %7803 = vpow2.f32 %v4366_v55 }
 0x480   : > { %14219 = vst [vmem:[#allocation123_spill] sm:$0xff] %v11556_v20  ;;  %v3884_v32 = vpop.xlane.xlu0 %3883  ;;  %4864 = vadd.xlane.f32.xlu1 %v4863_v6  ;;  %v4368_v46 = vmul.f32 1.442695, %v14222_v27  ;;  %v7794_v6 = vpop.eup %7793  ;;  %v4872_v5 = vsel %vm3317_vm8, %v7792_v24, 0.0 }
 0x481   : > { %v11562_v52 = vsub.f32 %v14051_v39, %v3884_v32  ;;  %v3887_v4 = vpop.xlane.xlu1 %3886  ;;  %v4370_v39 = vmul.f32 1.442695, %v14225_v54  ;;  %v4875_v31 = vsel %vm3317_vm8, %v7794_v6, 0.0  ;;  %v14230_v54 = vld [vmem:[#allocation128_spill] sm:$0xff] }
 0x482   : > { %v11566_v20 = vsub.f32 %v14223_v3, %v3887_v4  ;;  %7805 = vpow2.f32 %v4368_v46  ;;  %v14228_v3 = vld [vmem:[#allocation77_spill] sm:$0xff] }
 0x483   : > { %14221 = vst [vmem:[#allocation217_spill] sm:$0xff] %v11562_v52  ;;  %4867 = vadd.xlane.f32.xlu0 %v4866_v59  ;;  %v14227_v52 = vld [vmem:[#allocation127_spill] sm:$0xff]  ;;  %v7796_v59 = vpop.eup %7795  ;;  %7807 = vpow2.f32 %v4370_v39 }
 0x484   : > { %14224 = vst [vmem:[#allocation125_spill] sm:$0xff] %v11566_v20  ;;  %v3890_v23 = vpop.xlane.xlu0 %3889  ;;  %4870 = vadd.xlane.f32.xlu1 %v4869_v62  ;;  %v4372_v4 = vmul.f32 1.442695, %v14227_v52  ;;  %v7798_v62 = vpop.eup %7797  ;;  %v14233_v52 = vld [vmem:[#allocation129_spill] sm:$0xff]  ;;  %v4878_v24 = vsel %vm3317_vm8, %v7796_v59, 0.0 }
 0x485   : > { %v11572_v32 = vsub.f32 %v14055_v0, %v3890_v23  ;;  %v3893_v47 = vpop.xlane.xlu1 %3892  ;;  %v4374_v0 = vmul.f32 1.442695, %v14230_v54  ;;  %v14231_v23 = vld [vmem:[#allocation78_spill] sm:$0xff]  ;;  %v4881_v6 = vsel %vm3317_vm8, %v7798_v62, 0.0 }
 0x486   : > { %v11576_v20 = vsub.f32 %v14228_v3, %v3893_v47  ;;  %7809 = vpow2.f32 %v4372_v4  ;;  %v4376_v47 = vmul.f32 1.442695, %v14233_v52  ;;  %v14234_v3 = vld [vmem:[#allocation79_spill] sm:$0xff]  ;;  %v14236_v54 = vld [vmem:[#allocation130_spill] sm:$0xff] }
 0x487   : > { %14226 = vst [vmem:[#allocation75_spill] sm:$0xff] %v11572_v32  ;;  %4873 = vadd.xlane.f32.xlu0 %v4872_v5  ;;  %v7800_v5 = vpop.eup %7799  ;;  %7811 = vpow2.f32 %v4374_v0 }
 0x488   : > { %14229 = vst [vmem:[#allocation77_spill] sm:$0xff] %v11576_v20  ;;  %v3896_v55 = vpop.xlane.xlu0 %3895  ;;  %4876 = vadd.xlane.f32.xlu1 %v4875_v31  ;;  %v7802_v31 = vpop.eup %7801  ;;  %7813 = vpow2.f32 %v4376_v47  ;;  %v4884_v59 = vsel %vm3317_vm8, %v7800_v5, 0.0 }
 0x489   : > { %v11582_v32 = vsub.f32 %v14231_v23, %v3896_v55  ;;  %v3899_v46 = vpop.xlane.xlu1 %3898  ;;  %v4378_v55 = vmul.f32 1.442695, %v14236_v54  ;;  %v4887_v62 = vsel %vm3317_vm8, %v7802_v31, 0.0  ;;  %v14241_v54 = vld [vmem:[#allocation132_spill] sm:$0xff] }
 0x48a   : > { %v11586_v20 = vsub.f32 %v14234_v3, %v3899_v46  ;;  %v14239_v3 = vld [vmem:[#allocation81_spill] sm:$0xff] }
 0x48b   : > { %14232 = vst [vmem:[#allocation78_spill] sm:$0xff] %v11582_v32  ;;  %4879 = vadd.xlane.f32.xlu0 %v4878_v24  ;;  %v14238_v32 = vld [vmem:[#allocation131_spill] sm:$0xff]  ;;  %v7804_v24 = vpop.eup %7803  ;;  %7815 = vpow2.f32 %v4378_v55 }
 0x48c   : > { %14235 = vst [vmem:[#allocation129_spill] sm:$0xff] %v11586_v20  ;;  %v3902_v39 = vpop.xlane.xlu0 %3901  ;;  %4882 = vadd.xlane.f32.xlu1 %v4881_v6  ;;  %v4380_v46 = vmul.f32 1.442695, %v14238_v32  ;;  %v7806_v6 = vpop.eup %7805  ;;  %v4890_v5 = vsel %vm3317_vm8, %v7804_v24, 0.0 }
 0x48d   : > { %v11592_v23 = vsub.f32 %v14065_v40, %v3902_v39  ;;  %v3905_v4 = vpop.xlane.xlu1 %3904  ;;  %v4382_v40 = vmul.f32 1.442695, %v14241_v54  ;;  %v4893_v31 = vsel %vm3317_vm8, %v7806_v6, 0.0  ;;  %v14246_v54 = vld [vmem:[#allocation63_spill] sm:$0xff] }
 0x48e   : > { %v11596_v20 = vsub.f32 %v14239_v3, %v3905_v4  ;;  %7817 = vpow2.f32 %v4380_v46  ;;  %v14244_v3 = vld [vmem:[#allocation154_spill] sm:$0xff] }
 0x48f   : > { %14237 = vst [vmem:[#allocation79_spill] sm:$0xff] %v11592_v23  ;;  %4885 = vadd.xlane.f32.xlu0 %v4884_v59  ;;  %v14243_v23 = vld [vmem:[#allocation133_spill] sm:$0xff]  ;;  %v7808_v59 = vpop.eup %7807  ;;  %7819 = vpow2.f32 %v4382_v40 }
 0x490   : > { %14240 = vst [vmem:[#allocation131_spill] sm:$0xff] %v11596_v20  ;;  %v3908_v0 = vpop.xlane.xlu0 %3907  ;;  %4888 = vadd.xlane.f32.xlu1 %v4887_v62  ;;  %v4384_v4 = vmul.f32 1.442695, %v14243_v23  ;;  %v7810_v62 = vpop.eup %7809  ;;  %v4896_v24 = vsel %vm3317_vm8, %v7808_v59, 0.0 }
 0x491   : > { %v11602_v39 = vsub.f32 %v14071_v53, %v3908_v0  ;;  %v3911_v47 = vpop.xlane.xlu1 %3910  ;;  %v4386_v53 = vmul.f32 1.442695, %v14246_v54  ;;  %v4899_v6 = vsel %vm3317_vm8, %v7810_v62, 0.0 }
 0x492   : > { %v11606_v20 = vsub.f32 %v14244_v3, %v3911_v47  ;;  %7821 = vpow2.f32 %v4384_v4 }
 0x493   : > { %14242 = vst [vmem:[#allocation81_spill] sm:$0xff] %v11602_v39  ;;  %4891 = vadd.xlane.f32.xlu0 %v4890_v5  ;;  %v14248_v39 = vld [vmem:[#allocation135_spill] sm:$0xff]  ;;  %v7812_v5 = vpop.eup %7811  ;;  %7823 = vpow2.f32 %v4386_v53 }
 0x494   : > { %14245 = vst [vmem:[#allocation133_spill] sm:$0xff] %v11606_v20  ;;  %v3914_v55 = vpop.xlane.xlu0 %3913  ;;  %4894 = vadd.xlane.f32.xlu1 %v4893_v31  ;;  %v4388_v47 = vmul.f32 1.442695, %v14248_v39  ;;  %v7814_v31 = vpop.eup %7813  ;;  %v14250_v20 = vld [vmem:[#allocation65_spill] sm:$0xff]  ;;  %v4902_v59 = vsel %vm3317_vm8, %v7812_v5, 0.0 }
 0x495   : > { %v11612_v0 = vsub.f32 %v14076_v56, %v3914_v55  ;;  %v3917_v46 = vpop.xlane.xlu1 %3916  ;;  %v4390_v56 = vmul.f32 1.442695, %v14250_v20  ;;  %v4905_v62 = vsel %vm3317_vm8, %v7814_v31, 0.0 }
 0x496   : > { %v11616_v3 = vsub.f32 %v14077_v58, %v3917_v46  ;;  %7825 = vpow2.f32 %v4388_v47 }
 0x497   : > { %14247 = vst [vmem:[#allocation154_spill] sm:$0xff] %v11612_v0  ;;  %4897 = vadd.xlane.f32.xlu0 %v4896_v24  ;;  %v14252_v0 = vld [vmem:[#allocation137_spill] sm:$0xff]  ;;  %v7816_v24 = vpop.eup %7815  ;;  %7827 = vpow2.f32 %v4390_v56 }
 0x498   : > { %14249 = vst [vmem:[#allocation63_spill] sm:$0xff] %v11616_v3  ;;  %v3920_v40 = vpop.xlane.xlu0 %3919  ;;  %4900 = vadd.xlane.f32.xlu1 %v4899_v6  ;;  %v4392_v58 = vmul.f32 1.442695, %v14252_v0  ;;  %v7818_v6 = vpop.eup %7817  ;;  %v14254_v3 = vld [vmem:[#allocation67_spill] sm:$0xff]  ;;  %v4908_v5 = vsel %vm3317_vm8, %v7816_v24, 0.0 }
 0x499   : > { %v11622_v55 = vsub.f32 %v14081_v37, %v3920_v40  ;;  %v3923_v4 = vpop.xlane.xlu1 %3922  ;;  %v4394_v37 = vmul.f32 1.442695, %v14254_v3  ;;  %v14255_v40 = vld [vmem:[#allocation90_spill] sm:$0xff]  ;;  %v14257_v0 = vld [vmem:[#allocation139_spill] sm:$0xff]  ;;  %v4911_v31 = vsel %vm3317_vm8, %v7818_v6, 0.0  ;;  %v14260_v3 = vld [vmem:[#allocation69_spill] sm:$0xff] }
 0x49a   : > { %v11626_v46 = vsub.f32 %v14082_v45, %v3923_v4  ;;  %7829 = vpow2.f32 %v4392_v58  ;;  %v4396_v45 = vmul.f32 1.442695, %v14257_v0  ;;  %v14258_v4 = vld [vmem:[#allocation92_spill] sm:$0xff] }
 0x49b   : > { %14251 = vst [vmem:[#allocation135_spill] sm:$0xff] %v11622_v55  ;;  %4903 = vadd.xlane.f32.xlu0 %v4902_v59  ;;  %v7820_v59 = vpop.eup %7819  ;;  %7831 = vpow2.f32 %v4394_v37 }
 0x49c   : > { %14253 = vst [vmem:[#allocation65_spill] sm:$0xff] %v11626_v46  ;;  %v3926_v53 = vpop.xlane.xlu0 %3925  ;;  %4906 = vadd.xlane.f32.xlu1 %v4905_v62  ;;  %v7822_v62 = vpop.eup %7821  ;;  %7833 = vpow2.f32 %v4396_v45  ;;  %v4914_v24 = vsel %vm3317_vm8, %v7820_v59, 0.0 }
 0x49d   : > { %v11632_v55 = vsub.f32 %v14255_v40, %v3926_v53  ;;  %v3929_v47 = vpop.xlane.xlu1 %3928  ;;  %v4398_v53 = vmul.f32 1.442695, %v14260_v3  ;;  %v4917_v6 = vsel %vm3317_vm8, %v7822_v62, 0.0  ;;  %v14265_v3 = vld [vmem:[#allocation71_spill] sm:$0xff] }
 0x49e   : > { %v11636_v46 = vsub.f32 %v14258_v4, %v3929_v47  ;;  %v14263_v4 = vld [vmem:[#allocation93_spill] sm:$0xff] }
 0x49f   : > { %14256 = vst [vmem:[#allocation90_spill] sm:$0xff] %v11632_v55  ;;  %4909 = vadd.xlane.f32.xlu0 %v4908_v5  ;;  %v14262_v55 = vld [vmem:[#allocation141_spill] sm:$0xff]  ;;  %v7824_v5 = vpop.eup %7823  ;;  %7835 = vpow2.f32 %v4398_v53 }
 0x4a0   : > { %14259 = vst [vmem:[#allocation139_spill] sm:$0xff] %v11636_v46  ;;  %v3932_v56 = vpop.xlane.xlu0 %3931  ;;  %4912 = vadd.xlane.f32.xlu1 %v4911_v31  ;;  %v4400_v47 = vmul.f32 1.442695, %v14262_v55  ;;  %v7826_v31 = vpop.eup %7825  ;;  %v14268_v55 = vld [vmem:[#allocation8_spill] sm:$0xff]  ;;  %v4920_v59 = vsel %vm3317_vm8, %v7824_v5, 0.0 }
 0x4a1   : > { %v11642_v40 = vsub.f32 %v14089_v51, %v3932_v56  ;;  %v3935_v58 = vpop.xlane.xlu1 %3934  ;;  %v4402_v51 = vmul.f32 1.442695, %v14265_v3  ;;  %v14266_v56 = vld [vmem:[#allocation164_spill] sm:$0xff]  ;;  %v4923_v62 = vsel %vm3317_vm8, %v7826_v31, 0.0  ;;  %v14271_v3 = vld [vmem:[#allocation10_spill] sm:$0xff] }
 0x4a2   : > { %v11646_v46 = vsub.f32 %v14263_v4, %v3935_v58  ;;  %7837 = vpow2.f32 %v4400_v47  ;;  %v4404_v58 = vmul.f32 1.442695, %v14268_v55  ;;  %v14269_v4 = vld [vmem:[#allocation95_spill] sm:$0xff] }
 0x4a3   : > { %14261 = vst [vmem:[#allocation92_spill] sm:$0xff] %v11642_v40  ;;  %4915 = vadd.xlane.f32.xlu0 %v4914_v24  ;;  %v7828_v24 = vpop.eup %7827  ;;  %7839 = vpow2.f32 %v4402_v51 }
 0x4a4   : > { %14264 = vst [vmem:[#allocation93_spill] sm:$0xff] %v11646_v46  ;;  %v3938_v37 = vpop.xlane.xlu0 %3937  ;;  %4918 = vadd.xlane.f32.xlu1 %v4917_v6  ;;  %v7830_v6 = vpop.eup %7829  ;;  %7841 = vpow2.f32 %v4404_v58  ;;  %v4926_v5 = vsel %vm3317_vm8, %v7828_v24, 0.0 }
 0x4a5   : > { %v11652_v40 = vsub.f32 %v14266_v56, %v3938_v37  ;;  %v3941_v45 = vpop.xlane.xlu1 %3940  ;;  %v4406_v37 = vmul.f32 1.442695, %v14271_v3  ;;  %v4929_v31 = vsel %vm3317_vm8, %v7830_v6, 0.0  ;;  %v14276_v3 = vld [vmem:[#allocation146_spill] sm:$0xff] }
 0x4a6   : > { %v11656_v46 = vsub.f32 %v14269_v4, %v3941_v45  ;;  %v14274_v4 = vld [vmem:[#allocation166_spill] sm:$0xff] }
 0x4a7   : > { %14267 = vst [vmem:[#allocation164_spill] sm:$0xff] %v11652_v40  ;;  %4921 = vadd.xlane.f32.xlu0 %v4920_v59  ;;  %v14273_v40 = vld [vmem:[#allocation9_spill] sm:$0xff]  ;;  %v7832_v59 = vpop.eup %7831  ;;  %7843 = vpow2.f32 %v4406_v37 }
 0x4a8   : > { %14270 = vst [vmem:[#allocation8_spill] sm:$0xff] %v11656_v46  ;;  %v3944_v53 = vpop.xlane.xlu0 %3943  ;;  %4924 = vadd.xlane.f32.xlu1 %v4923_v62  ;;  %v4408_v45 = vmul.f32 1.442695, %v14273_v40  ;;  %v7834_v62 = vpop.eup %7833  ;;  %v14279_v40 = vld [vmem:[#allocation147_spill] sm:$0xff]  ;;  %v4932_v24 = vsel %vm3317_vm8, %v7832_v59, 0.0 }
 0x4a9   : > { %v11662_v56 = vsub.f32 %v14100_v49, %v3944_v53  ;;  %v3947_v47 = vpop.xlane.xlu1 %3946  ;;  %v4410_v49 = vmul.f32 1.442695, %v14276_v3  ;;  %v14277_v53 = vld [vmem:[#allocation170_spill] sm:$0xff]  ;;  %v4935_v6 = vsel %vm3317_vm8, %v7834_v62, 0.0  ;;  %v14282_v3 = vld [vmem:[#allocation148_spill] sm:$0xff] }
 0x4aa   : > { %v11666_v46 = vsub.f32 %v14274_v4, %v3947_v47  ;;  %7845 = vpow2.f32 %v4408_v45  ;;  %v4412_v47 = vmul.f32 1.442695, %v14279_v40  ;;  %v14280_v4 = vld [vmem:[#allocation169_spill] sm:$0xff] }
 0x4ab   : > { %14272 = vst [vmem:[#allocation95_spill] sm:$0xff] %v11662_v56  ;;  %4927 = vadd.xlane.f32.xlu0 %v4926_v5  ;;  %v7836_v5 = vpop.eup %7835  ;;  %7847 = vpow2.f32 %v4410_v49 }
 0x4ac   : > { %14275 = vst [vmem:[#allocation166_spill] sm:$0xff] %v11666_v46  ;;  %v3950_v51 = vpop.xlane.xlu0 %3949  ;;  %4930 = vadd.xlane.f32.xlu1 %v4929_v31  ;;  %v7838_v31 = vpop.eup %7837  ;;  %7849 = vpow2.f32 %v4412_v47  ;;  %v4938_v59 = vsel %vm3317_vm8, %v7836_v5, 0.0 }
 0x4ad   : > { %v11672_v56 = vsub.f32 %v14277_v53, %v3950_v51  ;;  %v3953_v58 = vpop.xlane.xlu1 %3952  ;;  %v4414_v51 = vmul.f32 1.442695, %v14282_v3  ;;  %v4941_v62 = vsel %vm3317_vm8, %v7838_v31, 0.0 }
 0x4ae   : > { %v11676_v46 = vsub.f32 %v14280_v4, %v3953_v58 }
 0x4af   : > { %14278 = vst [vmem:[#allocation170_spill] sm:$0xff] %v11672_v56  ;;  %4933 = vadd.xlane.f32.xlu0 %v4932_v24  ;;  %v14284_v56 = vld [vmem:[#allocation149_spill] sm:$0xff]  ;;  %v7840_v24 = vpop.eup %7839  ;;  %7851 = vpow2.f32 %v4414_v51 }
 0x4b0   : > { %14281 = vst [vmem:[#allocation147_spill] sm:$0xff] %v11676_v46  ;;  %v3956_v37 = vpop.xlane.xlu0 %3955  ;;  %4936 = vadd.xlane.f32.xlu1 %v4935_v6  ;;  %v4416_v58 = vmul.f32 1.442695, %v14284_v56  ;;  %v7842_v6 = vpop.eup %7841  ;;  %v14286_v46 = vld [vmem:[#allocation150_spill] sm:$0xff]  ;;  %v4944_v5 = vsel %vm3317_vm8, %v7840_v24, 0.0 }
 0x4b1   : > { %v11682_v53 = vsub.f32 %v14111_v12, %v3956_v37  ;;  %v3959_v45 = vpop.xlane.xlu1 %3958  ;;  %v4418_v12 = vmul.f32 1.442695, %v14286_v46  ;;  %v4947_v31 = vsel %vm3317_vm8, %v7842_v6, 0.0 }
 0x4b2   : > { %v11686_v4 = vsub.f32 %v14112_v11, %v3959_v45  ;;  %7853 = vpow2.f32 %v4416_v58 }
 0x4b3   : > { %14283 = vst [vmem:[#allocation169_spill] sm:$0xff] %v11682_v53  ;;  %4939 = vadd.xlane.f32.xlu0 %v4938_v59  ;;  %v14288_v53 = vld [vmem:[#allocation151_spill] sm:$0xff]  ;;  %v7844_v59 = vpop.eup %7843  ;;  %7855 = vpow2.f32 %v4418_v12 }
 0x4b4   : > { %14285 = vst [vmem:[#allocation148_spill] sm:$0xff] %v11686_v4  ;;  %v3962_v49 = vpop.xlane.xlu0 %3961  ;;  %4942 = vadd.xlane.f32.xlu1 %v4941_v62  ;;  %v4420_v11 = vmul.f32 1.442695, %v14288_v53  ;;  %v7846_v62 = vpop.eup %7845  ;;  %v14290_v4 = vld [vmem:[#allocation152_spill] sm:$0xff]  ;;  %v4950_v24 = vsel %vm3317_vm8, %v7844_v59, 0.0 }
 0x4b5   : > { %v11692_v37 = vsub.f32 %v14117_v10, %v3962_v49  ;;  %v3965_v47 = vpop.xlane.xlu1 %3964  ;;  %v4422_v10 = vmul.f32 1.442695, %v14290_v4  ;;  %v4953_v6 = vsel %vm3317_vm8, %v7846_v62, 0.0 }
 0x4b6   : > { %v11696_v45 = vsub.f32 %v14118_v44, %v3965_v47  ;;  %7857 = vpow2.f32 %v4420_v11 }
 0x4b7   : > { %14287 = vst [vmem:[#allocation149_spill] sm:$0xff] %v11692_v37  ;;  %4945 = vadd.xlane.f32.xlu0 %v4944_v5  ;;  %v14292_v37 = vld [vmem:[#allocation153_spill] sm:$0xff]  ;;  %v7848_v5 = vpop.eup %7847  ;;  %7859 = vpow2.f32 %v4422_v10 }
 0x4b8   : > { %14289 = vst [vmem:[#allocation150_spill] sm:$0xff] %v11696_v45  ;;  %v3968_v51 = vpop.xlane.xlu0 %3967  ;;  %4948 = vadd.xlane.f32.xlu1 %v4947_v31  ;;  %v4424_v44 = vmul.f32 1.442695, %v14292_v37  ;;  %v7850_v31 = vpop.eup %7849  ;;  %v14294_v45 = vld [vmem:[#allocation14_spill] sm:$0xff]  ;;  %v4956_v59 = vsel %vm3317_vm8, %v7848_v5, 0.0 }
 0x4b9   : > { %v11702_v49 = vsub.f32 %v14121_v57, %v3968_v51  ;;  %v3971_v58 = vpop.xlane.xlu1 %3970  ;;  %v4426_v57 = vmul.f32 1.442695, %v14294_v45  ;;  %v4959_v62 = vsel %vm3317_vm8, %v7850_v31, 0.0 }
 0x4ba   : > { %v11706_v47 = vsub.f32 %v14122_v38, %v3971_v58  ;;  %7861 = vpow2.f32 %v4424_v44 }
 0x4bb   : > { %14291 = vst [vmem:[#allocation151_spill] sm:$0xff] %v11702_v49  ;;  %4951 = vadd.xlane.f32.xlu0 %v4950_v24  ;;  %v14296_v49 = vld [vmem:[#allocation13_spill] sm:$0xff]  ;;  %v7852_v24 = vpop.eup %7851  ;;  %7863 = vpow2.f32 %v4426_v57 }
 0x4bc   : > { %14293 = vst [vmem:[#allocation152_spill] sm:$0xff] %v11706_v47  ;;  %v3974_v12 = vpop.xlane.xlu0 %3973  ;;  %4954 = vadd.xlane.f32.xlu1 %v4953_v6  ;;  %v4428_v38 = vmul.f32 1.442695, %v14296_v49  ;;  %v7854_v6 = vpop.eup %7853  ;;  %v14298_v47 = vld [vmem:[#allocation16_spill] sm:$0xff]  ;;  %v4962_v5 = vsel %vm3317_vm8, %v7852_v24, 0.0 }
 0x4bd   : > { %v11712_v51 = vsub.f32 %v14125_v28, %v3974_v12  ;;  %v3977_v11 = vpop.xlane.xlu1 %3976  ;;  %v4430_v28 = vmul.f32 1.442695, %v14298_v47  ;;  %v4965_v31 = vsel %vm3317_vm8, %v7854_v6, 0.0 }
 0x4be   : > { %v11716_v58 = vsub.f32 %v14126_v2, %v3977_v11  ;;  %7865 = vpow2.f32 %v4428_v38 }
 0x4bf   : > { %14295 = vst [vmem:[#allocation153_spill] sm:$0xff] %v11712_v51  ;;  %4957 = vadd.xlane.f32.xlu0 %v4956_v59  ;;  %v14300_v51 = vld [vmem:[#allocation15_spill] sm:$0xff]  ;;  %v7856_v59 = vpop.eup %7855  ;;  %7867 = vpow2.f32 %v4430_v28 }
 0x4c0   : > { %14297 = vst [vmem:[#allocation14_spill] sm:$0xff] %v11716_v58  ;;  %v3980_v10 = vpop.xlane.xlu0 %3979  ;;  %4960 = vadd.xlane.f32.xlu1 %v4959_v62  ;;  %v4432_v2 = vmul.f32 1.442695, %v14300_v51  ;;  %v7858_v62 = vpop.eup %7857  ;;  %v14302_v58 = vld [vmem:[#allocation158_spill] sm:$0xff]  ;;  %v4968_v24 = vsel %vm3317_vm8, %v7856_v59, 0.0 }
 0x4c1   : > { %v11722_v12 = vsub.f32 %v14129_v8, %v3980_v10  ;;  %v3983_v44 = vpop.xlane.xlu1 %3982  ;;  %v4434_v8 = vmul.f32 1.442695, %v14302_v58  ;;  %v4971_v6 = vsel %vm3317_vm8, %v7858_v62, 0.0 }
 0x4c2   : > { %v11726_v11 = vsub.f32 %v14130_v16, %v3983_v44  ;;  %7869 = vpow2.f32 %v4432_v2 }
 0x4c3   : > { %14299 = vst [vmem:[#allocation13_spill] sm:$0xff] %v11722_v12  ;;  %4963 = vadd.xlane.f32.xlu0 %v4962_v5  ;;  %v14304_v12 = vld [vmem:[#allocation159_spill] sm:$0xff]  ;;  %v7860_v5 = vpop.eup %7859  ;;  %7871 = vpow2.f32 %v4434_v8 }
 0x4c4   : > { %14301 = vst [vmem:[#allocation16_spill] sm:$0xff] %v11726_v11  ;;  %v3986_v57 = vpop.xlane.xlu0 %3985  ;;  %4966 = vadd.xlane.f32.xlu1 %v4965_v31  ;;  %v4436_v16 = vmul.f32 1.442695, %v14304_v12  ;;  %v7862_v31 = vpop.eup %7861  ;;  %v14306_v11 = vld [vmem:[#allocation160_spill] sm:$0xff]  ;;  %v4974_v59 = vsel %vm3317_vm8, %v7860_v5, 0.0 }
 0x4c5   : > { %v11732_v10 = vsub.f32 %v14133_v9, %v3986_v57  ;;  %v3989_v38 = vpop.xlane.xlu1 %3988  ;;  %v4438_v9 = vmul.f32 1.442695, %v14306_v11  ;;  %v4977_v62 = vsel %vm3317_vm8, %v7862_v31, 0.0 }
 0x4c6   : > { %v11736_v44 = vsub.f32 %v14134_v7, %v3989_v38  ;;  %7873 = vpow2.f32 %v4436_v16 }
 0x4c7   : > { %14303 = vst [vmem:[#allocation15_spill] sm:$0xff] %v11732_v10  ;;  %4969 = vadd.xlane.f32.xlu0 %v4968_v24  ;;  %v14308_v10 = vld [vmem:[#allocation161_spill] sm:$0xff]  ;;  %v7864_v24 = vpop.eup %7863  ;;  %7875 = vpow2.f32 %v4438_v9 }
 0x4c8   : > { %14305 = vst [vmem:[#allocation158_spill] sm:$0xff] %v11736_v44  ;;  %v3992_v28 = vpop.xlane.xlu0 %3991  ;;  %4972 = vadd.xlane.f32.xlu1 %v4971_v6  ;;  %v4440_v7 = vmul.f32 1.442695, %v14308_v10  ;;  %v7866_v6 = vpop.eup %7865  ;;  %v14310_v44 = vld [vmem:[#allocation163_spill] sm:$0xff]  ;;  %v4980_v5 = vsel %vm3317_vm8, %v7864_v24, 0.0 }
 0x4c9   : > { %v11742_v57 = vsub.f32 %v14137_v22, %v3992_v28  ;;  %v3995_v2 = vpop.xlane.xlu1 %3994  ;;  %v4442_v22 = vmul.f32 1.442695, %v14310_v44  ;;  %v4983_v31 = vsel %vm3317_vm8, %v7866_v6, 0.0 }
 0x4ca   : > { %v11746_v38 = vsub.f32 %v14138_v48, %v3995_v2  ;;  %7877 = vpow2.f32 %v4440_v7 }
 0x4cb   : > { %14307 = vst [vmem:[#allocation159_spill] sm:$0xff] %v11742_v57  ;;  %4975 = vadd.xlane.f32.xlu0 %v4974_v59  ;;  %v14312_v57 = vld [vmem:[#allocation21_spill] sm:$0xff]  ;;  %v7868_v59 = vpop.eup %7867  ;;  %7879 = vpow2.f32 %v4442_v22 }
 0x4cc   : > { %14309 = vst [vmem:[#allocation160_spill] sm:$0xff] %v11746_v38  ;;  %v3998_v8 = vpop.xlane.xlu0 %3997  ;;  %4978 = vadd.xlane.f32.xlu1 %v4977_v62  ;;  %v4444_v48 = vmul.f32 1.442695, %v14312_v57  ;;  %v7870_v62 = vpop.eup %7869  ;;  %v14314_v38 = vld [vmem:[#allocation24_spill] sm:$0xff]  ;;  %v4986_v24 = vsel %vm3317_vm8, %v7868_v59, 0.0 }
 0x4cd   : > { %v11752_v28 = vsub.f32 %v14141_v13, %v3998_v8  ;;  %v4001_v16 = vpop.xlane.xlu1 %4000  ;;  %v4446_v13 = vmul.f32 1.442695, %v14314_v38  ;;  %v4989_v6 = vsel %vm3317_vm8, %v7870_v62, 0.0 }
 0x4ce   : > { %v11756_v2 = vsub.f32 %v14142_v14, %v4001_v16  ;;  %7881 = vpow2.f32 %v4444_v48 }
 0x4cf   : > { %14311 = vst [vmem:[#allocation161_spill] sm:$0xff] %v11752_v28  ;;  %4981 = vadd.xlane.f32.xlu0 %v4980_v5  ;;  %v14316_v28 = vld [vmem:[#allocation165_spill] sm:$0xff]  ;;  %v7872_v5 = vpop.eup %7871  ;;  %7883 = vpow2.f32 %v4446_v13 }
 0x4d0   : > { %14313 = vst [vmem:[#allocation163_spill] sm:$0xff] %v11756_v2  ;;  %v4004_v9 = vpop.xlane.xlu0 %4003  ;;  %4984 = vadd.xlane.f32.xlu1 %v4983_v31  ;;  %v4448_v14 = vmul.f32 1.442695, %v14316_v28  ;;  %v7874_v31 = vpop.eup %7873  ;;  %v14318_v2 = vld [vmem:[#allocation168_spill] sm:$0xff]  ;;  %v4992_v59 = vsel %vm3317_vm8, %v7872_v5, 0.0 }
 0x4d1   : > { %v11762_v8 = vsub.f32 %v14145_v63, %v4004_v9  ;;  %v4007_v7 = vpop.xlane.xlu1 %4006  ;;  %v4450_v63 = vmul.f32 1.442695, %v14318_v2  ;;  %v4995_v62 = vsel %vm3317_vm8, %v7874_v31, 0.0 }
 0x4d2   : > { %v11766_v16 = vsub.f32 %v14146_v18, %v4007_v7  ;;  %7885 = vpow2.f32 %v4448_v14 }
 0x4d3   : > { %14315 = vst [vmem:[#allocation21_spill] sm:$0xff] %v11762_v8  ;;  %4987 = vadd.xlane.f32.xlu0 %v4986_v24  ;;  %v14320_v8 = vld [vmem:[#allocation25_spill] sm:$0xff]  ;;  %v7876_v24 = vpop.eup %7875  ;;  %7887 = vpow2.f32 %v4450_v63 }
 0x4d4   : > { %14317 = vst [vmem:[#allocation24_spill] sm:$0xff] %v11766_v16  ;;  %v4010_v22 = vpop.xlane.xlu0 %4009  ;;  %4990 = vadd.xlane.f32.xlu1 %v4989_v6  ;;  %v4452_v18 = vmul.f32 1.442695, %v14320_v8  ;;  %v7878_v6 = vpop.eup %7877  ;;  %v14322_v16 = vld [vmem:[#allocation100_spill] sm:$0xff]  ;;  %v4998_v5 = vsel %vm3317_vm8, %v7876_v24, 0.0 }
 0x4d5   : > { %v11772_v9 = vsub.f32 %v14149_v34, %v4010_v22  ;;  %v4013_v48 = vpop.xlane.xlu1 %4012  ;;  %v4454_v34 = vmul.f32 1.442695, %v14322_v16  ;;  %v5001_v31 = vsel %vm3317_vm8, %v7878_v6, 0.0 }
 0x4d6   : > { %v11776_v7 = vsub.f32 %v14150_v21, %v4013_v48  ;;  %7889 = vpow2.f32 %v4452_v18 }
 0x4d7   : > { %14319 = vst [vmem:[#allocation165_spill] sm:$0xff] %v11772_v9  ;;  %4993 = vadd.xlane.f32.xlu0 %v4992_v59  ;;  %v14324_v9 = vld [vmem:[#allocation28_spill] sm:$0xff]  ;;  %v7880_v59 = vpop.eup %7879  ;;  %7891 = vpow2.f32 %v4454_v34 }
 0x4d8   : > { %14321 = vst [vmem:[#allocation168_spill] sm:$0xff] %v11776_v7  ;;  %v4016_v13 = vpop.xlane.xlu0 %4015  ;;  %4996 = vadd.xlane.f32.xlu1 %v4995_v62  ;;  %v4456_v21 = vmul.f32 1.442695, %v14324_v9  ;;  %v7882_v62 = vpop.eup %7881  ;;  %v14326_v7 = vld [vmem:[#allocation30_spill] sm:$0xff]  ;;  %v5004_v24 = vsel %vm3317_vm8, %v7880_v59, 0.0 }
 0x4d9   : > { %v11782_v22 = vsub.f32 %v14153_v17, %v4016_v13  ;;  %v4019_v14 = vpop.xlane.xlu1 %4018  ;;  %v4458_v17 = vmul.f32 1.442695, %v14326_v7  ;;  %v5007_v6 = vsel %vm3317_vm8, %v7882_v62, 0.0 }
 0x4da   : > { %v11786_v48 = vsub.f32 %v14154_v42, %v4019_v14  ;;  %7893 = vpow2.f32 %v4456_v21 }
 0x4db   : > { %14323 = vst [vmem:[#allocation25_spill] sm:$0xff] %v11782_v22  ;;  %4999 = vadd.xlane.f32.xlu0 %v4998_v5  ;;  %v14328_v22 = vld [vmem:[#allocation171_spill] sm:$0xff]  ;;  %v7884_v5 = vpop.eup %7883  ;;  %7895 = vpow2.f32 %v4458_v17 }
 0x4dc   : > { %14325 = vst [vmem:[#allocation100_spill] sm:$0xff] %v11786_v48  ;;  %v4022_v63 = vpop.xlane.xlu0 %4021  ;;  %5002 = vadd.xlane.f32.xlu1 %v5001_v31  ;;  %v4460_v42 = vmul.f32 1.442695, %v14328_v22  ;;  %v7886_v31 = vpop.eup %7885  ;;  %v14330_v48 = vld [vmem:[#allocation91_spill] sm:$0xff]  ;;  %v5010_v59 = vsel %vm3317_vm8, %v7884_v5, 0.0 }
 0x4dd   : > { %v11792_v13 = vsub.f32 %v14157_v36, %v4022_v63  ;;  %v4025_v18 = vpop.xlane.xlu1 %4024  ;;  %v4462_v36 = vmul.f32 1.442695, %v14330_v48  ;;  %v5013_v62 = vsel %vm3317_vm8, %v7886_v31, 0.0 }
 0x4de   : > { %v11796_v14 = vsub.f32 %v14158_v15, %v4025_v18  ;;  %7897 = vpow2.f32 %v4460_v42 }
 0x4df   : > { %14327 = vst [vmem:[#allocation28_spill] sm:$0xff] %v11792_v13  ;;  %5005 = vadd.xlane.f32.xlu0 %v5004_v24  ;;  %v14332_v13 = vld [vmem:[#allocation173_spill] sm:$0xff]  ;;  %v7888_v24 = vpop.eup %7887  ;;  %7899 = vpow2.f32 %v4462_v36 }
 0x4e0   : > { %14329 = vst [vmem:[#allocation30_spill] sm:$0xff] %v11796_v14  ;;  %v4028_v34 = vpop.xlane.xlu0 %4027  ;;  %5008 = vadd.xlane.f32.xlu1 %v5007_v6  ;;  %v4464_v15 = vmul.f32 1.442695, %v14332_v13  ;;  %v7890_v6 = vpop.eup %7889  ;;  %v14334_v14 = vld [vmem:[#allocation96_spill] sm:$0xff]  ;;  %v5016_v5 = vsel %vm3317_vm8, %v7888_v24, 0.0 }
 0x4e1   : > { %v11802_v63 = vsub.f32 %v14161_v25, %v4028_v34  ;;  %v4031_v21 = vpop.xlane.xlu1 %4030  ;;  %v4466_v25 = vmul.f32 1.442695, %v14334_v14  ;;  %v5019_v31 = vsel %vm3317_vm8, %v7890_v6, 0.0  ;;  %v14339_v14 = vld [vmem:[#allocation36_spill] sm:$0xff] }
 0x4e2   : > { %v11806_v18 = vsub.f32 %v14162_v30, %v4031_v21  ;;  %7901 = vpow2.f32 %v4464_v15  ;;  %v14337_v21 = vld [vmem:[#allocation42_spill] sm:$0xff] }
 0x4e3   : > { %14331 = vst [vmem:[#allocation171_spill] sm:$0xff] %v11802_v63  ;;  %5011 = vadd.xlane.f32.xlu0 %v5010_v59  ;;  %v14336_v63 = vld [vmem:[#allocation175_spill] sm:$0xff]  ;;  %v7892_v59 = vpop.eup %7891  ;;  %7903 = vpow2.f32 %v4466_v25 }
 0x4e4   : > { %14333 = vst [vmem:[#allocation91_spill] sm:$0xff] %v11806_v18  ;;  %v4034_v17 = vpop.xlane.xlu0 %4033  ;;  %5014 = vadd.xlane.f32.xlu1 %v5013_v62  ;;  %v4468_v30 = vmul.f32 1.442695, %v14336_v63  ;;  %v7894_v62 = vpop.eup %7893  ;;  %v5022_v24 = vsel %vm3317_vm8, %v7892_v59, 0.0 }
 0x4e5   : > { %v11812_v34 = vsub.f32 %v14165_v41, %v4034_v17  ;;  %v4037_v42 = vpop.xlane.xlu1 %4036  ;;  %v4470_v41 = vmul.f32 1.442695, %v14339_v14  ;;  %v5025_v6 = vsel %vm3317_vm8, %v7894_v62, 0.0 }
 0x4e6   : > { %v11816_v18 = vsub.f32 %v14337_v21, %v4037_v42  ;;  %7905 = vpow2.f32 %v4468_v30 }
 0x4e7   : > { %14335 = vst [vmem:[#allocation173_spill] sm:$0xff] %v11812_v34  ;;  %5017 = vadd.xlane.f32.xlu0 %v5016_v5  ;;  %v14341_v34 = vld [vmem:[#allocation35_spill] sm:$0xff]  ;;  %v7896_v5 = vpop.eup %7895  ;;  %7907 = vpow2.f32 %v4470_v41 }
 0x4e8   : > { %14338 = vst [vmem:[#allocation175_spill] sm:$0xff] %v11816_v18  ;;  %v4040_v36 = vpop.xlane.xlu0 %4039  ;;  %5020 = vadd.xlane.f32.xlu1 %v5019_v31  ;;  %v4472_v42 = vmul.f32 1.442695, %v14341_v34  ;;  %v7898_v31 = vpop.eup %7897  ;;  %v14343_v18 = vld [vmem:[#allocation179_spill] sm:$0xff]  ;;  %v5028_v59 = vsel %vm3317_vm8, %v7896_v5, 0.0 }
 0x4e9   : > { %v11822_v17 = vsub.f32 %v14169_v19, %v4040_v36  ;;  %v4043_v15 = vpop.xlane.xlu1 %4042  ;;  %v4474_v19 = vmul.f32 1.442695, %v14343_v18  ;;  %v5031_v62 = vsel %vm3317_vm8, %v7898_v31, 0.0 }
 0x4ea   : > { %v11826_v21 = vsub.f32 %v14170_v43, %v4043_v15  ;;  %7909 = vpow2.f32 %v4472_v42 }
 0x4eb   : > { %14340 = vst [vmem:[#allocation42_spill] sm:$0xff] %v11822_v17  ;;  %5023 = vadd.xlane.f32.xlu0 %v5022_v24  ;;  %v14345_v17 = vld [vmem:[#allocation37_spill] sm:$0xff]  ;;  %v7900_v24 = vpop.eup %7899  ;;  %7911 = vpow2.f32 %v4474_v19 }
 0x4ec   : > { %14342 = vst [vmem:[#allocation36_spill] sm:$0xff] %v11826_v21  ;;  %v4046_v25 = vpop.xlane.xlu0 %4045  ;;  %5026 = vadd.xlane.f32.xlu1 %v5025_v6  ;;  %v4476_v43 = vmul.f32 1.442695, %v14345_v17  ;;  %v7902_v6 = vpop.eup %7901  ;;  %v14347_v21 = vld [vmem:[#allocation40_spill] sm:$0xff]  ;;  %v5034_v5 = vsel %vm3317_vm8, %v7900_v24, 0.0 }
 0x4ed   : > { %v11832_v36 = vsub.f32 %v14174_v35, %v4046_v25  ;;  %v4049_v30 = vpop.xlane.xlu1 %4048  ;;  %v4478_v35 = vmul.f32 1.442695, %v14347_v21  ;;  %v5037_v31 = vsel %vm3317_vm8, %v7902_v6, 0.0  ;;  %v14352_v21 = vld [vmem:[#allocation183_spill] sm:$0xff] }
 0x4ee   : > { %v11836_v15 = vsub.f32 %v14175_v60, %v4049_v30  ;;  %7913 = vpow2.f32 %v4476_v43  ;;  %v14350_v30 = vld [vmem:[#allocation202_spill] sm:$0xff] }
 0x4ef   : > { %14344 = vst [vmem:[#allocation35_spill] sm:$0xff] %v11832_v36  ;;  %5029 = vadd.xlane.f32.xlu0 %v5028_v59  ;;  %v14349_v36 = vld [vmem:[#allocation39_spill] sm:$0xff]  ;;  %v7904_v59 = vpop.eup %7903  ;;  %7915 = vpow2.f32 %v4478_v35 }
 0x4f0   : > { %14346 = vst [vmem:[#allocation218_spill] sm:$0xff] %v11836_v15  ;;  %v4052_v41 = vpop.xlane.xlu0 %4051  ;;  %5032 = vadd.xlane.f32.xlu1 %v5031_v62  ;;  %v4480_v60 = vmul.f32 1.442695, %v14349_v36  ;;  %v7906_v62 = vpop.eup %7905  ;;  %v14355_v36 = vld [vmem:[#allocation41_spill] sm:$0xff]  ;;  %v5040_v24 = vsel %vm3317_vm8, %v7904_v59, 0.0 }
 0x4f1   : > { %v11842_v25 = vsub.f32 %v14178_v33, %v4052_v41  ;;  %v4055_v42 = vpop.xlane.xlu1 %4054  ;;  %v4482_v33 = vmul.f32 1.442695, %v14352_v21  ;;  %v14353_v41 = vld [vmem:[#allocation49_spill] sm:$0xff]  ;;  %v5043_v6 = vsel %vm3317_vm8, %v7906_v62, 0.0  ;;  %v14358_v21 = vld [vmem:[#allocation44_spill] sm:$0xff] }
 0x4f2   : > { %v11846_v15 = vsub.f32 %v14350_v30, %v4055_v42  ;;  %7917 = vpow2.f32 %v4480_v60  ;;  %v4484_v42 = vmul.f32 1.442695, %v14355_v36  ;;  %v14356_v30 = vld [vmem:[#allocation204_spill] sm:$0xff] }
 0x4f3   : > { %14348 = vst [vmem:[#allocation219_spill] sm:$0xff] %v11842_v25  ;;  %5035 = vadd.xlane.f32.xlu0 %v5034_v5  ;;  %v7908_v5 = vpop.eup %7907  ;;  %7919 = vpow2.f32 %v4482_v33 }
 0x4f4   : > { %14351 = vst [vmem:[#allocation202_spill] sm:$0xff] %v11846_v15  ;;  %v4058_v19 = vpop.xlane.xlu0 %4057  ;;  %5038 = vadd.xlane.f32.xlu1 %v5037_v31  ;;  %v7910_v31 = vpop.eup %7909  ;;  %7921 = vpow2.f32 %v4484_v42  ;;  %v5046_v59 = vsel %vm3317_vm8, %v7908_v5, 0.0 }
 0x4f5   : > { %v11852_v25 = vsub.f32 %v14353_v41, %v4058_v19  ;;  %v4061_v43 = vpop.xlane.xlu1 %4060  ;;  %v4486_v19 = vmul.f32 1.442695, %v14358_v21  ;;  %v5049_v62 = vsel %vm3317_vm8, %v7910_v31, 0.0  ;;  %v14363_v21 = vld [vmem:[#allocation186_spill] sm:$0xff] }
 0x4f6   : > { %v11856_v15 = vsub.f32 %v14356_v30, %v4061_v43  ;;  %v14361_v30 = vld [vmem:[#allocation206_spill] sm:$0xff] }
 0x4f7   : > { %14354 = vst [vmem:[#allocation49_spill] sm:$0xff] %v11852_v25  ;;  %5041 = vadd.xlane.f32.xlu0 %v5040_v24  ;;  %v14360_v25 = vld [vmem:[#allocation43_spill] sm:$0xff]  ;;  %v7912_v24 = vpop.eup %7911  ;;  %7923 = vpow2.f32 %v4486_v19 }
 0x4f8   : > { %14357 = vst [vmem:[#allocation204_spill] sm:$0xff] %v11856_v15  ;;  %v4064_v35 = vpop.xlane.xlu0 %4063  ;;  %5044 = vadd.xlane.f32.xlu1 %v5043_v6  ;;  %v4488_v43 = vmul.f32 1.442695, %v14360_v25  ;;  %v7914_v6 = vpop.eup %7913  ;;  %v14366_v25 = vld [vmem:[#allocation187_spill] sm:$0xff]  ;;  %v5052_v5 = vsel %vm3317_vm8, %v7912_v24, 0.0 }
 0x4f9   : > { %v11862_v41 = vsub.f32 %v14188_v26, %v4064_v35  ;;  %v4067_v60 = vpop.xlane.xlu1 %4066  ;;  %v4490_v26 = vmul.f32 1.442695, %v14363_v21  ;;  %v14364_v35 = vld [vmem:[#allocation53_spill] sm:$0xff]  ;;  %v5055_v31 = vsel %vm3317_vm8, %v7914_v6, 0.0  ;;  %v14369_v21 = vld [vmem:[#allocation188_spill] sm:$0xff]  ;;  %v14375_v6 = vld [vmem:[#allocation190_spill] sm:$0xff] }
 0x4fa   : > { %v11866_v15 = vsub.f32 %v14361_v30, %v4067_v60  ;;  %7925 = vpow2.f32 %v4488_v43  ;;  %v4492_v60 = vmul.f32 1.442695, %v14366_v25  ;;  %v14367_v30 = vld [vmem:[#allocation208_spill] sm:$0xff]  ;;  %v14372_v25 = vld [vmem:[#allocation189_spill] sm:$0xff]  ;;  %v4498_v36 = vmul.f32 1.442695, %v14375_v6 }
 0x4fb   : > { %14359 = vst [vmem:[#allocation220_spill] sm:$0xff] %v11862_v41  ;;  %5047 = vadd.xlane.f32.xlu0 %v5046_v59  ;;  %v7916_v59 = vpop.eup %7915  ;;  %7927 = vpow2.f32 %v4490_v26 }
 0x4fc   : > { %14362 = vst [vmem:[#allocation206_spill] sm:$0xff] %v11866_v15  ;;  %v4070_v33 = vpop.xlane.xlu0 %4069  ;;  %5050 = vadd.xlane.f32.xlu1 %v5049_v62  ;;  %v7918_v62 = vpop.eup %7917  ;;  %7929 = vpow2.f32 %v4492_v60  ;;  %v5058_v24 = vsel %vm3317_vm8, %v7916_v59, 0.0  ;;  %v14377_v60 = vld [vmem:[#allocation192_spill] sm:$0xff]  ;;  %v14380_v59 = vld [vmem:[#allocation193_spill] sm:$0xff] }
 0x4fd   : > { %v11872_v41 = vsub.f32 %v14364_v35, %v4070_v33  ;;  %v4073_v42 = vpop.xlane.xlu1 %4072  ;;  %v4494_v33 = vmul.f32 1.442695, %v14369_v21  ;;  %v14370_v35 = vld [vmem:[#allocation56_spill] sm:$0xff]  ;;  %v5061_v26 = vsel %vm3317_vm8, %v7918_v62, 0.0  ;;  %v14376_v21 = vld [vmem:[#allocation191_spill] sm:$0xff] }
 0x4fe   : > { %v11876_v15 = vsub.f32 %v14367_v30, %v4073_v42  ;;  %v4496_v42 = vmul.f32 1.442695, %v14372_v25  ;;  %v14373_v30 = vld [vmem:[#allocation55_spill] sm:$0xff]  ;;  %v4500_v17 = vmul.f32 1.442695, %v14376_v21  ;;  %v14391_v21 = vld [vmem:[#allocation109_spill] sm:$0xff] }
 0x4ff   : > { %14365 = vst [vmem:[#allocation53_spill] sm:$0xff] %v11872_v41  ;;  %5053 = vadd.xlane.f32.xlu0 %v5052_v5  ;;  %v7920_v5 = vpop.eup %7919  ;;  %7931 = vpow2.f32 %v4494_v33 }
 0x500   : > { %14368 = vst [vmem:[#allocation208_spill] sm:$0xff] %v11876_v15  ;;  %v4076_v19 = vpop.xlane.xlu0 %4075  ;;  %5056 = vadd.xlane.f32.xlu1 %v5055_v31  ;;  %v7922_v31 = vpop.eup %7921  ;;  %7933 = vpow2.f32 %v4496_v42  ;;  %v5064_v62 = vsel %vm3317_vm8, %v7920_v5, 0.0 }
 0x501   : > { %v11882_v41 = vsub.f32 %v14370_v35, %v4076_v19  ;;  %v4079_v43 = vpop.xlane.xlu1 %4078  ;;  %v4502_v35 = vmul.f32 1.442695, %v14377_v60  ;;  %v7924_v6 = vpop.eup %7923  ;;  %7935 = vpow2.f32 %v4498_v36  ;;  %v5067_v33 = vsel %vm3317_vm8, %v7922_v31, 0.0  ;;  %v14383_v31 = vld [vmem:[#allocation195_spill] sm:$0xff] }
 0x502   : > { %v11886_v15 = vsub.f32 %v14373_v30, %v4079_v43  ;;  %7937 = vpow2.f32 %v4500_v17  ;;  %v5070_v42 = vsel %vm3317_vm8, %v7924_v6, 0.0 }
 0x503   : > { %14371 = vst [vmem:[#allocation56_spill] sm:$0xff] %v11882_v41  ;;  %5059 = vadd.xlane.f32.xlu0 %v5058_v24  ;;  %v14378_v41 = vld [vmem:[#allocation212_spill] sm:$0xff]  ;;  %7939 = vpow2.f32 %v4502_v35 }
 0x504   : > { %14374 = vst [vmem:[#allocation55_spill] sm:$0xff] %v11886_v15  ;;  %v4082_v19 = vpop.xlane.xlu0 %4081  ;;  %5062 = vadd.xlane.f32.xlu1 %v5061_v26  ;;  %v4504_v15 = vmul.f32 1.442695, %v14380_v59  ;;  %v7926_v26 = vpop.eup %7925 }
 0x505   : > { %v11894_v43 = vsub.f32 %v14378_v41, %v4082_v19  ;;  %v4085_v30 = vpop.xlane.xlu1 %4084  ;;  %v14382_v19 = vld [vmem:[#allocation194_spill] sm:$0xff]  ;;  %v5073_v36 = vsel %vm3317_vm8, %v7926_v26, 0.0 }
 0x506   : > { %v11898_v24 = vsub.f32 %v14211_v50, %v4085_v30  ;;  %7941 = vpow2.f32 %v4504_v15  ;;  %v7928_v50 = vpop.eup %7927  ;;  %v4506_v30 = vmul.f32 1.442695, %v14382_v19 }
 0x507   : > { %14379 = vst [vmem:[#allocation212_spill] sm:$0xff] %v11894_v43  ;;  %5065 = vadd.xlane.f32.xlu0 %v5064_v62  ;;  %v7930_v5 = vpop.eup %7929  ;;  %v4508_v62 = vmul.f32 1.442695, %v14383_v31  ;;  %v5076_v15 = vsel %vm3317_vm8, %v7928_v50, 0.0 }
 0x508   : > { %14381 = vst [vmem:[#allocation221_spill] sm:$0xff] %v11898_v24  ;;  %v4856_v60 = vpop.xlane.xlu0 %4855  ;;  %5068 = vadd.xlane.f32.xlu1 %v5067_v33  ;;  %v14384_v33 = vld [vmem:[#allocation196_spill] sm:$0xff] }
 0x509   : > { %v4859_v41 = vpop.xlane.xlu1 %4858  ;;  %7943 = vlog2.f32 %v4856_v60  ;;  %v7932_v6 = vpop.eup %7931  ;;  %v4510_v24 = vmul.f32 1.442695, %v14384_v33  ;;  %v5079_v60 = vsel %vm3317_vm8, %v7930_v5, 0.0  ;;  %v14386_v5 = vld [vmem:[#allocation112_spill] sm:$0xff]  ;;  %v14387_v33 = vld [vmem:[#allocation199_spill] sm:$0xff] }
 0x50a   : > { %7945 = vlog2.f32 %v4859_v41  ;;  %v7934_v26 = vpop.eup %7933  ;;  %v4516_v31 = vmul.f32 1.442695, %v14387_v33 }
 0x50b   : > { %5071 = vadd.xlane.f32.xlu0 %v5070_v42  ;;  %v14385_v42 = vld [vmem:[#allocation197_spill] sm:$0xff] }
 0x50c   : > { %v4862_v17 = vpop.xlane.xlu0 %4861  ;;  %5074 = vadd.xlane.f32.xlu1 %v5073_v36  ;;  %v4512_v43 = vmul.f32 1.442695, %v14385_v42  ;;  %v7936_v36 = vpop.eup %7935 }
 0x50d   : > { %7947 = vlog2.f32 %v4862_v17  ;;  %v4865_v35 = vpop.xlane.xlu1 %4864  ;;  %v7938_v17 = vpop.eup %7937 }
 0x50e   : > { %7949 = vlog2.f32 %v4865_v35  ;;  %v7940_v35 = vpop.eup %7939 }
 0x50f   : > { %7951 = vpow2.f32 %v4506_v30  ;;  %5077 = vadd.xlane.f32.xlu0 %v5076_v15  ;;  %v5082_v30 = vsel %vm3317_vm8, %v7932_v6, 0.0  ;;  %v4514_v15 = vmul.f32 1.442695, %v14386_v5 }
 0x510   : > { %7953 = vpow2.f32 %v4508_v62  ;;  %v4868_v41 = vpop.xlane.xlu0 %4867  ;;  %5080 = vadd.xlane.f32.xlu1 %v5079_v60  ;;  %v5085_v62 = vsel %vm3317_vm8, %v7934_v26, 0.0  ;;  %v7942_v42 = vpop.eup %7941  ;;  %v5091_v26 = vsel %vm3317_vm8, %v7938_v17, 0.0  ;;  %v14392_v17 = vld [vmem:[#allocation111_spill] sm:$0xff] }
 0x511   : > { %7955 = vlog2.f32 %v4868_v41  ;;  %v4871_v50 = vpop.xlane.xlu1 %4870 }
 0x512   : > { %7957 = vlog2.f32 %v4871_v50 }
 0x513   : > { %7959 = vpow2.f32 %v4510_v24  ;;  %5083 = vadd.xlane.f32.xlu0 %v5082_v30  ;;  %v7944_v41 = vpop.eup %7943  ;;  %v5088_v24 = vsel %vm3317_vm8, %v7936_v36, 0.0  ;;  %v14388_v30 = vld [vmem:[#allocation46_spill] sm:$0xff] }
 0x514   : > { %7961 = vpow2.f32 %v4512_v43  ;;  %v4874_v60 = vpop.xlane.xlu0 %4873  ;;  %5086 = vadd.xlane.f32.xlu1 %v5085_v62  ;;  %v7946_v50 = vpop.eup %7945  ;;  %v5623_v59 = vmul.f32 0.6931472, %v7944_v41  ;;  %v4518_v5 = vmul.f32 1.442695, %v14388_v30  ;;  %v14390_v41 = vld [vmem:[#allocation114_spill] sm:$0xff] }
 0x515   : > { %7963 = vlog2.f32 %v4874_v60  ;;  %v4877_v19 = vpop.xlane.xlu1 %4876  ;;  %v5625_v43 = vmul.f32 0.6931472, %v7946_v50  ;;  %v14389_v60 = vld [vmem:[#allocation201_spill] sm:$0xff] }
 0x516   : > { %7965 = vlog2.f32 %v4877_v19  ;;  %v4520_v19 = vmul.f32 1.442695, %v14389_v60  ;;  %v6134_v36 = vsub.f32 %v14390_v41, %v5623_v59  ;;  %v5094_v60 = vsel %vm3317_vm8, %v7940_v35, 0.0 }
 0x517   : > { %v7948_v6 = vpop.eup %7947  ;;  %7967 = vpow2.f32 %v4514_v15  ;;  %5089 = vadd.xlane.f32.xlu0 %v5088_v24  ;;  %v6135_v25 = vsub.f32 %v14391_v21, %v5625_v43  ;;  %v14394_v21 = vld [vmem:[#allocation115_spill] sm:$0xff] }
 0x518   : > { %v7950_v62 = vpop.eup %7949  ;;  %7969 = vpow2.f32 %v4516_v31  ;;  %v5627_v33 = vmul.f32 0.6931472, %v7948_v6  ;;  %v4880_v15 = vpop.xlane.xlu0 %4879  ;;  %5092 = vadd.xlane.f32.xlu1 %v5091_v26  ;;  %6390 = vst.msk [vmem:[%s11925_s16] sm:$0xff] %vm3317_vm8, %v6134_v36  ;;  %v14393_v6 = vld [vmem:[#allocation48_spill] sm:$0xff]  ;;  %v14395_v36 = vld [vmem:[#allocation203_spill] sm:$0xff] }
 0x519   : > { %v7952_v30 = vpop.eup %7951  ;;  %v5629_v18 = vmul.f32 0.6931472, %v7950_v62  ;;  %7971 = vlog2.f32 %v4880_v15  ;;  %v4883_v50 = vpop.xlane.xlu1 %4882  ;;  %v4522_v26 = vmul.f32 1.442695, %v14393_v6  ;;  %6391 = vst.msk [vmem:[%s11925_s16 + $0x8] sm:$0xff] %vm3317_vm8, %v6135_v25  ;;  %v5097_v62 = vsel %vm3317_vm8, %v7942_v42, 0.0 }
 0x51a   : > { %v7954_v24 = vpop.eup %7953  ;;  %v6136_v31 = vsub.f32 %v14392_v17, %v5627_v33  ;;  %7973 = vlog2.f32 %v4883_v50  ;;  %v4524_v15 = vmul.f32 1.442695, %v14395_v36  ;;  %v5100_v42 = vsel %vm3317_vm8, %v7952_v30, 0.0 }
 0x51b   : > { %v7956_v59 = vpop.eup %7955  ;;  %7975 = vpow2.f32 %v4518_v5  ;;  %v6137_v43 = vsub.f32 %v14394_v21, %v5629_v18  ;;  %5095 = vadd.xlane.f32.xlu0 %v5094_v60  ;;  %v14396_v60 = vld [vmem:[#allocation116_spill] sm:$0xff]  ;;  %v14398_v21 = vld [vmem:[#allocation117_spill] sm:$0xff] }
 0x51c   : > { %v7958_v41 = vpop.eup %7957  ;;  %7977 = vpow2.f32 %v4520_v19  ;;  %6392 = vst.msk [vmem:[%s11925_s16 + $0x10] sm:$0xff] %vm3317_vm8, %v6136_v31  ;;  %v5631_v33 = vmul.f32 0.6931472, %v7956_v59  ;;  %v4886_v35 = vpop.xlane.xlu0 %4885  ;;  %5098 = vadd.xlane.f32.xlu1 %v5097_v62  ;;  %v14397_v31 = vld [vmem:[#allocation50_spill] sm:$0xff] }
 0x51d   : > { %v7960_v50 = vpop.eup %7959  ;;  %6393 = vst.msk [vmem:[%s11925_s16 + $0x18] sm:$0xff] %vm3317_vm8, %v6137_v43  ;;  %v5633_v5 = vmul.f32 0.6931472, %v7958_v41  ;;  %7979 = vlog2.f32 %v4886_v35  ;;  %v4889_v25 = vpop.xlane.xlu1 %4888  ;;  %v4526_v59 = vmul.f32 1.442695, %v14397_v31  ;;  %v5103_v43 = vsel %vm3317_vm8, %v7954_v24, 0.0 }
 0x51e   : > { %v7962_v18 = vpop.eup %7961  ;;  %v6138_v17 = vsub.f32 %v14396_v60, %v5631_v33  ;;  %7981 = vlog2.f32 %v4889_v25  ;;  %v14399_v35 = vld [vmem:[#allocation205_spill] sm:$0xff]  ;;  %v5106_v24 = vsel %vm3317_vm8, %v7960_v50, 0.0 }
 0x51f   : > { %v7964_v19 = vpop.eup %7963  ;;  %7983 = vpow2.f32 %v4522_v26  ;;  %v6139_v62 = vsub.f32 %v14398_v21, %v5633_v5  ;;  %5101 = vadd.xlane.f32.xlu0 %v5100_v42  ;;  %v4528_v36 = vmul.f32 1.442695, %v14399_v35  ;;  %v14400_v42 = vld [vmem:[#allocation118_spill] sm:$0xff]  ;;  %v14402_v35 = vld [vmem:[#allocation119_spill] sm:$0xff] }
 0x520   : > { %v7966_v41 = vpop.eup %7965  ;;  %7985 = vpow2.f32 %v4524_v15  ;;  %6394 = vst.msk [vmem:[%s11925_s16 + $0x20] sm:$0xff] %vm3317_vm8, %v6138_v17  ;;  %v5635_v33 = vmul.f32 0.6931472, %v7964_v19  ;;  %v4892_v25 = vpop.xlane.xlu0 %4891  ;;  %5104 = vadd.xlane.f32.xlu1 %v5103_v43  ;;  %v14401_v17 = vld [vmem:[#allocation52_spill] sm:$0xff] }
 0x521   : > { %v7968_v60 = vpop.eup %7967  ;;  %6395 = vst.msk [vmem:[%s11925_s16 + $0x28] sm:$0xff] %vm3317_vm8, %v6139_v62  ;;  %v5637_v30 = vmul.f32 0.6931472, %v7966_v41  ;;  %7987 = vlog2.f32 %v4892_v25  ;;  %v4895_v26 = vpop.xlane.xlu1 %4894  ;;  %v4530_v19 = vmul.f32 1.442695, %v14401_v17  ;;  %v5109_v62 = vsel %vm3317_vm8, %v7962_v18, 0.0 }
 0x522   : > { %v7970_v5 = vpop.eup %7969  ;;  %v6140_v21 = vsub.f32 %v14400_v42, %v5635_v33  ;;  %7989 = vlog2.f32 %v4895_v26  ;;  %v14403_v25 = vld [vmem:[#allocation207_spill] sm:$0xff] }
 0x523   : > { %v7972_v15 = vpop.eup %7971  ;;  %7991 = vpow2.f32 %v4526_v59  ;;  %v6141_v43 = vsub.f32 %v14402_v35, %v5637_v30  ;;  %5107 = vadd.xlane.f32.xlu0 %v5106_v24  ;;  %v4532_v31 = vmul.f32 1.442695, %v14403_v25  ;;  %v14404_v30 = vld [vmem:[#allocation120_spill] sm:$0xff] }
 0x524   : > { %v7974_v41 = vpop.eup %7973  ;;  %7993 = vpow2.f32 %v4528_v36  ;;  %6396 = vst.msk [vmem:[%s11925_s16 + $0x30] sm:$0xff] %vm3317_vm8, %v6140_v21  ;;  %v5639_v33 = vmul.f32 0.6931472, %v7972_v15  ;;  %v4898_v26 = vpop.xlane.xlu0 %4897  ;;  %5110 = vadd.xlane.f32.xlu1 %v5109_v62  ;;  %v5112_v36 = vsel %vm3317_vm8, %v7968_v60, 0.0  ;;  %v14405_v21 = vld [vmem:[#allocation54_spill] sm:$0xff] }
 0x525   : > { %v7976_v42 = vpop.eup %7975  ;;  %6397 = vst.msk [vmem:[%s11925_s16 + $0x38] sm:$0xff] %vm3317_vm8, %v6141_v43  ;;  %v5641_v50 = vmul.f32 0.6931472, %v7974_v41  ;;  %7995 = vlog2.f32 %v4898_v26  ;;  %v4901_v59 = vpop.xlane.xlu1 %4900  ;;  %v4534_v15 = vmul.f32 1.442695, %v14405_v21  ;;  %v5115_v43 = vsel %vm3317_vm8, %v7970_v5, 0.0 }
 0x526   : > { %v7978_v35 = vpop.eup %7977  ;;  %v6142_v24 = vsub.f32 %v14404_v30, %v5639_v33  ;;  %7997 = vlog2.f32 %v4901_v59  ;;  %v14406_v26 = vld [vmem:[#allocation209_spill] sm:$0xff] }
 0x527   : > { %v7980_v18 = vpop.eup %7979  ;;  %7999 = vpow2.f32 %v4530_v19  ;;  %v6143_v62 = vsub.f32 %v14214_v61, %v5641_v50  ;;  %5113 = vadd.xlane.f32.xlu0 %v5112_v36  ;;  %v4536_v25 = vmul.f32 1.442695, %v14406_v26 }
 0x528   : > { %v7982_v41 = vpop.eup %7981  ;;  %8001 = vpow2.f32 %v4532_v31  ;;  %6398 = vst.msk [vmem:[%s11925_s16 + $0x40] sm:$0xff] %vm3317_vm8, %v6142_v24  ;;  %v5643_v33 = vmul.f32 0.6931472, %v7980_v18  ;;  %v4904_v59 = vpop.xlane.xlu0 %4903  ;;  %5116 = vadd.xlane.f32.xlu1 %v5115_v43  ;;  %v5118_v31 = vsel %vm3317_vm8, %v7976_v42, 0.0  ;;  %v14407_v24 = vld [vmem:[#allocation210_spill] sm:$0xff] }
 0x529   : > { %v7984_v30 = vpop.eup %7983  ;;  %6399 = vst.msk [vmem:[%s11925_s16 + $0x48] sm:$0xff] %vm3317_vm8, %v6143_v62  ;;  %v5645_v60 = vmul.f32 0.6931472, %v7982_v41  ;;  %8003 = vlog2.f32 %v4904_v59  ;;  %v4907_v19 = vpop.xlane.xlu1 %4906  ;;  %v4538_v36 = vmul.f32 1.442695, %v14407_v24  ;;  %v5121_v62 = vsel %vm3317_vm8, %v7978_v35, 0.0 }
 0x52a   : > { %v7986_v61 = vpop.eup %7985  ;;  %v6144_v50 = vsub.f32 %v14216_v29, %v5643_v33  ;;  %8005 = vlog2.f32 %v4907_v19  ;;  %v14408_v41 = vld [vmem:[#allocation211_spill] sm:$0xff] }
 0x52b   : > { %v7988_v5 = vpop.eup %7987  ;;  %8007 = vpow2.f32 %v4534_v15  ;;  %v6145_v18 = vsub.f32 %v14218_v1, %v5645_v60  ;;  %5119 = vadd.xlane.f32.xlu0 %v5118_v31  ;;  %v4540_v59 = vmul.f32 1.442695, %v14408_v41  ;;  %v14409_v60 = vld [vmem:[#allocation124_spill] sm:$0xff] }
 0x52c   : > { %v7990_v43 = vpop.eup %7989  ;;  %8009 = vpow2.f32 %v4536_v25  ;;  %6400 = vst.msk [vmem:[%s11925_s16 + $0x50] sm:$0xff] %vm3317_vm8, %v6144_v50  ;;  %v5647_v29 = vmul.f32 0.6931472, %v7988_v5  ;;  %v4910_v33 = vpop.xlane.xlu0 %4909  ;;  %5122 = vadd.xlane.f32.xlu1 %v5121_v62  ;;  %v5124_v25 = vsel %vm3317_vm8, %v7984_v30, 0.0  ;;  %v14410_v50 = vld [vmem:[#allocation213_spill] sm:$0xff] }
 0x52d   : > { %v7992_v19 = vpop.eup %7991  ;;  %6401 = vst.msk [vmem:[%s11925_s16 + $0x58] sm:$0xff] %vm3317_vm8, %v6145_v18  ;;  %v5649_v42 = vmul.f32 0.6931472, %v7990_v43  ;;  %8011 = vlog2.f32 %v4910_v33  ;;  %v4913_v15 = vpop.xlane.xlu1 %4912  ;;  %v4542_v5 = vmul.f32 1.442695, %v14410_v50  ;;  %v5127_v18 = vsel %vm3317_vm8, %v7986_v61, 0.0 }
 0x52e   : > { %v7994_v1 = vpop.eup %7993  ;;  %v6146_v31 = vsub.f32 %v14409_v60, %v5647_v29  ;;  %8013 = vlog2.f32 %v4913_v15  ;;  %v14411_v33 = vld [vmem:[#allocation214_spill] sm:$0xff]  ;;  %v5130_v61 = vsel %vm3317_vm8, %v7992_v19, 0.0 }
 0x52f   : > { %v7996_v35 = vpop.eup %7995  ;;  %8015 = vpow2.f32 %v4538_v36  ;;  %v6147_v62 = vsub.f32 %v14222_v27, %v5649_v42  ;;  %5125 = vadd.xlane.f32.xlu0 %v5124_v25  ;;  %v4544_v41 = vmul.f32 1.442695, %v14411_v33  ;;  %v14412_v42 = vld [vmem:[#allocation126_spill] sm:$0xff]  ;;  %v14414_v33 = vld [vmem:[#allocation127_spill] sm:$0xff] }
 0x530   : > { %v7998_v43 = vpop.eup %7997  ;;  %8017 = vpow2.f32 %v4540_v59  ;;  %6402 = vst.msk [vmem:[%s11925_s16 + $0x60] sm:$0xff] %vm3317_vm8, %v6146_v31  ;;  %v5651_v29 = vmul.f32 0.6931472, %v7996_v35  ;;  %v4916_v15 = vpop.xlane.xlu0 %4915  ;;  %5128 = vadd.xlane.f32.xlu1 %v5127_v18  ;;  %v14413_v31 = vld [vmem:[#allocation59_spill] sm:$0xff] }
 0x531   : > { %v8000_v60 = vpop.eup %7999  ;;  %6403 = vst.msk [vmem:[%s11925_s16 + $0x68] sm:$0xff] %vm3317_vm8, %v6147_v62  ;;  %v5653_v30 = vmul.f32 0.6931472, %v7998_v43  ;;  %8019 = vlog2.f32 %v4916_v15  ;;  %v4919_v36 = vpop.xlane.xlu1 %4918  ;;  %v4546_v35 = vmul.f32 1.442695, %v14413_v31  ;;  %v5133_v62 = vsel %vm3317_vm8, %v7994_v1, 0.0 }
 0x532   : > { %v8002_v27 = vpop.eup %8001  ;;  %v6148_v25 = vsub.f32 %v14412_v42, %v5651_v29  ;;  %8021 = vlog2.f32 %v4919_v36  ;;  %v14415_v15 = vld [vmem:[#allocation60_spill] sm:$0xff] }
 0x533   : > { %v8004_v59 = vpop.eup %8003  ;;  %8023 = vpow2.f32 %v4542_v5  ;;  %v6149_v18 = vsub.f32 %v14414_v33, %v5653_v30  ;;  %5131 = vadd.xlane.f32.xlu0 %v5130_v61  ;;  %v4548_v50 = vmul.f32 1.442695, %v14415_v15  ;;  %v14416_v30 = vld [vmem:[#allocation128_spill] sm:$0xff] }
 0x534   : > { %v8006_v43 = vpop.eup %8005  ;;  %8025 = vpow2.f32 %v4544_v41  ;;  %6404 = vst.msk [vmem:[%s11925_s16 + $0x70] sm:$0xff] %vm3317_vm8, %v6148_v25  ;;  %v5655_v29 = vmul.f32 0.6931472, %v8004_v59  ;;  %v4922_v36 = vpop.xlane.xlu0 %4921  ;;  %5134 = vadd.xlane.f32.xlu1 %v5133_v62  ;;  %v5136_v41 = vsel %vm3317_vm8, %v8000_v60, 0.0  ;;  %v14417_v25 = vld [vmem:[#allocation73_spill] sm:$0xff] }
 0x535   : > { %v8008_v42 = vpop.eup %8007  ;;  %6405 = vst.msk [vmem:[%s11925_s16 + $0x78] sm:$0xff] %vm3317_vm8, %v6149_v18  ;;  %v5657_v19 = vmul.f32 0.6931472, %v8006_v43  ;;  %8027 = vlog2.f32 %v4922_v36  ;;  %v4925_v5 = vpop.xlane.xlu1 %4924  ;;  %v4550_v59 = vmul.f32 1.442695, %v14417_v25  ;;  %v5139_v18 = vsel %vm3317_vm8, %v8002_v27, 0.0 }
 0x536   : > { %v8010_v33 = vpop.eup %8009  ;;  %v6150_v61 = vsub.f32 %v14416_v30, %v5655_v29  ;;  %8029 = vlog2.f32 %v4925_v5  ;;  %v14418_v36 = vld [vmem:[#allocation72_spill] sm:$0xff] }
 0x537   : > { %v8012_v1 = vpop.eup %8011  ;;  %8031 = vpow2.f32 %v4546_v35  ;;  %v6151_v62 = vsub.f32 %v14233_v52, %v5657_v19  ;;  %5137 = vadd.xlane.f32.xlu0 %v5136_v41  ;;  %v4552_v15 = vmul.f32 1.442695, %v14418_v36  ;;  %v14419_v19 = vld [vmem:[#allocation130_spill] sm:$0xff] }
 0x538   : > { %v8014_v43 = vpop.eup %8013  ;;  %8033 = vpow2.f32 %v4548_v50  ;;  %6406 = vst.msk [vmem:[%s11925_s16 + $0x80] sm:$0xff] %vm3317_vm8, %v6150_v61  ;;  %v5659_v29 = vmul.f32 0.6931472, %v8012_v1  ;;  %v4928_v5 = vpop.xlane.xlu0 %4927  ;;  %5140 = vadd.xlane.f32.xlu1 %v5139_v18  ;;  %v5142_v50 = vsel %vm3317_vm8, %v8008_v42, 0.0  ;;  %v14420_v61 = vld [vmem:[#allocation61_spill] sm:$0xff] }
 0x539   : > { %v8016_v30 = vpop.eup %8015  ;;  %6407 = vst.msk [vmem:[%s11925_s16 + $0x88] sm:$0xff] %vm3317_vm8, %v6151_v62  ;;  %v5661_v60 = vmul.f32 0.6931472, %v8014_v43  ;;  %8035 = vlog2.f32 %v4928_v5  ;;  %v4931_v35 = vpop.xlane.xlu1 %4930  ;;  %v4554_v1 = vmul.f32 1.442695, %v14420_v61  ;;  %v5145_v62 = vsel %vm3317_vm8, %v8010_v33, 0.0 }
 0x53a   : > { %v8018_v52 = vpop.eup %8017  ;;  %v6152_v41 = vsub.f32 %v14419_v19, %v5659_v29  ;;  %8037 = vlog2.f32 %v4931_v35  ;;  %v14421_v5 = vld [vmem:[#allocation62_spill] sm:$0xff] }
 0x53b   : > { %v8020_v27 = vpop.eup %8019  ;;  %8039 = vpow2.f32 %v4550_v59  ;;  %v6153_v18 = vsub.f32 %v14238_v32, %v5661_v60  ;;  %5143 = vadd.xlane.f32.xlu0 %v5142_v50  ;;  %v4556_v36 = vmul.f32 1.442695, %v14421_v5  ;;  %v14422_v60 = vld [vmem:[#allocation132_spill] sm:$0xff] }
 0x53c   : > { %v8022_v43 = vpop.eup %8021  ;;  %8041 = vpow2.f32 %v4552_v15  ;;  %6408 = vst.msk [vmem:[%s11925_s16 + $0x90] sm:$0xff] %vm3317_vm8, %v6152_v41  ;;  %v5663_v29 = vmul.f32 0.6931472, %v8020_v27  ;;  %v4934_v35 = vpop.xlane.xlu0 %4933  ;;  %5146 = vadd.xlane.f32.xlu1 %v5145_v62  ;;  %v5148_v15 = vsel %vm3317_vm8, %v8016_v30, 0.0  ;;  %v14423_v41 = vld [vmem:[#allocation64_spill] sm:$0xff] }
 0x53d   : > { %v8024_v19 = vpop.eup %8023  ;;  %6409 = vst.msk [vmem:[%s11925_s16 + $0x98] sm:$0xff] %vm3317_vm8, %v6153_v18  ;;  %v5665_v42 = vmul.f32 0.6931472, %v8022_v43  ;;  %8043 = vlog2.f32 %v4934_v35  ;;  %v4937_v59 = vpop.xlane.xlu1 %4936  ;;  %v4558_v27 = vmul.f32 1.442695, %v14423_v41  ;;  %v5151_v18 = vsel %vm3317_vm8, %v8018_v52, 0.0 }
 0x53e   : > { %v8026_v32 = vpop.eup %8025  ;;  %v6154_v50 = vsub.f32 %v14422_v60, %v5663_v29  ;;  %8045 = vlog2.f32 %v4937_v59  ;;  %v14424_v35 = vld [vmem:[#allocation134_spill] sm:$0xff] }
 0x53f   : > { %v8028_v33 = vpop.eup %8027  ;;  %8047 = vpow2.f32 %v4554_v1  ;;  %v6155_v62 = vsub.f32 %v14243_v23, %v5665_v42  ;;  %5149 = vadd.xlane.f32.xlu0 %v5148_v15  ;;  %v4560_v5 = vmul.f32 1.442695, %v14424_v35 }
 0x540   : > { %v8030_v43 = vpop.eup %8029  ;;  %8049 = vpow2.f32 %v4556_v36  ;;  %6410 = vst.msk [vmem:[%s11925_s16 + $0xa0] sm:$0xff] %vm3317_vm8, %v6154_v50  ;;  %v5667_v29 = vmul.f32 0.6931472, %v8028_v33  ;;  %v4940_v59 = vpop.xlane.xlu0 %4939  ;;  %5152 = vadd.xlane.f32.xlu1 %v5151_v18  ;;  %v5154_v36 = vsel %vm3317_vm8, %v8024_v19, 0.0  ;;  %v14425_v50 = vld [vmem:[#allocation66_spill] sm:$0xff] }
 0x541   : > { %v8032_v60 = vpop.eup %8031  ;;  %6411 = vst.msk [vmem:[%s11925_s16 + $0xa8] sm:$0xff] %vm3317_vm8, %v6155_v62  ;;  %v5669_v30 = vmul.f32 0.6931472, %v8030_v43  ;;  %8051 = vlog2.f32 %v4940_v59  ;;  %v4943_v1 = vpop.xlane.xlu1 %4942  ;;  %v4562_v15 = vmul.f32 1.442695, %v14425_v50  ;;  %v5157_v62 = vsel %vm3317_vm8, %v8026_v32, 0.0 }
 0x542   : > { %v8034_v23 = vpop.eup %8033  ;;  %v6156_v42 = vsub.f32 %v14246_v54, %v5667_v29  ;;  %8053 = vlog2.f32 %v4943_v1  ;;  %v14426_v43 = vld [vmem:[#allocation136_spill] sm:$0xff] }
 0x543   : > { %v8036_v52 = vpop.eup %8035  ;;  %8055 = vpow2.f32 %v4558_v27  ;;  %v6157_v33 = vsub.f32 %v14248_v39, %v5669_v30  ;;  %5155 = vadd.xlane.f32.xlu0 %v5154_v36  ;;  %v4564_v59 = vmul.f32 1.442695, %v14426_v43 }
 0x544   : > { %v8038_v18 = vpop.eup %8037  ;;  %8057 = vpow2.f32 %v4560_v5  ;;  %6412 = vst.msk [vmem:[%s11925_s16 + $0xb0] sm:$0xff] %vm3317_vm8, %v6156_v42  ;;  %v5671_v54 = vmul.f32 0.6931472, %v8036_v52  ;;  %v4946_v29 = vpop.xlane.xlu0 %4945  ;;  %5158 = vadd.xlane.f32.xlu1 %v5157_v62  ;;  %v5160_v5 = vsel %vm3317_vm8, %v8032_v60, 0.0  ;;  %v14427_v42 = vld [vmem:[#allocation83_spill] sm:$0xff]  ;;  %v14428_v52 = vld [vmem:[#allocation137_spill] sm:$0xff] }
 0x545   : > { %v8040_v1 = vpop.eup %8039  ;;  %6413 = vst.msk [vmem:[%s11925_s16 + $0xb8] sm:$0xff] %vm3317_vm8, %v6157_v33  ;;  %v5673_v19 = vmul.f32 0.6931472, %v8038_v18  ;;  %8059 = vlog2.f32 %v4946_v29  ;;  %v4949_v27 = vpop.xlane.xlu1 %4948  ;;  %v4566_v36 = vmul.f32 1.442695, %v14427_v42  ;;  %v5163_v33 = vsel %vm3317_vm8, %v8034_v23, 0.0 }
 0x546   : > { %v8042_v39 = vpop.eup %8041  ;;  %v6158_v30 = vsub.f32 %v14250_v20, %v5671_v54  ;;  %8061 = vlog2.f32 %v4949_v27  ;;  %v14429_v29 = vld [vmem:[#allocation82_spill] sm:$0xff]  ;;  %v5166_v23 = vsel %vm3317_vm8, %v8040_v1, 0.0 }
 0x547   : > { %v8044_v32 = vpop.eup %8043  ;;  %8063 = vpow2.f32 %v4562_v15  ;;  %v6159_v62 = vsub.f32 %v14428_v52, %v5673_v19  ;;  %5161 = vadd.xlane.f32.xlu0 %v5160_v5  ;;  %v4568_v43 = vmul.f32 1.442695, %v14429_v29  ;;  %v14430_v5 = vld [vmem:[#allocation67_spill] sm:$0xff] }
 0x548   : > { %v8046_v18 = vpop.eup %8045  ;;  %8065 = vpow2.f32 %v4564_v59  ;;  %6414 = vst.msk [vmem:[%s11925_s16 + $0xc0] sm:$0xff] %vm3317_vm8, %v6158_v30  ;;  %v5675_v20 = vmul.f32 0.6931472, %v8044_v32  ;;  %v4952_v54 = vpop.xlane.xlu0 %4951  ;;  %5164 = vadd.xlane.f32.xlu1 %v5163_v33  ;;  %v14431_v30 = vld [vmem:[#allocation143_spill] sm:$0xff] }
 0x549   : > { %v8048_v27 = vpop.eup %8047  ;;  %6415 = vst.msk [vmem:[%s11925_s16 + $0xc8] sm:$0xff] %vm3317_vm8, %v6159_v62  ;;  %v5677_v60 = vmul.f32 0.6931472, %v8046_v18  ;;  %8067 = vlog2.f32 %v4952_v54  ;;  %v4955_v15 = vpop.xlane.xlu1 %4954  ;;  %v4570_v32 = vmul.f32 1.442695, %v14431_v30  ;;  %v5169_v62 = vsel %vm3317_vm8, %v8042_v39, 0.0 }
 0x54a   : > { %v8050_v19 = vpop.eup %8049  ;;  %v6160_v52 = vsub.f32 %v14430_v5, %v5675_v20  ;;  %8069 = vlog2.f32 %v4955_v15  ;;  %v14432_v54 = vld [vmem:[#allocation142_spill] sm:$0xff] }
 0x54b   : > { %v8052_v59 = vpop.eup %8051  ;;  %8071 = vpow2.f32 %v4566_v36  ;;  %v6161_v33 = vsub.f32 %v14257_v0, %v5677_v60  ;;  %5167 = vadd.xlane.f32.xlu0 %v5166_v23  ;;  %v4572_v29 = vmul.f32 1.442695, %v14432_v54  ;;  %v14433_v60 = vld [vmem:[#allocation69_spill] sm:$0xff] }
 0x54c   : > { %v8054_v18 = vpop.eup %8053  ;;  %8073 = vpow2.f32 %v4568_v43  ;;  %6416 = vst.msk [vmem:[%s11925_s16 + $0xd0] sm:$0xff] %vm3317_vm8, %v6160_v52  ;;  %v5679_v20 = vmul.f32 0.6931472, %v8052_v59  ;;  %v4958_v15 = vpop.xlane.xlu0 %4957  ;;  %5170 = vadd.xlane.f32.xlu1 %v5169_v62  ;;  %v5172_v43 = vsel %vm3317_vm8, %v8048_v27, 0.0  ;;  %v14434_v52 = vld [vmem:[#allocation86_spill] sm:$0xff]  ;;  %v14435_v54 = vld [vmem:[#allocation141_spill] sm:$0xff] }
 0x54d   : > { %v8056_v5 = vpop.eup %8055  ;;  %6417 = vst.msk [vmem:[%s11925_s16 + $0xd8] sm:$0xff] %vm3317_vm8, %v6161_v33  ;;  %v5681_v1 = vmul.f32 0.6931472, %v8054_v18  ;;  %8075 = vlog2.f32 %v4958_v15  ;;  %v4961_v36 = vpop.xlane.xlu1 %4960  ;;  %v4574_v59 = vmul.f32 1.442695, %v14434_v52  ;;  %v5175_v33 = vsel %vm3317_vm8, %v8050_v19, 0.0 }
 0x54e   : > { %v8058_v0 = vpop.eup %8057  ;;  %v6162_v23 = vsub.f32 %v14433_v60, %v5679_v20  ;;  %8077 = vlog2.f32 %v4961_v36  ;;  %v14436_v15 = vld [vmem:[#allocation84_spill] sm:$0xff] }
 0x54f   : > { %v8060_v39 = vpop.eup %8059  ;;  %8079 = vpow2.f32 %v4570_v32  ;;  %v6163_v62 = vsub.f32 %v14435_v54, %v5681_v1  ;;  %5173 = vadd.xlane.f32.xlu0 %v5172_v43  ;;  %v4576_v30 = vmul.f32 1.442695, %v14436_v15  ;;  %v14437_v1 = vld [vmem:[#allocation71_spill] sm:$0xff] }
 0x550   : > { %v8062_v18 = vpop.eup %8061  ;;  %8081 = vpow2.f32 %v4572_v29  ;;  %6418 = vst.msk [vmem:[%s11925_s16 + $0xe0] sm:$0xff] %vm3317_vm8, %v6162_v23  ;;  %v5683_v20 = vmul.f32 0.6931472, %v8060_v39  ;;  %v4964_v36 = vpop.xlane.xlu0 %4963  ;;  %5176 = vadd.xlane.f32.xlu1 %v5175_v33  ;;  %v5178_v29 = vsel %vm3317_vm8, %v8056_v5, 0.0  ;;  %v14438_v23 = vld [vmem:[#allocation145_spill] sm:$0xff] }
 0x551   : > { %v8064_v60 = vpop.eup %8063  ;;  %6419 = vst.msk [vmem:[%s11925_s16 + $0xe8] sm:$0xff] %vm3317_vm8, %v6163_v62  ;;  %v5685_v27 = vmul.f32 0.6931472, %v8062_v18  ;;  %8083 = vlog2.f32 %v4964_v36  ;;  %v4967_v32 = vpop.xlane.xlu1 %4966  ;;  %v4578_v39 = vmul.f32 1.442695, %v14438_v23  ;;  %v5181_v62 = vsel %vm3317_vm8, %v8058_v0, 0.0 }
 0x552   : > { %v8066_v54 = vpop.eup %8065  ;;  %v6164_v43 = vsub.f32 %v14437_v1, %v5683_v20  ;;  %8085 = vlog2.f32 %v4967_v32  ;;  %v14439_v36 = vld [vmem:[#allocation144_spill] sm:$0xff] }
 0x553   : > { %v8068_v19 = vpop.eup %8067  ;;  %8087 = vpow2.f32 %v4574_v59  ;;  %v6165_v33 = vsub.f32 %v14268_v55, %v5685_v27  ;;  %5179 = vadd.xlane.f32.xlu0 %v5178_v29  ;;  %v4580_v15 = vmul.f32 1.442695, %v14439_v36  ;;  %v14440_v27 = vld [vmem:[#allocation10_spill] sm:$0xff]  ;;  %v14442_v36 = vld [vmem:[#allocation9_spill] sm:$0xff] }
 0x554   : > { %v8070_v18 = vpop.eup %8069  ;;  %8089 = vpow2.f32 %v4576_v30  ;;  %6420 = vst.msk [vmem:[%s11925_s16 + $0xf0] sm:$0xff] %vm3317_vm8, %v6164_v43  ;;  %v5687_v20 = vmul.f32 0.6931472, %v8068_v19  ;;  %v4970_v32 = vpop.xlane.xlu0 %4969  ;;  %5182 = vadd.xlane.f32.xlu1 %v5181_v62  ;;  %v5184_v30 = vsel %vm3317_vm8, %v8064_v60, 0.0  ;;  %v14441_v43 = vld [vmem:[#allocation74_spill] sm:$0xff] }
 0x555   : > { %v8072_v1 = vpop.eup %8071  ;;  %6421 = vst.msk [vmem:[%s11925_s16 + $0xf8] sm:$0xff] %vm3317_vm8, %v6165_v33  ;;  %v5689_v5 = vmul.f32 0.6931472, %v8070_v18  ;;  %8091 = vlog2.f32 %v4970_v32  ;;  %v4973_v59 = vpop.xlane.xlu1 %4972  ;;  %v4582_v19 = vmul.f32 1.442695, %v14441_v43  ;;  %v5187_v33 = vsel %vm3317_vm8, %v8066_v54, 0.0 }
 0x556   : > { %v8074_v55 = vpop.eup %8073  ;;  %v6166_v29 = vsub.f32 %v14440_v27, %v5687_v20  ;;  %8093 = vlog2.f32 %v4973_v59  ;;  %v14443_v32 = vld [vmem:[#allocation76_spill] sm:$0xff] }
 0x557   : > { %v8076_v0 = vpop.eup %8075  ;;  %8095 = vpow2.f32 %v4578_v39  ;;  %v6167_v62 = vsub.f32 %v14442_v36, %v5689_v5  ;;  %5185 = vadd.xlane.f32.xlu0 %v5184_v30  ;;  %v4584_v23 = vmul.f32 1.442695, %v14443_v32  ;;  %v14444_v5 = vld [vmem:[#allocation146_spill] sm:$0xff] }
 0x558   : > { %v8078_v18 = vpop.eup %8077  ;;  %8097 = vpow2.f32 %v4580_v15  ;;  %6422 = vst.msk [vmem:[%s11925_s16 + $0x100] sm:$0xff] %vm3317_vm8, %v6166_v29  ;;  %v5691_v20 = vmul.f32 0.6931472, %v8076_v0  ;;  %v4976_v59 = vpop.xlane.xlu0 %4975  ;;  %5188 = vadd.xlane.f32.xlu1 %v5187_v33  ;;  %v5190_v15 = vsel %vm3317_vm8, %v8072_v1, 0.0  ;;  %v14445_v29 = vld [vmem:[#allocation11_spill] sm:$0xff] }
 0x559   : > { %v8080_v27 = vpop.eup %8079  ;;  %6423 = vst.msk [vmem:[%s11925_s16 + $0x108] sm:$0xff] %vm3317_vm8, %v6167_v62  ;;  %v5693_v60 = vmul.f32 0.6931472, %v8078_v18  ;;  %8099 = vlog2.f32 %v4976_v59  ;;  %v4979_v39 = vpop.xlane.xlu1 %4978  ;;  %v4586_v0 = vmul.f32 1.442695, %v14445_v29  ;;  %v5193_v62 = vsel %vm3317_vm8, %v8074_v55, 0.0 }
 0x55a   : > { %v8082_v36 = vpop.eup %8081  ;;  %v6168_v30 = vsub.f32 %v14444_v5, %v5691_v20  ;;  %8101 = vlog2.f32 %v4979_v39  ;;  %v14446_v59 = vld [vmem:[#allocation94_spill] sm:$0xff] }
 0x55b   : > { %v8084_v54 = vpop.eup %8083  ;;  %8103 = vpow2.f32 %v4582_v19  ;;  %v6169_v33 = vsub.f32 %v14279_v40, %v5693_v60  ;;  %5191 = vadd.xlane.f32.xlu0 %v5190_v15  ;;  %v4588_v32 = vmul.f32 1.442695, %v14446_v59 }
 0x55c   : > { %v8086_v18 = vpop.eup %8085  ;;  %8105 = vpow2.f32 %v4584_v23  ;;  %6424 = vst.msk [vmem:[%s11925_s16 + $0x110] sm:$0xff] %vm3317_vm8, %v6168_v30  ;;  %v5695_v20 = vmul.f32 0.6931472, %v8084_v54  ;;  %v4982_v39 = vpop.xlane.xlu0 %4981  ;;  %5194 = vadd.xlane.f32.xlu1 %v5193_v62  ;;  %v5196_v23 = vsel %vm3317_vm8, %v8080_v27, 0.0  ;;  %v14447_v30 = vld [vmem:[#allocation80_spill] sm:$0xff] }
 0x55d   : > { %v8088_v5 = vpop.eup %8087  ;;  %6425 = vst.msk [vmem:[%s11925_s16 + $0x118] sm:$0xff] %vm3317_vm8, %v6169_v33  ;;  %v5697_v1 = vmul.f32 0.6931472, %v8086_v18  ;;  %8107 = vlog2.f32 %v4982_v39  ;;  %v4985_v19 = vpop.xlane.xlu1 %4984  ;;  %v4590_v15 = vmul.f32 1.442695, %v14447_v30  ;;  %v5199_v33 = vsel %vm3317_vm8, %v8082_v36, 0.0 }
 0x55e   : > { %v8090_v40 = vpop.eup %8089  ;;  %v6170_v60 = vsub.f32 %v14282_v3, %v5695_v20  ;;  %8109 = vlog2.f32 %v4985_v19  ;;  %v14448_v18 = vld [vmem:[#allocation99_spill] sm:$0xff] }
 0x55f   : > { %v8092_v55 = vpop.eup %8091  ;;  %8111 = vpow2.f32 %v4586_v0  ;;  %v6171_v54 = vsub.f32 %v14284_v56, %v5697_v1  ;;  %5197 = vadd.xlane.f32.xlu0 %v5196_v23  ;;  %v4592_v39 = vmul.f32 1.442695, %v14448_v18 }
 0x560   : > { %v8094_v62 = vpop.eup %8093  ;;  %8113 = vpow2.f32 %v4588_v32  ;;  %6426 = vst.msk [vmem:[%s11925_s16 + $0x120] sm:$0xff] %vm3317_vm8, %v6170_v60  ;;  %v5699_v3 = vmul.f32 0.6931472, %v8092_v55  ;;  %v4988_v20 = vpop.xlane.xlu0 %4987  ;;  %5200 = vadd.xlane.f32.xlu1 %v5199_v33  ;;  %v5202_v32 = vsel %vm3317_vm8, %v8088_v5, 0.0  ;;  %v14449_v60 = vld [vmem:[#allocation98_spill] sm:$0xff] }
 0x561   : > { %v8096_v19 = vpop.eup %8095  ;;  %6427 = vst.msk [vmem:[%s11925_s16 + $0x128] sm:$0xff] %vm3317_vm8, %v6171_v54  ;;  %v5701_v27 = vmul.f32 0.6931472, %v8094_v62  ;;  %8115 = vlog2.f32 %v4988_v20  ;;  %v4991_v0 = vpop.xlane.xlu1 %4990  ;;  %v4594_v23 = vmul.f32 1.442695, %v14449_v60  ;;  %v5205_v54 = vsel %vm3317_vm8, %v8090_v40, 0.0 }
 0x562   : > { %v8098_v56 = vpop.eup %8097  ;;  %v6172_v1 = vsub.f32 %v14286_v46, %v5699_v3  ;;  %8117 = vlog2.f32 %v4991_v0  ;;  %v14450_v62 = vld [vmem:[#allocation155_spill] sm:$0xff]  ;;  %v5208_v40 = vsel %vm3317_vm8, %v8096_v19, 0.0 }
 0x563   : > { %v8100_v36 = vpop.eup %8099  ;;  %8119 = vpow2.f32 %v4590_v15  ;;  %v6173_v55 = vsub.f32 %v14288_v53, %v5701_v27  ;;  %5203 = vadd.xlane.f32.xlu0 %v5202_v32  ;;  %v4596_v20 = vmul.f32 1.442695, %v14450_v62 }
 0x564   : > { %v8102_v33 = vpop.eup %8101  ;;  %8121 = vpow2.f32 %v4592_v39  ;;  %6428 = vst.msk [vmem:[%s11925_s16 + $0x130] sm:$0xff] %vm3317_vm8, %v6172_v1  ;;  %v5703_v46 = vmul.f32 0.6931472, %v8100_v36  ;;  %v4994_v3 = vpop.xlane.xlu0 %4993  ;;  %5206 = vadd.xlane.f32.xlu1 %v5205_v54  ;;  %v14451_v1 = vld [vmem:[#allocation101_spill] sm:$0xff] }
 0x565   : > { %v8104_v0 = vpop.eup %8103  ;;  %6429 = vst.msk [vmem:[%s11925_s16 + $0x138] sm:$0xff] %vm3317_vm8, %v6173_v55  ;;  %v5705_v5 = vmul.f32 0.6931472, %v8102_v33  ;;  %8123 = vlog2.f32 %v4994_v3  ;;  %v4997_v15 = vpop.xlane.xlu1 %4996  ;;  %v4598_v32 = vmul.f32 1.442695, %v14451_v1  ;;  %v5211_v55 = vsel %vm3317_vm8, %v8098_v56, 0.0 }
 0x566   : > { %v8106_v53 = vpop.eup %8105  ;;  %v6174_v27 = vsub.f32 %v14290_v4, %v5703_v46  ;;  %8125 = vlog2.f32 %v4997_v15  ;;  %v14452_v33 = vld [vmem:[#allocation157_spill] sm:$0xff]  ;;  %v5214_v56 = vsel %vm3317_vm8, %v8104_v0, 0.0 }
 0x567   : > { %v8108_v39 = vpop.eup %8107  ;;  %8127 = vpow2.f32 %v4594_v23  ;;  %v6175_v36 = vsub.f32 %v14292_v37, %v5705_v5  ;;  %5209 = vadd.xlane.f32.xlu0 %v5208_v40  ;;  %v4600_v3 = vmul.f32 1.442695, %v14452_v33 }
 0x568   : > { %v8110_v54 = vpop.eup %8109  ;;  %8129 = vpow2.f32 %v4596_v20  ;;  %6430 = vst.msk [vmem:[%s11925_s16 + $0x140] sm:$0xff] %vm3317_vm8, %v6174_v27  ;;  %v5707_v4 = vmul.f32 0.6931472, %v8108_v39  ;;  %v5000_v46 = vpop.xlane.xlu0 %4999  ;;  %5212 = vadd.xlane.f32.xlu1 %v5211_v55  ;;  %v14453_v27 = vld [vmem:[#allocation156_spill] sm:$0xff] }
 0x569   : > { %v8112_v15 = vpop.eup %8111  ;;  %6431 = vst.msk [vmem:[%s11925_s16 + $0x148] sm:$0xff] %vm3317_vm8, %v6175_v36  ;;  %v5709_v19 = vmul.f32 0.6931472, %v8110_v54  ;;  %8131 = vlog2.f32 %v5000_v46  ;;  %v5003_v23 = vpop.xlane.xlu1 %5002  ;;  %v4602_v40 = vmul.f32 1.442695, %v14453_v27  ;;  %v5217_v36 = vsel %vm3317_vm8, %v8106_v53, 0.0 }
 0x56a   : > { %v8114_v37 = vpop.eup %8113  ;;  %v6176_v5 = vsub.f32 %v14294_v45, %v5707_v4  ;;  %8133 = vlog2.f32 %v5003_v23  ;;  %v14454_v54 = vld [vmem:[#allocation85_spill] sm:$0xff]  ;;  %v5220_v53 = vsel %vm3317_vm8, %v8112_v15, 0.0 }
 0x56b   : > { %v8116_v20 = vpop.eup %8115  ;;  %8135 = vpow2.f32 %v4598_v32  ;;  %v6177_v39 = vsub.f32 %v14296_v49, %v5709_v19  ;;  %5215 = vadd.xlane.f32.xlu0 %v5214_v56  ;;  %v4604_v46 = vmul.f32 1.442695, %v14454_v54 }
 0x56c   : > { %v8118_v55 = vpop.eup %8117  ;;  %8137 = vpow2.f32 %v4600_v3  ;;  %6432 = vst.msk [vmem:[%s11925_s16 + $0x150] sm:$0xff] %vm3317_vm8, %v6176_v5  ;;  %v5711_v45 = vmul.f32 0.6931472, %v8116_v20  ;;  %v5006_v4 = vpop.xlane.xlu0 %5005  ;;  %5218 = vadd.xlane.f32.xlu1 %v5217_v36  ;;  %v14455_v5 = vld [vmem:[#allocation88_spill] sm:$0xff] }
 0x56d   : > { %v8120_v23 = vpop.eup %8119  ;;  %6433 = vst.msk [vmem:[%s11925_s16 + $0x158] sm:$0xff] %vm3317_vm8, %v6177_v39  ;;  %v5713_v0 = vmul.f32 0.6931472, %v8118_v55  ;;  %8139 = vlog2.f32 %v5006_v4  ;;  %v5009_v32 = vpop.xlane.xlu1 %5008  ;;  %v4606_v56 = vmul.f32 1.442695, %v14455_v5  ;;  %v5223_v39 = vsel %vm3317_vm8, %v8114_v37, 0.0 }
 0x56e   : > { %v8122_v49 = vpop.eup %8121  ;;  %v6178_v19 = vsub.f32 %v14298_v47, %v5711_v45  ;;  %8141 = vlog2.f32 %v5009_v32  ;;  %v14456_v55 = vld [vmem:[#allocation89_spill] sm:$0xff]  ;;  %v5226_v37 = vsel %vm3317_vm8, %v8120_v23, 0.0 }
 0x56f   : > { %v8124_v3 = vpop.eup %8123  ;;  %8143 = vpow2.f32 %v4602_v40  ;;  %v6179_v20 = vsub.f32 %v14300_v51, %v5713_v0  ;;  %5221 = vadd.xlane.f32.xlu0 %v5220_v53  ;;  %v4608_v4 = vmul.f32 1.442695, %v14456_v55 }
 0x570   : > { %v8126_v36 = vpop.eup %8125  ;;  %8145 = vpow2.f32 %v4604_v46  ;;  %6434 = vst.msk [vmem:[%s11925_s16 + $0x160] sm:$0xff] %vm3317_vm8, %v6178_v19  ;;  %v5715_v47 = vmul.f32 0.6931472, %v8124_v3  ;;  %v5012_v45 = vpop.xlane.xlu0 %5011  ;;  %5224 = vadd.xlane.f32.xlu1 %v5223_v39  ;;  %v14457_v19 = vld [vmem:[#allocation162_spill] sm:$0xff] }
 0x571   : > { %v8128_v32 = vpop.eup %8127  ;;  %6435 = vst.msk [vmem:[%s11925_s16 + $0x168] sm:$0xff] %vm3317_vm8, %v6179_v20  ;;  %v5717_v15 = vmul.f32 0.6931472, %v8126_v36  ;;  %8147 = vlog2.f32 %v5012_v45  ;;  %v5015_v40 = vpop.xlane.xlu1 %5014  ;;  %v4610_v53 = vmul.f32 1.442695, %v14457_v19  ;;  %v5229_v20 = vsel %vm3317_vm8, %v8122_v49, 0.0 }
 0x572   : > { %v8130_v51 = vpop.eup %8129  ;;  %v6180_v0 = vsub.f32 %v14302_v58, %v5715_v47  ;;  %8149 = vlog2.f32 %v5015_v40  ;;  %v14458_v36 = vld [vmem:[#allocation103_spill] sm:$0xff]  ;;  %v5232_v49 = vsel %vm3317_vm8, %v8128_v32, 0.0 }
 0x573   : > { %v8132_v46 = vpop.eup %8131  ;;  %8151 = vpow2.f32 %v4606_v56  ;;  %v6181_v3 = vsub.f32 %v14304_v12, %v5717_v15  ;;  %5227 = vadd.xlane.f32.xlu0 %v5226_v37  ;;  %v4612_v45 = vmul.f32 1.442695, %v14458_v36 }
 0x574   : > { %v8134_v39 = vpop.eup %8133  ;;  %8153 = vpow2.f32 %v4608_v4  ;;  %6436 = vst.msk [vmem:[%s11925_s16 + $0x170] sm:$0xff] %vm3317_vm8, %v6180_v0  ;;  %v5719_v58 = vmul.f32 0.6931472, %v8132_v46  ;;  %v5018_v47 = vpop.xlane.xlu0 %5017  ;;  %5230 = vadd.xlane.f32.xlu1 %v5229_v20  ;;  %v14459_v0 = vld [vmem:[#allocation102_spill] sm:$0xff] }
 0x575   : > { %v8136_v40 = vpop.eup %8135  ;;  %6437 = vst.msk [vmem:[%s11925_s16 + $0x178] sm:$0xff] %vm3317_vm8, %v6181_v3  ;;  %v5721_v23 = vmul.f32 0.6931472, %v8134_v39  ;;  %8155 = vlog2.f32 %v5018_v47  ;;  %v5021_v56 = vpop.xlane.xlu1 %5020  ;;  %v4614_v37 = vmul.f32 1.442695, %v14459_v0  ;;  %v5235_v3 = vsel %vm3317_vm8, %v8130_v51, 0.0 }
 0x576   : > { %v8138_v12 = vpop.eup %8137  ;;  %v6182_v15 = vsub.f32 %v14306_v11, %v5719_v58  ;;  %8157 = vlog2.f32 %v5021_v56  ;;  %v14460_v39 = vld [vmem:[#allocation104_spill] sm:$0xff]  ;;  %v5238_v51 = vsel %vm3317_vm8, %v8136_v40, 0.0 }
 0x577   : > { %v8140_v4 = vpop.eup %8139  ;;  %8159 = vpow2.f32 %v4610_v53  ;;  %v6183_v46 = vsub.f32 %v14308_v10, %v5721_v23  ;;  %5233 = vadd.xlane.f32.xlu0 %v5232_v49  ;;  %v4616_v47 = vmul.f32 1.442695, %v14460_v39 }
 0x578   : > { %v8142_v20 = vpop.eup %8141  ;;  %8161 = vpow2.f32 %v4612_v45  ;;  %6438 = vst.msk [vmem:[%s11925_s16 + $0x180] sm:$0xff] %vm3317_vm8, %v6182_v15  ;;  %v5723_v11 = vmul.f32 0.6931472, %v8140_v4  ;;  %v5024_v58 = vpop.xlane.xlu0 %5023  ;;  %5236 = vadd.xlane.f32.xlu1 %v5235_v3  ;;  %v14461_v15 = vld [vmem:[#allocation167_spill] sm:$0xff] }
 0x579   : > { %v8144_v56 = vpop.eup %8143  ;;  %6439 = vst.msk [vmem:[%s11925_s16 + $0x188] sm:$0xff] %vm3317_vm8, %v6183_v46  ;;  %v5725_v32 = vmul.f32 0.6931472, %v8142_v20  ;;  %8163 = vlog2.f32 %v5024_v58  ;;  %v5027_v53 = vpop.xlane.xlu1 %5026  ;;  %v4618_v49 = vmul.f32 1.442695, %v14461_v15  ;;  %v5241_v46 = vsel %vm3317_vm8, %v8138_v12, 0.0 }
 0x57a   : > { %v8146_v10 = vpop.eup %8145  ;;  %v6184_v23 = vsub.f32 %v14310_v44, %v5723_v11  ;;  %8165 = vlog2.f32 %v5027_v53  ;;  %v14462_v20 = vld [vmem:[#allocation20_spill] sm:$0xff]  ;;  %v5244_v12 = vsel %vm3317_vm8, %v8144_v56, 0.0 }
 0x57b   : > { %v8148_v45 = vpop.eup %8147  ;;  %8167 = vpow2.f32 %v4614_v37  ;;  %v6185_v4 = vsub.f32 %v14312_v57, %v5725_v32  ;;  %5239 = vadd.xlane.f32.xlu0 %v5238_v51  ;;  %v4620_v58 = vmul.f32 1.442695, %v14462_v20 }
 0x57c   : > { %v8150_v3 = vpop.eup %8149  ;;  %8169 = vpow2.f32 %v4616_v47  ;;  %6440 = vst.msk [vmem:[%s11925_s16 + $0x190] sm:$0xff] %vm3317_vm8, %v6184_v23  ;;  %v5727_v44 = vmul.f32 0.6931472, %v8148_v45  ;;  %v5030_v11 = vpop.xlane.xlu0 %5029  ;;  %5242 = vadd.xlane.f32.xlu1 %v5241_v46  ;;  %v14463_v23 = vld [vmem:[#allocation17_spill] sm:$0xff] }
 0x57d   : > { %v8152_v53 = vpop.eup %8151  ;;  %6441 = vst.msk [vmem:[%s11925_s16 + $0x198] sm:$0xff] %vm3317_vm8, %v6185_v4  ;;  %v5729_v40 = vmul.f32 0.6931472, %v8150_v3  ;;  %8171 = vlog2.f32 %v5030_v11  ;;  %v5033_v37 = vpop.xlane.xlu1 %5032  ;;  %v4622_v51 = vmul.f32 1.442695, %v14463_v23  ;;  %v5247_v4 = vsel %vm3317_vm8, %v8146_v10, 0.0 }
 0x57e   : > { %v8154_v57 = vpop.eup %8153  ;;  %v6186_v32 = vsub.f32 %v14314_v38, %v5727_v44  ;;  %8173 = vlog2.f32 %v5033_v37  ;;  %v14464_v3 = vld [vmem:[#allocation19_spill] sm:$0xff]  ;;  %v5250_v10 = vsel %vm3317_vm8, %v8152_v53, 0.0 }
 0x57f   : > { %v8156_v47 = vpop.eup %8155  ;;  %8175 = vpow2.f32 %v4618_v49  ;;  %v6187_v45 = vsub.f32 %v14316_v28, %v5729_v40  ;;  %5245 = vadd.xlane.f32.xlu0 %v5244_v12  ;;  %v4624_v11 = vmul.f32 1.442695, %v14464_v3 }
 0x580   : > { %v8158_v46 = vpop.eup %8157  ;;  %8177 = vpow2.f32 %v4620_v58  ;;  %6442 = vst.msk [vmem:[%s11925_s16 + $0x1a0] sm:$0xff] %vm3317_vm8, %v6186_v32  ;;  %v5731_v38 = vmul.f32 0.6931472, %v8156_v47  ;;  %v5036_v44 = vpop.xlane.xlu0 %5035  ;;  %5248 = vadd.xlane.f32.xlu1 %v5247_v4  ;;  %v14465_v32 = vld [vmem:[#allocation87_spill] sm:$0xff] }
 0x581   : > { %v8160_v37 = vpop.eup %8159  ;;  %6443 = vst.msk [vmem:[%s11925_s16 + $0x1a8] sm:$0xff] %vm3317_vm8, %v6187_v45  ;;  %v5733_v56 = vmul.f32 0.6931472, %v8158_v46  ;;  %8179 = vlog2.f32 %v5036_v44  ;;  %v5039_v49 = vpop.xlane.xlu1 %5038  ;;  %v4626_v12 = vmul.f32 1.442695, %v14465_v32  ;;  %v5253_v45 = vsel %vm3317_vm8, %v8154_v57, 0.0 }
 0x582   : > { %v8162_v28 = vpop.eup %8161  ;;  %v6188_v40 = vsub.f32 %v14318_v2, %v5731_v38  ;;  %8181 = vlog2.f32 %v5039_v49  ;;  %v14466_v46 = vld [vmem:[#allocation27_spill] sm:$0xff]  ;;  %v5256_v57 = vsel %vm3317_vm8, %v8160_v37, 0.0 }
 0x583   : > { %v8164_v58 = vpop.eup %8163  ;;  %8183 = vpow2.f32 %v4622_v51  ;;  %v6189_v47 = vsub.f32 %v14320_v8, %v5733_v56  ;;  %5251 = vadd.xlane.f32.xlu0 %v5250_v10  ;;  %v4628_v44 = vmul.f32 1.442695, %v14466_v46 }
 0x584   : > { %v8166_v4 = vpop.eup %8165  ;;  %8185 = vpow2.f32 %v4624_v11  ;;  %6444 = vst.msk [vmem:[%s11925_s16 + $0x1b0] sm:$0xff] %vm3317_vm8, %v6188_v40  ;;  %v5735_v2 = vmul.f32 0.6931472, %v8164_v58  ;;  %v5042_v38 = vpop.xlane.xlu0 %5041  ;;  %5254 = vadd.xlane.f32.xlu1 %v5253_v45  ;;  %v14467_v40 = vld [vmem:[#allocation26_spill] sm:$0xff] }
 0x585   : > { %v8168_v49 = vpop.eup %8167  ;;  %6445 = vst.msk [vmem:[%s11925_s16 + $0x1b8] sm:$0xff] %vm3317_vm8, %v6189_v47  ;;  %v5737_v53 = vmul.f32 0.6931472, %v8166_v4  ;;  %8187 = vlog2.f32 %v5042_v38  ;;  %v5045_v51 = vpop.xlane.xlu1 %5044  ;;  %v4630_v10 = vmul.f32 1.442695, %v14467_v40  ;;  %v5259_v47 = vsel %vm3317_vm8, %v8162_v28, 0.0 }
 0x586   : > { %v8170_v8 = vpop.eup %8169  ;;  %v6190_v56 = vsub.f32 %v14322_v16, %v5735_v2  ;;  %8189 = vlog2.f32 %v5045_v51  ;;  %v14468_v4 = vld [vmem:[#allocation23_spill] sm:$0xff]  ;;  %v5262_v28 = vsel %vm3317_vm8, %v8168_v49, 0.0 }
 0x587   : > { %v8172_v11 = vpop.eup %8171  ;;  %8191 = vpow2.f32 %v4626_v12  ;;  %v6191_v58 = vsub.f32 %v14324_v9, %v5737_v53  ;;  %5257 = vadd.xlane.f32.xlu0 %v5256_v57  ;;  %v4632_v38 = vmul.f32 1.442695, %v14468_v4 }
 0x588   : > { %v8174_v45 = vpop.eup %8173  ;;  %8193 = vpow2.f32 %v4628_v44  ;;  %6446 = vst.msk [vmem:[%s11925_s16 + $0x1c0] sm:$0xff] %vm3317_vm8, %v6190_v56  ;;  %v5739_v16 = vmul.f32 0.6931472, %v8172_v11  ;;  %v5048_v2 = vpop.xlane.xlu0 %5047  ;;  %5260 = vadd.xlane.f32.xlu1 %v5259_v47  ;;  %v14469_v56 = vld [vmem:[#allocation12_spill] sm:$0xff] }
 0x589   : > { %v8176_v51 = vpop.eup %8175  ;;  %6447 = vst.msk [vmem:[%s11925_s16 + $0x1c8] sm:$0xff] %vm3317_vm8, %v6191_v58  ;;  %v5741_v37 = vmul.f32 0.6931472, %v8174_v45  ;;  %8195 = vlog2.f32 %v5048_v2  ;;  %v5051_v12 = vpop.xlane.xlu1 %5050  ;;  %v4634_v57 = vmul.f32 1.442695, %v14469_v56  ;;  %v5265_v58 = vsel %vm3317_vm8, %v8170_v8, 0.0 }
 0x58a   : > { %v8178_v9 = vpop.eup %8177  ;;  %v6192_v53 = vsub.f32 %v14326_v7, %v5739_v16  ;;  %8197 = vlog2.f32 %v5051_v12  ;;  %v14470_v45 = vld [vmem:[#allocation172_spill] sm:$0xff]  ;;  %v5268_v8 = vsel %vm3317_vm8, %v8176_v51, 0.0 }
 0x58b   : > { %v8180_v44 = vpop.eup %8179  ;;  %8199 = vpow2.f32 %v4630_v10  ;;  %v6193_v11 = vsub.f32 %v14328_v22, %v5741_v37  ;;  %5263 = vadd.xlane.f32.xlu0 %v5262_v28  ;;  %v4636_v2 = vmul.f32 1.442695, %v14470_v45 }
 0x58c   : > { %v8182_v47 = vpop.eup %8181  ;;  %8201 = vpow2.f32 %v4632_v38  ;;  %6448 = vst.msk [vmem:[%s11925_s16 + $0x1d0] sm:$0xff] %vm3317_vm8, %v6192_v53  ;;  %v5743_v7 = vmul.f32 0.6931472, %v8180_v44  ;;  %v5054_v16 = vpop.xlane.xlu0 %5053  ;;  %5266 = vadd.xlane.f32.xlu1 %v5265_v58  ;;  %v14471_v53 = vld [vmem:[#allocation97_spill] sm:$0xff] }
 0x58d   : > { %v8184_v12 = vpop.eup %8183  ;;  %6449 = vst.msk [vmem:[%s11925_s16 + $0x1d8] sm:$0xff] %vm3317_vm8, %v6193_v11  ;;  %v5745_v49 = vmul.f32 0.6931472, %v8182_v47  ;;  %8203 = vlog2.f32 %v5054_v16  ;;  %v5057_v10 = vpop.xlane.xlu1 %5056  ;;  %v4638_v28 = vmul.f32 1.442695, %v14471_v53  ;;  %v5271_v11 = vsel %vm3317_vm8, %v8178_v9, 0.0 }
 0x58e   : > { %v8186_v22 = vpop.eup %8185  ;;  %v6194_v37 = vsub.f32 %v14330_v48, %v5743_v7  ;;  %8205 = vlog2.f32 %v5057_v10  ;;  %v14472_v47 = vld [vmem:[#allocation174_spill] sm:$0xff]  ;;  %v5274_v9 = vsel %vm3317_vm8, %v8184_v12, 0.0 }
 0x58f   : > { %v8188_v38 = vpop.eup %8187  ;;  %8207 = vpow2.f32 %v4634_v57  ;;  %v6195_v44 = vsub.f32 %v14332_v13, %v5745_v49  ;;  %5269 = vadd.xlane.f32.xlu0 %v5268_v8  ;;  %v4640_v16 = vmul.f32 1.442695, %v14472_v47  ;;  %v14473_v49 = vld [vmem:[#allocation96_spill] sm:$0xff] }
 0x590   : > { %v8190_v58 = vpop.eup %8189  ;;  %8209 = vpow2.f32 %v4636_v2  ;;  %6450 = vst.msk [vmem:[%s11925_s16 + $0x1e0] sm:$0xff] %vm3317_vm8, %v6194_v37  ;;  %v5747_v48 = vmul.f32 0.6931472, %v8188_v38  ;;  %v5060_v7 = vpop.xlane.xlu0 %5059  ;;  %5272 = vadd.xlane.f32.xlu1 %v5271_v11  ;;  %v14474_v37 = vld [vmem:[#allocation177_spill] sm:$0xff] }
 0x591   : > { %v8192_v10 = vpop.eup %8191  ;;  %6451 = vst.msk [vmem:[%s11925_s16 + $0x1e8] sm:$0xff] %vm3317_vm8, %v6195_v44  ;;  %v5749_v51 = vmul.f32 0.6931472, %v8190_v58  ;;  %8211 = vlog2.f32 %v5060_v7  ;;  %v5063_v57 = vpop.xlane.xlu1 %5062  ;;  %v4642_v38 = vmul.f32 1.442695, %v14474_v37  ;;  %v5277_v44 = vsel %vm3317_vm8, %v8186_v22, 0.0 }
 0x592   : > { %v8194_v13 = vpop.eup %8193  ;;  %v6196_v8 = vsub.f32 %v14473_v49, %v5747_v48  ;;  %8213 = vlog2.f32 %v5063_v57  ;;  %v14475_v7 = vld [vmem:[#allocation176_spill] sm:$0xff]  ;;  %v5280_v22 = vsel %vm3317_vm8, %v8192_v10, 0.0 }
 0x593   : > { %v8196_v2 = vpop.eup %8195  ;;  %8215 = vpow2.f32 %v4638_v28  ;;  %v6197_v11 = vsub.f32 %v14336_v63, %v5749_v51  ;;  %5275 = vadd.xlane.f32.xlu0 %v5274_v9  ;;  %v4644_v47 = vmul.f32 1.442695, %v14475_v7 }
 0x594   : > { %v8198_v58 = vpop.eup %8197  ;;  %8217 = vpow2.f32 %v4640_v16  ;;  %6452 = vst.msk [vmem:[%s11925_s16 + $0x1f0] sm:$0xff] %vm3317_vm8, %v6196_v8  ;;  %v5751_v48 = vmul.f32 0.6931472, %v8196_v2  ;;  %v5066_v57 = vpop.xlane.xlu0 %5065  ;;  %5278 = vadd.xlane.f32.xlu1 %v5277_v44  ;;  %v14476_v8 = vld [vmem:[#allocation178_spill] sm:$0xff] }
 0x595   : > { %v8200_v49 = vpop.eup %8199  ;;  %6453 = vst.msk [vmem:[%s11925_s16 + $0x1f8] sm:$0xff] %vm3317_vm8, %v6197_v11  ;;  %v5753_v12 = vmul.f32 0.6931472, %v8198_v58  ;;  %8219 = vlog2.f32 %v5066_v57  ;;  %v5069_v28 = vpop.xlane.xlu1 %5068  ;;  %v4646_v9 = vmul.f32 1.442695, %v14476_v8  ;;  %v5283_v11 = vsel %vm3317_vm8, %v8194_v13, 0.0 }
 0x596   : > { %v8202_v63 = vpop.eup %8201  ;;  %v6198_v51 = vsub.f32 %v14339_v14, %v5751_v48  ;;  %8221 = vlog2.f32 %v5069_v28  ;;  %v14477_v58 = vld [vmem:[#allocation18_spill] sm:$0xff] }
 0x597   : > { %v8204_v16 = vpop.eup %8203  ;;  %8223 = vpow2.f32 %v4642_v38  ;;  %v6199_v2 = vsub.f32 %v14341_v34, %v5753_v12  ;;  %5281 = vadd.xlane.f32.xlu0 %v5280_v22  ;;  %v4648_v57 = vmul.f32 1.442695, %v14477_v58  ;;  %v14478_v12 = vld [vmem:[#allocation179_spill] sm:$0xff]  ;;  %v14480_v58 = vld [vmem:[#allocation37_spill] sm:$0xff] }
 0x598   : > { %v8206_v44 = vpop.eup %8205  ;;  %8225 = vpow2.f32 %v4644_v47  ;;  %6454 = vst.msk [vmem:[%s11925_s16 + $0x200] sm:$0xff] %vm3317_vm8, %v6198_v51  ;;  %v5755_v14 = vmul.f32 0.6931472, %v8204_v16  ;;  %v5072_v48 = vpop.xlane.xlu0 %5071  ;;  %5284 = vadd.xlane.f32.xlu1 %v5283_v11  ;;  %v5286_v47 = vsel %vm3317_vm8, %v8200_v49, 0.0  ;;  %v14479_v51 = vld [vmem:[#allocation181_spill] sm:$0xff] }
 0x599   : > { %v8208_v28 = vpop.eup %8207  ;;  %6455 = vst.msk [vmem:[%s11925_s16 + $0x208] sm:$0xff] %vm3317_vm8, %v6199_v2  ;;  %v5757_v10 = vmul.f32 0.6931472, %v8206_v44  ;;  %8227 = vlog2.f32 %v5072_v48  ;;  %v5075_v38 = vpop.xlane.xlu1 %5074  ;;  %v4650_v16 = vmul.f32 1.442695, %v14479_v51  ;;  %v5289_v2 = vsel %vm3317_vm8, %v8202_v63, 0.0 }
 0x59a   : > { %v8210_v34 = vpop.eup %8209  ;;  %v6200_v22 = vsub.f32 %v14478_v12, %v5755_v14  ;;  %8229 = vlog2.f32 %v5075_v38  ;;  %v14481_v48 = vld [vmem:[#allocation180_spill] sm:$0xff]  ;;  %v5292_v63 = vsel %vm3317_vm8, %v8208_v28, 0.0 }
 0x59b   : > { %v8212_v13 = vpop.eup %8211  ;;  %8231 = vpow2.f32 %v4646_v9  ;;  %v6201_v11 = vsub.f32 %v14480_v58, %v5757_v10  ;;  %5287 = vadd.xlane.f32.xlu0 %v5286_v47  ;;  %v4652_v8 = vmul.f32 1.442695, %v14481_v48  ;;  %v14482_v10 = vld [vmem:[#allocation40_spill] sm:$0xff]  ;;  %v14484_v48 = vld [vmem:[#allocation39_spill] sm:$0xff] }
 0x59c   : > { %v8214_v44 = vpop.eup %8213  ;;  %8233 = vpow2.f32 %v4648_v57  ;;  %6456 = vst.msk [vmem:[%s11925_s16 + $0x210] sm:$0xff] %vm3317_vm8, %v6200_v22  ;;  %v5759_v14 = vmul.f32 0.6931472, %v8212_v13  ;;  %v5078_v38 = vpop.xlane.xlu0 %5077  ;;  %5290 = vadd.xlane.f32.xlu1 %v5289_v2  ;;  %v14483_v22 = vld [vmem:[#allocation182_spill] sm:$0xff] }
 0x59d   : > { %v8216_v12 = vpop.eup %8215  ;;  %6457 = vst.msk [vmem:[%s11925_s16 + $0x218] sm:$0xff] %vm3317_vm8, %v6201_v11  ;;  %v5761_v49 = vmul.f32 0.6931472, %v8214_v44  ;;  %8235 = vlog2.f32 %v5078_v38  ;;  %v5081_v9 = vpop.xlane.xlu1 %5080  ;;  %v4654_v13 = vmul.f32 1.442695, %v14483_v22  ;;  %v5295_v11 = vsel %vm3317_vm8, %v8210_v34, 0.0 }
 0x59e   : > { %v8218_v58 = vpop.eup %8217  ;;  %v6202_v47 = vsub.f32 %v14482_v10, %v5759_v14  ;;  %8237 = vlog2.f32 %v5081_v9  ;;  %v14485_v38 = vld [vmem:[#allocation22_spill] sm:$0xff] }
 0x59f   : > { %v8220_v57 = vpop.eup %8219  ;;  %8239 = vpow2.f32 %v4650_v16  ;;  %v6203_v2 = vsub.f32 %v14484_v48, %v5761_v49  ;;  %5293 = vadd.xlane.f32.xlu0 %v5292_v63  ;;  %v4656_v51 = vmul.f32 1.442695, %v14485_v38  ;;  %v14486_v49 = vld [vmem:[#allocation183_spill] sm:$0xff]  ;;  %v14488_v38 = vld [vmem:[#allocation41_spill] sm:$0xff] }
 0x5a0   : > { %v8222_v44 = vpop.eup %8221  ;;  %8241 = vpow2.f32 %v4652_v8  ;;  %6458 = vst.msk [vmem:[%s11925_s16 + $0x220] sm:$0xff] %vm3317_vm8, %v6202_v47  ;;  %v5763_v14 = vmul.f32 0.6931472, %v8220_v57  ;;  %v5084_v9 = vpop.xlane.xlu0 %5083  ;;  %5296 = vadd.xlane.f32.xlu1 %v5295_v11  ;;  %v5298_v8 = vsel %vm3317_vm8, %v8216_v12, 0.0  ;;  %v14487_v47 = vld [vmem:[#allocation185_spill] sm:$0xff] }
 0x5a1   : > { %v8224_v10 = vpop.eup %8223  ;;  %6459 = vst.msk [vmem:[%s11925_s16 + $0x228] sm:$0xff] %vm3317_vm8, %v6203_v2  ;;  %v5765_v28 = vmul.f32 0.6931472, %v8222_v44  ;;  %8243 = vlog2.f32 %v5084_v9  ;;  %v5087_v16 = vpop.xlane.xlu1 %5086  ;;  %v4658_v57 = vmul.f32 1.442695, %v14487_v47  ;;  %v5301_v2 = vsel %vm3317_vm8, %v8218_v58, 0.0 }
 0x5a2   : > { %v8226_v48 = vpop.eup %8225  ;;  %v6204_v63 = vsub.f32 %v14486_v49, %v5763_v14  ;;  %8245 = vlog2.f32 %v5087_v16  ;;  %v14489_v9 = vld [vmem:[#allocation184_spill] sm:$0xff] }
 0x5a3   : > { %v8228_v34 = vpop.eup %8227  ;;  %8247 = vpow2.f32 %v4654_v13  ;;  %v6205_v11 = vsub.f32 %v14488_v38, %v5765_v28  ;;  %5299 = vadd.xlane.f32.xlu0 %v5298_v8  ;;  %v4660_v22 = vmul.f32 1.442695, %v14489_v9  ;;  %v14490_v28 = vld [vmem:[#allocation44_spill] sm:$0xff]  ;;  %v14492_v9 = vld [vmem:[#allocation43_spill] sm:$0xff] }
 0x5a4   : > { %v8230_v44 = vpop.eup %8229  ;;  %8249 = vpow2.f32 %v4656_v51  ;;  %6460 = vst.msk [vmem:[%s11925_s16 + $0x230] sm:$0xff] %vm3317_vm8, %v6204_v63  ;;  %v5767_v14 = vmul.f32 0.6931472, %v8228_v34  ;;  %v5090_v16 = vpop.xlane.xlu0 %5089  ;;  %5302 = vadd.xlane.f32.xlu1 %v5301_v2  ;;  %v5304_v51 = vsel %vm3317_vm8, %v8224_v10, 0.0  ;;  %v14491_v63 = vld [vmem:[#allocation29_spill] sm:$0xff] }
 0x5a5   : > { %v8232_v49 = vpop.eup %8231  ;;  %6461 = vst.msk [vmem:[%s11925_s16 + $0x238] sm:$0xff] %vm3317_vm8, %v6205_v11  ;;  %v5769_v12 = vmul.f32 0.6931472, %v8230_v44  ;;  %8251 = vlog2.f32 %v5090_v16  ;;  %v5093_v13 = vpop.xlane.xlu1 %5092  ;;  %v4662_v34 = vmul.f32 1.442695, %v14491_v63  ;;  %v5307_v11 = vsel %vm3317_vm8, %v8226_v48, 0.0 }
 0x5a6   : > { %v8234_v38 = vpop.eup %8233  ;;  %v6206_v8 = vsub.f32 %v14490_v28, %v5767_v14  ;;  %8253 = vlog2.f32 %v5093_v13  ;;  %v14493_v16 = vld [vmem:[#allocation32_spill] sm:$0xff] }
 0x5a7   : > { %v8236_v58 = vpop.eup %8235  ;;  %8255 = vpow2.f32 %v4658_v57  ;;  %v6207_v2 = vsub.f32 %v14492_v9, %v5769_v12  ;;  %5305 = vadd.xlane.f32.xlu0 %v5304_v51  ;;  %v4664_v47 = vmul.f32 1.442695, %v14493_v16  ;;  %v14494_v12 = vld [vmem:[#allocation186_spill] sm:$0xff]  ;;  %v14496_v16 = vld [vmem:[#allocation187_spill] sm:$0xff] }
 0x5a8   : > { %v8238_v44 = vpop.eup %8237  ;;  %8257 = vpow2.f32 %v4660_v22  ;;  %6462 = vst.msk [vmem:[%s11925_s16 + $0x240] sm:$0xff] %vm3317_vm8, %v6206_v8  ;;  %v5771_v14 = vmul.f32 0.6931472, %v8236_v58  ;;  %v5096_v13 = vpop.xlane.xlu0 %5095  ;;  %5308 = vadd.xlane.f32.xlu1 %v5307_v11  ;;  %v5310_v22 = vsel %vm3317_vm8, %v8232_v49, 0.0  ;;  %v14495_v8 = vld [vmem:[#allocation31_spill] sm:$0xff] }
 0x5a9   : > { %v8240_v28 = vpop.eup %8239  ;;  %6463 = vst.msk [vmem:[%s11925_s16 + $0x248] sm:$0xff] %vm3317_vm8, %v6207_v2  ;;  %v5773_v10 = vmul.f32 0.6931472, %v8238_v44  ;;  %8259 = vlog2.f32 %v5096_v13  ;;  %v5099_v57 = vpop.xlane.xlu1 %5098  ;;  %v4666_v58 = vmul.f32 1.442695, %v14495_v8  ;;  %v5313_v2 = vsel %vm3317_vm8, %v8234_v38, 0.0 }
 0x5aa   : > { %v8242_v9 = vpop.eup %8241  ;;  %v6208_v51 = vsub.f32 %v14494_v12, %v5771_v14  ;;  %8261 = vlog2.f32 %v5099_v57  ;;  %v14497_v13 = vld [vmem:[#allocation34_spill] sm:$0xff] }
 0x5ab   : > { %v8244_v48 = vpop.eup %8243  ;;  %8263 = vpow2.f32 %v4662_v34  ;;  %v6209_v11 = vsub.f32 %v14496_v16, %v5773_v10  ;;  %5311 = vadd.xlane.f32.xlu0 %v5310_v22  ;;  %v4668_v63 = vmul.f32 1.442695, %v14497_v13  ;;  %v14498_v10 = vld [vmem:[#allocation188_spill] sm:$0xff]  ;;  %v14500_v13 = vld [vmem:[#allocation189_spill] sm:$0xff] }
 0x5ac   : > { %v8246_v44 = vpop.eup %8245  ;;  %8265 = vpow2.f32 %v4664_v47  ;;  %6464 = vst.msk [vmem:[%s11925_s16 + $0x250] sm:$0xff] %vm3317_vm8, %v6208_v51  ;;  %v5775_v14 = vmul.f32 0.6931472, %v8244_v48  ;;  %v5102_v57 = vpop.xlane.xlu0 %5101  ;;  %5314 = vadd.xlane.f32.xlu1 %v5313_v2  ;;  %v5316_v47 = vsel %vm3317_vm8, %v8240_v28, 0.0  ;;  %v14499_v51 = vld [vmem:[#allocation33_spill] sm:$0xff] }
 0x5ad   : > { %v8248_v12 = vpop.eup %8247  ;;  %6465 = vst.msk [vmem:[%s11925_s16 + $0x258] sm:$0xff] %vm3317_vm8, %v6209_v11  ;;  %v5777_v49 = vmul.f32 0.6931472, %v8246_v44  ;;  %8267 = vlog2.f32 %v5102_v57  ;;  %v5105_v34 = vpop.xlane.xlu1 %5104  ;;  %v4670_v48 = vmul.f32 1.442695, %v14499_v51  ;;  %v5319_v11 = vsel %vm3317_vm8, %v8242_v9, 0.0 }
 0x5ae   : > { %v8250_v16 = vpop.eup %8249  ;;  %v6210_v22 = vsub.f32 %v14498_v10, %v5775_v14  ;;  %8269 = vlog2.f32 %v5105_v34  ;;  %v14501_v57 = vld [vmem:[#allocation105_spill] sm:$0xff] }
 0x5af   : > { %v8252_v38 = vpop.eup %8251  ;;  %8271 = vpow2.f32 %v4666_v58  ;;  %v6211_v2 = vsub.f32 %v14500_v13, %v5777_v49  ;;  %5317 = vadd.xlane.f32.xlu0 %v5316_v47  ;;  %v4672_v8 = vmul.f32 1.442695, %v14501_v57  ;;  %v14502_v49 = vld [vmem:[#allocation190_spill] sm:$0xff]  ;;  %v14504_v57 = vld [vmem:[#allocation191_spill] sm:$0xff] }
 0x5b0   : > { %v8254_v44 = vpop.eup %8253  ;;  %8273 = vpow2.f32 %v4668_v63  ;;  %6466 = vst.msk [vmem:[%s11925_s16 + $0x260] sm:$0xff] %vm3317_vm8, %v6210_v22  ;;  %v5779_v14 = vmul.f32 0.6931472, %v8252_v38  ;;  %v5108_v34 = vpop.xlane.xlu0 %5107  ;;  %5320 = vadd.xlane.f32.xlu1 %v5319_v11  ;;  %v5322_v63 = vsel %vm3317_vm8, %v8248_v12, 0.0  ;;  %v14503_v22 = vld [vmem:[#allocation106_spill] sm:$0xff] }
 0x5b1   : > { %v8256_v10 = vpop.eup %8255  ;;  %6467 = vst.msk [vmem:[%s11925_s16 + $0x268] sm:$0xff] %vm3317_vm8, %v6211_v2  ;;  %v5781_v28 = vmul.f32 0.6931472, %v8254_v44  ;;  %8275 = vlog2.f32 %v5108_v34  ;;  %v5111_v58 = vpop.xlane.xlu1 %5110  ;;  %v4674_v38 = vmul.f32 1.442695, %v14503_v22  ;;  %v5325_v2 = vsel %vm3317_vm8, %v8250_v16, 0.0 }
 0x5b2   : > { %v8258_v13 = vpop.eup %8257  ;;  %v6212_v47 = vsub.f32 %v14502_v49, %v5779_v14  ;;  %8277 = vlog2.f32 %v5111_v58  ;;  %v14505_v34 = vld [vmem:[#allocation38_spill] sm:$0xff] }
 0x5b3   : > { %v8260_v9 = vpop.eup %8259  ;;  %8279 = vpow2.f32 %v4670_v48  ;;  %v6213_v11 = vsub.f32 %v14504_v57, %v5781_v28  ;;  %5323 = vadd.xlane.f32.xlu0 %v5322_v63  ;;  %v4676_v51 = vmul.f32 1.442695, %v14505_v34  ;;  %v14506_v28 = vld [vmem:[#allocation192_spill] sm:$0xff]  ;;  %v14508_v34 = vld [vmem:[#allocation193_spill] sm:$0xff] }
 0x5b4   : > { %v8262_v44 = vpop.eup %8261  ;;  %8281 = vpow2.f32 %v4672_v8  ;;  %6468 = vst.msk [vmem:[%s11925_s16 + $0x270] sm:$0xff] %vm3317_vm8, %v6212_v47  ;;  %v5783_v14 = vmul.f32 0.6931472, %v8260_v9  ;;  %v5114_v58 = vpop.xlane.xlu0 %5113  ;;  %5326 = vadd.xlane.f32.xlu1 %v5325_v2  ;;  %v5328_v8 = vsel %vm3317_vm8, %v8256_v10, 0.0  ;;  %v14507_v47 = vld [vmem:[#allocation107_spill] sm:$0xff] }
 0x5b5   : > { %v8264_v49 = vpop.eup %8263  ;;  %6469 = vst.msk [vmem:[%s11925_s16 + $0x278] sm:$0xff] %vm3317_vm8, %v6213_v11  ;;  %v5785_v12 = vmul.f32 0.6931472, %v8262_v44  ;;  %8283 = vlog2.f32 %v5114_v58  ;;  %v5117_v48 = vpop.xlane.xlu1 %5116  ;;  %v4678_v9 = vmul.f32 1.442695, %v14507_v47  ;;  %v5331_v11 = vsel %vm3317_vm8, %v8258_v13, 0.0 }
 0x5b6   : > { %v8266_v57 = vpop.eup %8265  ;;  %v6214_v63 = vsub.f32 %v14506_v28, %v5783_v14  ;;  %8285 = vlog2.f32 %v5117_v48  ;;  %v14509_v58 = vld [vmem:[#allocation108_spill] sm:$0xff] }
 0x5b7   : > { %v8268_v16 = vpop.eup %8267  ;;  %8287 = vpow2.f32 %v4674_v38  ;;  %v6215_v2 = vsub.f32 %v14508_v34, %v5785_v12  ;;  %5329 = vadd.xlane.f32.xlu0 %v5328_v8  ;;  %v4680_v22 = vmul.f32 1.442695, %v14509_v58  ;;  %v14510_v12 = vld [vmem:[#allocation194_spill] sm:$0xff]  ;;  %v14512_v58 = vld [vmem:[#allocation195_spill] sm:$0xff] }
 0x5b8   : > { %v8270_v44 = vpop.eup %8269  ;;  %8289 = vpow2.f32 %v4676_v51  ;;  %6470 = vst.msk [vmem:[%s11925_s16 + $0x280] sm:$0xff] %vm3317_vm8, %v6214_v63  ;;  %v5787_v14 = vmul.f32 0.6931472, %v8268_v16  ;;  %v5120_v48 = vpop.xlane.xlu0 %5119  ;;  %5332 = vadd.xlane.f32.xlu1 %v5331_v11  ;;  %v5334_v51 = vsel %vm3317_vm8, %v8264_v49, 0.0  ;;  %v14511_v63 = vld [vmem:[#allocation110_spill] sm:$0xff] }
 0x5b9   : > { %v8272_v28 = vpop.eup %8271  ;;  %6471 = vst.msk [vmem:[%s11925_s16 + $0x288] sm:$0xff] %vm3317_vm8, %v6215_v2  ;;  %v5789_v10 = vmul.f32 0.6931472, %v8270_v44  ;;  %8291 = vlog2.f32 %v5120_v48  ;;  %v5123_v38 = vpop.xlane.xlu1 %5122  ;;  %v4682_v16 = vmul.f32 1.442695, %v14511_v63  ;;  %v5337_v2 = vsel %vm3317_vm8, %v8266_v57, 0.0 }
 0x5ba   : > { %v8274_v34 = vpop.eup %8273  ;;  %v6216_v8 = vsub.f32 %v14510_v12, %v5787_v14  ;;  %8293 = vlog2.f32 %v5123_v38  ;;  %v14513_v48 = vld [vmem:[#allocation113_spill] sm:$0xff] }
 0x5bb   : > { %v8276_v13 = vpop.eup %8275  ;;  %8295 = vpow2.f32 %v4678_v9  ;;  %v6217_v11 = vsub.f32 %v14512_v58, %v5789_v10  ;;  %5335 = vadd.xlane.f32.xlu0 %v5334_v51  ;;  %v4684_v47 = vmul.f32 1.442695, %v14513_v48  ;;  %v14514_v10 = vld [vmem:[#allocation196_spill] sm:$0xff]  ;;  %v14516_v48 = vld [vmem:[#allocation197_spill] sm:$0xff] }
 0x5bc   : > { %v8278_v44 = vpop.eup %8277  ;;  %8297 = vpow2.f32 %v4680_v22  ;;  %6472 = vst.msk [vmem:[%s11925_s16 + $0x290] sm:$0xff] %vm3317_vm8, %v6216_v8  ;;  %v5791_v14 = vmul.f32 0.6931472, %v8276_v13  ;;  %v5126_v38 = vpop.xlane.xlu0 %5125  ;;  %5338 = vadd.xlane.f32.xlu1 %v5337_v2  ;;  %v5340_v22 = vsel %vm3317_vm8, %v8272_v28, 0.0  ;;  %v14515_v8 = vld [vmem:[#allocation198_spill] sm:$0xff] }
 0x5bd   : > { %v8280_v12 = vpop.eup %8279  ;;  %6473 = vst.msk [vmem:[%s11925_s16 + $0x298] sm:$0xff] %vm3317_vm8, %v6217_v11  ;;  %v5793_v49 = vmul.f32 0.6931472, %v8278_v44  ;;  %8299 = vlog2.f32 %v5126_v38  ;;  %v5129_v9 = vpop.xlane.xlu1 %5128  ;;  %v4686_v13 = vmul.f32 1.442695, %v14515_v8  ;;  %v5343_v11 = vsel %vm3317_vm8, %v8274_v34, 0.0 }
 0x5be   : > { %v8282_v58 = vpop.eup %8281  ;;  %v6218_v51 = vsub.f32 %v14514_v10, %v5791_v14  ;;  %8301 = vlog2.f32 %v5129_v9  ;;  %v14517_v38 = vld [vmem:[#allocation58_spill] sm:$0xff] }
 0x5bf   : > { %v8284_v57 = vpop.eup %8283  ;;  %8303 = vpow2.f32 %v4682_v16  ;;  %v6219_v2 = vsub.f32 %v14516_v48, %v5793_v49  ;;  %5341 = vadd.xlane.f32.xlu0 %v5340_v22  ;;  %v4688_v63 = vmul.f32 1.442695, %v14517_v38  ;;  %v14518_v49 = vld [vmem:[#allocation112_spill] sm:$0xff]  ;;  %v14520_v38 = vld [vmem:[#allocation199_spill] sm:$0xff] }
 0x5c0   : > { %v8286_v44 = vpop.eup %8285  ;;  %8305 = vpow2.f32 %v4684_v47  ;;  %6474 = vst.msk [vmem:[%s11925_s16 + $0x2a0] sm:$0xff] %vm3317_vm8, %v6218_v51  ;;  %v5795_v14 = vmul.f32 0.6931472, %v8284_v57  ;;  %v5132_v9 = vpop.xlane.xlu0 %5131  ;;  %5344 = vadd.xlane.f32.xlu1 %v5343_v11  ;;  %v5346_v47 = vsel %vm3317_vm8, %v8280_v12, 0.0  ;;  %v14519_v51 = vld [vmem:[#allocation45_spill] sm:$0xff] }
 0x5c1   : > { %v8288_v10 = vpop.eup %8287  ;;  %6475 = vst.msk [vmem:[%s11925_s16 + $0x2a8] sm:$0xff] %vm3317_vm8, %v6219_v2  ;;  %v5797_v28 = vmul.f32 0.6931472, %v8286_v44  ;;  %8307 = vlog2.f32 %v5132_v9  ;;  %v5135_v16 = vpop.xlane.xlu1 %5134  ;;  %v4690_v57 = vmul.f32 1.442695, %v14519_v51  ;;  %v5349_v2 = vsel %vm3317_vm8, %v8282_v58, 0.0 }
 0x5c2   : > { %v8290_v48 = vpop.eup %8289  ;;  %v6220_v22 = vsub.f32 %v14518_v49, %v5795_v14  ;;  %8309 = vlog2.f32 %v5135_v16  ;;  %v14521_v9 = vld [vmem:[#allocation200_spill] sm:$0xff] }
 0x5c3   : > { %v8292_v34 = vpop.eup %8291  ;;  %8311 = vpow2.f32 %v4686_v13  ;;  %v6221_v11 = vsub.f32 %v14520_v38, %v5797_v28  ;;  %5347 = vadd.xlane.f32.xlu0 %v5346_v47  ;;  %v4692_v8 = vmul.f32 1.442695, %v14521_v9  ;;  %v14522_v28 = vld [vmem:[#allocation46_spill] sm:$0xff]  ;;  %v14524_v9 = vld [vmem:[#allocation201_spill] sm:$0xff] }
 0x5c4   : > { %v8294_v44 = vpop.eup %8293  ;;  %8313 = vpow2.f32 %v4688_v63  ;;  %6476 = vst.msk [vmem:[%s11925_s16 + $0x2b0] sm:$0xff] %vm3317_vm8, %v6220_v22  ;;  %v5799_v14 = vmul.f32 0.6931472, %v8292_v34  ;;  %v5138_v16 = vpop.xlane.xlu0 %5137  ;;  %5350 = vadd.xlane.f32.xlu1 %v5349_v2  ;;  %v5352_v63 = vsel %vm3317_vm8, %v8288_v10, 0.0  ;;  %v14523_v22 = vld [vmem:[#allocation47_spill] sm:$0xff] }
 0x5c5   : > { %v8296_v49 = vpop.eup %8295  ;;  %6477 = vst.msk [vmem:[%s11925_s16 + $0x2b8] sm:$0xff] %vm3317_vm8, %v6221_v11  ;;  %v5801_v12 = vmul.f32 0.6931472, %v8294_v44  ;;  %8315 = vlog2.f32 %v5138_v16  ;;  %v5141_v13 = vpop.xlane.xlu1 %5140  ;;  %v4694_v34 = vmul.f32 1.442695, %v14523_v22  ;;  %v5355_v11 = vsel %vm3317_vm8, %v8290_v48, 0.0 }
 0x5c6   : > { %v8298_v38 = vpop.eup %8297  ;;  %v6222_v47 = vsub.f32 %v14522_v28, %v5799_v14  ;;  %8317 = vlog2.f32 %v5141_v13  ;;  %v14525_v16 = vld [vmem:[#allocation215_spill] sm:$0xff] }
 0x5c7   : > { %v8300_v58 = vpop.eup %8299  ;;  %8319 = vpow2.f32 %v4690_v57  ;;  %v6223_v2 = vsub.f32 %v14524_v9, %v5801_v12  ;;  %5353 = vadd.xlane.f32.xlu0 %v5352_v63  ;;  %v4696_v51 = vmul.f32 1.442695, %v14525_v16 }
 0x5c8   : > { %v8302_v44 = vpop.eup %8301  ;;  %8321 = vpow2.f32 %v4692_v8  ;;  %6478 = vst.msk [vmem:[%s11925_s16 + $0x2c0] sm:$0xff] %vm3317_vm8, %v6222_v47  ;;  %v5803_v14 = vmul.f32 0.6931472, %v8300_v58  ;;  %v5144_v13 = vpop.xlane.xlu0 %5143  ;;  %5356 = vadd.xlane.f32.xlu1 %v5355_v11  ;;  %v5358_v8 = vsel %vm3317_vm8, %v8296_v49, 0.0  ;;  %v14526_v47 = vld [vmem:[#allocation51_spill] sm:$0xff] }
 0x5c9   : > { %v8304_v28 = vpop.eup %8303  ;;  %6479 = vst.msk [vmem:[%s11925_s16 + $0x2c8] sm:$0xff] %vm3317_vm8, %v6223_v2  ;;  %v5805_v10 = vmul.f32 0.6931472, %v8302_v44  ;;  %8323 = vlog2.f32 %v5144_v13  ;;  %v5147_v57 = vpop.xlane.xlu1 %5146  ;;  %v4698_v63 = vmul.f32 1.442695, %v14526_v47  ;;  %v14527_v58 = vld [vmem:[#allocation203_spill] sm:$0xff] }
 0x5ca   : > { %v8306_v9 = vpop.eup %8305  ;;  %v6224_v12 = vsub.f32 %v14393_v6, %v5803_v14  ;;  %8325 = vlog2.f32 %v5147_v57  ;;  %v5361_v2 = vsel %vm3317_vm8, %v8298_v38, 0.0  ;;  %v14528_v13 = vld [vmem:[#allocation216_spill] sm:$0xff] }
 0x5cb   : > { %v8308_v48 = vpop.eup %8307  ;;  %8327 = vpow2.f32 %v4694_v34  ;;  %v6225_v11 = vsub.f32 %v14527_v58, %v5805_v10  ;;  %5359 = vadd.xlane.f32.xlu0 %v5358_v8  ;;  %v4700_v16 = vmul.f32 1.442695, %v14528_v13  ;;  %v14529_v8 = vld [vmem:[#allocation50_spill] sm:$0xff]  ;;  %v14531_v13 = vld [vmem:[#allocation205_spill] sm:$0xff] }
 0x5cc   : > { %v8310_v44 = vpop.eup %8309  ;;  %8329 = vpow2.f32 %v4696_v51  ;;  %6480 = vst.msk [vmem:[%s11925_s16 + $0x2d0] sm:$0xff] %vm3317_vm8, %v6224_v12  ;;  %v5807_v6 = vmul.f32 0.6931472, %v8308_v48  ;;  %v5150_v14 = vpop.xlane.xlu0 %5149  ;;  %5362 = vadd.xlane.f32.xlu1 %v5361_v2  ;;  %v5364_v51 = vsel %vm3317_vm8, %v8304_v28, 0.0  ;;  %v14530_v12 = vld [vmem:[#allocation68_spill] sm:$0xff] }
 0x5cd   : > { %v8312_v57 = vpop.eup %8311  ;;  %6481 = vst.msk [vmem:[%s11925_s16 + $0x2d8] sm:$0xff] %vm3317_vm8, %v6225_v11  ;;  %v5809_v49 = vmul.f32 0.6931472, %v8310_v44  ;;  %8331 = vlog2.f32 %v5150_v14  ;;  %v5153_v34 = vpop.xlane.xlu1 %5152  ;;  %v4702_v48 = vmul.f32 1.442695, %v14530_v12  ;;  %v5367_v11 = vsel %vm3317_vm8, %v8306_v9, 0.0 }
 0x5ce   : > { %v8314_v10 = vpop.eup %8313  ;;  %v6226_v58 = vsub.f32 %v14529_v8, %v5807_v6  ;;  %8333 = vlog2.f32 %v5153_v34  ;;  %v14532_v14 = vld [vmem:[#allocation138_spill] sm:$0xff] }
 0x5cf   : > { %v8316_v38 = vpop.eup %8315  ;;  %8335 = vpow2.f32 %v4698_v63  ;;  %v6227_v2 = vsub.f32 %v14531_v13, %v5809_v49  ;;  %5365 = vadd.xlane.f32.xlu0 %v5364_v51  ;;  %v4704_v47 = vmul.f32 1.442695, %v14532_v14 }
 0x5d0   : > { %v8318_v44 = vpop.eup %8317  ;;  %8337 = vpow2.f32 %v4700_v16  ;;  %6482 = vst.msk [vmem:[%s11925_s16 + $0x2e0] sm:$0xff] %vm3317_vm8, %v6226_v58  ;;  %v5811_v6 = vmul.f32 0.6931472, %v8316_v38  ;;  %v5156_v34 = vpop.xlane.xlu0 %5155  ;;  %5368 = vadd.xlane.f32.xlu1 %v5367_v11  ;;  %v5370_v16 = vsel %vm3317_vm8, %v8312_v57, 0.0  ;;  %v14533_v58 = vld [vmem:[#allocation70_spill] sm:$0xff]  ;;  %v14534_v38 = vld [vmem:[#allocation207_spill] sm:$0xff] }
 0x5d1   : > { %v8320_v8 = vpop.eup %8319  ;;  %6483 = vst.msk [vmem:[%s11925_s16 + $0x2e8] sm:$0xff] %vm3317_vm8, %v6227_v2  ;;  %v5813_v28 = vmul.f32 0.6931472, %v8318_v44  ;;  %8339 = vlog2.f32 %v5156_v34  ;;  %v5159_v63 = vpop.xlane.xlu1 %5158  ;;  %v4706_v51 = vmul.f32 1.442695, %v14533_v58  ;;  %v5373_v2 = vsel %vm3317_vm8, %v8314_v10, 0.0 }
 0x5d2   : > { %v8322_v13 = vpop.eup %8321  ;;  %v6228_v49 = vsub.f32 %v14401_v17, %v5811_v6  ;;  %8341 = vlog2.f32 %v5159_v63  ;;  %v14535_v34 = vld [vmem:[#allocation140_spill] sm:$0xff] }
 0x5d3   : > { %v8324_v9 = vpop.eup %8323  ;;  %8343 = vpow2.f32 %v4702_v48  ;;  %v6229_v11 = vsub.f32 %v14534_v38, %v5813_v28  ;;  %5371 = vadd.xlane.f32.xlu0 %v5370_v16  ;;  %v4708_v14 = vmul.f32 1.442695, %v14535_v34 }
 0x5d4   : > { %v8326_v44 = vpop.eup %8325  ;;  %8345 = vpow2.f32 %v4704_v47  ;;  %6484 = vst.msk [vmem:[%s11925_s16 + $0x2f0] sm:$0xff] %vm3317_vm8, %v6228_v49  ;;  %v5815_v17 = vmul.f32 0.6931472, %v8324_v9  ;;  %v5162_v6 = vpop.xlane.xlu0 %5161  ;;  %5374 = vadd.xlane.f32.xlu1 %v5373_v2  ;;  %v5376_v47 = vsel %vm3317_vm8, %v8320_v8, 0.0  ;;  %v14536_v49 = vld [vmem:[#allocation57_spill] sm:$0xff] }
 0x5d5   : > { %v8328_v63 = vpop.eup %8327  ;;  %6485 = vst.msk [vmem:[%s11925_s16 + $0x2f8] sm:$0xff] %vm3317_vm8, %v6229_v11  ;;  %v5817_v57 = vmul.f32 0.6931472, %v8326_v44  ;;  %8347 = vlog2.f32 %v5162_v6  ;;  %v5165_v48 = vpop.xlane.xlu1 %5164  ;;  %v4710_v9 = vmul.f32 1.442695, %v14536_v49  ;;  %v5379_v11 = vsel %vm3317_vm8, %v8322_v13, 0.0 }
 0x5d6   : > { %v8330_v28 = vpop.eup %8329  ;;  %v6230_v16 = vsub.f32 %v14405_v21, %v5815_v17  ;;  %8349 = vlog2.f32 %v5165_v48  ;;  %v14537_v44 = vld [vmem:[#allocation121_spill] sm:$0xff] }
 0x5d7   : > { %v8332_v10 = vpop.eup %8331  ;;  %8351 = vpow2.f32 %v4706_v51  ;;  %v6231_v38 = vsub.f32 %v14406_v26, %v5817_v57  ;;  %5377 = vadd.xlane.f32.xlu0 %v5376_v47  ;;  %v4712_v6 = vmul.f32 1.442695, %v14537_v44 }
 0x5d8   : > { %v8334_v2 = vpop.eup %8333  ;;  %8353 = vpow2.f32 %v4708_v14  ;;  %6486 = vst.msk [vmem:[%s11925_s16 + $0x300] sm:$0xff] %vm3317_vm8, %v6230_v16  ;;  %v5819_v21 = vmul.f32 0.6931472, %v8332_v10  ;;  %v5168_v17 = vpop.xlane.xlu0 %5167  ;;  %5380 = vadd.xlane.f32.xlu1 %v5379_v11  ;;  %v5382_v14 = vsel %vm3317_vm8, %v8328_v63, 0.0  ;;  %v14538_v16 = vld [vmem:[#allocation122_spill] sm:$0xff]  ;;  %v14539_v10 = vld [vmem:[#allocation211_spill] sm:$0xff] }
 0x5d9   : > { %v8336_v48 = vpop.eup %8335  ;;  %6487 = vst.msk [vmem:[%s11925_s16 + $0x308] sm:$0xff] %vm3317_vm8, %v6231_v38  ;;  %v5821_v8 = vmul.f32 0.6931472, %v8334_v2  ;;  %8355 = vlog2.f32 %v5168_v17  ;;  %v5171_v51 = vpop.xlane.xlu1 %5170  ;;  %v4714_v47 = vmul.f32 1.442695, %v14538_v16  ;;  %v5385_v38 = vsel %vm3317_vm8, %v8330_v28, 0.0 }
 0x5da   : > { %v8338_v26 = vpop.eup %8337  ;;  %v6232_v57 = vsub.f32 %v14407_v24, %v5819_v21  ;;  %8357 = vlog2.f32 %v5171_v51  ;;  %v14540_v17 = vld [vmem:[#allocation123_spill] sm:$0xff]  ;;  %v5388_v28 = vsel %vm3317_vm8, %v8336_v48, 0.0 }
 0x5db   : > { %v8340_v13 = vpop.eup %8339  ;;  %8359 = vpow2.f32 %v4710_v9  ;;  %v6233_v11 = vsub.f32 %v14539_v10, %v5821_v8  ;;  %5383 = vadd.xlane.f32.xlu0 %v5382_v14  ;;  %v4716_v44 = vmul.f32 1.442695, %v14540_v17  ;;  %v14541_v14 = vld [vmem:[#allocation213_spill] sm:$0xff]  ;;  %v14543_v17 = vld [vmem:[#allocation214_spill] sm:$0xff] }
 0x5dc   : > { %v8342_v2 = vpop.eup %8341  ;;  %8361 = vpow2.f32 %v4712_v6  ;;  %6488 = vst.msk [vmem:[%s11925_s16 + $0x310] sm:$0xff] %vm3317_vm8, %v6232_v57  ;;  %v5823_v24 = vmul.f32 0.6931472, %v8340_v13  ;;  %v5174_v21 = vpop.xlane.xlu0 %5173  ;;  %5386 = vadd.xlane.f32.xlu1 %v5385_v38  ;;  %v14542_v57 = vld [vmem:[#allocation217_spill] sm:$0xff] }
 0x5dd   : > { %v8344_v51 = vpop.eup %8343  ;;  %6489 = vst.msk [vmem:[%s11925_s16 + $0x318] sm:$0xff] %vm3317_vm8, %v6233_v11  ;;  %v5825_v63 = vmul.f32 0.6931472, %v8342_v2  ;;  %8363 = vlog2.f32 %v5174_v21  ;;  %v5177_v9 = vpop.xlane.xlu1 %5176  ;;  %v4718_v13 = vmul.f32 1.442695, %v14542_v57  ;;  %v5391_v11 = vsel %vm3317_vm8, %v8338_v26, 0.0 }
 0x5de   : > { %v8346_v8 = vpop.eup %8345  ;;  %v6234_v10 = vsub.f32 %v14541_v14, %v5823_v24  ;;  %8365 = vlog2.f32 %v5177_v9  ;;  %v14544_v21 = vld [vmem:[#allocation125_spill] sm:$0xff] }
 0x5df   : > { %v8348_v6 = vpop.eup %8347  ;;  %8367 = vpow2.f32 %v4714_v47  ;;  %v6235_v38 = vsub.f32 %v14543_v17, %v5825_v63  ;;  %5389 = vadd.xlane.f32.xlu0 %v5388_v28  ;;  %v4720_v16 = vmul.f32 1.442695, %v14544_v21 }
 0x5e0   : > { %v8350_v2 = vpop.eup %8349  ;;  %8369 = vpow2.f32 %v4716_v44  ;;  %6490 = vst.msk [vmem:[%s11925_s16 + $0x320] sm:$0xff] %vm3317_vm8, %v6234_v10  ;;  %v5827_v24 = vmul.f32 0.6931472, %v8348_v6  ;;  %v5180_v9 = vpop.xlane.xlu0 %5179  ;;  %5392 = vadd.xlane.f32.xlu1 %v5391_v11  ;;  %v5394_v44 = vsel %vm3317_vm8, %v8344_v51, 0.0  ;;  %v14545_v10 = vld [vmem:[#allocation75_spill] sm:$0xff]  ;;  %v14546_v6 = vld [vmem:[#allocation60_spill] sm:$0xff] }
 0x5e1   : > { %v8352_v14 = vpop.eup %8351  ;;  %6491 = vst.msk [vmem:[%s11925_s16 + $0x328] sm:$0xff] %vm3317_vm8, %v6235_v38  ;;  %v5829_v48 = vmul.f32 0.6931472, %v8350_v2  ;;  %8371 = vlog2.f32 %v5180_v9  ;;  %v5183_v47 = vpop.xlane.xlu1 %5182  ;;  %v4722_v28 = vmul.f32 1.442695, %v14545_v10  ;;  %v5397_v38 = vsel %vm3317_vm8, %v8346_v8, 0.0 }
 0x5e2   : > { %v8354_v17 = vpop.eup %8353  ;;  %v6236_v63 = vsub.f32 %v14413_v31, %v5827_v24  ;;  %8373 = vlog2.f32 %v5183_v47  ;;  %v14547_v9 = vld [vmem:[#allocation77_spill] sm:$0xff] }
 0x5e3   : > { %v8356_v26 = vpop.eup %8355  ;;  %8375 = vpow2.f32 %v4718_v13  ;;  %v6237_v11 = vsub.f32 %v14546_v6, %v5829_v48  ;;  %5395 = vadd.xlane.f32.xlu0 %v5394_v44  ;;  %v4724_v21 = vmul.f32 1.442695, %v14547_v9  ;;  %v14549_v6 = vld [vmem:[#allocation72_spill] sm:$0xff] }
 0x5e4   : > { %v8358_v2 = vpop.eup %8357  ;;  %8377 = vpow2.f32 %v4720_v16  ;;  %6492 = vst.msk [vmem:[%s11925_s16 + $0x330] sm:$0xff] %vm3317_vm8, %v6236_v63  ;;  %v5831_v31 = vmul.f32 0.6931472, %v8356_v26  ;;  %v5186_v24 = vpop.xlane.xlu0 %5185  ;;  %5398 = vadd.xlane.f32.xlu1 %v5397_v38  ;;  %v5400_v16 = vsel %vm3317_vm8, %v8352_v14, 0.0  ;;  %v14548_v63 = vld [vmem:[#allocation78_spill] sm:$0xff] }
 0x5e5   : > { %v8360_v47 = vpop.eup %8359  ;;  %6493 = vst.msk [vmem:[%s11925_s16 + $0x338] sm:$0xff] %vm3317_vm8, %v6237_v11  ;;  %v5833_v51 = vmul.f32 0.6931472, %v8358_v2  ;;  %8379 = vlog2.f32 %v5186_v24  ;;  %v5189_v13 = vpop.xlane.xlu1 %5188  ;;  %v4726_v26 = vmul.f32 1.442695, %v14548_v63  ;;  %v5403_v11 = vsel %vm3317_vm8, %v8354_v17, 0.0 }
 0x5e6   : > { %v8362_v48 = vpop.eup %8361  ;;  %v6238_v44 = vsub.f32 %v14417_v25, %v5831_v31  ;;  %8381 = vlog2.f32 %v5189_v13  ;;  %v14550_v24 = vld [vmem:[#allocation129_spill] sm:$0xff] }
 0x5e7   : > { %v8364_v8 = vpop.eup %8363  ;;  %8383 = vpow2.f32 %v4722_v28  ;;  %v6239_v38 = vsub.f32 %v14549_v6, %v5833_v51  ;;  %5401 = vadd.xlane.f32.xlu0 %v5400_v16  ;;  %v4728_v9 = vmul.f32 1.442695, %v14550_v24  ;;  %v14552_v6 = vld [vmem:[#allocation62_spill] sm:$0xff] }
 0x5e8   : > { %v8366_v2 = vpop.eup %8365  ;;  %8385 = vpow2.f32 %v4724_v21  ;;  %6494 = vst.msk [vmem:[%s11925_s16 + $0x340] sm:$0xff] %vm3317_vm8, %v6238_v44  ;;  %v5835_v25 = vmul.f32 0.6931472, %v8364_v8  ;;  %v5192_v31 = vpop.xlane.xlu0 %5191  ;;  %5404 = vadd.xlane.f32.xlu1 %v5403_v11  ;;  %v5406_v21 = vsel %vm3317_vm8, %v8360_v47, 0.0  ;;  %v14551_v44 = vld [vmem:[#allocation79_spill] sm:$0xff] }
 0x5e9   : > { %v8368_v13 = vpop.eup %8367  ;;  %6495 = vst.msk [vmem:[%s11925_s16 + $0x348] sm:$0xff] %vm3317_vm8, %v6239_v38  ;;  %v5837_v14 = vmul.f32 0.6931472, %v8366_v2  ;;  %8387 = vlog2.f32 %v5192_v31  ;;  %v5195_v28 = vpop.xlane.xlu1 %5194  ;;  %v4730_v8 = vmul.f32 1.442695, %v14551_v44  ;;  %v5409_v38 = vsel %vm3317_vm8, %v8362_v48, 0.0 }
 0x5ea   : > { %v8370_v51 = vpop.eup %8369  ;;  %v6240_v16 = vsub.f32 %v14420_v61, %v5835_v25  ;;  %8389 = vlog2.f32 %v5195_v28  ;;  %v14553_v31 = vld [vmem:[#allocation131_spill] sm:$0xff] }
 0x5eb   : > { %v8372_v17 = vpop.eup %8371  ;;  %8391 = vpow2.f32 %v4726_v26  ;;  %v6241_v11 = vsub.f32 %v14552_v6, %v5837_v14  ;;  %5407 = vadd.xlane.f32.xlu0 %v5406_v21  ;;  %v4732_v24 = vmul.f32 1.442695, %v14553_v31 }
 0x5ec   : > { %v8374_v2 = vpop.eup %8373  ;;  %8393 = vpow2.f32 %v4728_v9  ;;  %6496 = vst.msk [vmem:[%s11925_s16 + $0x350] sm:$0xff] %vm3317_vm8, %v6240_v16  ;;  %v5839_v61 = vmul.f32 0.6931472, %v8372_v17  ;;  %v5198_v25 = vpop.xlane.xlu0 %5197  ;;  %5410 = vadd.xlane.f32.xlu1 %v5409_v38  ;;  %v5412_v9 = vsel %vm3317_vm8, %v8368_v13, 0.0  ;;  %v14554_v16 = vld [vmem:[#allocation81_spill] sm:$0xff] }
 0x5ed   : > { %v8376_v28 = vpop.eup %8375  ;;  %6497 = vst.msk [vmem:[%s11925_s16 + $0x358] sm:$0xff] %vm3317_vm8, %v6241_v11  ;;  %v5841_v47 = vmul.f32 0.6931472, %v8374_v2  ;;  %8395 = vlog2.f32 %v5198_v25  ;;  %v5201_v26 = vpop.xlane.xlu1 %5200  ;;  %v4734_v17 = vmul.f32 1.442695, %v14554_v16  ;;  %v5415_v11 = vsel %vm3317_vm8, %v8370_v51, 0.0 }
 0x5ee   : > { %v8378_v14 = vpop.eup %8377  ;;  %v6242_v21 = vsub.f32 %v14423_v41, %v5839_v61  ;;  %8397 = vlog2.f32 %v5201_v26  ;;  %v14555_v2 = vld [vmem:[#allocation133_spill] sm:$0xff] }
 0x5ef   : > { %v8380_v48 = vpop.eup %8379  ;;  %8399 = vpow2.f32 %v4730_v8  ;;  %v6243_v6 = vsub.f32 %v14424_v35, %v5841_v47  ;;  %5413 = vadd.xlane.f32.xlu0 %v5412_v9  ;;  %v4736_v25 = vmul.f32 1.442695, %v14555_v2 }
 0x5f0   : > { %v8382_v38 = vpop.eup %8381  ;;  %8401 = vpow2.f32 %v4732_v24  ;;  %6498 = vst.msk [vmem:[%s11925_s16 + $0x360] sm:$0xff] %vm3317_vm8, %v6242_v21  ;;  %v5843_v41 = vmul.f32 0.6931472, %v8380_v48  ;;  %v5204_v61 = vpop.xlane.xlu0 %5203  ;;  %5416 = vadd.xlane.f32.xlu1 %v5415_v11  ;;  %v5418_v24 = vsel %vm3317_vm8, %v8376_v28, 0.0  ;;  %v14556_v21 = vld [vmem:[#allocation154_spill] sm:$0xff]  ;;  %v14557_v48 = vld [vmem:[#allocation136_spill] sm:$0xff] }
 0x5f1   : > { %v8384_v26 = vpop.eup %8383  ;;  %6499 = vst.msk [vmem:[%s11925_s16 + $0x368] sm:$0xff] %vm3317_vm8, %v6243_v6  ;;  %v5845_v13 = vmul.f32 0.6931472, %v8382_v38  ;;  %8403 = vlog2.f32 %v5204_v61  ;;  %v5207_v8 = vpop.xlane.xlu1 %5206  ;;  %v4738_v9 = vmul.f32 1.442695, %v14556_v21  ;;  %v5421_v6 = vsel %vm3317_vm8, %v8378_v14, 0.0 }
 0x5f2   : > { %v8386_v35 = vpop.eup %8385  ;;  %v6244_v47 = vsub.f32 %v14425_v50, %v5843_v41  ;;  %8405 = vlog2.f32 %v5207_v8  ;;  %v14558_v61 = vld [vmem:[#allocation63_spill] sm:$0xff]  ;;  %v5424_v14 = vsel %vm3317_vm8, %v8384_v26, 0.0 }
 0x5f3   : > { %v8388_v51 = vpop.eup %8387  ;;  %8407 = vpow2.f32 %v4734_v17  ;;  %v6245_v11 = vsub.f32 %v14557_v48, %v5845_v13  ;;  %5419 = vadd.xlane.f32.xlu0 %v5418_v24  ;;  %v4740_v2 = vmul.f32 1.442695, %v14558_v61  ;;  %v14560_v48 = vld [vmem:[#allocation82_spill] sm:$0xff] }
 0x5f4   : > { %v8390_v38 = vpop.eup %8389  ;;  %8409 = vpow2.f32 %v4736_v25  ;;  %6500 = vst.msk [vmem:[%s11925_s16 + $0x370] sm:$0xff] %vm3317_vm8, %v6244_v47  ;;  %v5847_v50 = vmul.f32 0.6931472, %v8388_v51  ;;  %v5210_v41 = vpop.xlane.xlu0 %5209  ;;  %5422 = vadd.xlane.f32.xlu1 %v5421_v6  ;;  %v14559_v47 = vld [vmem:[#allocation135_spill] sm:$0xff] }
 0x5f5   : > { %v8392_v8 = vpop.eup %8391  ;;  %6501 = vst.msk [vmem:[%s11925_s16 + $0x378] sm:$0xff] %vm3317_vm8, %v6245_v11  ;;  %v5849_v28 = vmul.f32 0.6931472, %v8390_v38  ;;  %8411 = vlog2.f32 %v5210_v41  ;;  %v5213_v17 = vpop.xlane.xlu1 %5212  ;;  %v4742_v51 = vmul.f32 1.442695, %v14559_v47  ;;  %v5427_v11 = vsel %vm3317_vm8, %v8386_v35, 0.0 }
 0x5f6   : > { %v8394_v13 = vpop.eup %8393  ;;  %v6246_v24 = vsub.f32 %v14427_v42, %v5847_v50  ;;  %8413 = vlog2.f32 %v5213_v17  ;;  %v14561_v41 = vld [vmem:[#allocation65_spill] sm:$0xff] }
 0x5f7   : > { %v8396_v25 = vpop.eup %8395  ;;  %8415 = vpow2.f32 %v4738_v9  ;;  %v6247_v6 = vsub.f32 %v14560_v48, %v5849_v28  ;;  %5425 = vadd.xlane.f32.xlu0 %v5424_v14  ;;  %v4744_v61 = vmul.f32 1.442695, %v14561_v41  ;;  %v14562_v14 = vld [vmem:[#allocation143_spill] sm:$0xff]  ;;  %v14564_v41 = vld [vmem:[#allocation142_spill] sm:$0xff] }
 0x5f8   : > { %v8398_v38 = vpop.eup %8397  ;;  %8417 = vpow2.f32 %v4740_v2  ;;  %6502 = vst.msk [vmem:[%s11925_s16 + $0x380] sm:$0xff] %vm3317_vm8, %v6246_v24  ;;  %v5851_v42 = vmul.f32 0.6931472, %v8396_v25  ;;  %v5216_v50 = vpop.xlane.xlu0 %5215  ;;  %5428 = vadd.xlane.f32.xlu1 %v5427_v11  ;;  %v5430_v2 = vsel %vm3317_vm8, %v8392_v8, 0.0  ;;  %v14563_v24 = vld [vmem:[#allocation90_spill] sm:$0xff] }
 0x5f9   : > { %v8400_v17 = vpop.eup %8399  ;;  %6503 = vst.msk [vmem:[%s11925_s16 + $0x388] sm:$0xff] %vm3317_vm8, %v6247_v6  ;;  %v5853_v26 = vmul.f32 0.6931472, %v8398_v38  ;;  %8419 = vlog2.f32 %v5216_v50  ;;  %v5219_v9 = vpop.xlane.xlu1 %5218  ;;  %v4746_v25 = vmul.f32 1.442695, %v14563_v24  ;;  %v5433_v6 = vsel %vm3317_vm8, %v8394_v13, 0.0 }
 0x5fa   : > { %v8402_v28 = vpop.eup %8401  ;;  %v6248_v48 = vsub.f32 %v14562_v14, %v5851_v42  ;;  %8421 = vlog2.f32 %v5219_v9  ;;  %v14565_v50 = vld [vmem:[#allocation139_spill] sm:$0xff] }
 0x5fb   : > { %v8404_v35 = vpop.eup %8403  ;;  %8423 = vpow2.f32 %v4742_v51  ;;  %v6249_v11 = vsub.f32 %v14564_v41, %v5853_v26  ;;  %5431 = vadd.xlane.f32.xlu0 %v5430_v2  ;;  %v4748_v47 = vmul.f32 1.442695, %v14565_v50 }
 0x5fc   : > { %v8406_v38 = vpop.eup %8405  ;;  %8425 = vpow2.f32 %v4744_v61  ;;  %6504 = vst.msk [vmem:[%s11925_s16 + $0x390] sm:$0xff] %vm3317_vm8, %v6248_v48  ;;  %v5855_v42 = vmul.f32 0.6931472, %v8404_v35  ;;  %v5222_v9 = vpop.xlane.xlu0 %5221  ;;  %5434 = vadd.xlane.f32.xlu1 %v5433_v6  ;;  %v5436_v61 = vsel %vm3317_vm8, %v8400_v17, 0.0  ;;  %v14566_v48 = vld [vmem:[#allocation92_spill] sm:$0xff] }
 0x5fd   : > { %v8408_v14 = vpop.eup %8407  ;;  %6505 = vst.msk [vmem:[%s11925_s16 + $0x398] sm:$0xff] %vm3317_vm8, %v6249_v11  ;;  %v5857_v8 = vmul.f32 0.6931472, %v8406_v38  ;;  %8427 = vlog2.f32 %v5222_v9  ;;  %v5225_v51 = vpop.xlane.xlu1 %5224  ;;  %v4750_v2 = vmul.f32 1.442695, %v14566_v48  ;;  %v14567_v35 = vld [vmem:[#allocation84_spill] sm:$0xff] }
 0x5fe   : > { %v8410_v41 = vpop.eup %8409  ;;  %v6250_v26 = vsub.f32 %v14434_v52, %v5855_v42  ;;  %8429 = vlog2.f32 %v5225_v51  ;;  %v5439_v11 = vsel %vm3317_vm8, %v8402_v28, 0.0  ;;  %v14568_v9 = vld [vmem:[#allocation93_spill] sm:$0xff] }
 0x5ff   : > { %v8412_v13 = vpop.eup %8411  ;;  %8431 = vpow2.f32 %v4746_v25  ;;  %v6251_v6 = vsub.f32 %v14567_v35, %v5857_v8  ;;  %5437 = vadd.xlane.f32.xlu0 %v5436_v61  ;;  %v4752_v50 = vmul.f32 1.442695, %v14568_v9  ;;  %v14569_v61 = vld [vmem:[#allocation145_spill] sm:$0xff]  ;;  %v14571_v9 = vld [vmem:[#allocation144_spill] sm:$0xff] }
 0x600   : > { %v8414_v38 = vpop.eup %8413  ;;  %8433 = vpow2.f32 %v4748_v47  ;;  %6506 = vst.msk [vmem:[%s11925_s16 + $0x3a0] sm:$0xff] %vm3317_vm8, %v6250_v26  ;;  %v5859_v52 = vmul.f32 0.6931472, %v8412_v13  ;;  %v5228_v42 = vpop.xlane.xlu0 %5227  ;;  %5440 = vadd.xlane.f32.xlu1 %v5439_v11  ;;  %v5442_v47 = vsel %vm3317_vm8, %v8408_v14, 0.0  ;;  %v14570_v26 = vld [vmem:[#allocation164_spill] sm:$0xff] }
 0x601   : > { %v8416_v51 = vpop.eup %8415  ;;  %6507 = vst.msk [vmem:[%s11925_s16 + $0x3a8] sm:$0xff] %vm3317_vm8, %v6251_v6  ;;  %v5861_v17 = vmul.f32 0.6931472, %v8414_v38  ;;  %8435 = vlog2.f32 %v5228_v42  ;;  %v5231_v25 = vpop.xlane.xlu1 %5230  ;;  %v4754_v13 = vmul.f32 1.442695, %v14570_v26  ;;  %v5445_v6 = vsel %vm3317_vm8, %v8410_v41, 0.0 }
 0x602   : > { %v8418_v8 = vpop.eup %8417  ;;  %v6252_v35 = vsub.f32 %v14569_v61, %v5859_v52  ;;  %8437 = vlog2.f32 %v5231_v25  ;;  %v14572_v42 = vld [vmem:[#allocation8_spill] sm:$0xff] }
 0x603   : > { %v8420_v28 = vpop.eup %8419  ;;  %8439 = vpow2.f32 %v4750_v2  ;;  %v6253_v11 = vsub.f32 %v14571_v9, %v5861_v17  ;;  %5443 = vadd.xlane.f32.xlu0 %v5442_v47  ;;  %v4756_v48 = vmul.f32 1.442695, %v14572_v42 }
 0x604   : > { %v8422_v38 = vpop.eup %8421  ;;  %8441 = vpow2.f32 %v4752_v50  ;;  %6508 = vst.msk [vmem:[%s11925_s16 + $0x3b0] sm:$0xff] %vm3317_vm8, %v6252_v35  ;;  %v5863_v52 = vmul.f32 0.6931472, %v8420_v28  ;;  %v5234_v25 = vpop.xlane.xlu0 %5233  ;;  %5446 = vadd.xlane.f32.xlu1 %v5445_v6  ;;  %v5448_v50 = vsel %vm3317_vm8, %v8416_v51, 0.0  ;;  %v14573_v35 = vld [vmem:[#allocation95_spill] sm:$0xff]  ;;  %v14574_v28 = vld [vmem:[#allocation76_spill] sm:$0xff] }
 0x605   : > { %v8424_v61 = vpop.eup %8423  ;;  %6509 = vst.msk [vmem:[%s11925_s16 + $0x3b8] sm:$0xff] %vm3317_vm8, %v6253_v11  ;;  %v5865_v14 = vmul.f32 0.6931472, %v8422_v38  ;;  %8443 = vlog2.f32 %v5234_v25  ;;  %v5237_v2 = vpop.xlane.xlu1 %5236  ;;  %v4758_v47 = vmul.f32 1.442695, %v14573_v35  ;;  %v5451_v11 = vsel %vm3317_vm8, %v8418_v8, 0.0 }
 0x606   : > { %v8426_v9 = vpop.eup %8425  ;;  %v6254_v17 = vsub.f32 %v14441_v43, %v5863_v52  ;;  %8445 = vlog2.f32 %v5237_v2  ;;  %v14575_v25 = vld [vmem:[#allocation166_spill] sm:$0xff] }
 0x607   : > { %v8428_v41 = vpop.eup %8427  ;;  %8447 = vpow2.f32 %v4754_v13  ;;  %v6255_v6 = vsub.f32 %v14574_v28, %v5865_v14  ;;  %5449 = vadd.xlane.f32.xlu0 %v5448_v50  ;;  %v4760_v42 = vmul.f32 1.442695, %v14575_v25 }
 0x608   : > { %v8430_v38 = vpop.eup %8429  ;;  %8449 = vpow2.f32 %v4756_v48  ;;  %6510 = vst.msk [vmem:[%s11925_s16 + $0x3c0] sm:$0xff] %vm3317_vm8, %v6254_v17  ;;  %v5867_v43 = vmul.f32 0.6931472, %v8428_v41  ;;  %v5240_v52 = vpop.xlane.xlu0 %5239  ;;  %5452 = vadd.xlane.f32.xlu1 %v5451_v11  ;;  %v5454_v48 = vsel %vm3317_vm8, %v8424_v61, 0.0  ;;  %v14576_v17 = vld [vmem:[#allocation170_spill] sm:$0xff] }
 0x609   : > { %v8432_v2 = vpop.eup %8431  ;;  %6511 = vst.msk [vmem:[%s11925_s16 + $0x3c8] sm:$0xff] %vm3317_vm8, %v6255_v6  ;;  %v5869_v51 = vmul.f32 0.6931472, %v8430_v38  ;;  %8451 = vlog2.f32 %v5240_v52  ;;  %v5243_v13 = vpop.xlane.xlu1 %5242  ;;  %v4762_v41 = vmul.f32 1.442695, %v14576_v17  ;;  %v5457_v6 = vsel %vm3317_vm8, %v8426_v9, 0.0 }
 0x60a   : > { %v8434_v14 = vpop.eup %8433  ;;  %v6256_v50 = vsub.f32 %v14445_v29, %v5867_v43  ;;  %8453 = vlog2.f32 %v5243_v13  ;;  %v14577_v38 = vld [vmem:[#allocation147_spill] sm:$0xff] }
 0x60b   : > { %v8436_v8 = vpop.eup %8435  ;;  %8455 = vpow2.f32 %v4758_v47  ;;  %v6257_v28 = vsub.f32 %v14446_v59, %v5869_v51  ;;  %5455 = vadd.xlane.f32.xlu0 %v5454_v48  ;;  %v4764_v52 = vmul.f32 1.442695, %v14577_v38 }
 0x60c   : > { %v8438_v11 = vpop.eup %8437  ;;  %8457 = vpow2.f32 %v4760_v42  ;;  %6512 = vst.msk [vmem:[%s11925_s16 + $0x3d0] sm:$0xff] %vm3317_vm8, %v6256_v50  ;;  %v5871_v29 = vmul.f32 0.6931472, %v8436_v8  ;;  %v5246_v43 = vpop.xlane.xlu0 %5245  ;;  %5458 = vadd.xlane.f32.xlu1 %v5457_v6  ;;  %v5460_v42 = vsel %vm3317_vm8, %v8432_v2, 0.0  ;;  %v14578_v50 = vld [vmem:[#allocation169_spill] sm:$0xff] }
 0x60d   : > { %v8440_v13 = vpop.eup %8439  ;;  %6513 = vst.msk [vmem:[%s11925_s16 + $0x3d8] sm:$0xff] %vm3317_vm8, %v6257_v28  ;;  %v5873_v61 = vmul.f32 0.6931472, %v8438_v11  ;;  %8459 = vlog2.f32 %v5246_v43  ;;  %v5249_v47 = vpop.xlane.xlu1 %5248  ;;  %v4766_v48 = vmul.f32 1.442695, %v14578_v50  ;;  %v5463_v28 = vsel %vm3317_vm8, %v8434_v14, 0.0 }
 0x60e   : > { %v8442_v59 = vpop.eup %8441  ;;  %v6258_v51 = vsub.f32 %v14447_v30, %v5871_v29  ;;  %8461 = vlog2.f32 %v5249_v47  ;;  %v14579_v11 = vld [vmem:[#allocation148_spill] sm:$0xff]  ;;  %v5466_v14 = vsel %vm3317_vm8, %v8440_v13, 0.0 }
 0x60f   : > { %v8444_v9 = vpop.eup %8443  ;;  %8463 = vpow2.f32 %v4762_v41  ;;  %v6259_v8 = vsub.f32 %v14448_v18, %v5873_v61  ;;  %5461 = vadd.xlane.f32.xlu0 %v5460_v42  ;;  %v4768_v43 = vmul.f32 1.442695, %v14579_v11 }
 0x610   : > { %v8446_v6 = vpop.eup %8445  ;;  %8465 = vpow2.f32 %v4764_v52  ;;  %6514 = vst.msk [vmem:[%s11925_s16 + $0x3e0] sm:$0xff] %vm3317_vm8, %v6258_v51  ;;  %v5875_v30 = vmul.f32 0.6931472, %v8444_v9  ;;  %v5252_v29 = vpop.xlane.xlu0 %5251  ;;  %5464 = vadd.xlane.f32.xlu1 %v5463_v28  ;;  %v14580_v51 = vld [vmem:[#allocation149_spill] sm:$0xff] }
 0x611   : > { %v8448_v47 = vpop.eup %8447  ;;  %6515 = vst.msk [vmem:[%s11925_s16 + $0x3e8] sm:$0xff] %vm3317_vm8, %v6259_v8  ;;  %v5877_v2 = vmul.f32 0.6931472, %v8446_v6  ;;  %8467 = vlog2.f32 %v5252_v29  ;;  %v5255_v41 = vpop.xlane.xlu1 %5254  ;;  %v4770_v42 = vmul.f32 1.442695, %v14580_v51  ;;  %v5469_v8 = vsel %vm3317_vm8, %v8442_v59, 0.0 }
 0x612   : > { %v8450_v18 = vpop.eup %8449  ;;  %v6260_v61 = vsub.f32 %v14449_v60, %v5875_v30  ;;  %8469 = vlog2.f32 %v5255_v41  ;;  %v14581_v6 = vld [vmem:[#allocation150_spill] sm:$0xff]  ;;  %v5472_v59 = vsel %vm3317_vm8, %v8448_v47, 0.0 }
 0x613   : > { %v8452_v52 = vpop.eup %8451  ;;  %8471 = vpow2.f32 %v4766_v48  ;;  %v6261_v9 = vsub.f32 %v14450_v62, %v5877_v2  ;;  %5467 = vadd.xlane.f32.xlu0 %v5466_v14  ;;  %v4772_v29 = vmul.f32 1.442695, %v14581_v6 }
 0x614   : > { %v8454_v28 = vpop.eup %8453  ;;  %8473 = vpow2.f32 %v4768_v43  ;;  %6516 = vst.msk [vmem:[%s11925_s16 + $0x3f0] sm:$0xff] %vm3317_vm8, %v6260_v61  ;;  %v5879_v60 = vmul.f32 0.6931472, %v8452_v52  ;;  %v5258_v30 = vpop.xlane.xlu0 %5257  ;;  %5470 = vadd.xlane.f32.xlu1 %v5469_v8  ;;  %v14582_v61 = vld [vmem:[#allocation151_spill] sm:$0xff] }
 0x615   : > { %v8456_v41 = vpop.eup %8455  ;;  %6517 = vst.msk [vmem:[%s11925_s16 + $0x3f8] sm:$0xff] %vm3317_vm8, %v6261_v9  ;;  %v5881_v13 = vmul.f32 0.6931472, %v8454_v28  ;;  %8475 = vlog2.f32 %v5258_v30  ;;  %v5261_v48 = vpop.xlane.xlu1 %5260  ;;  %v4774_v14 = vmul.f32 1.442695, %v14582_v61  ;;  %v5475_v9 = vsel %vm3317_vm8, %v8450_v18, 0.0 }
 0x616   : > { %v8458_v62 = vpop.eup %8457  ;;  %v6262_v2 = vsub.f32 %v14451_v1, %v5879_v60  ;;  %8477 = vlog2.f32 %v5261_v48  ;;  %v14583_v28 = vld [vmem:[#allocation152_spill] sm:$0xff]  ;;  %v5478_v18 = vsel %vm3317_vm8, %v8456_v41, 0.0 }
 0x617   : > { %v8460_v43 = vpop.eup %8459  ;;  %8479 = vpow2.f32 %v4770_v42  ;;  %v6263_v52 = vsub.f32 %v14452_v33, %v5881_v13  ;;  %5473 = vadd.xlane.f32.xlu0 %v5472_v59  ;;  %v4776_v30 = vmul.f32 1.442695, %v14583_v28 }
 0x618   : > { %v8462_v8 = vpop.eup %8461  ;;  %8481 = vpow2.f32 %v4772_v29  ;;  %6518 = vst.msk [vmem:[%s11925_s16 + $0x400] sm:$0xff] %vm3317_vm8, %v6262_v2  ;;  %v5883_v1 = vmul.f32 0.6931472, %v8460_v43  ;;  %v5264_v60 = vpop.xlane.xlu0 %5263  ;;  %5476 = vadd.xlane.f32.xlu1 %v5475_v9  ;;  %v14584_v2 = vld [vmem:[#allocation153_spill] sm:$0xff] }
 0x619   : > { %v8464_v48 = vpop.eup %8463  ;;  %6519 = vst.msk [vmem:[%s11925_s16 + $0x408] sm:$0xff] %vm3317_vm8, %v6263_v52  ;;  %v5885_v47 = vmul.f32 0.6931472, %v8462_v8  ;;  %8483 = vlog2.f32 %v5264_v60  ;;  %v5267_v42 = vpop.xlane.xlu1 %5266  ;;  %v4778_v59 = vmul.f32 1.442695, %v14584_v2  ;;  %v5481_v52 = vsel %vm3317_vm8, %v8458_v62, 0.0 }
 0x61a   : > { %v8466_v33 = vpop.eup %8465  ;;  %v6264_v13 = vsub.f32 %v14453_v27, %v5883_v1  ;;  %8485 = vlog2.f32 %v5267_v42  ;;  %v14585_v8 = vld [vmem:[#allocation14_spill] sm:$0xff]  ;;  %v5484_v62 = vsel %vm3317_vm8, %v8464_v48, 0.0 }
 0x61b   : > { %v8468_v29 = vpop.eup %8467  ;;  %8487 = vpow2.f32 %v4774_v14  ;;  %v6265_v43 = vsub.f32 %v14454_v54, %v5885_v47  ;;  %5479 = vadd.xlane.f32.xlu0 %v5478_v18  ;;  %v4780_v60 = vmul.f32 1.442695, %v14585_v8 }
 0x61c   : > { %v8470_v9 = vpop.eup %8469  ;;  %8489 = vpow2.f32 %v4776_v30  ;;  %6520 = vst.msk [vmem:[%s11925_s16 + $0x410] sm:$0xff] %vm3317_vm8, %v6264_v13  ;;  %v5887_v27 = vmul.f32 0.6931472, %v8468_v29  ;;  %v5270_v1 = vpop.xlane.xlu0 %5269  ;;  %5482 = vadd.xlane.f32.xlu1 %v5481_v52  ;;  %v14586_v13 = vld [vmem:[#allocation13_spill] sm:$0xff] }
 0x61d   : > { %v8472_v42 = vpop.eup %8471  ;;  %6521 = vst.msk [vmem:[%s11925_s16 + $0x418] sm:$0xff] %vm3317_vm8, %v6265_v43  ;;  %v5889_v41 = vmul.f32 0.6931472, %v8470_v9  ;;  %8491 = vlog2.f32 %v5270_v1  ;;  %v5273_v14 = vpop.xlane.xlu1 %5272  ;;  %v4782_v18 = vmul.f32 1.442695, %v14586_v13  ;;  %v5487_v43 = vsel %vm3317_vm8, %v8466_v33, 0.0 }
 0x61e   : > { %v8474_v54 = vpop.eup %8473  ;;  %v6266_v47 = vsub.f32 %v14455_v5, %v5887_v27  ;;  %8493 = vlog2.f32 %v5273_v14  ;;  %v14587_v9 = vld [vmem:[#allocation16_spill] sm:$0xff]  ;;  %v5490_v33 = vsel %vm3317_vm8, %v8472_v42, 0.0 }
 0x61f   : > { %v8476_v30 = vpop.eup %8475  ;;  %8495 = vpow2.f32 %v4778_v59  ;;  %v6267_v29 = vsub.f32 %v14456_v55, %v5889_v41  ;;  %5485 = vadd.xlane.f32.xlu0 %v5484_v62  ;;  %v4784_v1 = vmul.f32 1.442695, %v14587_v9 }
 0x620   : > { %v8478_v52 = vpop.eup %8477  ;;  %8497 = vpow2.f32 %v4780_v60  ;;  %6522 = vst.msk [vmem:[%s11925_s16 + $0x420] sm:$0xff] %vm3317_vm8, %v6266_v47  ;;  %v5891_v5 = vmul.f32 0.6931472, %v8476_v30  ;;  %v5276_v27 = vpop.xlane.xlu0 %5275  ;;  %5488 = vadd.xlane.f32.xlu1 %v5487_v43  ;;  %v14588_v47 = vld [vmem:[#allocation15_spill] sm:$0xff] }
 0x621   : > { %v8480_v14 = vpop.eup %8479  ;;  %6523 = vst.msk [vmem:[%s11925_s16 + $0x428] sm:$0xff] %vm3317_vm8, %v6267_v29  ;;  %v5893_v48 = vmul.f32 0.6931472, %v8478_v52  ;;  %8499 = vlog2.f32 %v5276_v27  ;;  %v5279_v59 = vpop.xlane.xlu1 %5278  ;;  %v4786_v62 = vmul.f32 1.442695, %v14588_v47  ;;  %v5493_v29 = vsel %vm3317_vm8, %v8474_v54, 0.0 }
 0x622   : > { %v8482_v55 = vpop.eup %8481  ;;  %v6268_v41 = vsub.f32 %v14457_v19, %v5891_v5  ;;  %8501 = vlog2.f32 %v5279_v59  ;;  %v14589_v52 = vld [vmem:[#allocation158_spill] sm:$0xff]  ;;  %v5496_v54 = vsel %vm3317_vm8, %v8480_v14, 0.0 }
 0x623   : > { %v8484_v60 = vpop.eup %8483  ;;  %8503 = vpow2.f32 %v4782_v18  ;;  %v6269_v30 = vsub.f32 %v14458_v36, %v5893_v48  ;;  %5491 = vadd.xlane.f32.xlu0 %v5490_v33  ;;  %v4788_v27 = vmul.f32 1.442695, %v14589_v52 }
 0x624   : > { %v8486_v43 = vpop.eup %8485  ;;  %8505 = vpow2.f32 %v4784_v1  ;;  %6524 = vst.msk [vmem:[%s11925_s16 + $0x430] sm:$0xff] %vm3317_vm8, %v6268_v41  ;;  %v5895_v19 = vmul.f32 0.6931472, %v8484_v60  ;;  %v5282_v5 = vpop.xlane.xlu0 %5281  ;;  %5494 = vadd.xlane.f32.xlu1 %v5493_v29  ;;  %v14590_v41 = vld [vmem:[#allocation159_spill] sm:$0xff] }
 0x625   : > { %v8488_v59 = vpop.eup %8487  ;;  %6525 = vst.msk [vmem:[%s11925_s16 + $0x438] sm:$0xff] %vm3317_vm8, %v6269_v30  ;;  %v5897_v42 = vmul.f32 0.6931472, %v8486_v43  ;;  %8507 = vlog2.f32 %v5282_v5  ;;  %v5285_v18 = vpop.xlane.xlu1 %5284  ;;  %v4790_v33 = vmul.f32 1.442695, %v14590_v41  ;;  %v5499_v30 = vsel %vm3317_vm8, %v8482_v55, 0.0 }
 0x626   : > { %v8490_v36 = vpop.eup %8489  ;;  %v6270_v48 = vsub.f32 %v14459_v0, %v5895_v19  ;;  %8509 = vlog2.f32 %v5285_v18  ;;  %v14591_v43 = vld [vmem:[#allocation160_spill] sm:$0xff]  ;;  %v5502_v55 = vsel %vm3317_vm8, %v8488_v59, 0.0 }
 0x627   : > { %v8492_v1 = vpop.eup %8491  ;;  %8511 = vpow2.f32 %v4786_v62  ;;  %v6271_v60 = vsub.f32 %v14460_v39, %v5897_v42  ;;  %5497 = vadd.xlane.f32.xlu0 %v5496_v54  ;;  %v4792_v5 = vmul.f32 1.442695, %v14591_v43 }
 0x628   : > { %v8494_v29 = vpop.eup %8493  ;;  %8513 = vpow2.f32 %v4788_v27  ;;  %6526 = vst.msk [vmem:[%s11925_s16 + $0x440] sm:$0xff] %vm3317_vm8, %v6270_v48  ;;  %v5899_v0 = vmul.f32 0.6931472, %v8492_v1  ;;  %v5288_v19 = vpop.xlane.xlu0 %5287  ;;  %5500 = vadd.xlane.f32.xlu1 %v5499_v30  ;;  %v14592_v48 = vld [vmem:[#allocation161_spill] sm:$0xff] }
 0x629   : > { %v8496_v18 = vpop.eup %8495  ;;  %6527 = vst.msk [vmem:[%s11925_s16 + $0x448] sm:$0xff] %vm3317_vm8, %v6271_v60  ;;  %v5901_v14 = vmul.f32 0.6931472, %v8494_v29  ;;  %8515 = vlog2.f32 %v5288_v19  ;;  %v5291_v62 = vpop.xlane.xlu1 %5290  ;;  %v4794_v54 = vmul.f32 1.442695, %v14592_v48  ;;  %v5505_v60 = vsel %vm3317_vm8, %v8490_v36, 0.0 }
 0x62a   : > { %v8498_v39 = vpop.eup %8497  ;;  %v6272_v42 = vsub.f32 %v14461_v15, %v5899_v0  ;;  %8517 = vlog2.f32 %v5291_v62  ;;  %v14593_v29 = vld [vmem:[#allocation163_spill] sm:$0xff]  ;;  %v5508_v36 = vsel %vm3317_vm8, %v8496_v18, 0.0 }
 0x62b   : > { %v8500_v27 = vpop.eup %8499  ;;  %8519 = vpow2.f32 %v4790_v33  ;;  %v6273_v1 = vsub.f32 %v14462_v20, %v5901_v14  ;;  %5503 = vadd.xlane.f32.xlu0 %v5502_v55  ;;  %v4796_v19 = vmul.f32 1.442695, %v14593_v29 }
 0x62c   : > { %v8502_v30 = vpop.eup %8501  ;;  %8521 = vpow2.f32 %v4792_v5  ;;  %6528 = vst.msk [vmem:[%s11925_s16 + $0x450] sm:$0xff] %vm3317_vm8, %v6272_v42  ;;  %v5903_v15 = vmul.f32 0.6931472, %v8500_v27  ;;  %v5294_v0 = vpop.xlane.xlu0 %5293  ;;  %5506 = vadd.xlane.f32.xlu1 %v5505_v60  ;;  %v14594_v42 = vld [vmem:[#allocation21_spill] sm:$0xff] }
 0x62d   : > { %v8504_v62 = vpop.eup %8503  ;;  %6529 = vst.msk [vmem:[%s11925_s16 + $0x458] sm:$0xff] %vm3317_vm8, %v6273_v1  ;;  %v5905_v59 = vmul.f32 0.6931472, %v8502_v30  ;;  %8523 = vlog2.f32 %v5294_v0  ;;  %v5297_v33 = vpop.xlane.xlu1 %5296  ;;  %v4798_v55 = vmul.f32 1.442695, %v14594_v42  ;;  %v5511_v1 = vsel %vm3317_vm8, %v8498_v39, 0.0 }
 0x62e   : > { %v8506_v20 = vpop.eup %8505  ;;  %v6274_v14 = vsub.f32 %v14463_v23, %v5903_v15  ;;  %8525 = vlog2.f32 %v5297_v33  ;;  %v14595_v30 = vld [vmem:[#allocation24_spill] sm:$0xff]  ;;  %v5514_v39 = vsel %vm3317_vm8, %v8504_v62, 0.0 }
 0x62f   : > { %v8508_v5 = vpop.eup %8507  ;;  %8527 = vpow2.f32 %v4794_v54  ;;  %v6275_v27 = vsub.f32 %v14464_v3, %v5905_v59  ;;  %5509 = vadd.xlane.f32.xlu0 %v5508_v36  ;;  %v4800_v0 = vmul.f32 1.442695, %v14595_v30 }
 0x630   : > { %v8510_v60 = vpop.eup %8509  ;;  %8529 = vpow2.f32 %v4796_v19  ;;  %6530 = vst.msk [vmem:[%s11925_s16 + $0x460] sm:$0xff] %vm3317_vm8, %v6274_v14  ;;  %v5907_v23 = vmul.f32 0.6931472, %v8508_v5  ;;  %v5300_v15 = vpop.xlane.xlu0 %5299  ;;  %5512 = vadd.xlane.f32.xlu1 %v5511_v1  ;;  %v14596_v14 = vld [vmem:[#allocation165_spill] sm:$0xff] }
 0x631   : > { %v8512_v33 = vpop.eup %8511  ;;  %6531 = vst.msk [vmem:[%s11925_s16 + $0x468] sm:$0xff] %vm3317_vm8, %v6275_v27  ;;  %v5909_v18 = vmul.f32 0.6931472, %v8510_v60  ;;  %8531 = vlog2.f32 %v5300_v15  ;;  %v5303_v54 = vpop.xlane.xlu1 %5302  ;;  %v4802_v36 = vmul.f32 1.442695, %v14596_v14  ;;  %v5517_v27 = vsel %vm3317_vm8, %v8506_v20, 0.0 }
 0x632   : > { %v8514_v3 = vpop.eup %8513  ;;  %v6276_v59 = vsub.f32 %v14465_v32, %v5907_v23  ;;  %8533 = vlog2.f32 %v5303_v54  ;;  %v14597_v60 = vld [vmem:[#allocation168_spill] sm:$0xff]  ;;  %v5520_v20 = vsel %vm3317_vm8, %v8512_v33, 0.0 }
 0x633   : > { %v8516_v19 = vpop.eup %8515  ;;  %8535 = vpow2.f32 %v4798_v55  ;;  %v6277_v5 = vsub.f32 %v14466_v46, %v5909_v18  ;;  %5515 = vadd.xlane.f32.xlu0 %v5514_v39  ;;  %v4804_v15 = vmul.f32 1.442695, %v14597_v60 }
 0x634   : > { %v8518_v1 = vpop.eup %8517  ;;  %8537 = vpow2.f32 %v4800_v0  ;;  %6532 = vst.msk [vmem:[%s11925_s16 + $0x470] sm:$0xff] %vm3317_vm8, %v6276_v59  ;;  %v5911_v32 = vmul.f32 0.6931472, %v8516_v19  ;;  %v5306_v23 = vpop.xlane.xlu0 %5305  ;;  %5518 = vadd.xlane.f32.xlu1 %v5517_v27  ;;  %v14598_v59 = vld [vmem:[#allocation25_spill] sm:$0xff] }
 0x635   : > { %v8520_v54 = vpop.eup %8519  ;;  %6533 = vst.msk [vmem:[%s11925_s16 + $0x478] sm:$0xff] %vm3317_vm8, %v6277_v5  ;;  %v5913_v62 = vmul.f32 0.6931472, %v8518_v1  ;;  %8539 = vlog2.f32 %v5306_v23  ;;  %v5309_v55 = vpop.xlane.xlu1 %5308  ;;  %v4806_v39 = vmul.f32 1.442695, %v14598_v59  ;;  %v5523_v5 = vsel %vm3317_vm8, %v8514_v3, 0.0 }
 0x636   : > { %v8522_v46 = vpop.eup %8521  ;;  %v6278_v18 = vsub.f32 %v14467_v40, %v5911_v32  ;;  %8541 = vlog2.f32 %v5309_v55  ;;  %v14599_v1 = vld [vmem:[#allocation100_spill] sm:$0xff]  ;;  %v5526_v3 = vsel %vm3317_vm8, %v8520_v54, 0.0 }
 0x637   : > { %v8524_v0 = vpop.eup %8523  ;;  %8543 = vpow2.f32 %v4802_v36  ;;  %v6279_v19 = vsub.f32 %v14468_v4, %v5913_v62  ;;  %5521 = vadd.xlane.f32.xlu0 %v5520_v20  ;;  %v4808_v23 = vmul.f32 1.442695, %v14599_v1 }
 0x638   : > { %v8526_v27 = vpop.eup %8525  ;;  %8545 = vpow2.f32 %v4804_v15  ;;  %6534 = vst.msk [vmem:[%s11925_s16 + $0x480] sm:$0xff] %vm3317_vm8, %v6278_v18  ;;  %v5915_v40 = vmul.f32 0.6931472, %v8524_v0  ;;  %v5312_v32 = vpop.xlane.xlu0 %5311  ;;  %5524 = vadd.xlane.f32.xlu1 %v5523_v5  ;;  %v14600_v18 = vld [vmem:[#allocation28_spill] sm:$0xff] }
 0x639   : > { %v8528_v55 = vpop.eup %8527  ;;  %6535 = vst.msk [vmem:[%s11925_s16 + $0x488] sm:$0xff] %vm3317_vm8, %v6279_v19  ;;  %v5917_v33 = vmul.f32 0.6931472, %v8526_v27  ;;  %8547 = vlog2.f32 %v5312_v32  ;;  %v5315_v36 = vpop.xlane.xlu1 %5314  ;;  %v4810_v20 = vmul.f32 1.442695, %v14600_v18  ;;  %v5529_v19 = vsel %vm3317_vm8, %v8522_v46, 0.0 }
 0x63a   : > { %v8530_v4 = vpop.eup %8529  ;;  %v6280_v62 = vsub.f32 %v14469_v56, %v5915_v40  ;;  %8549 = vlog2.f32 %v5315_v36  ;;  %v14601_v27 = vld [vmem:[#allocation30_spill] sm:$0xff]  ;;  %v5532_v46 = vsel %vm3317_vm8, %v8528_v55, 0.0 }
 0x63b   : > { %v8532_v15 = vpop.eup %8531  ;;  %8551 = vpow2.f32 %v4806_v39  ;;  %v6281_v0 = vsub.f32 %v14470_v45, %v5917_v33  ;;  %5527 = vadd.xlane.f32.xlu0 %v5526_v3  ;;  %v4812_v32 = vmul.f32 1.442695, %v14601_v27 }
 0x63c   : > { %v8534_v5 = vpop.eup %8533  ;;  %8553 = vpow2.f32 %v4808_v23  ;;  %6536 = vst.msk [vmem:[%s11925_s16 + $0x490] sm:$0xff] %vm3317_vm8, %v6280_v62  ;;  %v5919_v56 = vmul.f32 0.6931472, %v8532_v15  ;;  %v5318_v40 = vpop.xlane.xlu0 %5317  ;;  %5530 = vadd.xlane.f32.xlu1 %v5529_v19  ;;  %v14602_v62 = vld [vmem:[#allocation171_spill] sm:$0xff]  ;;  %v14603_v15 = vld [vmem:[#allocation174_spill] sm:$0xff] }
 0x63d   : > { %v8536_v36 = vpop.eup %8535  ;;  %6537 = vst.msk [vmem:[%s11925_s16 + $0x498] sm:$0xff] %vm3317_vm8, %v6281_v0  ;;  %v5921_v54 = vmul.f32 0.6931472, %v8534_v5  ;;  %8555 = vlog2.f32 %v5318_v40  ;;  %v5321_v39 = vpop.xlane.xlu1 %5320  ;;  %v4814_v3 = vmul.f32 1.442695, %v14602_v62  ;;  %v5535_v0 = vsel %vm3317_vm8, %v8530_v4, 0.0 }
 0x63e   : > { %v8538_v45 = vpop.eup %8537  ;;  %v6282_v33 = vsub.f32 %v14471_v53, %v5919_v56  ;;  %8557 = vlog2.f32 %v5321_v39  ;;  %v14604_v40 = vld [vmem:[#allocation91_spill] sm:$0xff]  ;;  %v5538_v4 = vsel %vm3317_vm8, %v8536_v36, 0.0 }
 0x63f   : > { %v8540_v23 = vpop.eup %8539  ;;  %8559 = vpow2.f32 %v4810_v20  ;;  %v6283_v19 = vsub.f32 %v14603_v15, %v5921_v54  ;;  %5533 = vadd.xlane.f32.xlu0 %v5532_v46  ;;  %v4816_v27 = vmul.f32 1.442695, %v14604_v40 }
 0x640   : > { %v8542_v5 = vpop.eup %8541  ;;  %8561 = vpow2.f32 %v4812_v32  ;;  %6538 = vst.msk [vmem:[%s11925_s16 + $0x4a0] sm:$0xff] %vm3317_vm8, %v6282_v33  ;;  %v5923_v53 = vmul.f32 0.6931472, %v8540_v23  ;;  %v5324_v56 = vpop.xlane.xlu0 %5323  ;;  %5536 = vadd.xlane.f32.xlu1 %v5535_v0  ;;  %v14605_v33 = vld [vmem:[#allocation173_spill] sm:$0xff] }
 0x641   : > { %v8544_v39 = vpop.eup %8543  ;;  %6539 = vst.msk [vmem:[%s11925_s16 + $0x4a8] sm:$0xff] %vm3317_vm8, %v6283_v19  ;;  %v5925_v55 = vmul.f32 0.6931472, %v8542_v5  ;;  %8563 = vlog2.f32 %v5324_v56  ;;  %v5327_v20 = vpop.xlane.xlu1 %5326  ;;  %v4818_v23 = vmul.f32 1.442695, %v14605_v33  ;;  %v5541_v19 = vsel %vm3317_vm8, %v8538_v45, 0.0 }
 0x642   : > { %v8546_v54 = vpop.eup %8545  ;;  %v6284_v46 = vsub.f32 %v14474_v37, %v5923_v53  ;;  %8565 = vlog2.f32 %v5327_v20  ;;  %v14606_v5 = vld [vmem:[#allocation175_spill] sm:$0xff] }
 0x643   : > { %v8548_v32 = vpop.eup %8547  ;;  %8567 = vpow2.f32 %v4814_v3  ;;  %v6285_v15 = vsub.f32 %v14475_v7, %v5925_v55  ;;  %5539 = vadd.xlane.f32.xlu0 %v5538_v4  ;;  %v4820_v56 = vmul.f32 1.442695, %v14606_v5  ;;  %v14607_v55 = vld [vmem:[#allocation178_spill] sm:$0xff] }
 0x644   : > { %v8550_v0 = vpop.eup %8549  ;;  %8569 = vpow2.f32 %v4816_v27  ;;  %6540 = vst.msk [vmem:[%s11925_s16 + $0x4b0] sm:$0xff] %vm3317_vm8, %v6284_v46  ;;  %v5927_v37 = vmul.f32 0.6931472, %v8548_v32  ;;  %v5330_v53 = vpop.xlane.xlu0 %5329  ;;  %5542 = vadd.xlane.f32.xlu1 %v5541_v19  ;;  %v5544_v27 = vsel %vm3317_vm8, %v8544_v39, 0.0  ;;  %v14608_v46 = vld [vmem:[#allocation42_spill] sm:$0xff] }
 0x645   : > { %v8552_v20 = vpop.eup %8551  ;;  %6541 = vst.msk [vmem:[%s11925_s16 + $0x4b8] sm:$0xff] %vm3317_vm8, %v6285_v15  ;;  %v5929_v36 = vmul.f32 0.6931472, %v8550_v0  ;;  %8571 = vlog2.f32 %v5330_v53  ;;  %v5333_v3 = vpop.xlane.xlu1 %5332  ;;  %v4822_v32 = vmul.f32 1.442695, %v14608_v46  ;;  %v14609_v5 = vld [vmem:[#allocation18_spill] sm:$0xff] }
 0x646   : > { %v8554_v7 = vpop.eup %8553  ;;  %v6286_v4 = vsub.f32 %v14607_v55, %v5927_v37  ;;  %8573 = vlog2.f32 %v5333_v3  ;;  %v5547_v15 = vsel %vm3317_vm8, %v8546_v54, 0.0  ;;  %v14610_v53 = vld [vmem:[#allocation36_spill] sm:$0xff]  ;;  %v5550_v54 = vsel %vm3317_vm8, %v8552_v20, 0.0 }
 0x647   : > { %v8556_v45 = vpop.eup %8555  ;;  %8575 = vpow2.f32 %v4818_v23  ;;  %v6287_v19 = vsub.f32 %v14609_v5, %v5929_v36  ;;  %5545 = vadd.xlane.f32.xlu0 %v5544_v27  ;;  %v4824_v33 = vmul.f32 1.442695, %v14610_v53  ;;  %v14611_v36 = vld [vmem:[#allocation181_spill] sm:$0xff]  ;;  %v14613_v53 = vld [vmem:[#allocation180_spill] sm:$0xff] }
 0x648   : > { %v8558_v0 = vpop.eup %8557  ;;  %8577 = vpow2.f32 %v4820_v56  ;;  %6542 = vst.msk [vmem:[%s11925_s16 + $0x4c0] sm:$0xff] %vm3317_vm8, %v6286_v4  ;;  %v5931_v37 = vmul.f32 0.6931472, %v8556_v45  ;;  %v5336_v3 = vpop.xlane.xlu0 %5335  ;;  %5548 = vadd.xlane.f32.xlu1 %v5547_v15  ;;  %v14612_v4 = vld [vmem:[#allocation35_spill] sm:$0xff] }
 0x649   : > { %v8560_v55 = vpop.eup %8559  ;;  %6543 = vst.msk [vmem:[%s11925_s16 + $0x4c8] sm:$0xff] %vm3317_vm8, %v6287_v19  ;;  %v5933_v39 = vmul.f32 0.6931472, %v8558_v0  ;;  %8579 = vlog2.f32 %v5336_v3  ;;  %v5339_v23 = vpop.xlane.xlu1 %5338  ;;  %v4826_v45 = vmul.f32 1.442695, %v14612_v4  ;;  %v5553_v19 = vsel %vm3317_vm8, %v8554_v7, 0.0 }
 0x64a   : > { %v8562_v5 = vpop.eup %8561  ;;  %v6288_v27 = vsub.f32 %v14611_v36, %v5931_v37  ;;  %8581 = vlog2.f32 %v5339_v23  ;;  %v14614_v3 = vld [vmem:[#allocation218_spill] sm:$0xff] }
 0x64b   : > { %v8564_v56 = vpop.eup %8563  ;;  %8583 = vpow2.f32 %v4822_v32  ;;  %v6289_v15 = vsub.f32 %v14613_v53, %v5933_v39  ;;  %5551 = vadd.xlane.f32.xlu0 %v5550_v54  ;;  %v4828_v46 = vmul.f32 1.442695, %v14614_v3  ;;  %v14615_v39 = vld [vmem:[#allocation182_spill] sm:$0xff] }
 0x64c   : > { %v8566_v0 = vpop.eup %8565  ;;  %8585 = vpow2.f32 %v4824_v33  ;;  %6544 = vst.msk [vmem:[%s11925_s16 + $0x4d0] sm:$0xff] %vm3317_vm8, %v6288_v27  ;;  %v5935_v37 = vmul.f32 0.6931472, %v8564_v56  ;;  %v5342_v23 = vpop.xlane.xlu0 %5341  ;;  %5554 = vadd.xlane.f32.xlu1 %v5553_v19  ;;  %v5556_v33 = vsel %vm3317_vm8, %v8560_v55, 0.0  ;;  %v14616_v27 = vld [vmem:[#allocation219_spill] sm:$0xff]  ;;  %v14617_v3 = vld [vmem:[#allocation22_spill] sm:$0xff] }
 0x64d   : > { %v8568_v36 = vpop.eup %8567  ;;  %6545 = vst.msk [vmem:[%s11925_s16 + $0x4d8] sm:$0xff] %vm3317_vm8, %v6289_v15  ;;  %v5937_v20 = vmul.f32 0.6931472, %v8566_v0  ;;  %8587 = vlog2.f32 %v5342_v23  ;;  %v5345_v32 = vpop.xlane.xlu1 %5344  ;;  %v4830_v56 = vmul.f32 1.442695, %v14616_v27  ;;  %v5559_v15 = vsel %vm3317_vm8, %v8562_v5, 0.0 }
 0x64e   : > { %v8570_v53 = vpop.eup %8569  ;;  %v6290_v54 = vsub.f32 %v14615_v39, %v5935_v37  ;;  %8589 = vlog2.f32 %v5345_v32  ;;  %v14618_v23 = vld [vmem:[#allocation202_spill] sm:$0xff] }
 0x64f   : > { %v8572_v7 = vpop.eup %8571  ;;  %8591 = vpow2.f32 %v4826_v45  ;;  %v6291_v19 = vsub.f32 %v14617_v3, %v5937_v20  ;;  %5557 = vadd.xlane.f32.xlu0 %v5556_v33  ;;  %v4832_v4 = vmul.f32 1.442695, %v14618_v23  ;;  %v14619_v20 = vld [vmem:[#allocation185_spill] sm:$0xff]  ;;  %v14621_v23 = vld [vmem:[#allocation184_spill] sm:$0xff] }
 0x650   : > { %v8574_v0 = vpop.eup %8573  ;;  %8593 = vpow2.f32 %v4828_v46  ;;  %6546 = vst.msk [vmem:[%s11925_s16 + $0x4e0] sm:$0xff] %vm3317_vm8, %v6290_v54  ;;  %v5939_v37 = vmul.f32 0.6931472, %v8572_v7  ;;  %v5348_v32 = vpop.xlane.xlu0 %5347  ;;  %5560 = vadd.xlane.f32.xlu1 %v5559_v15  ;;  %v5562_v46 = vsel %vm3317_vm8, %v8568_v36, 0.0  ;;  %v14620_v54 = vld [vmem:[#allocation49_spill] sm:$0xff] }
 0x651   : > { %v8576_v39 = vpop.eup %8575  ;;  %6547 = vst.msk [vmem:[%s11925_s16 + $0x4e8] sm:$0xff] %vm3317_vm8, %v6291_v19  ;;  %v5941_v55 = vmul.f32 0.6931472, %v8574_v0  ;;  %8595 = vlog2.f32 %v5348_v32  ;;  %v5351_v45 = vpop.xlane.xlu1 %5350  ;;  %v4834_v7 = vmul.f32 1.442695, %v14620_v54  ;;  %v5565_v19 = vsel %vm3317_vm8, %v8570_v53, 0.0 }
 0x652   : > { %v8578_v3 = vpop.eup %8577  ;;  %v6292_v33 = vsub.f32 %v14619_v20, %v5939_v37  ;;  %8597 = vlog2.f32 %v5351_v45  ;;  %v14622_v32 = vld [vmem:[#allocation204_spill] sm:$0xff] }
 0x653   : > { %v8580_v5 = vpop.eup %8579  ;;  %8599 = vpow2.f32 %v4830_v56  ;;  %v6293_v15 = vsub.f32 %v14621_v23, %v5941_v55  ;;  %5563 = vadd.xlane.f32.xlu0 %v5562_v46  ;;  %v4836_v27 = vmul.f32 1.442695, %v14622_v32  ;;  %v14623_v55 = vld [vmem:[#allocation29_spill] sm:$0xff]  ;;  %v14625_v32 = vld [vmem:[#allocation32_spill] sm:$0xff] }
 0x654   : > { %v8582_v0 = vpop.eup %8581  ;;  %8601 = vpow2.f32 %v4832_v4  ;;  %6548 = vst.msk [vmem:[%s11925_s16 + $0x4f0] sm:$0xff] %vm3317_vm8, %v6292_v33  ;;  %v5943_v37 = vmul.f32 0.6931472, %v8580_v5  ;;  %v5354_v45 = vpop.xlane.xlu0 %5353  ;;  %5566 = vadd.xlane.f32.xlu1 %v5565_v19  ;;  %v5568_v4 = vsel %vm3317_vm8, %v8576_v39, 0.0  ;;  %v14624_v33 = vld [vmem:[#allocation220_spill] sm:$0xff] }
 0x655   : > { %v8584_v20 = vpop.eup %8583  ;;  %6549 = vst.msk [vmem:[%s11925_s16 + $0x4f8] sm:$0xff] %vm3317_vm8, %v6293_v15  ;;  %v5945_v36 = vmul.f32 0.6931472, %v8582_v0  ;;  %8603 = vlog2.f32 %v5354_v45  ;;  %v5357_v56 = vpop.xlane.xlu1 %5356  ;;  %v4838_v5 = vmul.f32 1.442695, %v14624_v33  ;;  %v5571_v15 = vsel %vm3317_vm8, %v8578_v3, 0.0 }
 0x656   : > { %v8586_v23 = vpop.eup %8585  ;;  %v6294_v46 = vsub.f32 %v14623_v55, %v5943_v37  ;;  %8605 = vlog2.f32 %v5357_v56  ;;  %v14626_v45 = vld [vmem:[#allocation206_spill] sm:$0xff] }
 0x657   : > { %v8588_v53 = vpop.eup %8587  ;;  %8607 = vpow2.f32 %v4834_v7  ;;  %v6295_v19 = vsub.f32 %v14625_v32, %v5945_v36  ;;  %5569 = vadd.xlane.f32.xlu0 %v5568_v4  ;;  %v4840_v54 = vmul.f32 1.442695, %v14626_v45  ;;  %v14627_v36 = vld [vmem:[#allocation31_spill] sm:$0xff]  ;;  %v14629_v45 = vld [vmem:[#allocation34_spill] sm:$0xff] }
 0x658   : > { %v8590_v0 = vpop.eup %8589  ;;  %8609 = vpow2.f32 %v4836_v27  ;;  %6550 = vst.msk [vmem:[%s11925_s16 + $0x500] sm:$0xff] %vm3317_vm8, %v6294_v46  ;;  %v5947_v37 = vmul.f32 0.6931472, %v8588_v53  ;;  %v5360_v56 = vpop.xlane.xlu0 %5359  ;;  %5572 = vadd.xlane.f32.xlu1 %v5571_v15  ;;  %v5574_v27 = vsel %vm3317_vm8, %v8584_v20, 0.0  ;;  %v14628_v46 = vld [vmem:[#allocation53_spill] sm:$0xff] }
 0x659   : > { %v8592_v55 = vpop.eup %8591  ;;  %6551 = vst.msk [vmem:[%s11925_s16 + $0x508] sm:$0xff] %vm3317_vm8, %v6295_v19  ;;  %v5949_v39 = vmul.f32 0.6931472, %v8590_v0  ;;  %8611 = vlog2.f32 %v5360_v56  ;;  %v5363_v7 = vpop.xlane.xlu1 %5362  ;;  %v4842_v53 = vmul.f32 1.442695, %v14628_v46  ;;  %v5577_v19 = vsel %vm3317_vm8, %v8586_v23, 0.0 }
 0x65a   : > { %v8594_v32 = vpop.eup %8593  ;;  %v6296_v4 = vsub.f32 %v14627_v36, %v5947_v37  ;;  %8613 = vlog2.f32 %v5363_v7  ;;  %v14630_v56 = vld [vmem:[#allocation208_spill] sm:$0xff] }
 0x65b   : > { %v8596_v3 = vpop.eup %8595  ;;  %8615 = vpow2.f32 %v4838_v5  ;;  %v6297_v15 = vsub.f32 %v14629_v45, %v5949_v39  ;;  %5575 = vadd.xlane.f32.xlu0 %v5574_v27  ;;  %v4844_v33 = vmul.f32 1.442695, %v14630_v56  ;;  %v14631_v39 = vld [vmem:[#allocation33_spill] sm:$0xff] }
 0x65c   : > { %v8598_v0 = vpop.eup %8597  ;;  %8617 = vpow2.f32 %v4840_v54  ;;  %6552 = vst.msk [vmem:[%s11925_s16 + $0x510] sm:$0xff] %vm3317_vm8, %v6296_v4  ;;  %v5951_v37 = vmul.f32 0.6931472, %v8596_v3  ;;  %v5366_v7 = vpop.xlane.xlu0 %5365  ;;  %5578 = vadd.xlane.f32.xlu1 %v5577_v19  ;;  %v5580_v54 = vsel %vm3317_vm8, %v8592_v55, 0.0  ;;  %v14632_v4 = vld [vmem:[#allocation56_spill] sm:$0xff]  ;;  %v14633_v56 = vld [vmem:[#allocation105_spill] sm:$0xff] }
 0x65d   : > { %v8600_v36 = vpop.eup %8599  ;;  %6553 = vst.msk [vmem:[%s11925_s16 + $0x518] sm:$0xff] %vm3317_vm8, %v6297_v15  ;;  %v5953_v20 = vmul.f32 0.6931472, %v8598_v0  ;;  %8619 = vlog2.f32 %v5366_v7  ;;  %v5369_v5 = vpop.xlane.xlu1 %5368  ;;  %v4846_v3 = vmul.f32 1.442695, %v14632_v4  ;;  %v5583_v15 = vsel %vm3317_vm8, %v8594_v32, 0.0 }
 0x65e   : > { %v8602_v45 = vpop.eup %8601  ;;  %v6298_v27 = vsub.f32 %v14631_v39, %v5951_v37  ;;  %8621 = vlog2.f32 %v5369_v5  ;;  %v14634_v7 = vld [vmem:[#allocation55_spill] sm:$0xff] }
 0x65f   : > { %v8604_v23 = vpop.eup %8603  ;;  %8623 = vpow2.f32 %v4842_v53  ;;  %v6299_v19 = vsub.f32 %v14633_v56, %v5953_v20  ;;  %5581 = vadd.xlane.f32.xlu0 %v5580_v54  ;;  %v4848_v46 = vmul.f32 1.442695, %v14634_v7  ;;  %v14635_v20 = vld [vmem:[#allocation106_spill] sm:$0xff] }
 0x660   : > { %v8606_v0 = vpop.eup %8605  ;;  %8625 = vpow2.f32 %v4844_v33  ;;  %6554 = vst.msk [vmem:[%s11925_s16 + $0x520] sm:$0xff] %vm3317_vm8, %v6298_v27  ;;  %v5955_v37 = vmul.f32 0.6931472, %v8604_v23  ;;  %v5372_v5 = vpop.xlane.xlu0 %5371  ;;  %5584 = vadd.xlane.f32.xlu1 %v5583_v15  ;;  %v5586_v33 = vsel %vm3317_vm8, %v8600_v36, 0.0  ;;  %v14636_v27 = vld [vmem:[#allocation212_spill] sm:$0xff]  ;;  %v14637_v7 = vld [vmem:[#allocation38_spill] sm:$0xff] }
 0x661   : > { %v8608_v39 = vpop.eup %8607  ;;  %6555 = vst.msk [vmem:[%s11925_s16 + $0x528] sm:$0xff] %vm3317_vm8, %v6299_v19  ;;  %v5957_v55 = vmul.f32 0.6931472, %v8606_v0  ;;  %8627 = vlog2.f32 %v5372_v5  ;;  %v5375_v53 = vpop.xlane.xlu1 %5374  ;;  %v4850_v23 = vmul.f32 1.442695, %v14636_v27  ;;  %v5589_v19 = vsel %vm3317_vm8, %v8602_v45, 0.0 }
 0x662   : > { %v8610_v56 = vpop.eup %8609  ;;  %v6300_v54 = vsub.f32 %v14635_v20, %v5955_v37  ;;  %8629 = vlog2.f32 %v5375_v53  ;;  %v14638_v5 = vld [vmem:[#allocation221_spill] sm:$0xff] }
 0x663   : > { %v8612_v32 = vpop.eup %8611  ;;  %8631 = vpow2.f32 %v4846_v3  ;;  %v6301_v15 = vsub.f32 %v14637_v7, %v5957_v55  ;;  %5587 = vadd.xlane.f32.xlu0 %v5586_v33  ;;  %v4852_v4 = vmul.f32 1.442695, %v14638_v5  ;;  %v14639_v55 = vld [vmem:[#allocation107_spill] sm:$0xff] }
 0x664   : > { %v8614_v0 = vpop.eup %8613  ;;  %8633 = vpow2.f32 %v4848_v46  ;;  %6556 = vst.msk [vmem:[%s11925_s16 + $0x530] sm:$0xff] %vm3317_vm8, %v6300_v54  ;;  %v5959_v37 = vmul.f32 0.6931472, %v8612_v32  ;;  %v5378_v53 = vpop.xlane.xlu0 %5377  ;;  %5590 = vadd.xlane.f32.xlu1 %v5589_v19  ;;  %v5592_v46 = vsel %vm3317_vm8, %v8608_v39, 0.0  ;;  %v14640_v54 = vld [vmem:[#allocation108_spill] sm:$0xff]  ;;  %v5595_v19 = vsel %vm3317_vm8, %v8610_v56, 0.0 }
 0x665   : > { %v8616_v20 = vpop.eup %8615  ;;  %6557 = vst.msk [vmem:[%s11925_s16 + $0x538] sm:$0xff] %vm3317_vm8, %v6301_v15  ;;  %v5961_v36 = vmul.f32 0.6931472, %v8614_v0  ;;  %8635 = vlog2.f32 %v5378_v53  ;;  %v5381_v3 = vpop.xlane.xlu1 %5380 }
 0x666   : > { %v8618_v7 = vpop.eup %8617  ;;  %v6302_v45 = vsub.f32 %v14639_v55, %v5959_v37  ;;  %8637 = vlog2.f32 %v5381_v3  ;;  %v5598_v56 = vsel %vm3317_vm8, %v8616_v20, 0.0  ;;  %v14642_v55 = vld [vmem:[#allocation113_spill] sm:$0xff] }
 0x667   : > { %v8620_v33 = vpop.eup %8619  ;;  %8639 = vpow2.f32 %v4850_v23  ;;  %v6303_v32 = vsub.f32 %v14640_v54, %v5961_v36  ;;  %5593 = vadd.xlane.f32.xlu0 %v5592_v46  ;;  %v14641_v36 = vld [vmem:[#allocation110_spill] sm:$0xff]  ;;  %v5601_v46 = vsel %vm3317_vm8, %v8618_v7, 0.0 }
 0x668   : > { %v8622_v5 = vpop.eup %8621  ;;  %8641 = vpow2.f32 %v4852_v4  ;;  %6558 = vst.msk [vmem:[%s11925_s16 + $0x540] sm:$0xff] %vm3317_vm8, %v6302_v45  ;;  %v5963_v15 = vmul.f32 0.6931472, %v8620_v33  ;;  %v5384_v0 = vpop.xlane.xlu0 %5383  ;;  %5596 = vadd.xlane.f32.xlu1 %v5595_v19 }
 0x669   : > { %v8624_v53 = vpop.eup %8623  ;;  %6559 = vst.msk [vmem:[%s11925_s16 + $0x548] sm:$0xff] %vm3317_vm8, %v6303_v32  ;;  %v5965_v37 = vmul.f32 0.6931472, %v8622_v5  ;;  %8643 = vlog2.f32 %v5384_v0  ;;  %v5387_v39 = vpop.xlane.xlu1 %5386  ;;  %v14643_v0 = vld [vmem:[#allocation198_spill] sm:$0xff] }
 0x66a   : > { %v8626_v23 = vpop.eup %8625  ;;  %v6304_v3 = vsub.f32 %v14641_v36, %v5963_v15  ;;  %8645 = vlog2.f32 %v5387_v39  ;;  %v5604_v7 = vsel %vm3317_vm8, %v8624_v53, 0.0  ;;  %v14644_v36 = vld [vmem:[#allocation58_spill] sm:$0xff] }
 0x66b   : > { %v8628_v4 = vpop.eup %8627  ;;  %v6305_v45 = vsub.f32 %v14642_v55, %v5965_v37  ;;  %5599 = vadd.xlane.f32.xlu0 %v5598_v56  ;;  %v5607_v56 = vsel %vm3317_vm8, %v8626_v23, 0.0 }
 0x66c   : > { %v8630_v33 = vpop.eup %8629  ;;  %6560 = vst.msk [vmem:[%s11925_s16 + $0x550] sm:$0xff] %vm3317_vm8, %v6304_v3  ;;  %v5967_v54 = vmul.f32 0.6931472, %v8628_v4  ;;  %v5390_v5 = vpop.xlane.xlu0 %5389  ;;  %5602 = vadd.xlane.f32.xlu1 %v5601_v46 }
 0x66d   : > { %v8632_v32 = vpop.eup %8631  ;;  %6561 = vst.msk [vmem:[%s11925_s16 + $0x558] sm:$0xff] %vm3317_vm8, %v6305_v45  ;;  %v5969_v19 = vmul.f32 0.6931472, %v8630_v33  ;;  %8647 = vlog2.f32 %v5390_v5  ;;  %v5393_v20 = vpop.xlane.xlu1 %5392  ;;  %v14645_v5 = vld [vmem:[#allocation45_spill] sm:$0xff] }
 0x66e   : > { %v8634_v15 = vpop.eup %8633  ;;  %v6306_v37 = vsub.f32 %v14643_v0, %v5967_v54  ;;  %8649 = vlog2.f32 %v5393_v20  ;;  %v5610_v23 = vsel %vm3317_vm8, %v8632_v32, 0.0  ;;  %v14646_v0 = vld [vmem:[#allocation200_spill] sm:$0xff] }
 0x66f   : > { %v8636_v39 = vpop.eup %8635  ;;  %v6307_v3 = vsub.f32 %v14644_v36, %v5969_v19  ;;  %5605 = vadd.xlane.f32.xlu0 %v5604_v7  ;;  %v5613_v7 = vsel %vm3317_vm8, %v8634_v15, 0.0  ;;  %v14647_v15 = vld [vmem:[#allocation215_spill] sm:$0xff] }
 0x670   : > { %v8638_v4 = vpop.eup %8637  ;;  %6562 = vst.msk [vmem:[%s11925_s16 + $0x560] sm:$0xff] %vm3317_vm8, %v6306_v37  ;;  %v5971_v55 = vmul.f32 0.6931472, %v8636_v39  ;;  %v5396_v45 = vpop.xlane.xlu0 %5395  ;;  %5608 = vadd.xlane.f32.xlu1 %v5607_v56 }
 0x671   : > { %v8640_v46 = vpop.eup %8639  ;;  %6563 = vst.msk [vmem:[%s11925_s16 + $0x568] sm:$0xff] %vm3317_vm8, %v6307_v3  ;;  %v5973_v33 = vmul.f32 0.6931472, %v8638_v4  ;;  %8651 = vlog2.f32 %v5396_v45  ;;  %v5399_v53 = vpop.xlane.xlu1 %5398 }
 0x672   : > { %v8642_v54 = vpop.eup %8641  ;;  %v6308_v19 = vsub.f32 %v14645_v5, %v5971_v55  ;;  %8653 = vlog2.f32 %v5399_v53  ;;  %v5616_v55 = vsel %vm3317_vm8, %v8640_v46, 0.0  ;;  %v14648_v46 = vld [vmem:[#allocation51_spill] sm:$0xff] }
 0x673   : > { %v8644_v20 = vpop.eup %8643  ;;  %v6309_v37 = vsub.f32 %v14646_v0, %v5973_v33  ;;  %5611 = vadd.xlane.f32.xlu0 %v5610_v23  ;;  %v5619_v53 = vsel %vm3317_vm8, %v8642_v54, 0.0 }
 0x674   : > { %v8646_v39 = vpop.eup %8645  ;;  %6564 = vst.msk [vmem:[%s11925_s16 + $0x570] sm:$0xff] %vm3317_vm8, %v6308_v19  ;;  %v5975_v36 = vmul.f32 0.6931472, %v8644_v20  ;;  %v5402_v3 = vpop.xlane.xlu0 %5401  ;;  %5614 = vadd.xlane.f32.xlu1 %v5613_v7  ;;  %v14649_v7 = vld [vmem:[#allocation216_spill] sm:$0xff] }
 0x675   : > { %6565 = vst.msk [vmem:[%s11925_s16 + $0x578] sm:$0xff] %vm3317_vm8, %v6309_v37  ;;  %v5977_v56 = vmul.f32 0.6931472, %v8646_v39  ;;  %8655 = vlog2.f32 %v5402_v3  ;;  %v5405_v4 = vpop.xlane.xlu1 %5404 }
 0x676   : > { %v6310_v32 = vsub.f32 %v14523_v22, %v5975_v36  ;;  %8657 = vlog2.f32 %v5405_v4 }
 0x677   : > { %v8648_v45 = vpop.eup %8647  ;;  %v6311_v33 = vsub.f32 %v14647_v15, %v5977_v56  ;;  %5617 = vadd.xlane.f32.xlu0 %v5616_v55 }
 0x678   : > { %v8650_v5 = vpop.eup %8649  ;;  %6566 = vst.msk [vmem:[%s11925_s16 + $0x580] sm:$0xff] %vm3317_vm8, %v6310_v32  ;;  %v5979_v19 = vmul.f32 0.6931472, %v8648_v45  ;;  %v5408_v23 = vpop.xlane.xlu0 %5407  ;;  %5620 = vadd.xlane.f32.xlu1 %v5619_v53  ;;  %v14650_v45 = vld [vmem:[#allocation138_spill] sm:$0xff] }
 0x679   : > { %6567 = vst.msk [vmem:[%s11925_s16 + $0x588] sm:$0xff] %vm3317_vm8, %v6311_v33  ;;  %v5981_v22 = vmul.f32 0.6931472, %v8650_v5  ;;  %8659 = vlog2.f32 %v5408_v23  ;;  %v5411_v20 = vpop.xlane.xlu1 %5410 }
 0x67a   : > { %v6312_v0 = vsub.f32 %v14648_v46, %v5979_v19  ;;  %8661 = vlog2.f32 %v5411_v20 }
 0x67b   : > { %v8652_v37 = vpop.eup %8651  ;;  %v6313_v39 = vsub.f32 %v14649_v7, %v5981_v22 }
 0x67c   : > { %v8654_v54 = vpop.eup %8653  ;;  %6568 = vst.msk [vmem:[%s11925_s16 + $0x590] sm:$0xff] %vm3317_vm8, %v6312_v0  ;;  %v5983_v36 = vmul.f32 0.6931472, %v8652_v37  ;;  %v5414_v3 = vpop.xlane.xlu0 %5413 }
 0x67d   : > { %6569 = vst.msk [vmem:[%s11925_s16 + $0x598] sm:$0xff] %vm3317_vm8, %v6313_v39  ;;  %v5985_v56 = vmul.f32 0.6931472, %v8654_v54  ;;  %8663 = vlog2.f32 %v5414_v3  ;;  %v5417_v4 = vpop.xlane.xlu1 %5416 }
 0x67e   : > { %v6314_v32 = vsub.f32 %v14530_v12, %v5983_v36  ;;  %8665 = vlog2.f32 %v5417_v4  ;;  %v14651_v36 = vld [vmem:[#allocation121_spill] sm:$0xff] }
 0x67f   : > { %v8656_v55 = vpop.eup %8655  ;;  %v6315_v15 = vsub.f32 %v14650_v45, %v5985_v56  ;;  %v14652_v45 = vld [vmem:[#allocation122_spill] sm:$0xff] }
 0x680   : > { %v8658_v33 = vpop.eup %8657  ;;  %6570 = vst.msk [vmem:[%s11925_s16 + $0x5a0] sm:$0xff] %vm3317_vm8, %v6314_v32  ;;  %v5987_v53 = vmul.f32 0.6931472, %v8656_v55  ;;  %v5420_v5 = vpop.xlane.xlu0 %5419 }
 0x681   : > { %6571 = vst.msk [vmem:[%s11925_s16 + $0x5a8] sm:$0xff] %vm3317_vm8, %v6315_v15  ;;  %v5989_v19 = vmul.f32 0.6931472, %v8658_v33  ;;  %8667 = vlog2.f32 %v5420_v5  ;;  %v5423_v23 = vpop.xlane.xlu1 %5422  ;;  %v14653_v33 = vld [vmem:[#allocation123_spill] sm:$0xff] }
 0x682   : > { %v6316_v22 = vsub.f32 %v14533_v58, %v5987_v53  ;;  %8669 = vlog2.f32 %v5423_v23 }
 0x683   : > { %v8660_v12 = vpop.eup %8659  ;;  %v6317_v20 = vsub.f32 %v14535_v34, %v5989_v19 }
 0x684   : > { %v8662_v46 = vpop.eup %8661  ;;  %6572 = vst.msk [vmem:[%s11925_s16 + $0x5b0] sm:$0xff] %vm3317_vm8, %v6316_v22  ;;  %v5991_v0 = vmul.f32 0.6931472, %v8660_v12  ;;  %v5426_v37 = vpop.xlane.xlu0 %5425 }
 0x685   : > { %6573 = vst.msk [vmem:[%s11925_s16 + $0x5b8] sm:$0xff] %vm3317_vm8, %v6317_v20  ;;  %v5993_v7 = vmul.f32 0.6931472, %v8662_v46  ;;  %8671 = vlog2.f32 %v5426_v37  ;;  %v5429_v39 = vpop.xlane.xlu1 %5428 }
 0x686   : > { %v6318_v54 = vsub.f32 %v14536_v49, %v5991_v0  ;;  %8673 = vlog2.f32 %v5429_v39  ;;  %v14654_v0 = vld [vmem:[#allocation125_spill] sm:$0xff] }
 0x687   : > { %v8664_v58 = vpop.eup %8663  ;;  %v6319_v3 = vsub.f32 %v14651_v36, %v5993_v7 }
 0x688   : > { %v8666_v56 = vpop.eup %8665  ;;  %6574 = vst.msk [vmem:[%s11925_s16 + $0x5c0] sm:$0xff] %vm3317_vm8, %v6318_v54  ;;  %v5995_v34 = vmul.f32 0.6931472, %v8664_v58  ;;  %v5432_v4 = vpop.xlane.xlu0 %5431 }
 0x689   : > { %6575 = vst.msk [vmem:[%s11925_s16 + $0x5c8] sm:$0xff] %vm3317_vm8, %v6319_v3  ;;  %v5997_v32 = vmul.f32 0.6931472, %v8666_v56  ;;  %8675 = vlog2.f32 %v5432_v4  ;;  %v5435_v55 = vpop.xlane.xlu1 %5434  ;;  %v14655_v56 = vld [vmem:[#allocation77_spill] sm:$0xff] }
 0x68a   : > { %v6320_v15 = vsub.f32 %v14652_v45, %v5995_v34  ;;  %8677 = vlog2.f32 %v5435_v55 }
 0x68b   : > { %v8668_v49 = vpop.eup %8667  ;;  %v6321_v53 = vsub.f32 %v14653_v33, %v5997_v32  ;;  %v14656_v33 = vld [vmem:[#allocation129_spill] sm:$0xff] }
 0x68c   : > { %v8670_v5 = vpop.eup %8669  ;;  %6576 = vst.msk [vmem:[%s11925_s16 + $0x5d0] sm:$0xff] %vm3317_vm8, %v6320_v15  ;;  %v5999_v19 = vmul.f32 0.6931472, %v8668_v49  ;;  %v5438_v23 = vpop.xlane.xlu0 %5437 }
 0x68d   : > { %6577 = vst.msk [vmem:[%s11925_s16 + $0x5d8] sm:$0xff] %vm3317_vm8, %v6321_v53  ;;  %v6001_v22 = vmul.f32 0.6931472, %v8670_v5  ;;  %8679 = vlog2.f32 %v5438_v23  ;;  %v5441_v12 = vpop.xlane.xlu1 %5440 }
 0x68e   : > { %v6322_v20 = vsub.f32 %v14542_v57, %v5999_v19  ;;  %8681 = vlog2.f32 %v5441_v12 }
 0x68f   : > { %v8672_v46 = vpop.eup %8671  ;;  %v6323_v37 = vsub.f32 %v14654_v0, %v6001_v22 }
 0x690   : > { %v8674_v7 = vpop.eup %8673  ;;  %6578 = vst.msk [vmem:[%s11925_s16 + $0x5e0] sm:$0xff] %vm3317_vm8, %v6322_v20  ;;  %v6003_v39 = vmul.f32 0.6931472, %v8672_v46  ;;  %v5444_v54 = vpop.xlane.xlu0 %5443 }
 0x691   : > { %6579 = vst.msk [vmem:[%s11925_s16 + $0x5e8] sm:$0xff] %vm3317_vm8, %v6323_v37  ;;  %v6005_v58 = vmul.f32 0.6931472, %v8674_v7  ;;  %8683 = vlog2.f32 %v5444_v54  ;;  %v5447_v36 = vpop.xlane.xlu1 %5446 }
 0x692   : > { %v6324_v3 = vsub.f32 %v14545_v10, %v6003_v39  ;;  %8685 = vlog2.f32 %v5447_v36  ;;  %v14657_v36 = vld [vmem:[#allocation133_spill] sm:$0xff] }
 0x693   : > { %v8676_v57 = vpop.eup %8675  ;;  %v6325_v34 = vsub.f32 %v14655_v56, %v6005_v58 }
 0x694   : > { %v8678_v4 = vpop.eup %8677  ;;  %6580 = vst.msk [vmem:[%s11925_s16 + $0x5f0] sm:$0xff] %vm3317_vm8, %v6324_v3  ;;  %v6007_v32 = vmul.f32 0.6931472, %v8676_v57  ;;  %v5450_v55 = vpop.xlane.xlu0 %5449 }
 0x695   : > { %6581 = vst.msk [vmem:[%s11925_s16 + $0x5f8] sm:$0xff] %vm3317_vm8, %v6325_v34  ;;  %v6009_v45 = vmul.f32 0.6931472, %v8678_v4  ;;  %8687 = vlog2.f32 %v5450_v55  ;;  %v5453_v15 = vpop.xlane.xlu1 %5452  ;;  %v14658_v55 = vld [vmem:[#allocation63_spill] sm:$0xff] }
 0x696   : > { %v6326_v49 = vsub.f32 %v14548_v63, %v6007_v32  ;;  %8689 = vlog2.f32 %v5453_v15 }
 0x697   : > { %v8680_v10 = vpop.eup %8679  ;;  %v6327_v53 = vsub.f32 %v14656_v33, %v6009_v45 }
 0x698   : > { %v8682_v5 = vpop.eup %8681  ;;  %6582 = vst.msk [vmem:[%s11925_s16 + $0x600] sm:$0xff] %vm3317_vm8, %v6326_v49  ;;  %v6011_v19 = vmul.f32 0.6931472, %v8680_v10  ;;  %v5456_v23 = vpop.xlane.xlu0 %5455 }
 0x699   : > { %6583 = vst.msk [vmem:[%s11925_s16 + $0x608] sm:$0xff] %vm3317_vm8, %v6327_v53  ;;  %v6013_v22 = vmul.f32 0.6931472, %v8682_v5  ;;  %8691 = vlog2.f32 %v5456_v23  ;;  %v5459_v12 = vpop.xlane.xlu1 %5458  ;;  %v14659_v5 = vld [vmem:[#allocation135_spill] sm:$0xff]  ;;  %v14660_v23 = vld [vmem:[#allocation65_spill] sm:$0xff] }
 0x69a   : > { %v6328_v20 = vsub.f32 %v14551_v44, %v6011_v19  ;;  %8693 = vlog2.f32 %v5459_v12 }
 0x69b   : > { %v8684_v63 = vpop.eup %8683  ;;  %v6329_v46 = vsub.f32 %v14553_v31, %v6013_v22 }
 0x69c   : > { %v8686_v0 = vpop.eup %8685  ;;  %6584 = vst.msk [vmem:[%s11925_s16 + $0x610] sm:$0xff] %vm3317_vm8, %v6328_v20  ;;  %v6015_v37 = vmul.f32 0.6931472, %v8684_v63  ;;  %v5462_v7 = vpop.xlane.xlu0 %5461 }
 0x69d   : > { %6585 = vst.msk [vmem:[%s11925_s16 + $0x618] sm:$0xff] %vm3317_vm8, %v6329_v46  ;;  %v6017_v39 = vmul.f32 0.6931472, %v8686_v0  ;;  %8695 = vlog2.f32 %v5462_v7  ;;  %v5465_v54 = vpop.xlane.xlu1 %5464 }
 0x69e   : > { %v6330_v58 = vsub.f32 %v14554_v16, %v6015_v37  ;;  %8697 = vlog2.f32 %v5465_v54 }
 0x69f   : > { %v8688_v44 = vpop.eup %8687  ;;  %v6331_v3 = vsub.f32 %v14657_v36, %v6017_v39  ;;  %v14661_v39 = vld [vmem:[#allocation139_spill] sm:$0xff] }
 0x6a0   : > { %v8690_v57 = vpop.eup %8689  ;;  %6586 = vst.msk [vmem:[%s11925_s16 + $0x620] sm:$0xff] %vm3317_vm8, %v6330_v58  ;;  %v6019_v31 = vmul.f32 0.6931472, %v8688_v44  ;;  %v5468_v56 = vpop.xlane.xlu0 %5467 }
 0x6a1   : > { %6587 = vst.msk [vmem:[%s11925_s16 + $0x628] sm:$0xff] %vm3317_vm8, %v6331_v3  ;;  %v6021_v34 = vmul.f32 0.6931472, %v8690_v57  ;;  %8699 = vlog2.f32 %v5468_v56  ;;  %v5471_v4 = vpop.xlane.xlu1 %5470 }
 0x6a2   : > { %v6332_v32 = vsub.f32 %v14556_v21, %v6019_v31  ;;  %8701 = vlog2.f32 %v5471_v4  ;;  %v14662_v31 = vld [vmem:[#allocation92_spill] sm:$0xff] }
 0x6a3   : > { %v8692_v16 = vpop.eup %8691  ;;  %v6333_v45 = vsub.f32 %v14658_v55, %v6021_v34  ;;  %v14663_v34 = vld [vmem:[#allocation93_spill] sm:$0xff] }
 0x6a4   : > { %v8694_v15 = vpop.eup %8693  ;;  %6588 = vst.msk [vmem:[%s11925_s16 + $0x630] sm:$0xff] %vm3317_vm8, %v6332_v32  ;;  %v6023_v49 = vmul.f32 0.6931472, %v8692_v16  ;;  %v5474_v10 = vpop.xlane.xlu0 %5473 }
 0x6a5   : > { %6589 = vst.msk [vmem:[%s11925_s16 + $0x638] sm:$0xff] %vm3317_vm8, %v6333_v45  ;;  %v6025_v33 = vmul.f32 0.6931472, %v8694_v15  ;;  %8703 = vlog2.f32 %v5474_v10  ;;  %v5477_v53 = vpop.xlane.xlu1 %5476 }
 0x6a6   : > { %v6334_v19 = vsub.f32 %v14659_v5, %v6023_v49  ;;  %8705 = vlog2.f32 %v5477_v53 }
 0x6a7   : > { %v8696_v21 = vpop.eup %8695  ;;  %v6335_v22 = vsub.f32 %v14660_v23, %v6025_v33  ;;  %v14664_v33 = vld [vmem:[#allocation8_spill] sm:$0xff] }
 0x6a8   : > { %v8698_v12 = vpop.eup %8697  ;;  %6590 = vst.msk [vmem:[%s11925_s16 + $0x640] sm:$0xff] %vm3317_vm8, %v6334_v19  ;;  %v6027_v20 = vmul.f32 0.6931472, %v8696_v21  ;;  %v5480_v63 = vpop.xlane.xlu0 %5479 }
 0x6a9   : > { %6591 = vst.msk [vmem:[%s11925_s16 + $0x648] sm:$0xff] %vm3317_vm8, %v6335_v22  ;;  %v6029_v46 = vmul.f32 0.6931472, %v8698_v12  ;;  %8707 = vlog2.f32 %v5480_v63  ;;  %v5483_v0 = vpop.xlane.xlu1 %5482 }
 0x6aa   : > { %v6336_v37 = vsub.f32 %v14563_v24, %v6027_v20  ;;  %8709 = vlog2.f32 %v5483_v0 }
 0x6ab   : > { %v8700_v7 = vpop.eup %8699  ;;  %v6337_v54 = vsub.f32 %v14661_v39, %v6029_v46 }
 0x6ac   : > { %v8702_v58 = vpop.eup %8701  ;;  %6592 = vst.msk [vmem:[%s11925_s16 + $0x650] sm:$0xff] %vm3317_vm8, %v6336_v37  ;;  %v6031_v44 = vmul.f32 0.6931472, %v8700_v7  ;;  %v5486_v36 = vpop.xlane.xlu0 %5485 }
 0x6ad   : > { %6593 = vst.msk [vmem:[%s11925_s16 + $0x658] sm:$0xff] %vm3317_vm8, %v6337_v54  ;;  %v6033_v3 = vmul.f32 0.6931472, %v8702_v58  ;;  %8711 = vlog2.f32 %v5486_v36  ;;  %v5489_v57 = vpop.xlane.xlu1 %5488 }
 0x6ae   : > { %v6338_v56 = vsub.f32 %v14662_v31, %v6031_v44  ;;  %8713 = vlog2.f32 %v5489_v57 }
 0x6af   : > { %v8704_v24 = vpop.eup %8703  ;;  %v6339_v4 = vsub.f32 %v14663_v34, %v6033_v3 }
 0x6b0   : > { %v8706_v32 = vpop.eup %8705  ;;  %6594 = vst.msk [vmem:[%s11925_s16 + $0x660] sm:$0xff] %vm3317_vm8, %v6338_v56  ;;  %v6035_v16 = vmul.f32 0.6931472, %v8704_v24  ;;  %v5492_v55 = vpop.xlane.xlu0 %5491 }
 0x6b1   : > { %6595 = vst.msk [vmem:[%s11925_s16 + $0x668] sm:$0xff] %vm3317_vm8, %v6339_v4  ;;  %v6037_v45 = vmul.f32 0.6931472, %v8706_v32  ;;  %8715 = vlog2.f32 %v5492_v55  ;;  %v5495_v15 = vpop.xlane.xlu1 %5494 }
 0x6b2   : > { %v6340_v49 = vsub.f32 %v14570_v26, %v6035_v16  ;;  %8717 = vlog2.f32 %v5495_v15 }
 0x6b3   : > { %v8708_v10 = vpop.eup %8707  ;;  %v6341_v53 = vsub.f32 %v14664_v33, %v6037_v45 }
 0x6b4   : > { %v8710_v5 = vpop.eup %8709  ;;  %6596 = vst.msk [vmem:[%s11925_s16 + $0x670] sm:$0xff] %vm3317_vm8, %v6340_v49  ;;  %v6039_v19 = vmul.f32 0.6931472, %v8708_v10  ;;  %v5498_v21 = vpop.xlane.xlu0 %5497 }
 0x6b5   : > { %6597 = vst.msk [vmem:[%s11925_s16 + $0x678] sm:$0xff] %vm3317_vm8, %v6341_v53  ;;  %v6041_v23 = vmul.f32 0.6931472, %v8710_v5  ;;  %8719 = vlog2.f32 %v5498_v21  ;;  %v5501_v22 = vpop.xlane.xlu1 %5500 }
 0x6b6   : > { %v6342_v12 = vsub.f32 %v14573_v35, %v6039_v19  ;;  %8721 = vlog2.f32 %v5501_v22 }
 0x6b7   : > { %v8712_v26 = vpop.eup %8711  ;;  %v6343_v20 = vsub.f32 %v14575_v25, %v6041_v23 }
 0x6b8   : > { %v8714_v63 = vpop.eup %8713  ;;  %6598 = vst.msk [vmem:[%s11925_s16 + $0x680] sm:$0xff] %vm3317_vm8, %v6342_v12  ;;  %v6043_v46 = vmul.f32 0.6931472, %v8712_v26  ;;  %v5504_v0 = vpop.xlane.xlu0 %5503 }
 0x6b9   : > { %6599 = vst.msk [vmem:[%s11925_s16 + $0x688] sm:$0xff] %vm3317_vm8, %v6343_v20  ;;  %v6045_v37 = vmul.f32 0.6931472, %v8714_v63  ;;  %8723 = vlog2.f32 %v5504_v0  ;;  %v5507_v7 = vpop.xlane.xlu1 %5506 }
 0x6ba   : > { %v6344_v39 = vsub.f32 %v14576_v17, %v6043_v46  ;;  %8725 = vlog2.f32 %v5507_v7 }
 0x6bb   : > { %v8716_v35 = vpop.eup %8715  ;;  %v6345_v54 = vsub.f32 %v14577_v38, %v6045_v37 }
 0x6bc   : > { %v8718_v58 = vpop.eup %8717  ;;  %6600 = vst.msk [vmem:[%s11925_s16 + $0x690] sm:$0xff] %vm3317_vm8, %v6344_v39  ;;  %v6047_v25 = vmul.f32 0.6931472, %v8716_v35  ;;  %v5510_v44 = vpop.xlane.xlu0 %5509 }
 0x6bd   : > { %6601 = vst.msk [vmem:[%s11925_s16 + $0x698] sm:$0xff] %vm3317_vm8, %v6345_v54  ;;  %v6049_v36 = vmul.f32 0.6931472, %v8718_v58  ;;  %8727 = vlog2.f32 %v5510_v44  ;;  %v5513_v3 = vpop.xlane.xlu1 %5512 }
 0x6be   : > { %v6346_v57 = vsub.f32 %v14578_v50, %v6047_v25  ;;  %8729 = vlog2.f32 %v5513_v3 }
 0x6bf   : > { %v8720_v17 = vpop.eup %8719  ;;  %v6347_v31 = vsub.f32 %v14579_v11, %v6049_v36 }
 0x6c0   : > { %v8722_v56 = vpop.eup %8721  ;;  %6602 = vst.msk [vmem:[%s11925_s16 + $0x6a0] sm:$0xff] %vm3317_vm8, %v6346_v57  ;;  %v6051_v38 = vmul.f32 0.6931472, %v8720_v17  ;;  %v5516_v24 = vpop.xlane.xlu0 %5515 }
 0x6c1   : > { %6603 = vst.msk [vmem:[%s11925_s16 + $0x6a8] sm:$0xff] %vm3317_vm8, %v6347_v31  ;;  %v6053_v34 = vmul.f32 0.6931472, %v8722_v56  ;;  %8731 = vlog2.f32 %v5516_v24  ;;  %v5519_v4 = vpop.xlane.xlu1 %5518 }
 0x6c2   : > { %v6348_v32 = vsub.f32 %v14580_v51, %v6051_v38  ;;  %8733 = vlog2.f32 %v5519_v4 }
 0x6c3   : > { %v8724_v50 = vpop.eup %8723  ;;  %v6349_v16 = vsub.f32 %v14581_v6, %v6053_v34 }
 0x6c4   : > { %v8726_v55 = vpop.eup %8725  ;;  %6604 = vst.msk [vmem:[%s11925_s16 + $0x6b0] sm:$0xff] %vm3317_vm8, %v6348_v32  ;;  %v6055_v11 = vmul.f32 0.6931472, %v8724_v50  ;;  %v5522_v45 = vpop.xlane.xlu0 %5521 }
 0x6c5   : > { %6605 = vst.msk [vmem:[%s11925_s16 + $0x6b8] sm:$0xff] %vm3317_vm8, %v6349_v16  ;;  %v6057_v15 = vmul.f32 0.6931472, %v8726_v55  ;;  %8735 = vlog2.f32 %v5522_v45  ;;  %v5525_v49 = vpop.xlane.xlu1 %5524 }
 0x6c6   : > { %v6350_v10 = vsub.f32 %v14582_v61, %v6055_v11  ;;  %8737 = vlog2.f32 %v5525_v49 }
 0x6c7   : > { %v8728_v51 = vpop.eup %8727  ;;  %v6351_v33 = vsub.f32 %v14583_v28, %v6057_v15 }
 0x6c8   : > { %v8730_v53 = vpop.eup %8729  ;;  %6606 = vst.msk [vmem:[%s11925_s16 + $0x6c0] sm:$0xff] %vm3317_vm8, %v6350_v10  ;;  %v6059_v6 = vmul.f32 0.6931472, %v8728_v51  ;;  %v5528_v5 = vpop.xlane.xlu0 %5527 }
 0x6c9   : > { %6607 = vst.msk [vmem:[%s11925_s16 + $0x6c8] sm:$0xff] %vm3317_vm8, %v6351_v33  ;;  %v6061_v19 = vmul.f32 0.6931472, %v8730_v53  ;;  %8739 = vlog2.f32 %v5528_v5  ;;  %v5531_v21 = vpop.xlane.xlu1 %5530 }
 0x6ca   : > { %v6352_v23 = vsub.f32 %v14584_v2, %v6059_v6  ;;  %8741 = vlog2.f32 %v5531_v21 }
 0x6cb   : > { %v8732_v61 = vpop.eup %8731  ;;  %v6353_v22 = vsub.f32 %v14585_v8, %v6061_v19 }
 0x6cc   : > { %v8734_v12 = vpop.eup %8733  ;;  %6608 = vst.msk [vmem:[%s11925_s16 + $0x6d0] sm:$0xff] %vm3317_vm8, %v6352_v23  ;;  %v6063_v28 = vmul.f32 0.6931472, %v8732_v61  ;;  %v5534_v26 = vpop.xlane.xlu0 %5533 }
 0x6cd   : > { %6609 = vst.msk [vmem:[%s11925_s16 + $0x6d8] sm:$0xff] %vm3317_vm8, %v6353_v22  ;;  %v6065_v20 = vmul.f32 0.6931472, %v8734_v12  ;;  %8743 = vlog2.f32 %v5534_v26  ;;  %v5537_v63 = vpop.xlane.xlu1 %5536 }
 0x6ce   : > { %v6354_v46 = vsub.f32 %v14586_v13, %v6063_v28  ;;  %8745 = vlog2.f32 %v5537_v63  ;;  %v14665_v63 = vld [vmem:[#allocation30_spill] sm:$0xff] }
 0x6cf   : > { %v8736_v2 = vpop.eup %8735  ;;  %v6355_v0 = vsub.f32 %v14587_v9, %v6065_v20 }
 0x6d0   : > { %v8738_v37 = vpop.eup %8737  ;;  %6610 = vst.msk [vmem:[%s11925_s16 + $0x6e0] sm:$0xff] %vm3317_vm8, %v6354_v46  ;;  %v6067_v8 = vmul.f32 0.6931472, %v8736_v2  ;;  %v5540_v7 = vpop.xlane.xlu0 %5539 }
 0x6d1   : > { %6611 = vst.msk [vmem:[%s11925_s16 + $0x6e8] sm:$0xff] %vm3317_vm8, %v6355_v0  ;;  %v6069_v39 = vmul.f32 0.6931472, %v8738_v37  ;;  %8747 = vlog2.f32 %v5540_v7  ;;  %v5543_v35 = vpop.xlane.xlu1 %5542 }
 0x6d2   : > { %v6356_v54 = vsub.f32 %v14588_v47, %v6067_v8  ;;  %8749 = vlog2.f32 %v5543_v35 }
 0x6d3   : > { %v8740_v13 = vpop.eup %8739  ;;  %v6357_v58 = vsub.f32 %v14589_v52, %v6069_v39 }
 0x6d4   : > { %v8742_v25 = vpop.eup %8741  ;;  %6612 = vst.msk [vmem:[%s11925_s16 + $0x6f0] sm:$0xff] %vm3317_vm8, %v6356_v54  ;;  %v6071_v9 = vmul.f32 0.6931472, %v8740_v13  ;;  %v5546_v44 = vpop.xlane.xlu0 %5545 }
 0x6d5   : > { %6613 = vst.msk [vmem:[%s11925_s16 + $0x6f8] sm:$0xff] %vm3317_vm8, %v6357_v58  ;;  %v6073_v36 = vmul.f32 0.6931472, %v8742_v25  ;;  %8751 = vlog2.f32 %v5546_v44  ;;  %v5549_v3 = vpop.xlane.xlu1 %5548 }
 0x6d6   : > { %v6358_v57 = vsub.f32 %v14590_v41, %v6071_v9  ;;  %8753 = vlog2.f32 %v5549_v3  ;;  %v14666_v9 = vld [vmem:[#allocation173_spill] sm:$0xff] }
 0x6d7   : > { %v8744_v47 = vpop.eup %8743  ;;  %v6359_v17 = vsub.f32 %v14591_v43, %v6073_v36  ;;  %v14667_v36 = vld [vmem:[#allocation175_spill] sm:$0xff] }
 0x6d8   : > { %v8746_v31 = vpop.eup %8745  ;;  %6614 = vst.msk [vmem:[%s11925_s16 + $0x700] sm:$0xff] %vm3317_vm8, %v6358_v57  ;;  %v6075_v52 = vmul.f32 0.6931472, %v8744_v47  ;;  %v5552_v56 = vpop.xlane.xlu0 %5551 }
 0x6d9   : > { %6615 = vst.msk [vmem:[%s11925_s16 + $0x708] sm:$0xff] %vm3317_vm8, %v6359_v17  ;;  %v6077_v38 = vmul.f32 0.6931472, %v8746_v31  ;;  %8755 = vlog2.f32 %v5552_v56  ;;  %v5555_v24 = vpop.xlane.xlu1 %5554 }
 0x6da   : > { %v6360_v34 = vsub.f32 %v14592_v48, %v6075_v52  ;;  %8757 = vlog2.f32 %v5555_v24  ;;  %v14668_v52 = vld [vmem:[#allocation42_spill] sm:$0xff]  ;;  %v14669_v24 = vld [vmem:[#allocation36_spill] sm:$0xff] }
 0x6db   : > { %v8748_v41 = vpop.eup %8747  ;;  %v6361_v4 = vsub.f32 %v14593_v29, %v6077_v38 }
 0x6dc   : > { %v8750_v32 = vpop.eup %8749  ;;  %6616 = vst.msk [vmem:[%s11925_s16 + $0x710] sm:$0xff] %vm3317_vm8, %v6360_v34  ;;  %v6079_v43 = vmul.f32 0.6931472, %v8748_v41  ;;  %v5558_v50 = vpop.xlane.xlu0 %5557 }
 0x6dd   : > { %6617 = vst.msk [vmem:[%s11925_s16 + $0x718] sm:$0xff] %vm3317_vm8, %v6361_v4  ;;  %v6081_v16 = vmul.f32 0.6931472, %v8750_v32  ;;  %8759 = vlog2.f32 %v5558_v50  ;;  %v5561_v55 = vpop.xlane.xlu1 %5560 }
 0x6de   : > { %v6362_v11 = vsub.f32 %v14594_v42, %v6079_v43  ;;  %8761 = vlog2.f32 %v5561_v55 }
 0x6df   : > { %v8752_v48 = vpop.eup %8751  ;;  %v6363_v45 = vsub.f32 %v14595_v30, %v6081_v16  ;;  %v14670_v16 = vld [vmem:[#allocation35_spill] sm:$0xff] }
 0x6e0   : > { %v8754_v15 = vpop.eup %8753  ;;  %6618 = vst.msk [vmem:[%s11925_s16 + $0x720] sm:$0xff] %vm3317_vm8, %v6362_v11  ;;  %v6083_v29 = vmul.f32 0.6931472, %v8752_v48  ;;  %v5564_v49 = vpop.xlane.xlu0 %5563  ;;  %v14671_v48 = vld [vmem:[#allocation218_spill] sm:$0xff] }
 0x6e1   : > { %6619 = vst.msk [vmem:[%s11925_s16 + $0x728] sm:$0xff] %vm3317_vm8, %v6363_v45  ;;  %v6085_v10 = vmul.f32 0.6931472, %v8754_v15  ;;  %8763 = vlog2.f32 %v5564_v49  ;;  %v5567_v51 = vpop.xlane.xlu1 %5566 }
 0x6e2   : > { %v6364_v33 = vsub.f32 %v14596_v14, %v6083_v29  ;;  %8765 = vlog2.f32 %v5567_v51 }
 0x6e3   : > { %v8756_v42 = vpop.eup %8755  ;;  %v6365_v53 = vsub.f32 %v14597_v60, %v6085_v10 }
 0x6e4   : > { %v8758_v6 = vpop.eup %8757  ;;  %6620 = vst.msk [vmem:[%s11925_s16 + $0x730] sm:$0xff] %vm3317_vm8, %v6364_v33  ;;  %v6087_v30 = vmul.f32 0.6931472, %v8756_v42  ;;  %v5570_v5 = vpop.xlane.xlu0 %5569  ;;  %v14672_v33 = vld [vmem:[#allocation219_spill] sm:$0xff] }
 0x6e5   : > { %6621 = vst.msk [vmem:[%s11925_s16 + $0x738] sm:$0xff] %vm3317_vm8, %v6365_v53  ;;  %v6089_v19 = vmul.f32 0.6931472, %v8758_v6  ;;  %8767 = vlog2.f32 %v5570_v5  ;;  %v5573_v21 = vpop.xlane.xlu1 %5572  ;;  %v14673_v6 = vld [vmem:[#allocation202_spill] sm:$0xff] }
 0x6e6   : > { %v6366_v23 = vsub.f32 %v14598_v59, %v6087_v30  ;;  %8769 = vlog2.f32 %v5573_v21 }
 0x6e7   : > { %v8760_v14 = vpop.eup %8759  ;;  %v6367_v61 = vsub.f32 %v14599_v1, %v6089_v19 }
 0x6e8   : > { %v8762_v22 = vpop.eup %8761  ;;  %6622 = vst.msk [vmem:[%s11925_s16 + $0x740] sm:$0xff] %vm3317_vm8, %v6366_v23  ;;  %v6091_v60 = vmul.f32 0.6931472, %v8760_v14  ;;  %v5576_v12 = vpop.xlane.xlu0 %5575 }
 0x6e9   : > { %6623 = vst.msk [vmem:[%s11925_s16 + $0x748] sm:$0xff] %vm3317_vm8, %v6367_v61  ;;  %v6093_v28 = vmul.f32 0.6931472, %v8762_v22  ;;  %8771 = vlog2.f32 %v5576_v12  ;;  %v5579_v26 = vpop.xlane.xlu1 %5578  ;;  %v14674_v61 = vld [vmem:[#allocation49_spill] sm:$0xff]  ;;  %v14675_v12 = vld [vmem:[#allocation204_spill] sm:$0xff] }
 0x6ea   : > { %v6368_v20 = vsub.f32 %v14600_v18, %v6091_v60  ;;  %8773 = vlog2.f32 %v5579_v26 }
 0x6eb   : > { %v8764_v59 = vpop.eup %8763  ;;  %v6369_v46 = vsub.f32 %v14665_v63, %v6093_v28 }
 0x6ec   : > { %v8766_v2 = vpop.eup %8765  ;;  %6624 = vst.msk [vmem:[%s11925_s16 + $0x750] sm:$0xff] %vm3317_vm8, %v6368_v20  ;;  %v6095_v1 = vmul.f32 0.6931472, %v8764_v59  ;;  %v5582_v0 = vpop.xlane.xlu0 %5581 }
 0x6ed   : > { %6625 = vst.msk [vmem:[%s11925_s16 + $0x758] sm:$0xff] %vm3317_vm8, %v6369_v46  ;;  %v6097_v37 = vmul.f32 0.6931472, %v8766_v2  ;;  %8775 = vlog2.f32 %v5582_v0  ;;  %v5585_v8 = vpop.xlane.xlu1 %5584  ;;  %v14676_v2 = vld [vmem:[#allocation220_spill] sm:$0xff] }
 0x6ee   : > { %v6370_v7 = vsub.f32 %v14602_v62, %v6095_v1  ;;  %8777 = vlog2.f32 %v5585_v8 }
 0x6ef   : > { %v8768_v18 = vpop.eup %8767  ;;  %v6371_v39 = vsub.f32 %v14604_v40, %v6097_v37  ;;  %v14677_v37 = vld [vmem:[#allocation206_spill] sm:$0xff] }
 0x6f0   : > { %v8770_v35 = vpop.eup %8769  ;;  %6626 = vst.msk [vmem:[%s11925_s16 + $0x760] sm:$0xff] %vm3317_vm8, %v6370_v7  ;;  %v6099_v54 = vmul.f32 0.6931472, %v8768_v18  ;;  %v5588_v13 = vpop.xlane.xlu0 %5587 }
 0x6f1   : > { %6627 = vst.msk [vmem:[%s11925_s16 + $0x768] sm:$0xff] %vm3317_vm8, %v6371_v39  ;;  %v6101_v58 = vmul.f32 0.6931472, %v8770_v35  ;;  %8779 = vlog2.f32 %v5588_v13  ;;  %v5591_v25 = vpop.xlane.xlu1 %5590  ;;  %v14678_v35 = vld [vmem:[#allocation53_spill] sm:$0xff] }
 0x6f2   : > { %v6372_v44 = vsub.f32 %v14666_v9, %v6099_v54  ;;  %8781 = vlog2.f32 %v5591_v25 }
 0x6f3   : > { %v8772_v62 = vpop.eup %8771  ;;  %v6373_v3 = vsub.f32 %v14667_v36, %v6101_v58  ;;  %v14679_v58 = vld [vmem:[#allocation208_spill] sm:$0xff] }
 0x6f4   : > { %v8774_v57 = vpop.eup %8773  ;;  %6628 = vst.msk [vmem:[%s11925_s16 + $0x770] sm:$0xff] %vm3317_vm8, %v6372_v44  ;;  %v6103_v40 = vmul.f32 0.6931472, %v8772_v62  ;;  %v5594_v47 = vpop.xlane.xlu0 %5593  ;;  %v14680_v36 = vld [vmem:[#allocation56_spill] sm:$0xff] }
 0x6f5   : > { %6629 = vst.msk [vmem:[%s11925_s16 + $0x778] sm:$0xff] %vm3317_vm8, %v6373_v3  ;;  %v6105_v17 = vmul.f32 0.6931472, %v8774_v57  ;;  %8783 = vlog2.f32 %v5594_v47  ;;  %v5597_v31 = vpop.xlane.xlu1 %5596 }
 0x6f6   : > { %v6374_v56 = vsub.f32 %v14668_v52, %v6103_v40  ;;  %8785 = vlog2.f32 %v5597_v31  ;;  %v14681_v40 = vld [vmem:[#allocation55_spill] sm:$0xff] }
 0x6f7   : > { %v8776_v38 = vpop.eup %8775  ;;  %v6375_v34 = vsub.f32 %v14669_v24, %v6105_v17 }
 0x6f8   : > { %v8778_v41 = vpop.eup %8777  ;;  %6630 = vst.msk [vmem:[%s11925_s16 + $0x780] sm:$0xff] %vm3317_vm8, %v6374_v56  ;;  %v6107_v4 = vmul.f32 0.6931472, %v8776_v38  ;;  %v5600_v32 = vpop.xlane.xlu0 %5599  ;;  %v14682_v38 = vld [vmem:[#allocation221_spill] sm:$0xff] }
 0x6f9   : > { %6631 = vst.msk [vmem:[%s11925_s16 + $0x788] sm:$0xff] %vm3317_vm8, %v6375_v34  ;;  %v6109_v43 = vmul.f32 0.6931472, %v8778_v41  ;;  %8787 = vlog2.f32 %v5600_v32  ;;  %v5603_v50 = vpop.xlane.xlu1 %5602 }
 0x6fa   : > { %v6376_v55 = vsub.f32 %v14670_v16, %v6107_v4  ;;  %8789 = vlog2.f32 %v5603_v50 }
 0x6fb   : > { %v8780_v11 = vpop.eup %8779  ;;  %v6377_v45 = vsub.f32 %v14671_v48, %v6109_v43 }
 0x6fc   : > { %v8782_v15 = vpop.eup %8781  ;;  %6632 = vst.msk [vmem:[%s11925_s16 + $0x790] sm:$0xff] %vm3317_vm8, %v6376_v55  ;;  %v6111_v29 = vmul.f32 0.6931472, %v8780_v11  ;;  %v5606_v49 = vpop.xlane.xlu0 %5605 }
 0x6fd   : > { %6633 = vst.msk [vmem:[%s11925_s16 + $0x798] sm:$0xff] %vm3317_vm8, %v6377_v45  ;;  %v6113_v10 = vmul.f32 0.6931472, %v8782_v15  ;;  %8791 = vlog2.f32 %v5606_v49  ;;  %v5609_v51 = vpop.xlane.xlu1 %5608 }
 0x6fe   : > { %v6378_v42 = vsub.f32 %v14672_v33, %v6111_v29  ;;  %8793 = vlog2.f32 %v5609_v51 }
 0x6ff   : > { %v8784_v53 = vpop.eup %8783  ;;  %v6379_v30 = vsub.f32 %v14673_v6, %v6113_v10 }
 0x700   : > { %v8786_v5 = vpop.eup %8785  ;;  %6634 = vst.msk [vmem:[%s11925_s16 + $0x7a0] sm:$0xff] %vm3317_vm8, %v6378_v42  ;;  %v6115_v19 = vmul.f32 0.6931472, %v8784_v53  ;;  %v5612_v21 = vpop.xlane.xlu0 %5611 }
 0x701   : > { %6635 = vst.msk [vmem:[%s11925_s16 + $0x7a8] sm:$0xff] %vm3317_vm8, %v6379_v30  ;;  %v6117_v23 = vmul.f32 0.6931472, %v8786_v5  ;;  %8795 = vlog2.f32 %v5612_v21  ;;  %v5615_v14 = vpop.xlane.xlu1 %5614 }
 0x702   : > { %v6380_v22 = vsub.f32 %v14674_v61, %v6115_v19  ;;  %8797 = vlog2.f32 %v5615_v14 }
 0x703   : > { %v8788_v60 = vpop.eup %8787  ;;  %v6381_v28 = vsub.f32 %v14675_v12, %v6117_v23 }
 0x704   : > { %v8790_v26 = vpop.eup %8789  ;;  %6636 = vst.msk [vmem:[%s11925_s16 + $0x7b0] sm:$0xff] %vm3317_vm8, %v6380_v22  ;;  %v6119_v20 = vmul.f32 0.6931472, %v8788_v60  ;;  %v5618_v59 = vpop.xlane.xlu0 %5617 }
 0x705   : > { %6637 = vst.msk [vmem:[%s11925_s16 + $0x7b8] sm:$0xff] %vm3317_vm8, %v6381_v28  ;;  %v6121_v63 = vmul.f32 0.6931472, %v8790_v26  ;;  %8799 = vlog2.f32 %v5618_v59  ;;  %v5621_v46 = vpop.xlane.xlu1 %5620 }
 0x706   : > { %v6382_v1 = vsub.f32 %v14676_v2, %v6119_v20  ;;  %8801 = vlog2.f32 %v5621_v46 }
 0x707   : > { %v8792_v0 = vpop.eup %8791  ;;  %v6383_v8 = vsub.f32 %v14677_v37, %v6121_v63 }
 0x708   : > { %v8794_v7 = vpop.eup %8793  ;;  %6638 = vst.msk [vmem:[%s11925_s16 + $0x7c0] sm:$0xff] %vm3317_vm8, %v6382_v1  ;;  %v6123_v18 = vmul.f32 0.6931472, %v8792_v0 }
 0x709   : > { %6639 = vst.msk [vmem:[%s11925_s16 + $0x7c8] sm:$0xff] %vm3317_vm8, %v6383_v8  ;;  %v6125_v39 = vmul.f32 0.6931472, %v8794_v7 }
 0x70a   : > { %v6384_v54 = vsub.f32 %v14678_v35, %v6123_v18 }
 0x70b   : > { %v8796_v13 = vpop.eup %8795  ;;  %v6385_v25 = vsub.f32 %v14679_v58, %v6125_v39 }
 0x70c   : > { %v8798_v9 = vpop.eup %8797  ;;  %6640 = vst.msk [vmem:[%s11925_s16 + $0x7d0] sm:$0xff] %vm3317_vm8, %v6384_v54  ;;  %v6127_v44 = vmul.f32 0.6931472, %v8796_v13 }
 0x70d   : > { %6641 = vst.msk [vmem:[%s11925_s16 + $0x7d8] sm:$0xff] %vm3317_vm8, %v6385_v25  ;;  %v6129_v62 = vmul.f32 0.6931472, %v8798_v9 }
 0x70e   : > { %v6386_v3 = vsub.f32 %v14680_v36, %v6127_v44 }
 0x70f   : > { %v8800_v57 = vpop.eup %8799  ;;  %v6387_v47 = vsub.f32 %v14681_v40, %v6129_v62 }
 0x710   : > { %v8802_v17 = vpop.eup %8801  ;;  %6642 = vst.msk [vmem:[%s11925_s16 + $0x7e0] sm:$0xff] %vm3317_vm8, %v6386_v3  ;;  %v6131_v31 = vmul.f32 0.6931472, %v8800_v57 }
 0x711   : > { %6643 = vst.msk [vmem:[%s11925_s16 + $0x7e8] sm:$0xff] %vm3317_vm8, %v6387_v47  ;;  %v6133_v52 = vmul.f32 0.6931472, %v8802_v17 }
 0x712   : > { %v6388_v56 = vsub.f32 %v14636_v27, %v6131_v31 }
 0x713   : > { %v6389_v24 = vsub.f32 %v14682_v38, %v6133_v52 }
 0x714   : > { %6644 = vst.msk [vmem:[%s11925_s16 + $0x7f0] sm:$0xff] %vm3317_vm8, %v6388_v56 }
 0x715   : > { %6645 = vst.msk [vmem:[%s11925_s16 + $0x7f8] sm:$0xff] %vm3317_vm8, %v6389_v24 }
 0x716 PF: > { %p13_p6 = scmp.ge.s32.totalorder %s8968_s20, 4   ;;  %s14683_s9 = smov %s8891_s10 }
 0x717   : > { %s14684_s10 = smov %s8895_s11  ;;  %s14685_s11 = smov %s8994_s7 }
 0x718   : > { %s14686_s12 = smov %s8968_s20  ;;  %15 = sbr.rel (!%p13_p6) target bundleno = 4 (0x4), region = 75 }
 0x71f   :  { %6668 = vsyncpa [#allocation3], 1 }
 0x720   :  { %6670 = vsyncpa [#allocation3 + $0x1], 1 }
 0x721   :  { %6671 = vsyncpa [#allocation5], 1 }

</bundles_post_ra>
